<compile_context>
chip_gen: v7x
topology: tpu7x:2x2x1
jax: 0.10.0
libtpu: 0.0.40
codegen_flags: <defaults>
</compile_context>

<pallas_src>
import math
from functools import partial

import jax
import jax.numpy as jnp
from jax.experimental import pallas as pl
from jax.experimental.pallas import tpu as pltpu


def _default_vmem_limit():
    """Generation-aware VMEM cap (~5/8 of physical, max 96 MiB, min 16 MiB)."""
    cap = 128 * 1024 * 1024
    try:
        info = pltpu.get_tpu_info()
        cap = int(getattr(info, "vmem_capacity_bytes", cap))
    except Exception:
        pass
    return max(16 * 1024 * 1024, min((cap * 5) // 8, 96 * 1024 * 1024))


VMEM_LIMIT = _default_vmem_limit()


# ----------------------------------------------------------------------------
# tiling helpers
# ----------------------------------------------------------------------------
def _row_tile(m):
    # prefer multiples of 16 (bf16 sublane packing), as large as practical
    for t in (1024, 512, 256, 128, 64, 32, 16, 8):
        if m % t == 0:
            return t
    return m  # fall back to full (allowed when block == full dim)


def _ln_rows(x, g, b):
    mu = jnp.mean(x, axis=-1, keepdims=True)
    var = jnp.mean((x - mu) ** 2, axis=-1, keepdims=True)
    return (x - mu) * jax.lax.rsqrt(var + 1e-5) * g + b


# ----------------------------------------------------------------------------
# plain linear (in-proj / out-proj / gcn stand-in)
# ----------------------------------------------------------------------------
def _linear_kernel(x_ref, w_ref, b_ref, o_ref, *, relu):
    y = jnp.dot(x_ref[...].astype(jnp.bfloat16), w_ref[...],
                preferred_element_type=jnp.float32) + b_ref[...]
    if relu:
        y = jnp.maximum(y, 0.0)
    o_ref[...] = y.astype(o_ref.dtype)


def pallas_linear(x, w, b, *, relu=False, out_dtype=jnp.bfloat16):
    """x: [..., K] @ w(bf16): [K, N] + b(f32): [N], optional fused ReLU.

    Rows-only grid with a constant-index, fully VMEM-resident weight block when it
    fits (one weight DMA for the whole grid); column-tiled fallback otherwise.
    """
    orig = x.shape
    K = orig[-1]
    x2 = x.reshape(-1, K)
    Mr = x2.shape[0]
    Nout = w.shape[1]
    TM = _row_tile(Mr)
    b2 = b.reshape(1, Nout)
    w_bytes = K * Nout * jnp.dtype(w.dtype).itemsize

    if w_bytes <= 24 * 1024 * 1024:
        out = pl.pallas_call(
            partial(_linear_kernel, relu=relu),
            grid=(Mr // TM,),
            in_specs=[pl.BlockSpec((TM, K), lambda i: (i, 0)),
                      pl.BlockSpec((K, Nout), lambda i: (0, 0)),   # constant index -> fetched once
                      pl.BlockSpec((1, Nout), lambda i: (0, 0))],
            out_specs=pl.BlockSpec((TM, Nout), lambda i: (i, 0)),
            out_shape=jax.ShapeDtypeStruct((Mr, Nout), out_dtype),
            compiler_params=pltpu.CompilerParams(
                dimension_semantics=("parallel",), vmem_limit_bytes=VMEM_LIMIT),
        )(x2, w, b2)
    else:
        # column-tiled fallback: columns on the OUTER axis so each weight slab is
        # fetched once while all row tiles stream past it.
        TN = next((t for t in (512, 256, 128) if Nout % t == 0), Nout)
        out = pl.pallas_call(
            partial(_linear_kernel, relu=relu),
            grid=(Nout // TN, Mr // TM),
            in_specs=[pl.BlockSpec((TM, K), lambda j, i: (i, 0)),
                      pl.BlockSpec((K, TN), lambda j, i: (0, j)),
                      pl.BlockSpec((1, TN), lambda j, i: (0, j))],
            out_specs=pl.BlockSpec((TM, TN), lambda j, i: (i, j)),
            out_shape=jax.ShapeDtypeStruct((Mr, Nout), out_dtype),
            compiler_params=pltpu.CompilerParams(
                dimension_semantics=("parallel", "parallel"),
                vmem_limit_bytes=VMEM_LIMIT),
        )(x2, w, b2)
    return out.reshape(orig[:-1] + (Nout,))


# ----------------------------------------------------------------------------
# fused FFN + residual + LayerNorm (Dff intermediate never touches HBM)
# ----------------------------------------------------------------------------
def _ffn_ln_kernel(x_ref, w1_ref, b1_ref, w2_ref, b2_ref, g_ref, bb_ref, o_ref):
    x = x_ref[...].astype(jnp.float32)
    h = jnp.dot(x_ref[...].astype(jnp.bfloat16), w1_ref[...],
                preferred_element_type=jnp.float32) + b1_ref[...]
    h = jnp.maximum(h, 0.0)
    y = jnp.dot(h.astype(jnp.bfloat16), w2_ref[...],
                preferred_element_type=jnp.float32) + b2_ref[...]
    o_ref[...] = _ln_rows(y + x, g_ref[...], bb_ref[...]).astype(o_ref.dtype)


def pallas_ffn_ln(x, w1, b1, w2, b2, g, beta):
    orig = x.shape
    D = orig[-1]
    Dff = w1.shape[1]
    x2 = x.reshape(-1, D)
    Mr = x2.shape[0]
    TM = _row_tile(Mr)
    out = pl.pallas_call(
        _ffn_ln_kernel,
        grid=(Mr // TM,),
        in_specs=[pl.BlockSpec((TM, D), lambda i: (i, 0)),
                  pl.BlockSpec((D, Dff), lambda i: (0, 0)),
                  pl.BlockSpec((1, Dff), lambda i: (0, 0)),
                  pl.BlockSpec((Dff, D), lambda i: (0, 0)),
                  pl.BlockSpec((1, D), lambda i: (0, 0)),
                  pl.BlockSpec((1, D), lambda i: (0, 0)),
                  pl.BlockSpec((1, D), lambda i: (0, 0))],
        out_specs=pl.BlockSpec((TM, D), lambda i: (i, 0)),
        out_shape=jax.ShapeDtypeStruct((Mr, D), jnp.bfloat16),
        compiler_params=pltpu.CompilerParams(
            dimension_semantics=("parallel",), vmem_limit_bytes=VMEM_LIMIT),
    )(x2, w1, b1.reshape(1, Dff), w2, b2.reshape(1, D),
      g.reshape(1, D), beta.reshape(1, D))
    return out.reshape(orig)


# ----------------------------------------------------------------------------
# fused attention blocks: projections + MHA + out-proj + residual + LN in one kernel
# ----------------------------------------------------------------------------
def _make_bias(Sq, Sk, len_ref, causal, mask_kv):
    if not (causal or mask_kv):
        return None
    bias = jnp.zeros((Sq, Sk), jnp.float32)
    kidx = jax.lax.broadcasted_iota(jnp.int32, (Sq, Sk), 1)
    if mask_kv:
        valid = len_ref[pl.program_id(0)]
        bias = jnp.where(kidx >= valid, jnp.float32(-1e9), bias)
    if causal:
        qidx = jax.lax.broadcasted_iota(jnp.int32, (Sq, Sk), 0)
        bias = jnp.where(kidx > qidx, jnp.float32(-1e9), bias)
    return bias


def _mha_out(q, k, v, wo_ref, bo_ref, bias, num_heads, scale):
    """Multi-head attention + out-projection.

    Per head: scaled-q scores, softmax (approx reciprocal on the small Sq x Dh
    output), then the head's (Sq, Dh) output is immediately contracted with the
    matching (Dh, D) slab of Wo, accumulating a lane-dense (Sq, D) result — no
    narrow per-head lane stores and no concat.
    """
    Sq, D = q.shape
    Dh = D // num_heads
    y = jnp.zeros((Sq, wo_ref.shape[1]), jnp.float32) + bo_ref[...]
    for h in range(num_heads):                       # static unroll over heads
        lo = h * Dh
        qh = (q[:, lo:lo + Dh] * scale).astype(jnp.bfloat16)   # scale folded into q
        kh = k[:, lo:lo + Dh].astype(jnp.bfloat16)
        vh = v[:, lo:lo + Dh].astype(jnp.bfloat16)
        s = jax.lax.dot_general(qh, kh, (((1,), (1,)), ((), ())),
                                preferred_element_type=jnp.float32)
        if bias is not None:
            s = s + bias
        m = jnp.max(s, axis=-1, keepdims=True)
        p = jnp.exp(s - m)
        l = jnp.sum(p, axis=-1, keepdims=True)
        oh = jnp.dot(p.astype(jnp.bfloat16), vh, preferred_element_type=jnp.float32)
        oh = oh * pl.reciprocal(l, approx=True)       # scale Sq*Dh elems, not Sq*Sk
        y = y + jnp.dot(oh.astype(jnp.bfloat16), wo_ref[lo:lo + Dh, :],
                        preferred_element_type=jnp.float32)
    return y


def _self_attn_block_kernel(len_ref, h_ref, wqkv_ref, bqkv_ref, wo_ref, bo_ref,
                            g_ref, bb_ref, o_ref, *, num_heads, scale, causal,
                            mask_kv, d_model):
    x = h_ref[0].astype(jnp.float32)                              # (S, D)
    qkv = jnp.dot(h_ref[0].astype(jnp.bfloat16), wqkv_ref[...],
                  preferred_element_type=jnp.float32) + bqkv_ref[...]
    q = qkv[:, :d_model]
    k = qkv[:, d_model:2 * d_model]
    v = qkv[:, 2 * d_model:]
    bias = _make_bias(q.shape[0], k.shape[0], len_ref, causal, mask_kv)
    y = _mha_out(q, k, v, wo_ref, bo_ref, bias, num_heads, scale)
    o_ref[0] = _ln_rows(y + x, g_ref[...], bb_ref[...]).astype(o_ref.dtype)


def self_attention_block(p, h, lengths, ln_g, ln_b, *, num_heads, causal, mask_kv):
    """LayerNorm(h + MHA_self(h)) fused into one kernel per batch element."""
    N, S, D = h.shape
    scale = 1.0 / math.sqrt(D // num_heads)
    return pl.pallas_call(
        partial(_self_attn_block_kernel, num_heads=num_heads, scale=scale,
                causal=causal, mask_kv=mask_kv, d_model=D),
        grid_spec=pltpu.PrefetchScalarGridSpec(
            num_scalar_prefetch=1, grid=(N,),
            in_specs=[pl.BlockSpec((1, S, D), lambda b, lens: (b, 0, 0)),
                      pl.BlockSpec((D, 3 * D), lambda b, lens: (0, 0)),
                      pl.BlockSpec((1, 3 * D), lambda b, lens: (0, 0)),
                      pl.BlockSpec((D, D), lambda b, lens: (0, 0)),
                      pl.BlockSpec((1, D), lambda b, lens: (0, 0)),
                      pl.BlockSpec((1, D), lambda b, lens: (0, 0)),
                      pl.BlockSpec((1, D), lambda b, lens: (0, 0))],
            out_specs=pl.BlockSpec((1, S, D), lambda b, lens: (b, 0, 0))),
        out_shape=jax.ShapeDtypeStruct((N, S, D), jnp.bfloat16),
        compiler_params=pltpu.CompilerParams(
            dimension_semantics=("parallel",), vmem_limit_bytes=VMEM_LIMIT),
    )(lengths, h, p["w_qkv"], p["b_qkv"].reshape(1, -1), p["w_o"],
      p["b_o"].reshape(1, -1), ln_g.reshape(1, -1), ln_b.reshape(1, -1))


def _cross_attn_block_kernel(len_ref, xq_ref, mem_ref, wq_ref, bq_ref, wkv_ref,
                             bkv_ref, wo_ref, bo_ref, g_ref, bb_ref, o_ref,
                             *, num_heads, scale, mask_kv, d_model):
    xq = xq_ref[0].astype(jnp.float32)                            # (Sq, D)
    q = jnp.dot(xq_ref[0].astype(jnp.bfloat16), wq_ref[...],
                preferred_element_type=jnp.float32) + bq_ref[...]
    kv = jnp.dot(mem_ref[0].astype(jnp.bfloat16), wkv_ref[...],
                 preferred_element_type=jnp.float32) + bkv_ref[...]
    k = kv[:, :d_model]
    v = kv[:, d_model:]
    bias = _make_bias(q.shape[0], k.shape[0], len_ref, False, mask_kv)
    y = _mha_out(q, k, v, wo_ref, bo_ref, bias, num_heads, scale)
    o_ref[0] = _ln_rows(y + xq, g_ref[...], bb_ref[...]).astype(o_ref.dtype)


def cross_attention_block(p, x_q, memory, lengths, ln_g, ln_b, *, num_heads, mask_kv=False):
    """LayerNorm(x_q + MHA(x_q queries over memory)) fused into one kernel per batch."""
    N, Sq, D = x_q.shape
    Sk = memory.shape[1]
    scale = 1.0 / math.sqrt(D // num_heads)
    return pl.pallas_call(
        partial(_cross_attn_block_kernel, num_heads=num_heads, scale=scale,
                mask_kv=mask_kv, d_model=D),
        grid_spec=pltpu.PrefetchScalarGridSpec(
            num_scalar_prefetch=1, grid=(N,),
            in_specs=[pl.BlockSpec((1, Sq, D), lambda b, lens: (b, 0, 0)),
                      pl.BlockSpec((1, Sk, D), lambda b, lens: (b, 0, 0)),
                      pl.BlockSpec((D, D), lambda b, lens: (0, 0)),
                      pl.BlockSpec((1, D), lambda b, lens: (0, 0)),
                      pl.BlockSpec((D, 2 * D), lambda b, lens: (0, 0)),
                      pl.BlockSpec((1, 2 * D), lambda b, lens: (0, 0)),
                      pl.BlockSpec((D, D), lambda b, lens: (0, 0)),
                      pl.BlockSpec((1, D), lambda b, lens: (0, 0)),
                      pl.BlockSpec((1, D), lambda b, lens: (0, 0)),
                      pl.BlockSpec((1, D), lambda b, lens: (0, 0))],
            out_specs=pl.BlockSpec((1, Sq, D), lambda b, lens: (b, 0, 0))),
        out_shape=jax.ShapeDtypeStruct((N, Sq, D), jnp.bfloat16),
        compiler_params=pltpu.CompilerParams(
            dimension_semantics=("parallel",), vmem_limit_bytes=VMEM_LIMIT),
    )(lengths, x_q, memory, p["w_q"], p["b_q"].reshape(1, -1),
      p["w_kv"], p["b_kv"].reshape(1, -1), p["w_o"], p["b_o"].reshape(1, -1),
      ln_g.reshape(1, -1), ln_b.reshape(1, -1))


# ----------------------------------------------------------------------------
# Model building blocks (glue in JAX, hot paths in Pallas); layout [N, S, D]
# ----------------------------------------------------------------------------
def run_encoder(enc, x, lengths, num_heads):
    h = pallas_linear(x, enc["in_w"], enc["in_b"])
    for layer in enc["layers"]:
        h = self_attention_block(layer["self_attn"], h, lengths,
                                 layer["ln1_g"], layer["ln1_b"],
                                 num_heads=num_heads, causal=False, mask_kv=True)
        h = pallas_ffn_ln(h, layer["ff1_w"], layer["ff1_b"],
                          layer["ff2_w"], layer["ff2_b"],
                          layer["ln2_g"], layer["ln2_b"])
    return h


def positional_encoding(S, D):
    pos = jnp.arange(S, dtype=jnp.float32)[:, None]
    i = jnp.arange(0, D, 2, dtype=jnp.float32)
    div = jnp.exp(-math.log(10000.0) * i / D)
    pe = jnp.zeros((S, D), jnp.float32)
    pe = pe.at[:, 0::2].set(jnp.sin(pos * div))
    pe = pe.at[:, 1::2].set(jnp.cos(pos * div))
    return pe  # [S, D]


def mfs_forward(params, x, audio_embeddings, gesture_labels, lengths, *, num_heads):
    """
    x:                [N, S, C, F, V, M]   skeleton snippets
    audio_embeddings: [N, S, 1, audio_embed_dim]
    gesture_labels:   [N, S, gesture_dim]
    lengths:          [N]                  valid lengths per batch element
    returns:          [N, S, gesture_dim]
    """
    N, S, C, Fr, V, M = x.shape
    lengths = lengths.astype(jnp.int32)

    # joints_embed (synthetic gcns_model stand-in).
    # TODO(synk): real gcns_model (ST-GCN) is external to the reference; stand-in = pool + Linear+ReLU.
    xp = x.reshape(N * S, C, Fr * V * M).mean(axis=-1)                  # [N*S, C]
    e = pallas_linear(xp, params["gcn_w"], params["gcn_b"], relu=True)  # [N*S, Dj] bf16
    e = e.reshape(N, S, -1).astype(jnp.float32)

    audio = audio_embeddings.squeeze(2)                                 # [N, S, Da]
    audio = audio + positional_encoding(S, audio.shape[-1])[None]
    e = e + positional_encoding(S, e.shape[-1])[None]

    # src_key_padding_mask is generated in-kernel from `lengths` (no bias tensors in HBM)
    video_h = run_encoder(params["video_encoder"], e, lengths, num_heads)
    audio_h = run_encoder(params["audio_encoder"], audio, lengths, num_heads)

    # reference asserts video_h.shape == (S, N, joints_embed_dim) (seq-major, and
    # only consistent when joints_embed_dim == embed_dim); batch-major analogue:
    D = params["video_encoder"]["in_w"].shape[1]
    assert video_h.shape == (N, S, D)

    # multi-modal attention: audio queries attend over video memory, residual + LN
    # (no memory padding mask, matching the reference which passes none here)
    combined_memory = cross_attention_block(
        params["mma"]["attn"], audio_h, video_h, lengths,
        params["mma"]["ln_g"], params["mma"]["ln_b"],
        num_heads=num_heads, mask_kv=False)

    # transformer decoder over gesture labels with the combined memory
    y = pallas_linear(gesture_labels, params["decoder"]["in_w"], params["decoder"]["in_b"])
    for layer in params["decoder"]["layers"]:
        y = self_attention_block(layer["self_attn"], y, lengths,
                                 layer["ln1_g"], layer["ln1_b"],
                                 num_heads=num_heads, causal=True, mask_kv=False)
        y = cross_attention_block(layer["cross_attn"], y, combined_memory, lengths,
                                  layer["ln2_g"], layer["ln2_b"],
                                  num_heads=num_heads, mask_kv=False)
        y = pallas_ffn_ln(y, layer["ff1_w"], layer["ff1_b"],
                          layer["ff2_w"], layer["ff2_b"],
                          layer["ln3_g"], layer["ln3_b"])
    preds = pallas_linear(y, params["decoder"]["out_w"], params["decoder"]["out_b"],
                          out_dtype=jnp.float32)
    return preds                                                        # [N, S, gesture_dim]


# ----------------------------------------------------------------------------
# Deterministic parameter initialization
# (xavier-uniform weights stored in bf16, zero biases in f32; QKV / KV weights
#  pre-concatenated so no runtime concat copies in the forward pass)
# ----------------------------------------------------------------------------
def xavier(key, fan_in, fan_out, dtype=jnp.bfloat16):
    limit = math.sqrt(6.0 / (fan_in + fan_out))
    w = jax.random.uniform(key, (fan_in, fan_out), jnp.float32, -limit, limit)
    return w.astype(dtype)


def init_self_attn_params(key, D):
    ks = jax.random.split(key, 4)
    return dict(
        w_qkv=jnp.concatenate([xavier(ks[0], D, D), xavier(ks[1], D, D),
                               xavier(ks[2], D, D)], axis=1),           # [D, 3D] bf16
        b_qkv=jnp.zeros((3 * D,), jnp.float32),
        w_o=xavier(ks[3], D, D), b_o=jnp.zeros((D,), jnp.float32))


def init_cross_attn_params(key, D):
    ks = jax.random.split(key, 4)
    return dict(
        w_q=xavier(ks[0], D, D), b_q=jnp.zeros((D,), jnp.float32),
        w_kv=jnp.concatenate([xavier(ks[1], D, D), xavier(ks[2], D, D)], axis=1),
        b_kv=jnp.zeros((2 * D,), jnp.float32),
        w_o=xavier(ks[3], D, D), b_o=jnp.zeros((D,), jnp.float32))


def init_encoder_layer(key, D, Dff):
    ka, kf1, kf2 = jax.random.split(key, 3)
    return dict(self_attn=init_self_attn_params(ka, D),
                ln1_g=jnp.ones((D,), jnp.float32), ln1_b=jnp.zeros((D,), jnp.float32),
                ff1_w=xavier(kf1, D, Dff), ff1_b=jnp.zeros((Dff,), jnp.float32),
                ff2_w=xavier(kf2, Dff, D), ff2_b=jnp.zeros((D,), jnp.float32),
                ln2_g=jnp.ones((D,), jnp.float32), ln2_b=jnp.zeros((D,), jnp.float32))


def init_encoder(key, in_dim, D, Dff, n_layers):
    keys = jax.random.split(key, n_layers + 1)
    return dict(in_w=xavier(keys[0], in_dim, D), in_b=jnp.zeros((D,), jnp.float32),
                layers=[init_encoder_layer(k, D, Dff) for k in keys[1:]])


def init_decoder_layer(key, D, Dff):
    ksa, kca, kf1, kf2 = jax.random.split(key, 4)
    return dict(self_attn=init_self_attn_params(ksa, D),
                ln1_g=jnp.ones((D,), jnp.float32), ln1_b=jnp.zeros((D,), jnp.float32),
                cross_attn=init_cross_attn_params(kca, D),
                ln2_g=jnp.ones((D,), jnp.float32), ln2_b=jnp.zeros((D,), jnp.float32),
                ff1_w=xavier(kf1, D, Dff), ff1_b=jnp.zeros((Dff,), jnp.float32),
                ff2_w=xavier(kf2, Dff, D), ff2_b=jnp.zeros((D,), jnp.float32),
                ln3_g=jnp.ones((D,), jnp.float32), ln3_b=jnp.zeros((D,), jnp.float32))


def init_decoder(key, gesture_dim, D, Dff, n_layers):
    keys = jax.random.split(key, n_layers + 2)
    return dict(in_w=xavier(keys[0], gesture_dim, D), in_b=jnp.zeros((D,), jnp.float32),
                layers=[init_decoder_layer(k, D, Dff) for k in keys[2:]],
                out_w=xavier(keys[1], D, gesture_dim),
                out_b=jnp.zeros((gesture_dim,), jnp.float32))


def init_mfs_params(key, C, joints_dim, audio_dim, D, gesture_dim, n_layers, ff_dim):
    kg, ka, kv, km, kd = jax.random.split(key, 5)
    return dict(
        gcn_w=xavier(kg, C, joints_dim), gcn_b=jnp.zeros((joints_dim,), jnp.float32),
        audio_encoder=init_encoder(ka, audio_dim, D, ff_dim, n_layers),
        video_encoder=init_encoder(kv, joints_dim, D, ff_dim, n_layers),
        mma=dict(attn=init_cross_attn_params(km, D),
                 ln_g=jnp.ones((D,), jnp.float32), ln_b=jnp.zeros((D,), jnp.float32)),
        decoder=init_decoder(kd, gesture_dim, D, ff_dim, n_layers),
    )


# ----------------------------------------------------------------------------
if __name__ == "__main__":
    # small synthetic config (original defaults are 256/512/512, 8 heads, 6 layers)
    N, S, C, Fr, V, M = 2, 8, 4, 4, 5, 1
    JOINTS_EMBED_DIM = 32
    AUDIO_EMBED_DIM = 32
    EMBED_DIM = 32
    GESTURE_DIM = 4          # len(classes)
    NUM_HEADS = 8            # as hardcoded in MFS.__init__
    NUM_LAYERS = 2           # reduced from 6 for the small synthetic config
    FF_DIM = 64

    root = jax.random.PRNGKey(0)
    kp, kx, ka, kg = jax.random.split(root, 4)
    params = init_mfs_params(kp, C, JOINTS_EMBED_DIM, AUDIO_EMBED_DIM, EMBED_DIM,
                             GESTURE_DIM, NUM_LAYERS, FF_DIM)

    x = jax.random.normal(kx, (N, S, C, Fr, V, M), jnp.float32)
    audio_embeddings = jax.random.normal(ka, (N, S, 1, AUDIO_EMBED_DIM), jnp.float32)
    gesture_labels = jax.random.normal(kg, (N, S, GESTURE_DIM), jnp.float32)
    lengths = jnp.array([S, S - 3], dtype=jnp.int32)

    fwd = jax.jit(partial(mfs_forward, num_heads=NUM_HEADS))
    out = fwd(params, x, audio_embeddings, gesture_labels, lengths)
    jax.block_until_ready(out)
    assert out.shape == (N, S, GESTURE_DIM)
    assert bool(jnp.all(jnp.isfinite(out)))
    print("KERNEL_OK")
</pallas_src>

<mosaic_0001>
module attributes {stable_mosaic.version = 11 : i64} {
  func.func @_linear_kernel(%arg0: i32, %arg1: memref<16x4xf32, #tpu.memory_space<vmem>>, %arg2: memref<4x32xbf16, #tpu.memory_space<vmem>>, %arg3: memref<1x32xf32, #tpu.memory_space<vmem>>, %arg4: memref<16x32xbf16, #tpu.memory_space<vmem>>) attributes {dimension_semantics = [#tpu.dimension_semantics<parallel>], iteration_bounds = array<i64: 1>, scalar_prefetch = 0 : i64, scratch_operands = 0 : i64, tpu.core_type = #tpu.core_type<tc>, window_params = [{transform_indices = @transform_0, window_bounds = array<i64: 16, 4>}, {pipeline_mode = #tpu.pipeline_mode<synchronous>, transform_indices = @transform_1, window_bounds = array<i64: 4, 32>}, {pipeline_mode = #tpu.pipeline_mode<synchronous>, transform_indices = @transform_2, window_bounds = array<i64: 1, 32>}, {transform_indices = @transform_3, window_bounds = array<i64: 16, 32>}]} {
    %c0 = arith.constant 0 : index
    %c0_0 = arith.constant 0 : index
    %0 = vector.load %arg1[%c0, %c0_0] : memref<16x4xf32, #tpu.memory_space<vmem>>, vector<16x4xf32>
    %1 = arith.truncf %0 : vector<16x4xf32> to vector<16x4xbf16>
    %c0_1 = arith.constant 0 : index
    %c0_2 = arith.constant 0 : index
    %2 = vector.load %arg2[%c0_1, %c0_2] : memref<4x32xbf16, #tpu.memory_space<vmem>>, vector<4x32xbf16>
    %cst = arith.constant dense<0.000000e+00> : vector<16x32xf32>
    %3 = tpu.matmul %1, %2, %cst {dimension_numbers = #tpu.dot_dimension_numbers<[1], [0], [0], [1], [0, 0, 1, 1], [], []>} : vector<16x4xbf16>, vector<4x32xbf16>, vector<16x32xf32> -> vector<16x32xf32>
    %c0_3 = arith.constant 0 : index
    %c0_4 = arith.constant 0 : index
    %4 = vector.load %arg3[%c0_3, %c0_4] : memref<1x32xf32, #tpu.memory_space<vmem>>, vector<1x32xf32>
    %5 = vector.broadcast %4 : vector<1x32xf32> to vector<16x32xf32>
    %6 = arith.addf %3, %5 : vector<16x32xf32>
    %cst_5 = arith.constant 0.000000e+00 : f32
    %7 = vector.broadcast %cst_5 : f32 to vector<16x32xf32>
    %8 = arith.maximumf %6, %7 : vector<16x32xf32>
    %9 = arith.truncf %8 : vector<16x32xf32> to vector<16x32xbf16>
    %c0_6 = arith.constant 0 : index
    %c0_7 = arith.constant 0 : index
    %10 = vector.load %arg4[%c0_6, %c0_7] : memref<16x32xbf16, #tpu.memory_space<vmem>>, vector<16x32xbf16>
    tpu.vector_store %arg4[%c0_6, %c0_7], %9 {strides = array<i32>} : memref<16x32xbf16, #tpu.memory_space<vmem>>, vector<16x32xbf16>,
    return
  }
  func.func @transform_0(%arg0: i32) -> (i32, i32) {
    %c0_i32 = arith.constant 0 : i32
    %c0_i32_0 = arith.constant 0 : i32
    return %arg0, %c0_i32 : i32, i32
  }
  func.func @transform_1(%arg0: i32) -> (i32, i32) {
    %c0_i32 = arith.constant 0 : i32
    %c0_i32_0 = arith.constant 0 : i32
    %c0_i32_1 = arith.constant 0 : i32
    return %c0_i32, %c0_i32_0 : i32, i32
  }
  func.func @transform_2(%arg0: i32) -> (i32, i32) {
    %c0_i32 = arith.constant 0 : i32
    %c0_i32_0 = arith.constant 0 : i32
    %c0_i32_1 = arith.constant 0 : i32
    return %c0_i32, %c0_i32_0 : i32, i32
  }
  func.func @transform_3(%arg0: i32) -> (i32, i32) {
    %c0_i32 = arith.constant 0 : i32
    %c0_i32_0 = arith.constant 0 : i32
    return %arg0, %c0_i32 : i32, i32
  }
}

module attributes {stable_mosaic.version = 11 : i64} {
  func.func @_linear_kernel(%arg0: i32, %arg1: memref<16x32xf32, #tpu.memory_space<vmem>>, %arg2: memref<32x32xbf16, #tpu.memory_space<vmem>>, %arg3: memref<1x32xf32, #tpu.memory_space<vmem>>, %arg4: memref<16x32xbf16, #tpu.memory_space<vmem>>) attributes {dimension_semantics = [#tpu.dimension_semantics<parallel>], iteration_bounds = array<i64: 1>, scalar_prefetch = 0 : i64, scratch_operands = 0 : i64, tpu.core_type = #tpu.core_type<tc>, window_params = [{transform_indices = @transform_0, window_bounds = array<i64: 16, 32>}, {pipeline_mode = #tpu.pipeline_mode<synchronous>, transform_indices = @transform_1, window_bounds = array<i64: 32, 32>}, {pipeline_mode = #tpu.pipeline_mode<synchronous>, transform_indices = @transform_2, window_bounds = array<i64: 1, 32>}, {transform_indices = @transform_3, window_bounds = array<i64: 16, 32>}]} {
    %c0 = arith.constant 0 : index
    %c0_0 = arith.constant 0 : index
    %0 = vector.load %arg1[%c0, %c0_0] : memref<16x32xf32, #tpu.memory_space<vmem>>, vector<16x32xf32>
    %1 = arith.truncf %0 : vector<16x32xf32> to vector<16x32xbf16>
    %c0_1 = arith.constant 0 : index
    %c0_2 = arith.constant 0 : index
    %2 = vector.load %arg2[%c0_1, %c0_2] : memref<32x32xbf16, #tpu.memory_space<vmem>>, vector<32x32xbf16>
    %cst = arith.constant dense<0.000000e+00> : vector<16x32xf32>
    %3 = tpu.matmul %1, %2, %cst {dimension_numbers = #tpu.dot_dimension_numbers<[1], [0], [0], [1], [0, 0, 1, 1], [], []>} : vector<16x32xbf16>, vector<32x32xbf16>, vector<16x32xf32> -> vector<16x32xf32>
    %c0_3 = arith.constant 0 : index
    %c0_4 = arith.constant 0 : index
    %4 = vector.load %arg3[%c0_3, %c0_4] : memref<1x32xf32, #tpu.memory_space<vmem>>, vector<1x32xf32>
    %5 = vector.broadcast %4 : vector<1x32xf32> to vector<16x32xf32>
    %6 = arith.addf %3, %5 : vector<16x32xf32>
    %7 = arith.truncf %6 : vector<16x32xf32> to vector<16x32xbf16>
    %c0_5 = arith.constant 0 : index
    %c0_6 = arith.constant 0 : index
    %8 = vector.load %arg4[%c0_5, %c0_6] : memref<16x32xbf16, #tpu.memory_space<vmem>>, vector<16x32xbf16>
    tpu.vector_store %arg4[%c0_5, %c0_6], %7 {strides = array<i32>} : memref<16x32xbf16, #tpu.memory_space<vmem>>, vector<16x32xbf16>,
    return
  }
  func.func @transform_0(%arg0: i32) -> (i32, i32) {
    %c0_i32 = arith.constant 0 : i32
    %c0_i32_0 = arith.constant 0 : i32
    return %arg0, %c0_i32 : i32, i32
  }
  func.func @transform_1(%arg0: i32) -> (i32, i32) {
    %c0_i32 = arith.constant 0 : i32
    %c0_i32_0 = arith.constant 0 : i32
    %c0_i32_1 = arith.constant 0 : i32
    return %c0_i32, %c0_i32_0 : i32, i32
  }
  func.func @transform_2(%arg0: i32) -> (i32, i32) {
    %c0_i32 = arith.constant 0 : i32
    %c0_i32_0 = arith.constant 0 : i32
    %c0_i32_1 = arith.constant 0 : i32
    return %c0_i32, %c0_i32_0 : i32, i32
  }
  func.func @transform_3(%arg0: i32) -> (i32, i32) {
    %c0_i32 = arith.constant 0 : i32
    %c0_i32_0 = arith.constant 0 : i32
    return %arg0, %c0_i32 : i32, i32
  }
}

module attributes {stable_mosaic.version = 11 : i64} {
  func.func @_self_attn_block_kernel(%arg0: i32, %arg1: memref<2xi32, #tpu.memory_space<smem>>, %arg2: memref<1x8x32xbf16, #tpu.memory_space<vmem>>, %arg3: memref<32x96xbf16, #tpu.memory_space<vmem>>, %arg4: memref<1x96xf32, #tpu.memory_space<vmem>>, %arg5: memref<32x32xbf16, #tpu.memory_space<vmem>>, %arg6: memref<1x32xf32, #tpu.memory_space<vmem>>, %arg7: memref<1x32xf32, #tpu.memory_space<vmem>>, %arg8: memref<1x32xf32, #tpu.memory_space<vmem>>, %arg9: memref<1x8x32xbf16, #tpu.memory_space<vmem>>) attributes {dimension_semantics = [#tpu.dimension_semantics<parallel>], iteration_bounds = array<i64: 2>, scalar_prefetch = 1 : i64, scratch_operands = 0 : i64, tpu.core_type = #tpu.core_type<tc>, window_params = [{transform_indices = @transform_0, window_bounds = array<i64: 1, 8, 32>}, {pipeline_mode = #tpu.pipeline_mode<synchronous>, transform_indices = @transform_1, window_bounds = array<i64: 32, 96>}, {pipeline_mode = #tpu.pipeline_mode<synchronous>, transform_indices = @transform_2, window_bounds = array<i64: 1, 96>}, {pipeline_mode = #tpu.pipeline_mode<synchronous>, transform_indices = @transform_3, window_bounds = array<i64: 32, 32>}, {pipeline_mode = #tpu.pipeline_mode<synchronous>, transform_indices = @transform_4, window_bounds = array<i64: 1, 32>}, {pipeline_mode = #tpu.pipeline_mode<synchronous>, transform_indices = @transform_5, window_bounds = array<i64: 1, 32>}, {pipeline_mode = #tpu.pipeline_mode<synchronous>, transform_indices = @transform_6, window_bounds = array<i64: 1, 32>}, {transform_indices = @transform_7, window_bounds = array<i64: 1, 8, 32>}]} {
    %c0 = arith.constant 0 : index
    %c0_0 = arith.constant 0 : index
    %c0_1 = arith.constant 0 : index
    %0 = vector.load %arg2[%c0, %c0_0, %c0_1] : memref<1x8x32xbf16, #tpu.memory_space<vmem>>, vector<1x8x32xbf16>
    %1 = vector.shape_cast %0 : vector<1x8x32xbf16> to vector<8x32xbf16>
    %2 = arith.extf %1 : vector<8x32xbf16> to vector<8x32xf32>
    %c0_2 = arith.constant 0 : index
    %c0_3 = arith.constant 0 : index
    %c0_4 = arith.constant 0 : index
    %3 = vector.load %arg2[%c0_2, %c0_3, %c0_4] : memref<1x8x32xbf16, #tpu.memory_space<vmem>>, vector<1x8x32xbf16>
    %4 = vector.shape_cast %3 : vector<1x8x32xbf16> to vector<8x32xbf16>
    %c0_5 = arith.constant 0 : index
    %c0_6 = arith.constant 0 : index
    %5 = vector.load %arg3[%c0_5, %c0_6] : memref<32x96xbf16, #tpu.memory_space<vmem>>, vector<32x96xbf16>
    %cst = arith.constant dense<0.000000e+00> : vector<8x96xf32>
    %6 = tpu.matmul %4, %5, %cst {dimension_numbers = #tpu.dot_dimension_numbers<[1], [0], [0], [1], [0, 0, 1, 1], [], []>} : vector<8x32xbf16>, vector<32x96xbf16>, vector<8x96xf32> -> vector<8x96xf32>
    %c0_7 = arith.constant 0 : index
    %c0_8 = arith.constant 0 : index
    %7 = vector.load %arg4[%c0_7, %c0_8] : memref<1x96xf32, #tpu.memory_space<vmem>>, vector<1x96xf32>
    %8 = vector.broadcast %7 : vector<1x96xf32> to vector<8x96xf32>
    %9 = arith.addf %6, %8 : vector<8x96xf32>
    %10 = vector.extract_strided_slice %9 {offsets = [0, 0], sizes = [8, 32], strides = [1, 1]} : vector<8x96xf32> to vector<8x32xf32>
    %11 = vector.extract_strided_slice %9 {offsets = [0, 32], sizes = [8, 32], strides = [1, 1]} : vector<8x96xf32> to vector<8x32xf32>
    %12 = vector.extract_strided_slice %9 {offsets = [0, 64], sizes = [8, 32], strides = [1, 1]} : vector<8x96xf32> to vector<8x32xf32>
    %cst_9 = arith.constant 0.000000e+00 : f32
    %13 = vector.broadcast %cst_9 : f32 to vector<8x8xf32>
    %14 = tpu.iota {dimensions = array<i32: 1>} : vector<8x8xi32>
    %15 = arith.index_cast %arg0 : i32 to index
    %16 = memref.load %arg1[%15] : memref<2xi32, #tpu.memory_space<smem>>
    %17 = vector.broadcast %16 : i32 to vector<8x8xi32>
    %18 = arith.cmpi sge, %14, %17 : vector<8x8xi32>
    %cst_10 = arith.constant -1.000000e+09 : f32
    %19 = vector.broadcast %cst_10 : f32 to vector<8x8xf32>
    %20 = arith.select %18, %19, %13 : vector<8x8xi1>, vector<8x8xf32>
    %cst_11 = arith.constant 0.000000e+00 : f32
    %21 = vector.broadcast %cst_11 : f32 to vector<8x32xf32>
    %c0_12 = arith.constant 0 : index
    %c0_13 = arith.constant 0 : index
    %22 = vector.load %arg6[%c0_12, %c0_13] : memref<1x32xf32, #tpu.memory_space<vmem>>, vector<1x32xf32>
    %23 = vector.broadcast %22 : vector<1x32xf32> to vector<8x32xf32>
    %24 = arith.addf %21, %23 : vector<8x32xf32>
    %25 = vector.extract_strided_slice %10 {offsets = [0, 0], sizes = [8, 4], strides = [1, 1]} : vector<8x32xf32> to vector<8x4xf32>
    %cst_14 = arith.constant 5.000000e-01 : f32
    %26 = vector.broadcast %cst_14 : f32 to vector<8x4xf32>
    %27 = arith.mulf %25, %26 : vector<8x4xf32>
    %28 = arith.truncf %27 : vector<8x4xf32> to vector<8x4xbf16>
    %29 = vector.extract_strided_slice %11 {offsets = [0, 0], sizes = [8, 4], strides = [1, 1]} : vector<8x32xf32> to vector<8x4xf32>
    %30 = arith.truncf %29 : vector<8x4xf32> to vector<8x4xbf16>
    %31 = vector.extract_strided_slice %12 {offsets = [0, 0], sizes = [8, 4], strides = [1, 1]} : vector<8x32xf32> to vector<8x4xf32>
    %32 = arith.truncf %31 : vector<8x4xf32> to vector<8x4xbf16>
    %cst_15 = arith.constant dense<0.000000e+00> : vector<8x8xf32>
    %33 = tpu.matmul %28, %30, %cst_15 {dimension_numbers = #tpu.dot_dimension_numbers<[1], [1], [0], [0], [0, 0, 1, 0], [], []>} : vector<8x4xbf16>, vector<8x4xbf16>, vector<8x8xf32> -> vector<8x8xf32>
    %34 = arith.addf %33, %20 : vector<8x8xf32>
    %cst_16 = arith.constant dense<0xFF800000> : vector<8xf32>
    %35 = vector.multi_reduction <maximumf>, %34, %cst_16 [1] : vector<8x8xf32> to vector<8xf32>
    %36 = vector.shape_cast %35 : vector<8xf32> to vector<8x1xf32>
    %37 = vector.broadcast %36 : vector<8x1xf32> to vector<8x8xf32>
    %38 = arith.subf %34, %37 : vector<8x8xf32>
    %39 = math.exp %38 : vector<8x8xf32>
    %cst_17 = arith.constant dense<0.000000e+00> : vector<8xf32>
    %40 = vector.multi_reduction <add>, %39, %cst_17 [1] : vector<8x8xf32> to vector<8xf32>
    %41 = vector.shape_cast %40 : vector<8xf32> to vector<8x1xf32>
    %42 = arith.truncf %39 : vector<8x8xf32> to vector<8x8xbf16>
    %cst_18 = arith.constant dense<0.000000e+00> : vector<8x4xf32>
    %43 = tpu.matmul %42, %32, %cst_18 {dimension_numbers = #tpu.dot_dimension_numbers<[1], [0], [0], [1], [0, 0, 1, 1], [], []>} : vector<8x8xbf16>, vector<8x4xbf16>, vector<8x4xf32> -> vector<8x4xf32>
    %44 = tpu.reciprocal %41 {approx = true} : vector<8x1xf32> -> vector<8x1xf32>
    %45 = vector.broadcast %44 : vector<8x1xf32> to vector<8x4xf32>
    %46 = arith.mulf %43, %45 : vector<8x4xf32>
    %47 = arith.truncf %46 : vector<8x4xf32> to vector<8x4xbf16>
    %c0_19 = arith.constant 0 : index
    %c0_20 = arith.constant 0 : index
    %48 = vector.load %arg5[%c0_19, %c0_20] : memref<32x32xbf16, #tpu.memory_space<vmem>>, vector<4x32xbf16>
    %cst_21 = arith.constant dense<0.000000e+00> : vector<8x32xf32>
    %49 = tpu.matmul %47, %48, %cst_21 {dimension_numbers = #tpu.dot_dimension_numbers<[1], [0], [0], [1], [0, 0, 1, 1], [], []>} : vector<8x4xbf16>, vector<4x32xbf16>, vector<8x32xf32> -> vector<8x32xf32>
    %50 = arith.addf %24, %49 : vector<8x32xf32>
    %51 = vector.extract_strided_slice %10 {offsets = [0, 4], sizes = [8, 4], strides = [1, 1]} : vector<8x32xf32> to vector<8x4xf32>
    %cst_22 = arith.constant 5.000000e-01 : f32
    %52 = vector.broadcast %cst_22 : f32 to vector<8x4xf32>
    %53 = arith.mulf %51, %52 : vector<8x4xf32>
    %54 = arith.truncf %53 : vector<8x4xf32> to vector<8x4xbf16>
    %55 = vector.extract_strided_slice %11 {offsets = [0, 4], sizes = [8, 4], strides = [1, 1]} : vector<8x32xf32> to vector<8x4xf32>
    %56 = arith.truncf %55 : vector<8x4xf32> to vector<8x4xbf16>
    %57 = vector.extract_strided_slice %12 {offsets = [0, 4], sizes = [8, 4], strides = [1, 1]} : vector<8x32xf32> to vector<8x4xf32>
    %58 = arith.truncf %57 : vector<8x4xf32> to vector<8x4xbf16>
    %cst_23 = arith.constant dense<0.000000e+00> : vector<8x8xf32>
    %59 = tpu.matmul %54, %56, %cst_23 {dimension_numbers = #tpu.dot_dimension_numbers<[1], [1], [0], [0], [0, 0, 1, 0], [], []>} : vector<8x4xbf16>, vector<8x4xbf16>, vector<8x8xf32> -> vector<8x8xf32>
    %60 = arith.addf %59, %20 : vector<8x8xf32>
    %cst_24 = arith.constant dense<0xFF800000> : vector<8xf32>
    %61 = vector.multi_reduction <maximumf>, %60, %cst_24 [1] : vector<8x8xf32> to vector<8xf32>
    %62 = vector.shape_cast %61 : vector<8xf32> to vector<8x1xf32>
    %63 = vector.broadcast %62 : vector<8x1xf32> to vector<8x8xf32>
    %64 = arith.subf %60, %63 : vector<8x8xf32>
    %65 = math.exp %64 : vector<8x8xf32>
    %cst_25 = arith.constant dense<0.000000e+00> : vector<8xf32>
    %66 = vector.multi_reduction <add>, %65, %cst_25 [1] : vector<8x8xf32> to vector<8xf32>
    %67 = vector.shape_cast %66 : vector<8xf32> to vector<8x1xf32>
    %68 = arith.truncf %65 : vector<8x8xf32> to vector<8x8xbf16>
    %cst_26 = arith.constant dense<0.000000e+00> : vector<8x4xf32>
    %69 = tpu.matmul %68, %58, %cst_26 {dimension_numbers = #tpu.dot_dimension_numbers<[1], [0], [0], [1], [0, 0, 1, 1], [], []>} : vector<8x8xbf16>, vector<8x4xbf16>, vector<8x4xf32> -> vector<8x4xf32>
    %70 = tpu.reciprocal %67 {approx = true} : vector<8x1xf32> -> vector<8x1xf32>
    %71 = vector.broadcast %70 : vector<8x1xf32> to vector<8x4xf32>
    %72 = arith.mulf %69, %71 : vector<8x4xf32>
    %73 = arith.truncf %72 : vector<8x4xf32> to vector<8x4xbf16>
    %c4 = arith.constant 4 : index
    %c0_27 = arith.constant 0 : index
    %74 = vector.load %arg5[%c4, %c0_27] : memref<32x32xbf16, #tpu.memory_space<vmem>>, vector<4x32xbf16>
    %cst_28 = arith.constant dense<0.000000e+00> : vector<8x32xf32>
    %75 = tpu.matmul %73, %74, %cst_28 {dimension_numbers = #tpu.dot_dimension_numbers<[1], [0], [0], [1], [0, 0, 1, 1], [], []>} : vector<8x4xbf16>, vector<4x32xbf16>, vector<8x32xf32> -> vector<8x32xf32>
    %76 = arith.addf %50, %75 : vector<8x32xf32>
    %77 = vector.extract_strided_slice %10 {offsets = [0, 8], sizes = [8, 4], strides = [1, 1]} : vector<8x32xf32> to vector<8x4xf32>
    %cst_29 = arith.constant 5.000000e-01 : f32
    %78 = vector.broadcast %cst_29 : f32 to vector<8x4xf32>
    %79 = arith.mulf %77, %78 : vector<8x4xf32>
    %80 = arith.truncf %79 : vector<8x4xf32> to vector<8x4xbf16>
    %81 = vector.extract_strided_slice %11 {offsets = [0, 8], sizes = [8, 4], strides = [1, 1]} : vector<8x32xf32> to vector<8x4xf32>
    %82 = arith.truncf %81 : vector<8x4xf32> to vector<8x4xbf16>
    %83 = vector.extract_strided_slice %12 {offsets = [0, 8], sizes = [8, 4], strides = [1, 1]} : vector<8x32xf32> to vector<8x4xf32>
    %84 = arith.truncf %83 : vector<8x4xf32> to vector<8x4xbf16>
    %cst_30 = arith.constant dense<0.000000e+00> : vector<8x8xf32>
    %85 = tpu.matmul %80, %82, %cst_30 {dimension_numbers = #tpu.dot_dimension_numbers<[1], [1], [0], [0], [0, 0, 1, 0], [], []>} : vector<8x4xbf16>, vector<8x4xbf16>, vector<8x8xf32> -> vector<8x8xf32>
    %86 = arith.addf %85, %20 : vector<8x8xf32>
    %cst_31 = arith.constant dense<0xFF800000> : vector<8xf32>
    %87 = vector.multi_reduction <maximumf>, %86, %cst_31 [1] : vector<8x8xf32> to vector<8xf32>
    %88 = vector.shape_cast %87 : vector<8xf32> to vector<8x1xf32>
    %89 = vector.broadcast %88 : vector<8x1xf32> to vector<8x8xf32>
    %90 = arith.subf %86, %89 : vector<8x8xf32>
    %91 = math.exp %90 : vector<8x8xf32>
    %cst_32 = arith.constant dense<0.000000e+00> : vector<8xf32>
    %92 = vector.multi_reduction <add>, %91, %cst_32 [1] : vector<8x8xf32> to vector<8xf32>
    %93 = vector.shape_cast %92 : vector<8xf32> to vector<8x1xf32>
    %94 = arith.truncf %91 : vector<8x8xf32> to vector<8x8xbf16>
    %cst_33 = arith.constant dense<0.000000e+00> : vector<8x4xf32>
    %95 = tpu.matmul %94, %84, %cst_33 {dimension_numbers = #tpu.dot_dimension_numbers<[1], [0], [0], [1], [0, 0, 1, 1], [], []>} : vector<8x8xbf16>, vector<8x4xbf16>, vector<8x4xf32> -> vector<8x4xf32>
    %96 = tpu.reciprocal %93 {approx = true} : vector<8x1xf32> -> vector<8x1xf32>
    %97 = vector.broadcast %96 : vector<8x1xf32> to vector<8x4xf32>
    %98 = arith.mulf %95, %97 : vector<8x4xf32>
    %99 = arith.truncf %98 : vector<8x4xf32> to vector<8x4xbf16>
    %c8 = arith.constant 8 : index
    %c0_34 = arith.constant 0 : index
    %100 = vector.load %arg5[%c8, %c0_34] : memref<32x32xbf16, #tpu.memory_space<vmem>>, vector<4x32xbf16>
    %cst_35 = arith.constant dense<0.000000e+00> : vector<8x32xf32>
    %101 = tpu.matmul %99, %100, %cst_35 {dimension_numbers = #tpu.dot_dimension_numbers<[1], [0], [0], [1], [0, 0, 1, 1], [], []>} : vector<8x4xbf16>, vector<4x32xbf16>, vector<8x32xf32> -> vector<8x32xf32>
    %102 = arith.addf %76, %101 : vector<8x32xf32>
    %103 = vector.extract_strided_slice %10 {offsets = [0, 12], sizes = [8, 4], strides = [1, 1]} : vector<8x32xf32> to vector<8x4xf32>
    %cst_36 = arith.constant 5.000000e-01 : f32
    %104 = vector.broadcast %cst_36 : f32 to vector<8x4xf32>
    %105 = arith.mulf %103, %104 : vector<8x4xf32>
    %106 = arith.truncf %105 : vector<8x4xf32> to vector<8x4xbf16>
    %107 = vector.extract_strided_slice %11 {offsets = [0, 12], sizes = [8, 4], strides = [1, 1]} : vector<8x32xf32> to vector<8x4xf32>
    %108 = arith.truncf %107 : vector<8x4xf32> to vector<8x4xbf16>
    %109 = vector.extract_strided_slice %12 {offsets = [0, 12], sizes = [8, 4], strides = [1, 1]} : vector<8x32xf32> to vector<8x4xf32>
    %110 = arith.truncf %109 : vector<8x4xf32> to vector<8x4xbf16>
    %cst_37 = arith.constant dense<0.000000e+00> : vector<8x8xf32>
    %111 = tpu.matmul %106, %108, %cst_37 {dimension_numbers = #tpu.dot_dimension_numbers<[1], [1], [0], [0], [0, 0, 1, 0], [], []>} : vector<8x4xbf16>, vector<8x4xbf16>, vector<8x8xf32> -> vector<8x8xf32>
    %112 = arith.addf %111, %20 : vector<8x8xf32>
    %cst_38 = arith.constant dense<0xFF800000> : vector<8xf32>
    %113 = vector.multi_reduction <maximumf>, %112, %cst_38 [1] : vector<8x8xf32> to vector<8xf32>
    %114 = vector.shape_cast %113 : vector<8xf32> to vector<8x1xf32>
    %115 = vector.broadcast %114 : vector<8x1xf32> to vector<8x8xf32>
    %116 = arith.subf %112, %115 : vector<8x8xf32>
    %117 = math.exp %116 : vector<8x8xf32>
    %cst_39 = arith.constant dense<0.000000e+00> : vector<8xf32>
    %118 = vector.multi_reduction <add>, %117, %cst_39 [1] : vector<8x8xf32> to vector<8xf32>
    %119 = vector.shape_cast %118 : vector<8xf32> to vector<8x1xf32>
    %120 = arith.truncf %117 : vector<8x8xf32> to vector<8x8xbf16>
    %cst_40 = arith.constant dense<0.000000e+00> : vector<8x4xf32>
    %121 = tpu.matmul %120, %110, %cst_40 {dimension_numbers = #tpu.dot_dimension_numbers<[1], [0], [0], [1], [0, 0, 1, 1], [], []>} : vector<8x8xbf16>, vector<8x4xbf16>, vector<8x4xf32> -> vector<8x4xf32>
    %122 = tpu.reciprocal %119 {approx = true} : vector<8x1xf32> -> vector<8x1xf32>
    %123 = vector.broadcast %122 : vector<8x1xf32> to vector<8x4xf32>
    %124 = arith.mulf %121, %123 : vector<8x4xf32>
    %125 = arith.truncf %124 : vector<8x4xf32> to vector<8x4xbf16>
    %c12 = arith.constant 12 : index
    %c0_41 = arith.constant 0 : index
    %126 = vector.load %arg5[%c12, %c0_41] : memref<32x32xbf16, #tpu.memory_space<vmem>>, vector<4x32xbf16>
    %cst_42 = arith.constant dense<0.000000e+00> : vector<8x32xf32>
    %127 = tpu.matmul %125, %126, %cst_42 {dimension_numbers = #tpu.dot_dimension_numbers<[1], [0], [0], [1], [0, 0, 1, 1], [], []>} : vector<8x4xbf16>, vector<4x32xbf16>, vector<8x32xf32> -> vector<8x32xf32>
    %128 = arith.addf %102, %127 : vector<8x32xf32>
    %129 = vector.extract_strided_slice %10 {offsets = [0, 16], sizes = [8, 4], strides = [1, 1]} : vector<8x32xf32> to vector<8x4xf32>
    %cst_43 = arith.constant 5.000000e-01 : f32
    %130 = vector.broadcast %cst_43 : f32 to vector<8x4xf32>
    %131 = arith.mulf %129, %130 : vector<8x4xf32>
    %132 = arith.truncf %131 : vector<8x4xf32> to vector<8x4xbf16>
    %133 = vector.extract_strided_slice %11 {offsets = [0, 16], sizes = [8, 4], strides = [1, 1]} : vector<8x32xf32> to vector<8x4xf32>
    %134 = arith.truncf %133 : vector<8x4xf32> to vector<8x4xbf16>
    %135 = vector.extract_strided_slice %12 {offsets = [0, 16], sizes = [8, 4], strides = [1, 1]} : vector<8x32xf32> to vector<8x4xf32>
    %136 = arith.truncf %135 : vector<8x4xf32> to vector<8x4xbf16>
    %cst_44 = arith.constant dense<0.000000e+00> : vector<8x8xf32>
    %137 = tpu.matmul %132, %134, %cst_44 {dimension_numbers = #tpu.dot_dimension_numbers<[1], [1], [0], [0], [0, 0, 1, 0], [], []>} : vector<8x4xbf16>, vector<8x4xbf16>, vector<8x8xf32> -> vector<8x8xf32>
    %138 = arith.addf %137, %20 : vector<8x8xf32>
    %cst_45 = arith.constant dense<0xFF800000> : vector<8xf32>
    %139 = vector.multi_reduction <maximumf>, %138, %cst_45 [1] : vector<8x8xf32> to vector<8xf32>
    %140 = vector.shape_cast %139 : vector<8xf32> to vector<8x1xf32>
    %141 = vector.broadcast %140 : vector<8x1xf32> to vector<8x8xf32>
    %142 = arith.subf %138, %141 : vector<8x8xf32>
    %143 = math.exp %142 : vector<8x8xf32>
    %cst_46 = arith.constant dense<0.000000e+00> : vector<8xf32>
    %144 = vector.multi_reduction <add>, %143, %cst_46 [1] : vector<8x8xf32> to vector<8xf32>
    %145 = vector.shape_cast %144 : vector<8xf32> to vector<8x1xf32>
    %146 = arith.truncf %143 : vector<8x8xf32> to vector<8x8xbf16>
    %cst_47 = arith.constant dense<0.000000e+00> : vector<8x4xf32>
    %147 = tpu.matmul %146, %136, %cst_47 {dimension_numbers = #tpu.dot_dimension_numbers<[1], [0], [0], [1], [0, 0, 1, 1], [], []>} : vector<8x8xbf16>, vector<8x4xbf16>, vector<8x4xf32> -> vector<8x4xf32>
    %148 = tpu.reciprocal %145 {approx = true} : vector<8x1xf32> -> vector<8x1xf32>
    %149 = vector.broadcast %148 : vector<8x1xf32> to vector<8x4xf32>
    %150 = arith.mulf %147, %149 : vector<8x4xf32>
    %151 = arith.truncf %150 : vector<8x4xf32> to vector<8x4xbf16>
    %c16 = arith.constant 16 : index
    %c0_48 = arith.constant 0 : index
    %152 = vector.load %arg5[%c16, %c0_48] : memref<32x32xbf16, #tpu.memory_space<vmem>>, vector<4x32xbf16>
    %cst_49 = arith.constant dense<0.000000e+00> : vector<8x32xf32>
    %153 = tpu.matmul %151, %152, %cst_49 {dimension_numbers = #tpu.dot_dimension_numbers<[1], [0], [0], [1], [0, 0, 1, 1], [], []>} : vector<8x4xbf16>, vector<4x32xbf16>, vector<8x32xf32> -> vector<8x32xf32>
    %154 = arith.addf %128, %153 : vector<8x32xf32>
    %155 = vector.extract_strided_slice %10 {offsets = [0, 20], sizes = [8, 4], strides = [1, 1]} : vector<8x32xf32> to vector<8x4xf32>
    %cst_50 = arith.constant 5.000000e-01 : f32
    %156 = vector.broadcast %cst_50 : f32 to vector<8x4xf32>
    %157 = arith.mulf %155, %156 : vector<8x4xf32>
    %158 = arith.truncf %157 : vector<8x4xf32> to vector<8x4xbf16>
    %159 = vector.extract_strided_slice %11 {offsets = [0, 20], sizes = [8, 4], strides = [1, 1]} : vector<8x32xf32> to vector<8x4xf32>
    %160 = arith.truncf %159 : vector<8x4xf32> to vector<8x4xbf16>
    %161 = vector.extract_strided_slice %12 {offsets = [0, 20], sizes = [8, 4], strides = [1, 1]} : vector<8x32xf32> to vector<8x4xf32>
    %162 = arith.truncf %161 : vector<8x4xf32> to vector<8x4xbf16>
    %cst_51 = arith.constant dense<0.000000e+00> : vector<8x8xf32>
    %163 = tpu.matmul %158, %160, %cst_51 {dimension_numbers = #tpu.dot_dimension_numbers<[1], [1], [0], [0], [0, 0, 1, 0], [], []>} : vector<8x4xbf16>, vector<8x4xbf16>, vector<8x8xf32> -> vector<8x8xf32>
    %164 = arith.addf %163, %20 : vector<8x8xf32>
    %cst_52 = arith.constant dense<0xFF800000> : vector<8xf32>
    %165 = vector.multi_reduction <maximumf>, %164, %cst_52 [1] : vector<8x8xf32> to vector<8xf32>
    %166 = vector.shape_cast %165 : vector<8xf32> to vector<8x1xf32>
    %167 = vector.broadcast %166 : vector<8x1xf32> to vector<8x8xf32>
    %168 = arith.subf %164, %167 : vector<8x8xf32>
    %169 = math.exp %168 : vector<8x8xf32>
    %cst_53 = arith.constant dense<0.000000e+00> : vector<8xf32>
    %170 = vector.multi_reduction <add>, %169, %cst_53 [1] : vector<8x8xf32> to vector<8xf32>
    %171 = vector.shape_cast %170 : vector<8xf32> to vector<8x1xf32>
    %172 = arith.truncf %169 : vector<8x8xf32> to vector<8x8xbf16>
    %cst_54 = arith.constant dense<0.000000e+00> : vector<8x4xf32>
    %173 = tpu.matmul %172, %162, %cst_54 {dimension_numbers = #tpu.dot_dimension_numbers<[1], [0], [0], [1], [0, 0, 1, 1], [], []>} : vector<8x8xbf16>, vector<8x4xbf16>, vector<8x4xf32> -> vector<8x4xf32>
    %174 = tpu.reciprocal %171 {approx = true} : vector<8x1xf32> -> vector<8x1xf32>
    %175 = vector.broadcast %174 : vector<8x1xf32> to vector<8x4xf32>
    %176 = arith.mulf %173, %175 : vector<8x4xf32>
    %177 = arith.truncf %176 : vector<8x4xf32> to vector<8x4xbf16>
    %c20 = arith.constant 20 : index
    %c0_55 = arith.constant 0 : index
    %178 = vector.load %arg5[%c20, %c0_55] : memref<32x32xbf16, #tpu.memory_space<vmem>>, vector<4x32xbf16>
    %cst_56 = arith.constant dense<0.000000e+00> : vector<8x32xf32>
    %179 = tpu.matmul %177, %178, %cst_56 {dimension_numbers = #tpu.dot_dimension_numbers<[1], [0], [0], [1], [0, 0, 1, 1], [], []>} : vector<8x4xbf16>, vector<4x32xbf16>, vector<8x32xf32> -> vector<8x32xf32>
    %180 = arith.addf %154, %179 : vector<8x32xf32>
    %181 = vector.extract_strided_slice %10 {offsets = [0, 24], sizes = [8, 4], strides = [1, 1]} : vector<8x32xf32> to vector<8x4xf32>
    %cst_57 = arith.constant 5.000000e-01 : f32
    %182 = vector.broadcast %cst_57 : f32 to vector<8x4xf32>
    %183 = arith.mulf %181, %182 : vector<8x4xf32>
    %184 = arith.truncf %183 : vector<8x4xf32> to vector<8x4xbf16>
    %185 = vector.extract_strided_slice %11 {offsets = [0, 24], sizes = [8, 4], strides = [1, 1]} : vector<8x32xf32> to vector<8x4xf32>
    %186 = arith.truncf %185 : vector<8x4xf32> to vector<8x4xbf16>
    %187 = vector.extract_strided_slice %12 {offsets = [0, 24], sizes = [8, 4], strides = [1, 1]} : vector<8x32xf32> to vector<8x4xf32>
    %188 = arith.truncf %187 : vector<8x4xf32> to vector<8x4xbf16>
    %cst_58 = arith.constant dense<0.000000e+00> : vector<8x8xf32>
    %189 = tpu.matmul %184, %186, %cst_58 {dimension_numbers = #tpu.dot_dimension_numbers<[1], [1], [0], [0], [0, 0, 1, 0], [], []>} : vector<8x4xbf16>, vector<8x4xbf16>, vector<8x8xf32> -> vector<8x8xf32>
    %190 = arith.addf %189, %20 : vector<8x8xf32>
    %cst_59 = arith.constant dense<0xFF800000> : vector<8xf32>
    %191 = vector.multi_reduction <maximumf>, %190, %cst_59 [1] : vector<8x8xf32> to vector<8xf32>
    %192 = vector.shape_cast %191 : vector<8xf32> to vector<8x1xf32>
    %193 = vector.broadcast %192 : vector<8x1xf32> to vector<8x8xf32>
    %194 = arith.subf %190, %193 : vector<8x8xf32>
    %195 = math.exp %194 : vector<8x8xf32>
    %cst_60 = arith.constant dense<0.000000e+00> : vector<8xf32>
    %196 = vector.multi_reduction <add>, %195, %cst_60 [1] : vector<8x8xf32> to vector<8xf32>
    %197 = vector.shape_cast %196 : vector<8xf32> to vector<8x1xf32>
    %198 = arith.truncf %195 : vector<8x8xf32> to vector<8x8xbf16>
    %cst_61 = arith.constant dense<0.000000e+00> : vector<8x4xf32>
    %199 = tpu.matmul %198, %188, %cst_61 {dimension_numbers = #tpu.dot_dimension_numbers<[1], [0], [0], [1], [0, 0, 1, 1], [], []>} : vector<8x8xbf16>, vector<8x4xbf16>, vector<8x4xf32> -> vector<8x4xf32>
    %200 = tpu.reciprocal %197 {approx = true} : vector<8x1xf32> -> vector<8x1xf32>
    %201 = vector.broadcast %200 : vector<8x1xf32> to vector<8x4xf32>
    %202 = arith.mulf %199, %201 : vector<8x4xf32>
    %203 = arith.truncf %202 : vector<8x4xf32> to vector<8x4xbf16>
    %c24 = arith.constant 24 : index
    %c0_62 = arith.constant 0 : index
    %204 = vector.load %arg5[%c24, %c0_62] : memref<32x32xbf16, #tpu.memory_space<vmem>>, vector<4x32xbf16>
    %cst_63 = arith.constant dense<0.000000e+00> : vector<8x32xf32>
    %205 = tpu.matmul %203, %204, %cst_63 {dimension_numbers = #tpu.dot_dimension_numbers<[1], [0], [0], [1], [0, 0, 1, 1], [], []>} : vector<8x4xbf16>, vector<4x32xbf16>, vector<8x32xf32> -> vector<8x32xf32>
    %206 = arith.addf %180, %205 : vector<8x32xf32>
    %207 = vector.extract_strided_slice %10 {offsets = [0, 28], sizes = [8, 4], strides = [1, 1]} : vector<8x32xf32> to vector<8x4xf32>
    %cst_64 = arith.constant 5.000000e-01 : f32
    %208 = vector.broadcast %cst_64 : f32 to vector<8x4xf32>
    %209 = arith.mulf %207, %208 : vector<8x4xf32>
    %210 = arith.truncf %209 : vector<8x4xf32> to vector<8x4xbf16>
    %211 = vector.extract_strided_slice %11 {offsets = [0, 28], sizes = [8, 4], strides = [1, 1]} : vector<8x32xf32> to vector<8x4xf32>
    %212 = arith.truncf %211 : vector<8x4xf32> to vector<8x4xbf16>
    %213 = vector.extract_strided_slice %12 {offsets = [0, 28], sizes = [8, 4], strides = [1, 1]} : vector<8x32xf32> to vector<8x4xf32>
    %214 = arith.truncf %213 : vector<8x4xf32> to vector<8x4xbf16>
    %cst_65 = arith.constant dense<0.000000e+00> : vector<8x8xf32>
    %215 = tpu.matmul %210, %212, %cst_65 {dimension_numbers = #tpu.dot_dimension_numbers<[1], [1], [0], [0], [0, 0, 1, 0], [], []>} : vector<8x4xbf16>, vector<8x4xbf16>, vector<8x8xf32> -> vector<8x8xf32>
    %216 = arith.addf %215, %20 : vector<8x8xf32>
    %cst_66 = arith.constant dense<0xFF800000> : vector<8xf32>
    %217 = vector.multi_reduction <maximumf>, %216, %cst_66 [1] : vector<8x8xf32> to vector<8xf32>
    %218 = vector.shape_cast %217 : vector<8xf32> to vector<8x1xf32>
    %219 = vector.broadcast %218 : vector<8x1xf32> to vector<8x8xf32>
    %220 = arith.subf %216, %219 : vector<8x8xf32>
    %221 = math.exp %220 : vector<8x8xf32>
    %cst_67 = arith.constant dense<0.000000e+00> : vector<8xf32>
    %222 = vector.multi_reduction <add>, %221, %cst_67 [1] : vector<8x8xf32> to vector<8xf32>
    %223 = vector.shape_cast %222 : vector<8xf32> to vector<8x1xf32>
    %224 = arith.truncf %221 : vector<8x8xf32> to vector<8x8xbf16>
    %cst_68 = arith.constant dense<0.000000e+00> : vector<8x4xf32>
    %225 = tpu.matmul %224, %214, %cst_68 {dimension_numbers = #tpu.dot_dimension_numbers<[1], [0], [0], [1], [0, 0, 1, 1], [], []>} : vector<8x8xbf16>, vector<8x4xbf16>, vector<8x4xf32> -> vector<8x4xf32>
    %226 = tpu.reciprocal %223 {approx = true} : vector<8x1xf32> -> vector<8x1xf32>
    %227 = vector.broadcast %226 : vector<8x1xf32> to vector<8x4xf32>
    %228 = arith.mulf %225, %227 : vector<8x4xf32>
    %229 = arith.truncf %228 : vector<8x4xf32> to vector<8x4xbf16>
    %c28 = arith.constant 28 : index
    %c0_69 = arith.constant 0 : index
    %230 = vector.load %arg5[%c28, %c0_69] : memref<32x32xbf16, #tpu.memory_space<vmem>>, vector<4x32xbf16>
    %cst_70 = arith.constant dense<0.000000e+00> : vector<8x32xf32>
    %231 = tpu.matmul %229, %230, %cst_70 {dimension_numbers = #tpu.dot_dimension_numbers<[1], [0], [0], [1], [0, 0, 1, 1], [], []>} : vector<8x4xbf16>, vector<4x32xbf16>, vector<8x32xf32> -> vector<8x32xf32>
    %232 = arith.addf %206, %231 : vector<8x32xf32>
    %233 = arith.addf %232, %2 : vector<8x32xf32>
    %c0_71 = arith.constant 0 : index
    %c0_72 = arith.constant 0 : index
    %234 = vector.load %arg7[%c0_71, %c0_72] : memref<1x32xf32, #tpu.memory_space<vmem>>, vector<1x32xf32>
    %c0_73 = arith.constant 0 : index
    %c0_74 = arith.constant 0 : index
    %235 = vector.load %arg8[%c0_73, %c0_74] : memref<1x32xf32, #tpu.memory_space<vmem>>, vector<1x32xf32>
    %cst_75 = arith.constant dense<0.000000e+00> : vector<8xf32>
    %236 = vector.multi_reduction <add>, %233, %cst_75 [1] : vector<8x32xf32> to vector<8xf32>
    %237 = vector.shape_cast %236 : vector<8xf32> to vector<8x1xf32>
    %cst_76 = arith.constant 3.200000e+01 : f32
    %238 = vector.broadcast %cst_76 : f32 to vector<8x1xf32>
    %239 = arith.divf %237, %238 : vector<8x1xf32>
    %240 = vector.broadcast %239 : vector<8x1xf32> to vector<8x32xf32>
    %241 = arith.subf %233, %240 : vector<8x32xf32>
    %242 = arith.mulf %241, %241 : vector<8x32xf32>
    %cst_77 = arith.constant dense<0.000000e+00> : vector<8xf32>
    %243 = vector.multi_reduction <add>, %242, %cst_77 [1] : vector<8x32xf32> to vector<8xf32>
    %244 = vector.shape_cast %243 : vector<8xf32> to vector<8x1xf32>
    %cst_78 = arith.constant 3.200000e+01 : f32
    %245 = vector.broadcast %cst_78 : f32 to vector<8x1xf32>
    %246 = arith.divf %244, %245 : vector<8x1xf32>
    %247 = vector.broadcast %239 : vector<8x1xf32> to vector<8x32xf32>
    %248 = arith.subf %233, %247 : vector<8x32xf32>
    %cst_79 = arith.constant 9.99999974E-6 : f32
    %249 = vector.broadcast %cst_79 : f32 to vector<8x1xf32>
    %250 = arith.addf %246, %249 : vector<8x1xf32>
    %251 = math.rsqrt %250 : vector<8x1xf32>
    %252 = vector.broadcast %251 : vector<8x1xf32> to vector<8x32xf32>
    %253 = arith.mulf %248, %252 : vector<8x32xf32>
    %254 = vector.broadcast %234 : vector<1x32xf32> to vector<8x32xf32>
    %255 = arith.mulf %253, %254 : vector<8x32xf32>
    %256 = vector.broadcast %235 : vector<1x32xf32> to vector<8x32xf32>
    %257 = arith.addf %255, %256 : vector<8x32xf32>
    %258 = arith.truncf %257 : vector<8x32xf32> to vector<8x32xbf16>
    %c0_80 = arith.constant 0 : index
    %c0_81 = arith.constant 0 : index
    %c0_82 = arith.constant 0 : index
    %259 = vector.load %arg9[%c0_80, %c0_81, %c0_82] : memref<1x8x32xbf16, #tpu.memory_space<vmem>>, vector<1x8x32xbf16>
    %260 = vector.shape_cast %259 : vector<1x8x32xbf16> to vector<8x32xbf16>
    %261 = vector.shape_cast %258 : vector<8x32xbf16> to vector<1x8x32xbf16>
    tpu.vector_store %arg9[%c0_80, %c0_81, %c0_82], %261 {strides = array<i32>} : memref<1x8x32xbf16, #tpu.memory_space<vmem>>, vector<1x8x32xbf16>,
    return
  }
  func.func @transform_0(%arg0: i32, %arg1: memref<2xi32, #tpu.memory_space<smem>>) -> (i32, i32, i32) {
    %c0_i32 = arith.constant 0 : i32
    %c0_i32_0 = arith.constant 0 : i32
    %c0_i32_1 = arith.constant 0 : i32
    return %arg0, %c0_i32, %c0_i32_0 : i32, i32, i32
  }
  func.func @transform_1(%arg0: i32, %arg1: memref<2xi32, #tpu.memory_space<smem>>) -> (i32, i32) {
    %c0_i32 = arith.constant 0 : i32
    %c0_i32_0 = arith.constant 0 : i32
    %c0_i32_1 = arith.constant 0 : i32
    return %c0_i32, %c0_i32_0 : i32, i32
  }
  func.func @transform_2(%arg0: i32, %arg1: memref<2xi32, #tpu.memory_space<smem>>) -> (i32, i32) {
    %c0_i32 = arith.constant 0 : i32
    %c0_i32_0 = arith.constant 0 : i32
    %c0_i32_1 = arith.constant 0 : i32
    return %c0_i32, %c0_i32_0 : i32, i32
  }
  func.func @transform_3(%arg0: i32, %arg1: memref<2xi32, #tpu.memory_space<smem>>) -> (i32, i32) {
    %c0_i32 = arith.constant 0 : i32
    %c0_i32_0 = arith.constant 0 : i32
    %c0_i32_1 = arith.constant 0 : i32
    return %c0_i32, %c0_i32_0 : i32, i32
  }
  func.func @transform_4(%arg0: i32, %arg1: memref<2xi32, #tpu.memory_space<smem>>) -> (i32, i32) {
    %c0_i32 = arith.constant 0 : i32
    %c0_i32_0 = arith.constant 0 : i32
    %c0_i32_1 = arith.constant 0 : i32
    return %c0_i32, %c0_i32_0 : i32, i32
  }
  func.func @transform_5(%arg0: i32, %arg1: memref<2xi32, #tpu.memory_space<smem>>) -> (i32, i32) {
    %c0_i32 = arith.constant 0 : i32
    %c0_i32_0 = arith.constant 0 : i32
    %c0_i32_1 = arith.constant 0 : i32
    return %c0_i32, %c0_i32_0 : i32, i32
  }
  func.func @transform_6(%arg0: i32, %arg1: memref<2xi32, #tpu.memory_space<smem>>) -> (i32, i32) {
    %c0_i32 = arith.constant 0 : i32
    %c0_i32_0 = arith.constant 0 : i32
    %c0_i32_1 = arith.constant 0 : i32
    return %c0_i32, %c0_i32_0 : i32, i32
  }
  func.func @transform_7(%arg0: i32, %arg1: memref<2xi32, #tpu.memory_space<smem>>) -> (i32, i32, i32) {
    %c0_i32 = arith.constant 0 : i32
    %c0_i32_0 = arith.constant 0 : i32
    %c0_i32_1 = arith.constant 0 : i32
    return %arg0, %c0_i32, %c0_i32_0 : i32, i32, i32
  }
}

module attributes {stable_mosaic.version = 11 : i64} {
  func.func @_ffn_ln_kernel(%arg0: i32, %arg1: memref<16x32xbf16, #tpu.memory_space<vmem>>, %arg2: memref<32x64xbf16, #tpu.memory_space<vmem>>, %arg3: memref<1x64xf32, #tpu.memory_space<vmem>>, %arg4: memref<64x32xbf16, #tpu.memory_space<vmem>>, %arg5: memref<1x32xf32, #tpu.memory_space<vmem>>, %arg6: memref<1x32xf32, #tpu.memory_space<vmem>>, %arg7: memref<1x32xf32, #tpu.memory_space<vmem>>, %arg8: memref<16x32xbf16, #tpu.memory_space<vmem>>) attributes {dimension_semantics = [#tpu.dimension_semantics<parallel>], iteration_bounds = array<i64: 1>, scalar_prefetch = 0 : i64, scratch_operands = 0 : i64, tpu.core_type = #tpu.core_type<tc>, window_params = [{transform_indices = @transform_0, window_bounds = array<i64: 16, 32>}, {pipeline_mode = #tpu.pipeline_mode<synchronous>, transform_indices = @transform_1, window_bounds = array<i64: 32, 64>}, {pipeline_mode = #tpu.pipeline_mode<synchronous>, transform_indices = @transform_2, window_bounds = array<i64: 1, 64>}, {pipeline_mode = #tpu.pipeline_mode<synchronous>, transform_indices = @transform_3, window_bounds = array<i64: 64, 32>}, {pipeline_mode = #tpu.pipeline_mode<synchronous>, transform_indices = @transform_4, window_bounds = array<i64: 1, 32>}, {pipeline_mode = #tpu.pipeline_mode<synchronous>, transform_indices = @transform_5, window_bounds = array<i64: 1, 32>}, {pipeline_mode = #tpu.pipeline_mode<synchronous>, transform_indices = @transform_6, window_bounds = array<i64: 1, 32>}, {transform_indices = @transform_7, window_bounds = array<i64: 16, 32>}]} {
    %c0 = arith.constant 0 : index
    %c0_0 = arith.constant 0 : index
    %0 = vector.load %arg1[%c0, %c0_0] : memref<16x32xbf16, #tpu.memory_space<vmem>>, vector<16x32xbf16>
    %1 = arith.extf %0 : vector<16x32xbf16> to vector<16x32xf32>
    %c0_1 = arith.constant 0 : index
    %c0_2 = arith.constant 0 : index
    %2 = vector.load %arg1[%c0_1, %c0_2] : memref<16x32xbf16, #tpu.memory_space<vmem>>, vector<16x32xbf16>
    %c0_3 = arith.constant 0 : index
    %c0_4 = arith.constant 0 : index
    %3 = vector.load %arg2[%c0_3, %c0_4] : memref<32x64xbf16, #tpu.memory_space<vmem>>, vector<32x64xbf16>
    %cst = arith.constant dense<0.000000e+00> : vector<16x64xf32>
    %4 = tpu.matmul %2, %3, %cst {dimension_numbers = #tpu.dot_dimension_numbers<[1], [0], [0], [1], [0, 0, 1, 1], [], []>} : vector<16x32xbf16>, vector<32x64xbf16>, vector<16x64xf32> -> vector<16x64xf32>
    %c0_5 = arith.constant 0 : index
    %c0_6 = arith.constant 0 : index
    %5 = vector.load %arg3[%c0_5, %c0_6] : memref<1x64xf32, #tpu.memory_space<vmem>>, vector<1x64xf32>
    %6 = vector.broadcast %5 : vector<1x64xf32> to vector<16x64xf32>
    %7 = arith.addf %4, %6 : vector<16x64xf32>
    %cst_7 = arith.constant 0.000000e+00 : f32
    %8 = vector.broadcast %cst_7 : f32 to vector<16x64xf32>
    %9 = arith.maximumf %7, %8 : vector<16x64xf32>
    %10 = arith.truncf %9 : vector<16x64xf32> to vector<16x64xbf16>
    %c0_8 = arith.constant 0 : index
    %c0_9 = arith.constant 0 : index
    %11 = vector.load %arg4[%c0_8, %c0_9] : memref<64x32xbf16, #tpu.memory_space<vmem>>, vector<64x32xbf16>
    %cst_10 = arith.constant dense<0.000000e+00> : vector<16x32xf32>
    %12 = tpu.matmul %10, %11, %cst_10 {dimension_numbers = #tpu.dot_dimension_numbers<[1], [0], [0], [1], [0, 0, 1, 1], [], []>} : vector<16x64xbf16>, vector<64x32xbf16>, vector<16x32xf32> -> vector<16x32xf32>
    %c0_11 = arith.constant 0 : index
    %c0_12 = arith.constant 0 : index
    %13 = vector.load %arg5[%c0_11, %c0_12] : memref<1x32xf32, #tpu.memory_space<vmem>>, vector<1x32xf32>
    %14 = vector.broadcast %13 : vector<1x32xf32> to vector<16x32xf32>
    %15 = arith.addf %12, %14 : vector<16x32xf32>
    %16 = arith.addf %15, %1 : vector<16x32xf32>
    %c0_13 = arith.constant 0 : index
    %c0_14 = arith.constant 0 : index
    %17 = vector.load %arg6[%c0_13, %c0_14] : memref<1x32xf32, #tpu.memory_space<vmem>>, vector<1x32xf32>
    %c0_15 = arith.constant 0 : index
    %c0_16 = arith.constant 0 : index
    %18 = vector.load %arg7[%c0_15, %c0_16] : memref<1x32xf32, #tpu.memory_space<vmem>>, vector<1x32xf32>
    %cst_17 = arith.constant dense<0.000000e+00> : vector<16xf32>
    %19 = vector.multi_reduction <add>, %16, %cst_17 [1] : vector<16x32xf32> to vector<16xf32>
    %20 = vector.shape_cast %19 : vector<16xf32> to vector<16x1xf32>
    %cst_18 = arith.constant 3.200000e+01 : f32
    %21 = vector.broadcast %cst_18 : f32 to vector<16x1xf32>
    %22 = arith.divf %20, %21 : vector<16x1xf32>
    %23 = vector.broadcast %22 : vector<16x1xf32> to vector<16x32xf32>
    %24 = arith.subf %16, %23 : vector<16x32xf32>
    %25 = arith.mulf %24, %24 : vector<16x32xf32>
    %cst_19 = arith.constant dense<0.000000e+00> : vector<16xf32>
    %26 = vector.multi_reduction <add>, %25, %cst_19 [1] : vector<16x32xf32> to vector<16xf32>
    %27 = vector.shape_cast %26 : vector<16xf32> to vector<16x1xf32>
    %cst_20 = arith.constant 3.200000e+01 : f32
    %28 = vector.broadcast %cst_20 : f32 to vector<16x1xf32>
    %29 = arith.divf %27, %28 : vector<16x1xf32>
    %30 = vector.broadcast %22 : vector<16x1xf32> to vector<16x32xf32>
    %31 = arith.subf %16, %30 : vector<16x32xf32>
    %cst_21 = arith.constant 9.99999974E-6 : f32
    %32 = vector.broadcast %cst_21 : f32 to vector<16x1xf32>
    %33 = arith.addf %29, %32 : vector<16x1xf32>
    %34 = math.rsqrt %33 : vector<16x1xf32>
    %35 = vector.broadcast %34 : vector<16x1xf32> to vector<16x32xf32>
    %36 = arith.mulf %31, %35 : vector<16x32xf32>
    %37 = vector.broadcast %17 : vector<1x32xf32> to vector<16x32xf32>
    %38 = arith.mulf %36, %37 : vector<16x32xf32>
    %39 = vector.broadcast %18 : vector<1x32xf32> to vector<16x32xf32>
    %40 = arith.addf %38, %39 : vector<16x32xf32>
    %41 = arith.truncf %40 : vector<16x32xf32> to vector<16x32xbf16>
    %c0_22 = arith.constant 0 : index
    %c0_23 = arith.constant 0 : index
    %42 = vector.load %arg8[%c0_22, %c0_23] : memref<16x32xbf16, #tpu.memory_space<vmem>>, vector<16x32xbf16>
    tpu.vector_store %arg8[%c0_22, %c0_23], %41 {strides = array<i32>} : memref<16x32xbf16, #tpu.memory_space<vmem>>, vector<16x32xbf16>,
    return
  }
  func.func @transform_0(%arg0: i32) -> (i32, i32) {
    %c0_i32 = arith.constant 0 : i32
    %c0_i32_0 = arith.constant 0 : i32
    return %arg0, %c0_i32 : i32, i32
  }
  func.func @transform_1(%arg0: i32) -> (i32, i32) {
    %c0_i32 = arith.constant 0 : i32
    %c0_i32_0 = arith.constant 0 : i32
    %c0_i32_1 = arith.constant 0 : i32
    return %c0_i32, %c0_i32_0 : i32, i32
  }
  func.func @transform_2(%arg0: i32) -> (i32, i32) {
    %c0_i32 = arith.constant 0 : i32
    %c0_i32_0 = arith.constant 0 : i32
    %c0_i32_1 = arith.constant 0 : i32
    return %c0_i32, %c0_i32_0 : i32, i32
  }
  func.func @transform_3(%arg0: i32) -> (i32, i32) {
    %c0_i32 = arith.constant 0 : i32
    %c0_i32_0 = arith.constant 0 : i32
    %c0_i32_1 = arith.constant 0 : i32
    return %c0_i32, %c0_i32_0 : i32, i32
  }
  func.func @transform_4(%arg0: i32) -> (i32, i32) {
    %c0_i32 = arith.constant 0 : i32
    %c0_i32_0 = arith.constant 0 : i32
    %c0_i32_1 = arith.constant 0 : i32
    return %c0_i32, %c0_i32_0 : i32, i32
  }
  func.func @transform_5(%arg0: i32) -> (i32, i32) {
    %c0_i32 = arith.constant 0 : i32
    %c0_i32_0 = arith.constant 0 : i32
    %c0_i32_1 = arith.constant 0 : i32
    return %c0_i32, %c0_i32_0 : i32, i32
  }
  func.func @transform_6(%arg0: i32) -> (i32, i32) {
    %c0_i32 = arith.constant 0 : i32
    %c0_i32_0 = arith.constant 0 : i32
    %c0_i32_1 = arith.constant 0 : i32
    return %c0_i32, %c0_i32_0 : i32, i32
  }
  func.func @transform_7(%arg0: i32) -> (i32, i32) {
    %c0_i32 = arith.constant 0 : i32
    %c0_i32_0 = arith.constant 0 : i32
    return %arg0, %c0_i32 : i32, i32
  }
}

module attributes {stable_mosaic.version = 11 : i64} {
  func.func @_linear_kernel(%arg0: i32, %arg1: memref<16x4xf32, #tpu.memory_space<vmem>>, %arg2: memref<4x32xbf16, #tpu.memory_space<vmem>>, %arg3: memref<1x32xf32, #tpu.memory_space<vmem>>, %arg4: memref<16x32xbf16, #tpu.memory_space<vmem>>) attributes {dimension_semantics = [#tpu.dimension_semantics<parallel>], iteration_bounds = array<i64: 1>, scalar_prefetch = 0 : i64, scratch_operands = 0 : i64, tpu.core_type = #tpu.core_type<tc>, window_params = [{transform_indices = @transform_0, window_bounds = array<i64: 16, 4>}, {pipeline_mode = #tpu.pipeline_mode<synchronous>, transform_indices = @transform_1, window_bounds = array<i64: 4, 32>}, {pipeline_mode = #tpu.pipeline_mode<synchronous>, transform_indices = @transform_2, window_bounds = array<i64: 1, 32>}, {transform_indices = @transform_3, window_bounds = array<i64: 16, 32>}]} {
    %c0 = arith.constant 0 : index
    %c0_0 = arith.constant 0 : index
    %0 = vector.load %arg1[%c0, %c0_0] : memref<16x4xf32, #tpu.memory_space<vmem>>, vector<16x4xf32>
    %1 = arith.truncf %0 : vector<16x4xf32> to vector<16x4xbf16>
    %c0_1 = arith.constant 0 : index
    %c0_2 = arith.constant 0 : index
    %2 = vector.load %arg2[%c0_1, %c0_2] : memref<4x32xbf16, #tpu.memory_space<vmem>>, vector<4x32xbf16>
    %cst = arith.constant dense<0.000000e+00> : vector<16x32xf32>
    %3 = tpu.matmul %1, %2, %cst {dimension_numbers = #tpu.dot_dimension_numbers<[1], [0], [0], [1], [0, 0, 1, 1], [], []>} : vector<16x4xbf16>, vector<4x32xbf16>, vector<16x32xf32> -> vector<16x32xf32>
    %c0_3 = arith.constant 0 : index
    %c0_4 = arith.constant 0 : index
    %4 = vector.load %arg3[%c0_3, %c0_4] : memref<1x32xf32, #tpu.memory_space<vmem>>, vector<1x32xf32>
    %5 = vector.broadcast %4 : vector<1x32xf32> to vector<16x32xf32>
    %6 = arith.addf %3, %5 : vector<16x32xf32>
    %7 = arith.truncf %6 : vector<16x32xf32> to vector<16x32xbf16>
    %c0_5 = arith.constant 0 : index
    %c0_6 = arith.constant 0 : index
    %8 = vector.load %arg4[%c0_5, %c0_6] : memref<16x32xbf16, #tpu.memory_space<vmem>>, vector<16x32xbf16>
    tpu.vector_store %arg4[%c0_5, %c0_6], %7 {strides = array<i32>} : memref<16x32xbf16, #tpu.memory_space<vmem>>, vector<16x32xbf16>,
    return
  }
  func.func @transform_0(%arg0: i32) -> (i32, i32) {
    %c0_i32 = arith.constant 0 : i32
    %c0_i32_0 = arith.constant 0 : i32
    return %arg0, %c0_i32 : i32, i32
  }
  func.func @transform_1(%arg0: i32) -> (i32, i32) {
    %c0_i32 = arith.constant 0 : i32
    %c0_i32_0 = arith.constant 0 : i32
    %c0_i32_1 = arith.constant 0 : i32
    return %c0_i32, %c0_i32_0 : i32, i32
  }
  func.func @transform_2(%arg0: i32) -> (i32, i32) {
    %c0_i32 = arith.constant 0 : i32
    %c0_i32_0 = arith.constant 0 : i32
    %c0_i32_1 = arith.constant 0 : i32
    return %c0_i32, %c0_i32_0 : i32, i32
  }
  func.func @transform_3(%arg0: i32) -> (i32, i32) {
    %c0_i32 = arith.constant 0 : i32
    %c0_i32_0 = arith.constant 0 : i32
    return %arg0, %c0_i32 : i32, i32
  }
}

module attributes {stable_mosaic.version = 11 : i64} {
  func.func @_cross_attn_block_kernel(%arg0: i32, %arg1: memref<2xi32, #tpu.memory_space<smem>>, %arg2: memref<1x8x32xbf16, #tpu.memory_space<vmem>>, %arg3: memref<1x8x32xbf16, #tpu.memory_space<vmem>>, %arg4: memref<32x32xbf16, #tpu.memory_space<vmem>>, %arg5: memref<1x32xf32, #tpu.memory_space<vmem>>, %arg6: memref<32x64xbf16, #tpu.memory_space<vmem>>, %arg7: memref<1x64xf32, #tpu.memory_space<vmem>>, %arg8: memref<32x32xbf16, #tpu.memory_space<vmem>>, %arg9: memref<1x32xf32, #tpu.memory_space<vmem>>, %arg10: memref<1x32xf32, #tpu.memory_space<vmem>>, %arg11: memref<1x32xf32, #tpu.memory_space<vmem>>, %arg12: memref<1x8x32xbf16, #tpu.memory_space<vmem>>) attributes {dimension_semantics = [#tpu.dimension_semantics<parallel>], iteration_bounds = array<i64: 2>, scalar_prefetch = 1 : i64, scratch_operands = 0 : i64, tpu.core_type = #tpu.core_type<tc>, window_params = [{transform_indices = @transform_0, window_bounds = array<i64: 1, 8, 32>}, {transform_indices = @transform_1, window_bounds = array<i64: 1, 8, 32>}, {pipeline_mode = #tpu.pipeline_mode<synchronous>, transform_indices = @transform_2, window_bounds = array<i64: 32, 32>}, {pipeline_mode = #tpu.pipeline_mode<synchronous>, transform_indices = @transform_3, window_bounds = array<i64: 1, 32>}, {pipeline_mode = #tpu.pipeline_mode<synchronous>, transform_indices = @transform_4, window_bounds = array<i64: 32, 64>}, {pipeline_mode = #tpu.pipeline_mode<synchronous>, transform_indices = @transform_5, window_bounds = array<i64: 1, 64>}, {pipeline_mode = #tpu.pipeline_mode<synchronous>, transform_indices = @transform_6, window_bounds = array<i64: 32, 32>}, {pipeline_mode = #tpu.pipeline_mode<synchronous>, transform_indices = @transform_7, window_bounds = array<i64: 1, 32>}, {pipeline_mode = #tpu.pipeline_mode<synchronous>, transform_indices = @transform_8, window_bounds = array<i64: 1, 32>}, {pipeline_mode = #tpu.pipeline_mode<synchronous>, transform_indices = @transform_9, window_bounds = array<i64: 1, 32>}, {transform_indices = @transform_10, window_bounds = array<i64: 1, 8, 32>}]} {
    %c0 = arith.constant 0 : index
    %c0_0 = arith.constant 0 : index
    %c0_1 = arith.constant 0 : index
    %0 = vector.load %arg2[%c0, %c0_0, %c0_1] : memref<1x8x32xbf16, #tpu.memory_space<vmem>>, vector<1x8x32xbf16>
    %1 = vector.shape_cast %0 : vector<1x8x32xbf16> to vector<8x32xbf16>
    %2 = arith.extf %1 : vector<8x32xbf16> to vector<8x32xf32>
    %c0_2 = arith.constant 0 : index
    %c0_3 = arith.constant 0 : index
    %c0_4 = arith.constant 0 : index
    %3 = vector.load %arg2[%c0_2, %c0_3, %c0_4] : memref<1x8x32xbf16, #tpu.memory_space<vmem>>, vector<1x8x32xbf16>
    %4 = vector.shape_cast %3 : vector<1x8x32xbf16> to vector<8x32xbf16>
    %c0_5 = arith.constant 0 : index
    %c0_6 = arith.constant 0 : index
    %5 = vector.load %arg4[%c0_5, %c0_6] : memref<32x32xbf16, #tpu.memory_space<vmem>>, vector<32x32xbf16>
    %cst = arith.constant dense<0.000000e+00> : vector<8x32xf32>
    %6 = tpu.matmul %4, %5, %cst {dimension_numbers = #tpu.dot_dimension_numbers<[1], [0], [0], [1], [0, 0, 1, 1], [], []>} : vector<8x32xbf16>, vector<32x32xbf16>, vector<8x32xf32> -> vector<8x32xf32>
    %c0_7 = arith.constant 0 : index
    %c0_8 = arith.constant 0 : index
    %7 = vector.load %arg5[%c0_7, %c0_8] : memref<1x32xf32, #tpu.memory_space<vmem>>, vector<1x32xf32>
    %8 = vector.broadcast %7 : vector<1x32xf32> to vector<8x32xf32>
    %9 = arith.addf %6, %8 : vector<8x32xf32>
    %c0_9 = arith.constant 0 : index
    %c0_10 = arith.constant 0 : index
    %c0_11 = arith.constant 0 : index
    %10 = vector.load %arg3[%c0_9, %c0_10, %c0_11] : memref<1x8x32xbf16, #tpu.memory_space<vmem>>, vector<1x8x32xbf16>
    %11 = vector.shape_cast %10 : vector<1x8x32xbf16> to vector<8x32xbf16>
    %c0_12 = arith.constant 0 : index
    %c0_13 = arith.constant 0 : index
    %12 = vector.load %arg6[%c0_12, %c0_13] : memref<32x64xbf16, #tpu.memory_space<vmem>>, vector<32x64xbf16>
    %cst_14 = arith.constant dense<0.000000e+00> : vector<8x64xf32>
    %13 = tpu.matmul %11, %12, %cst_14 {dimension_numbers = #tpu.dot_dimension_numbers<[1], [0], [0], [1], [0, 0, 1, 1], [], []>} : vector<8x32xbf16>, vector<32x64xbf16>, vector<8x64xf32> -> vector<8x64xf32>
    %c0_15 = arith.constant 0 : index
    %c0_16 = arith.constant 0 : index
    %14 = vector.load %arg7[%c0_15, %c0_16] : memref<1x64xf32, #tpu.memory_space<vmem>>, vector<1x64xf32>
    %15 = vector.broadcast %14 : vector<1x64xf32> to vector<8x64xf32>
    %16 = arith.addf %13, %15 : vector<8x64xf32>
    %17 = vector.extract_strided_slice %16 {offsets = [0, 0], sizes = [8, 32], strides = [1, 1]} : vector<8x64xf32> to vector<8x32xf32>
    %18 = vector.extract_strided_slice %16 {offsets = [0, 32], sizes = [8, 32], strides = [1, 1]} : vector<8x64xf32> to vector<8x32xf32>
    %cst_17 = arith.constant 0.000000e+00 : f32
    %19 = vector.broadcast %cst_17 : f32 to vector<8x32xf32>
    %c0_18 = arith.constant 0 : index
    %c0_19 = arith.constant 0 : index
    %20 = vector.load %arg9[%c0_18, %c0_19] : memref<1x32xf32, #tpu.memory_space<vmem>>, vector<1x32xf32>
    %21 = vector.broadcast %20 : vector<1x32xf32> to vector<8x32xf32>
    %22 = arith.addf %19, %21 : vector<8x32xf32>
    %23 = vector.extract_strided_slice %9 {offsets = [0, 0], sizes = [8, 4], strides = [1, 1]} : vector<8x32xf32> to vector<8x4xf32>
    %cst_20 = arith.constant 5.000000e-01 : f32
    %24 = vector.broadcast %cst_20 : f32 to vector<8x4xf32>
    %25 = arith.mulf %23, %24 : vector<8x4xf32>
    %26 = arith.truncf %25 : vector<8x4xf32> to vector<8x4xbf16>
    %27 = vector.extract_strided_slice %17 {offsets = [0, 0], sizes = [8, 4], strides = [1, 1]} : vector<8x32xf32> to vector<8x4xf32>
    %28 = arith.truncf %27 : vector<8x4xf32> to vector<8x4xbf16>
    %29 = vector.extract_strided_slice %18 {offsets = [0, 0], sizes = [8, 4], strides = [1, 1]} : vector<8x32xf32> to vector<8x4xf32>
    %30 = arith.truncf %29 : vector<8x4xf32> to vector<8x4xbf16>
    %cst_21 = arith.constant dense<0.000000e+00> : vector<8x8xf32>
    %31 = tpu.matmul %26, %28, %cst_21 {dimension_numbers = #tpu.dot_dimension_numbers<[1], [1], [0], [0], [0, 0, 1, 0], [], []>} : vector<8x4xbf16>, vector<8x4xbf16>, vector<8x8xf32> -> vector<8x8xf32>
    %cst_22 = arith.constant dense<0xFF800000> : vector<8xf32>
    %32 = vector.multi_reduction <maximumf>, %31, %cst_22 [1] : vector<8x8xf32> to vector<8xf32>
    %33 = vector.shape_cast %32 : vector<8xf32> to vector<8x1xf32>
    %34 = vector.broadcast %33 : vector<8x1xf32> to vector<8x8xf32>
    %35 = arith.subf %31, %34 : vector<8x8xf32>
    %36 = math.exp %35 : vector<8x8xf32>
    %cst_23 = arith.constant dense<0.000000e+00> : vector<8xf32>
    %37 = vector.multi_reduction <add>, %36, %cst_23 [1] : vector<8x8xf32> to vector<8xf32>
    %38 = vector.shape_cast %37 : vector<8xf32> to vector<8x1xf32>
    %39 = arith.truncf %36 : vector<8x8xf32> to vector<8x8xbf16>
    %cst_24 = arith.constant dense<0.000000e+00> : vector<8x4xf32>
    %40 = tpu.matmul %39, %30, %cst_24 {dimension_numbers = #tpu.dot_dimension_numbers<[1], [0], [0], [1], [0, 0, 1, 1], [], []>} : vector<8x8xbf16>, vector<8x4xbf16>, vector<8x4xf32> -> vector<8x4xf32>
    %41 = tpu.reciprocal %38 {approx = true} : vector<8x1xf32> -> vector<8x1xf32>
    %42 = vector.broadcast %41 : vector<8x1xf32> to vector<8x4xf32>
    %43 = arith.mulf %40, %42 : vector<8x4xf32>
    %44 = arith.truncf %43 : vector<8x4xf32> to vector<8x4xbf16>
    %c0_25 = arith.constant 0 : index
    %c0_26 = arith.constant 0 : index
    %45 = vector.load %arg8[%c0_25, %c0_26] : memref<32x32xbf16, #tpu.memory_space<vmem>>, vector<4x32xbf16>
    %cst_27 = arith.constant dense<0.000000e+00> : vector<8x32xf32>
    %46 = tpu.matmul %44, %45, %cst_27 {dimension_numbers = #tpu.dot_dimension_numbers<[1], [0], [0], [1], [0, 0, 1, 1], [], []>} : vector<8x4xbf16>, vector<4x32xbf16>, vector<8x32xf32> -> vector<8x32xf32>
    %47 = arith.addf %22, %46 : vector<8x32xf32>
    %48 = vector.extract_strided_slice %9 {offsets = [0, 4], sizes = [8, 4], strides = [1, 1]} : vector<8x32xf32> to vector<8x4xf32>
    %cst_28 = arith.constant 5.000000e-01 : f32
    %49 = vector.broadcast %cst_28 : f32 to vector<8x4xf32>
    %50 = arith.mulf %48, %49 : vector<8x4xf32>
    %51 = arith.truncf %50 : vector<8x4xf32> to vector<8x4xbf16>
    %52 = vector.extract_strided_slice %17 {offsets = [0, 4], sizes = [8, 4], strides = [1, 1]} : vector<8x32xf32> to vector<8x4xf32>
    %53 = arith.truncf %52 : vector<8x4xf32> to vector<8x4xbf16>
    %54 = vector.extract_strided_slice %18 {offsets = [0, 4], sizes = [8, 4], strides = [1, 1]} : vector<8x32xf32> to vector<8x4xf32>
    %55 = arith.truncf %54 : vector<8x4xf32> to vector<8x4xbf16>
    %cst_29 = arith.constant dense<0.000000e+00> : vector<8x8xf32>
    %56 = tpu.matmul %51, %53, %cst_29 {dimension_numbers = #tpu.dot_dimension_numbers<[1], [1], [0], [0], [0, 0, 1, 0], [], []>} : vector<8x4xbf16>, vector<8x4xbf16>, vector<8x8xf32> -> vector<8x8xf32>
    %cst_30 = arith.constant dense<0xFF800000> : vector<8xf32>
    %57 = vector.multi_reduction <maximumf>, %56, %cst_30 [1] : vector<8x8xf32> to vector<8xf32>
    %58 = vector.shape_cast %57 : vector<8xf32> to vector<8x1xf32>
    %59 = vector.broadcast %58 : vector<8x1xf32> to vector<8x8xf32>
    %60 = arith.subf %56, %59 : vector<8x8xf32>
    %61 = math.exp %60 : vector<8x8xf32>
    %cst_31 = arith.constant dense<0.000000e+00> : vector<8xf32>
    %62 = vector.multi_reduction <add>, %61, %cst_31 [1] : vector<8x8xf32> to vector<8xf32>
    %63 = vector.shape_cast %62 : vector<8xf32> to vector<8x1xf32>
    %64 = arith.truncf %61 : vector<8x8xf32> to vector<8x8xbf16>
    %cst_32 = arith.constant dense<0.000000e+00> : vector<8x4xf32>
    %65 = tpu.matmul %64, %55, %cst_32 {dimension_numbers = #tpu.dot_dimension_numbers<[1], [0], [0], [1], [0, 0, 1, 1], [], []>} : vector<8x8xbf16>, vector<8x4xbf16>, vector<8x4xf32> -> vector<8x4xf32>
    %66 = tpu.reciprocal %63 {approx = true} : vector<8x1xf32> -> vector<8x1xf32>
    %67 = vector.broadcast %66 : vector<8x1xf32> to vector<8x4xf32>
    %68 = arith.mulf %65, %67 : vector<8x4xf32>
    %69 = arith.truncf %68 : vector<8x4xf32> to vector<8x4xbf16>
    %c4 = arith.constant 4 : index
    %c0_33 = arith.constant 0 : index
    %70 = vector.load %arg8[%c4, %c0_33] : memref<32x32xbf16, #tpu.memory_space<vmem>>, vector<4x32xbf16>
    %cst_34 = arith.constant dense<0.000000e+00> : vector<8x32xf32>
    %71 = tpu.matmul %69, %70, %cst_34 {dimension_numbers = #tpu.dot_dimension_numbers<[1], [0], [0], [1], [0, 0, 1, 1], [], []>} : vector<8x4xbf16>, vector<4x32xbf16>, vector<8x32xf32> -> vector<8x32xf32>
    %72 = arith.addf %47, %71 : vector<8x32xf32>
    %73 = vector.extract_strided_slice %9 {offsets = [0, 8], sizes = [8, 4], strides = [1, 1]} : vector<8x32xf32> to vector<8x4xf32>
    %cst_35 = arith.constant 5.000000e-01 : f32
    %74 = vector.broadcast %cst_35 : f32 to vector<8x4xf32>
    %75 = arith.mulf %73, %74 : vector<8x4xf32>
    %76 = arith.truncf %75 : vector<8x4xf32> to vector<8x4xbf16>
    %77 = vector.extract_strided_slice %17 {offsets = [0, 8], sizes = [8, 4], strides = [1, 1]} : vector<8x32xf32> to vector<8x4xf32>
    %78 = arith.truncf %77 : vector<8x4xf32> to vector<8x4xbf16>
    %79 = vector.extract_strided_slice %18 {offsets = [0, 8], sizes = [8, 4], strides = [1, 1]} : vector<8x32xf32> to vector<8x4xf32>
    %80 = arith.truncf %79 : vector<8x4xf32> to vector<8x4xbf16>
    %cst_36 = arith.constant dense<0.000000e+00> : vector<8x8xf32>
    %81 = tpu.matmul %76, %78, %cst_36 {dimension_numbers = #tpu.dot_dimension_numbers<[1], [1], [0], [0], [0, 0, 1, 0], [], []>} : vector<8x4xbf16>, vector<8x4xbf16>, vector<8x8xf32> -> vector<8x8xf32>
    %cst_37 = arith.constant dense<0xFF800000> : vector<8xf32>
    %82 = vector.multi_reduction <maximumf>, %81, %cst_37 [1] : vector<8x8xf32> to vector<8xf32>
    %83 = vector.shape_cast %82 : vector<8xf32> to vector<8x1xf32>
    %84 = vector.broadcast %83 : vector<8x1xf32> to vector<8x8xf32>
    %85 = arith.subf %81, %84 : vector<8x8xf32>
    %86 = math.exp %85 : vector<8x8xf32>
    %cst_38 = arith.constant dense<0.000000e+00> : vector<8xf32>
    %87 = vector.multi_reduction <add>, %86, %cst_38 [1] : vector<8x8xf32> to vector<8xf32>
    %88 = vector.shape_cast %87 : vector<8xf32> to vector<8x1xf32>
    %89 = arith.truncf %86 : vector<8x8xf32> to vector<8x8xbf16>
    %cst_39 = arith.constant dense<0.000000e+00> : vector<8x4xf32>
    %90 = tpu.matmul %89, %80, %cst_39 {dimension_numbers = #tpu.dot_dimension_numbers<[1], [0], [0], [1], [0, 0, 1, 1], [], []>} : vector<8x8xbf16>, vector<8x4xbf16>, vector<8x4xf32> -> vector<8x4xf32>
    %91 = tpu.reciprocal %88 {approx = true} : vector<8x1xf32> -> vector<8x1xf32>
    %92 = vector.broadcast %91 : vector<8x1xf32> to vector<8x4xf32>
    %93 = arith.mulf %90, %92 : vector<8x4xf32>
    %94 = arith.truncf %93 : vector<8x4xf32> to vector<8x4xbf16>
    %c8 = arith.constant 8 : index
    %c0_40 = arith.constant 0 : index
    %95 = vector.load %arg8[%c8, %c0_40] : memref<32x32xbf16, #tpu.memory_space<vmem>>, vector<4x32xbf16>
    %cst_41 = arith.constant dense<0.000000e+00> : vector<8x32xf32>
    %96 = tpu.matmul %94, %95, %cst_41 {dimension_numbers = #tpu.dot_dimension_numbers<[1], [0], [0], [1], [0, 0, 1, 1], [], []>} : vector<8x4xbf16>, vector<4x32xbf16>, vector<8x32xf32> -> vector<8x32xf32>
    %97 = arith.addf %72, %96 : vector<8x32xf32>
    %98 = vector.extract_strided_slice %9 {offsets = [0, 12], sizes = [8, 4], strides = [1, 1]} : vector<8x32xf32> to vector<8x4xf32>
    %cst_42 = arith.constant 5.000000e-01 : f32
    %99 = vector.broadcast %cst_42 : f32 to vector<8x4xf32>
    %100 = arith.mulf %98, %99 : vector<8x4xf32>
    %101 = arith.truncf %100 : vector<8x4xf32> to vector<8x4xbf16>
    %102 = vector.extract_strided_slice %17 {offsets = [0, 12], sizes = [8, 4], strides = [1, 1]} : vector<8x32xf32> to vector<8x4xf32>
    %103 = arith.truncf %102 : vector<8x4xf32> to vector<8x4xbf16>
    %104 = vector.extract_strided_slice %18 {offsets = [0, 12], sizes = [8, 4], strides = [1, 1]} : vector<8x32xf32> to vector<8x4xf32>
    %105 = arith.truncf %104 : vector<8x4xf32> to vector<8x4xbf16>
    %cst_43 = arith.constant dense<0.000000e+00> : vector<8x8xf32>
    %106 = tpu.matmul %101, %103, %cst_43 {dimension_numbers = #tpu.dot_dimension_numbers<[1], [1], [0], [0], [0, 0, 1, 0], [], []>} : vector<8x4xbf16>, vector<8x4xbf16>, vector<8x8xf32> -> vector<8x8xf32>
    %cst_44 = arith.constant dense<0xFF800000> : vector<8xf32>
    %107 = vector.multi_reduction <maximumf>, %106, %cst_44 [1] : vector<8x8xf32> to vector<8xf32>
    %108 = vector.shape_cast %107 : vector<8xf32> to vector<8x1xf32>
    %109 = vector.broadcast %108 : vector<8x1xf32> to vector<8x8xf32>
    %110 = arith.subf %106, %109 : vector<8x8xf32>
    %111 = math.exp %110 : vector<8x8xf32>
    %cst_45 = arith.constant dense<0.000000e+00> : vector<8xf32>
    %112 = vector.multi_reduction <add>, %111, %cst_45 [1] : vector<8x8xf32> to vector<8xf32>
    %113 = vector.shape_cast %112 : vector<8xf32> to vector<8x1xf32>
    %114 = arith.truncf %111 : vector<8x8xf32> to vector<8x8xbf16>
    %cst_46 = arith.constant dense<0.000000e+00> : vector<8x4xf32>
    %115 = tpu.matmul %114, %105, %cst_46 {dimension_numbers = #tpu.dot_dimension_numbers<[1], [0], [0], [1], [0, 0, 1, 1], [], []>} : vector<8x8xbf16>, vector<8x4xbf16>, vector<8x4xf32> -> vector<8x4xf32>
    %116 = tpu.reciprocal %113 {approx = true} : vector<8x1xf32> -> vector<8x1xf32>
    %117 = vector.broadcast %116 : vector<8x1xf32> to vector<8x4xf32>
    %118 = arith.mulf %115, %117 : vector<8x4xf32>
    %119 = arith.truncf %118 : vector<8x4xf32> to vector<8x4xbf16>
    %c12 = arith.constant 12 : index
    %c0_47 = arith.constant 0 : index
    %120 = vector.load %arg8[%c12, %c0_47] : memref<32x32xbf16, #tpu.memory_space<vmem>>, vector<4x32xbf16>
    %cst_48 = arith.constant dense<0.000000e+00> : vector<8x32xf32>
    %121 = tpu.matmul %119, %120, %cst_48 {dimension_numbers = #tpu.dot_dimension_numbers<[1], [0], [0], [1], [0, 0, 1, 1], [], []>} : vector<8x4xbf16>, vector<4x32xbf16>, vector<8x32xf32> -> vector<8x32xf32>
    %122 = arith.addf %97, %121 : vector<8x32xf32>
    %123 = vector.extract_strided_slice %9 {offsets = [0, 16], sizes = [8, 4], strides = [1, 1]} : vector<8x32xf32> to vector<8x4xf32>
    %cst_49 = arith.constant 5.000000e-01 : f32
    %124 = vector.broadcast %cst_49 : f32 to vector<8x4xf32>
    %125 = arith.mulf %123, %124 : vector<8x4xf32>
    %126 = arith.truncf %125 : vector<8x4xf32> to vector<8x4xbf16>
    %127 = vector.extract_strided_slice %17 {offsets = [0, 16], sizes = [8, 4], strides = [1, 1]} : vector<8x32xf32> to vector<8x4xf32>
    %128 = arith.truncf %127 : vector<8x4xf32> to vector<8x4xbf16>
    %129 = vector.extract_strided_slice %18 {offsets = [0, 16], sizes = [8, 4], strides = [1, 1]} : vector<8x32xf32> to vector<8x4xf32>
    %130 = arith.truncf %129 : vector<8x4xf32> to vector<8x4xbf16>
    %cst_50 = arith.constant dense<0.000000e+00> : vector<8x8xf32>
    %131 = tpu.matmul %126, %128, %cst_50 {dimension_numbers = #tpu.dot_dimension_numbers<[1], [1], [0], [0], [0, 0, 1, 0], [], []>} : vector<8x4xbf16>, vector<8x4xbf16>, vector<8x8xf32> -> vector<8x8xf32>
    %cst_51 = arith.constant dense<0xFF800000> : vector<8xf32>
    %132 = vector.multi_reduction <maximumf>, %131, %cst_51 [1] : vector<8x8xf32> to vector<8xf32>
    %133 = vector.shape_cast %132 : vector<8xf32> to vector<8x1xf32>
    %134 = vector.broadcast %133 : vector<8x1xf32> to vector<8x8xf32>
    %135 = arith.subf %131, %134 : vector<8x8xf32>
    %136 = math.exp %135 : vector<8x8xf32>
    %cst_52 = arith.constant dense<0.000000e+00> : vector<8xf32>
    %137 = vector.multi_reduction <add>, %136, %cst_52 [1] : vector<8x8xf32> to vector<8xf32>
    %138 = vector.shape_cast %137 : vector<8xf32> to vector<8x1xf32>
    %139 = arith.truncf %136 : vector<8x8xf32> to vector<8x8xbf16>
    %cst_53 = arith.constant dense<0.000000e+00> : vector<8x4xf32>
    %140 = tpu.matmul %139, %130, %cst_53 {dimension_numbers = #tpu.dot_dimension_numbers<[1], [0], [0], [1], [0, 0, 1, 1], [], []>} : vector<8x8xbf16>, vector<8x4xbf16>, vector<8x4xf32> -> vector<8x4xf32>
    %141 = tpu.reciprocal %138 {approx = true} : vector<8x1xf32> -> vector<8x1xf32>
    %142 = vector.broadcast %141 : vector<8x1xf32> to vector<8x4xf32>
    %143 = arith.mulf %140, %142 : vector<8x4xf32>
    %144 = arith.truncf %143 : vector<8x4xf32> to vector<8x4xbf16>
    %c16 = arith.constant 16 : index
    %c0_54 = arith.constant 0 : index
    %145 = vector.load %arg8[%c16, %c0_54] : memref<32x32xbf16, #tpu.memory_space<vmem>>, vector<4x32xbf16>
    %cst_55 = arith.constant dense<0.000000e+00> : vector<8x32xf32>
    %146 = tpu.matmul %144, %145, %cst_55 {dimension_numbers = #tpu.dot_dimension_numbers<[1], [0], [0], [1], [0, 0, 1, 1], [], []>} : vector<8x4xbf16>, vector<4x32xbf16>, vector<8x32xf32> -> vector<8x32xf32>
    %147 = arith.addf %122, %146 : vector<8x32xf32>
    %148 = vector.extract_strided_slice %9 {offsets = [0, 20], sizes = [8, 4], strides = [1, 1]} : vector<8x32xf32> to vector<8x4xf32>
    %cst_56 = arith.constant 5.000000e-01 : f32
    %149 = vector.broadcast %cst_56 : f32 to vector<8x4xf32>
    %150 = arith.mulf %148, %149 : vector<8x4xf32>
    %151 = arith.truncf %150 : vector<8x4xf32> to vector<8x4xbf16>
    %152 = vector.extract_strided_slice %17 {offsets = [0, 20], sizes = [8, 4], strides = [1, 1]} : vector<8x32xf32> to vector<8x4xf32>
    %153 = arith.truncf %152 : vector<8x4xf32> to vector<8x4xbf16>
    %154 = vector.extract_strided_slice %18 {offsets = [0, 20], sizes = [8, 4], strides = [1, 1]} : vector<8x32xf32> to vector<8x4xf32>
    %155 = arith.truncf %154 : vector<8x4xf32> to vector<8x4xbf16>
    %cst_57 = arith.constant dense<0.000000e+00> : vector<8x8xf32>
    %156 = tpu.matmul %151, %153, %cst_57 {dimension_numbers = #tpu.dot_dimension_numbers<[1], [1], [0], [0], [0, 0, 1, 0], [], []>} : vector<8x4xbf16>, vector<8x4xbf16>, vector<8x8xf32> -> vector<8x8xf32>
    %cst_58 = arith.constant dense<0xFF800000> : vector<8xf32>
    %157 = vector.multi_reduction <maximumf>, %156, %cst_58 [1] : vector<8x8xf32> to vector<8xf32>
    %158 = vector.shape_cast %157 : vector<8xf32> to vector<8x1xf32>
    %159 = vector.broadcast %158 : vector<8x1xf32> to vector<8x8xf32>
    %160 = arith.subf %156, %159 : vector<8x8xf32>
    %161 = math.exp %160 : vector<8x8xf32>
    %cst_59 = arith.constant dense<0.000000e+00> : vector<8xf32>
    %162 = vector.multi_reduction <add>, %161, %cst_59 [1] : vector<8x8xf32> to vector<8xf32>
    %163 = vector.shape_cast %162 : vector<8xf32> to vector<8x1xf32>
    %164 = arith.truncf %161 : vector<8x8xf32> to vector<8x8xbf16>
    %cst_60 = arith.constant dense<0.000000e+00> : vector<8x4xf32>
    %165 = tpu.matmul %164, %155, %cst_60 {dimension_numbers = #tpu.dot_dimension_numbers<[1], [0], [0], [1], [0, 0, 1, 1], [], []>} : vector<8x8xbf16>, vector<8x4xbf16>, vector<8x4xf32> -> vector<8x4xf32>
    %166 = tpu.reciprocal %163 {approx = true} : vector<8x1xf32> -> vector<8x1xf32>
    %167 = vector.broadcast %166 : vector<8x1xf32> to vector<8x4xf32>
    %168 = arith.mulf %165, %167 : vector<8x4xf32>
    %169 = arith.truncf %168 : vector<8x4xf32> to vector<8x4xbf16>
    %c20 = arith.constant 20 : index
    %c0_61 = arith.constant 0 : index
    %170 = vector.load %arg8[%c20, %c0_61] : memref<32x32xbf16, #tpu.memory_space<vmem>>, vector<4x32xbf16>
    %cst_62 = arith.constant dense<0.000000e+00> : vector<8x32xf32>
    %171 = tpu.matmul %169, %170, %cst_62 {dimension_numbers = #tpu.dot_dimension_numbers<[1], [0], [0], [1], [0, 0, 1, 1], [], []>} : vector<8x4xbf16>, vector<4x32xbf16>, vector<8x32xf32> -> vector<8x32xf32>
    %172 = arith.addf %147, %171 : vector<8x32xf32>
    %173 = vector.extract_strided_slice %9 {offsets = [0, 24], sizes = [8, 4], strides = [1, 1]} : vector<8x32xf32> to vector<8x4xf32>
    %cst_63 = arith.constant 5.000000e-01 : f32
    %174 = vector.broadcast %cst_63 : f32 to vector<8x4xf32>
    %175 = arith.mulf %173, %174 : vector<8x4xf32>
    %176 = arith.truncf %175 : vector<8x4xf32> to vector<8x4xbf16>
    %177 = vector.extract_strided_slice %17 {offsets = [0, 24], sizes = [8, 4], strides = [1, 1]} : vector<8x32xf32> to vector<8x4xf32>
    %178 = arith.truncf %177 : vector<8x4xf32> to vector<8x4xbf16>
    %179 = vector.extract_strided_slice %18 {offsets = [0, 24], sizes = [8, 4], strides = [1, 1]} : vector<8x32xf32> to vector<8x4xf32>
    %180 = arith.truncf %179 : vector<8x4xf32> to vector<8x4xbf16>
    %cst_64 = arith.constant dense<0.000000e+00> : vector<8x8xf32>
    %181 = tpu.matmul %176, %178, %cst_64 {dimension_numbers = #tpu.dot_dimension_numbers<[1], [1], [0], [0], [0, 0, 1, 0], [], []>} : vector<8x4xbf16>, vector<8x4xbf16>, vector<8x8xf32> -> vector<8x8xf32>
    %cst_65 = arith.constant dense<0xFF800000> : vector<8xf32>
    %182 = vector.multi_reduction <maximumf>, %181, %cst_65 [1] : vector<8x8xf32> to vector<8xf32>
    %183 = vector.shape_cast %182 : vector<8xf32> to vector<8x1xf32>
    %184 = vector.broadcast %183 : vector<8x1xf32> to vector<8x8xf32>
    %185 = arith.subf %181, %184 : vector<8x8xf32>
    %186 = math.exp %185 : vector<8x8xf32>
    %cst_66 = arith.constant dense<0.000000e+00> : vector<8xf32>
    %187 = vector.multi_reduction <add>, %186, %cst_66 [1] : vector<8x8xf32> to vector<8xf32>
    %188 = vector.shape_cast %187 : vector<8xf32> to vector<8x1xf32>
    %189 = arith.truncf %186 : vector<8x8xf32> to vector<8x8xbf16>
    %cst_67 = arith.constant dense<0.000000e+00> : vector<8x4xf32>
    %190 = tpu.matmul %189, %180, %cst_67 {dimension_numbers = #tpu.dot_dimension_numbers<[1], [0], [0], [1], [0, 0, 1, 1], [], []>} : vector<8x8xbf16>, vector<8x4xbf16>, vector<8x4xf32> -> vector<8x4xf32>
    %191 = tpu.reciprocal %188 {approx = true} : vector<8x1xf32> -> vector<8x1xf32>
    %192 = vector.broadcast %191 : vector<8x1xf32> to vector<8x4xf32>
    %193 = arith.mulf %190, %192 : vector<8x4xf32>
    %194 = arith.truncf %193 : vector<8x4xf32> to vector<8x4xbf16>
    %c24 = arith.constant 24 : index
    %c0_68 = arith.constant 0 : index
    %195 = vector.load %arg8[%c24, %c0_68] : memref<32x32xbf16, #tpu.memory_space<vmem>>, vector<4x32xbf16>
    %cst_69 = arith.constant dense<0.000000e+00> : vector<8x32xf32>
    %196 = tpu.matmul %194, %195, %cst_69 {dimension_numbers = #tpu.dot_dimension_numbers<[1], [0], [0], [1], [0, 0, 1, 1], [], []>} : vector<8x4xbf16>, vector<4x32xbf16>, vector<8x32xf32> -> vector<8x32xf32>
    %197 = arith.addf %172, %196 : vector<8x32xf32>
    %198 = vector.extract_strided_slice %9 {offsets = [0, 28], sizes = [8, 4], strides = [1, 1]} : vector<8x32xf32> to vector<8x4xf32>
    %cst_70 = arith.constant 5.000000e-01 : f32
    %199 = vector.broadcast %cst_70 : f32 to vector<8x4xf32>
    %200 = arith.mulf %198, %199 : vector<8x4xf32>
    %201 = arith.truncf %200 : vector<8x4xf32> to vector<8x4xbf16>
    %202 = vector.extract_strided_slice %17 {offsets = [0, 28], sizes = [8, 4], strides = [1, 1]} : vector<8x32xf32> to vector<8x4xf32>
    %203 = arith.truncf %202 : vector<8x4xf32> to vector<8x4xbf16>
    %204 = vector.extract_strided_slice %18 {offsets = [0, 28], sizes = [8, 4], strides = [1, 1]} : vector<8x32xf32> to vector<8x4xf32>
    %205 = arith.truncf %204 : vector<8x4xf32> to vector<8x4xbf16>
    %cst_71 = arith.constant dense<0.000000e+00> : vector<8x8xf32>
    %206 = tpu.matmul %201, %203, %cst_71 {dimension_numbers = #tpu.dot_dimension_numbers<[1], [1], [0], [0], [0, 0, 1, 0], [], []>} : vector<8x4xbf16>, vector<8x4xbf16>, vector<8x8xf32> -> vector<8x8xf32>
    %cst_72 = arith.constant dense<0xFF800000> : vector<8xf32>
    %207 = vector.multi_reduction <maximumf>, %206, %cst_72 [1] : vector<8x8xf32> to vector<8xf32>
    %208 = vector.shape_cast %207 : vector<8xf32> to vector<8x1xf32>
    %209 = vector.broadcast %208 : vector<8x1xf32> to vector<8x8xf32>
    %210 = arith.subf %206, %209 : vector<8x8xf32>
    %211 = math.exp %210 : vector<8x8xf32>
    %cst_73 = arith.constant dense<0.000000e+00> : vector<8xf32>
    %212 = vector.multi_reduction <add>, %211, %cst_73 [1] : vector<8x8xf32> to vector<8xf32>
    %213 = vector.shape_cast %212 : vector<8xf32> to vector<8x1xf32>
    %214 = arith.truncf %211 : vector<8x8xf32> to vector<8x8xbf16>
    %cst_74 = arith.constant dense<0.000000e+00> : vector<8x4xf32>
    %215 = tpu.matmul %214, %205, %cst_74 {dimension_numbers = #tpu.dot_dimension_numbers<[1], [0], [0], [1], [0, 0, 1, 1], [], []>} : vector<8x8xbf16>, vector<8x4xbf16>, vector<8x4xf32> -> vector<8x4xf32>
    %216 = tpu.reciprocal %213 {approx = true} : vector<8x1xf32> -> vector<8x1xf32>
    %217 = vector.broadcast %216 : vector<8x1xf32> to vector<8x4xf32>
    %218 = arith.mulf %215, %217 : vector<8x4xf32>
    %219 = arith.truncf %218 : vector<8x4xf32> to vector<8x4xbf16>
    %c28 = arith.constant 28 : index
    %c0_75 = arith.constant 0 : index
    %220 = vector.load %arg8[%c28, %c0_75] : memref<32x32xbf16, #tpu.memory_space<vmem>>, vector<4x32xbf16>
    %cst_76 = arith.constant dense<0.000000e+00> : vector<8x32xf32>
    %221 = tpu.matmul %219, %220, %cst_76 {dimension_numbers = #tpu.dot_dimension_numbers<[1], [0], [0], [1], [0, 0, 1, 1], [], []>} : vector<8x4xbf16>, vector<4x32xbf16>, vector<8x32xf32> -> vector<8x32xf32>
    %222 = arith.addf %197, %221 : vector<8x32xf32>
    %223 = arith.addf %222, %2 : vector<8x32xf32>
    %c0_77 = arith.constant 0 : index
    %c0_78 = arith.constant 0 : index
    %224 = vector.load %arg10[%c0_77, %c0_78] : memref<1x32xf32, #tpu.memory_space<vmem>>, vector<1x32xf32>
    %c0_79 = arith.constant 0 : index
    %c0_80 = arith.constant 0 : index
    %225 = vector.load %arg11[%c0_79, %c0_80] : memref<1x32xf32, #tpu.memory_space<vmem>>, vector<1x32xf32>
    %cst_81 = arith.constant dense<0.000000e+00> : vector<8xf32>
    %226 = vector.multi_reduction <add>, %223, %cst_81 [1] : vector<8x32xf32> to vector<8xf32>
    %227 = vector.shape_cast %226 : vector<8xf32> to vector<8x1xf32>
    %cst_82 = arith.constant 3.200000e+01 : f32
    %228 = vector.broadcast %cst_82 : f32 to vector<8x1xf32>
    %229 = arith.divf %227, %228 : vector<8x1xf32>
    %230 = vector.broadcast %229 : vector<8x1xf32> to vector<8x32xf32>
    %231 = arith.subf %223, %230 : vector<8x32xf32>
    %232 = arith.mulf %231, %231 : vector<8x32xf32>
    %cst_83 = arith.constant dense<0.000000e+00> : vector<8xf32>
    %233 = vector.multi_reduction <add>, %232, %cst_83 [1] : vector<8x32xf32> to vector<8xf32>
    %234 = vector.shape_cast %233 : vector<8xf32> to vector<8x1xf32>
    %cst_84 = arith.constant 3.200000e+01 : f32
    %235 = vector.broadcast %cst_84 : f32 to vector<8x1xf32>
    %236 = arith.divf %234, %235 : vector<8x1xf32>
    %237 = vector.broadcast %229 : vector<8x1xf32> to vector<8x32xf32>
    %238 = arith.subf %223, %237 : vector<8x32xf32>
    %cst_85 = arith.constant 9.99999974E-6 : f32
    %239 = vector.broadcast %cst_85 : f32 to vector<8x1xf32>
    %240 = arith.addf %236, %239 : vector<8x1xf32>
    %241 = math.rsqrt %240 : vector<8x1xf32>
    %242 = vector.broadcast %241 : vector<8x1xf32> to vector<8x32xf32>
    %243 = arith.mulf %238, %242 : vector<8x32xf32>
    %244 = vector.broadcast %224 : vector<1x32xf32> to vector<8x32xf32>
    %245 = arith.mulf %243, %244 : vector<8x32xf32>
    %246 = vector.broadcast %225 : vector<1x32xf32> to vector<8x32xf32>
    %247 = arith.addf %245, %246 : vector<8x32xf32>
    %248 = arith.truncf %247 : vector<8x32xf32> to vector<8x32xbf16>
    %c0_86 = arith.constant 0 : index
    %c0_87 = arith.constant 0 : index
    %c0_88 = arith.constant 0 : index
    %249 = vector.load %arg12[%c0_86, %c0_87, %c0_88] : memref<1x8x32xbf16, #tpu.memory_space<vmem>>, vector<1x8x32xbf16>
    %250 = vector.shape_cast %249 : vector<1x8x32xbf16> to vector<8x32xbf16>
    %251 = vector.shape_cast %248 : vector<8x32xbf16> to vector<1x8x32xbf16>
    tpu.vector_store %arg12[%c0_86, %c0_87, %c0_88], %251 {strides = array<i32>} : memref<1x8x32xbf16, #tpu.memory_space<vmem>>, vector<1x8x32xbf16>,
    return
  }
  func.func @transform_0(%arg0: i32, %arg1: memref<2xi32, #tpu.memory_space<smem>>) -> (i32, i32, i32) {
    %c0_i32 = arith.constant 0 : i32
    %c0_i32_0 = arith.constant 0 : i32
    %c0_i32_1 = arith.constant 0 : i32
    return %arg0, %c0_i32, %c0_i32_0 : i32, i32, i32
  }
  func.func @transform_1(%arg0: i32, %arg1: memref<2xi32, #tpu.memory_space<smem>>) -> (i32, i32, i32) {
    %c0_i32 = arith.constant 0 : i32
    %c0_i32_0 = arith.constant 0 : i32
    %c0_i32_1 = arith.constant 0 : i32
    return %arg0, %c0_i32, %c0_i32_0 : i32, i32, i32
  }
  func.func @transform_2(%arg0: i32, %arg1: memref<2xi32, #tpu.memory_space<smem>>) -> (i32, i32) {
    %c0_i32 = arith.constant 0 : i32
    %c0_i32_0 = arith.constant 0 : i32
    %c0_i32_1 = arith.constant 0 : i32
    return %c0_i32, %c0_i32_0 : i32, i32
  }
  func.func @transform_3(%arg0: i32, %arg1: memref<2xi32, #tpu.memory_space<smem>>) -> (i32, i32) {
    %c0_i32 = arith.constant 0 : i32
    %c0_i32_0 = arith.constant 0 : i32
    %c0_i32_1 = arith.constant 0 : i32
    return %c0_i32, %c0_i32_0 : i32, i32
  }
  func.func @transform_4(%arg0: i32, %arg1: memref<2xi32, #tpu.memory_space<smem>>) -> (i32, i32) {
    %c0_i32 = arith.constant 0 : i32
    %c0_i32_0 = arith.constant 0 : i32
    %c0_i32_1 = arith.constant 0 : i32
    return %c0_i32, %c0_i32_0 : i32, i32
  }
  func.func @transform_5(%arg0: i32, %arg1: memref<2xi32, #tpu.memory_space<smem>>) -> (i32, i32) {
    %c0_i32 = arith.constant 0 : i32
    %c0_i32_0 = arith.constant 0 : i32
    %c0_i32_1 = arith.constant 0 : i32
    return %c0_i32, %c0_i32_0 : i32, i32
  }
  func.func @transform_6(%arg0: i32, %arg1: memref<2xi32, #tpu.memory_space<smem>>) -> (i32, i32) {
    %c0_i32 = arith.constant 0 : i32
    %c0_i32_0 = arith.constant 0 : i32
    %c0_i32_1 = arith.constant 0 : i32
    return %c0_i32, %c0_i32_0 : i32, i32
  }
  func.func @transform_7(%arg0: i32, %arg1: memref<2xi32, #tpu.memory_space<smem>>) -> (i32, i32) {
    %c0_i32 = arith.constant 0 : i32
    %c0_i32_0 = arith.constant 0 : i32
    %c0_i32_1 = arith.constant 0 : i32
    return %c0_i32, %c0_i32_0 : i32, i32
  }
  func.func @transform_8(%arg0: i32, %arg1: memref<2xi32, #tpu.memory_space<smem>>) -> (i32, i32) {
    %c0_i32 = arith.constant 0 : i32
    %c0_i32_0 = arith.constant 0 : i32
    %c0_i32_1 = arith.constant 0 : i32
    return %c0_i32, %c0_i32_0 : i32, i32
  }
  func.func @transform_9(%arg0: i32, %arg1: memref<2xi32, #tpu.memory_space<smem>>) -> (i32, i32) {
    %c0_i32 = arith.constant 0 : i32
    %c0_i32_0 = arith.constant 0 : i32
    %c0_i32_1 = arith.constant 0 : i32
    return %c0_i32, %c0_i32_0 : i32, i32
  }
  func.func @transform_10(%arg0: i32, %arg1: memref<2xi32, #tpu.memory_space<smem>>) -> (i32, i32, i32) {
    %c0_i32 = arith.constant 0 : i32
    %c0_i32_0 = arith.constant 0 : i32
    %c0_i32_1 = arith.constant 0 : i32
    return %arg0, %c0_i32, %c0_i32_0 : i32, i32, i32
  }
}

module attributes {stable_mosaic.version = 11 : i64} {
  func.func @_self_attn_block_kernel(%arg0: i32, %arg1: memref<2xi32, #tpu.memory_space<smem>>, %arg2: memref<1x8x32xbf16, #tpu.memory_space<vmem>>, %arg3: memref<32x96xbf16, #tpu.memory_space<vmem>>, %arg4: memref<1x96xf32, #tpu.memory_space<vmem>>, %arg5: memref<32x32xbf16, #tpu.memory_space<vmem>>, %arg6: memref<1x32xf32, #tpu.memory_space<vmem>>, %arg7: memref<1x32xf32, #tpu.memory_space<vmem>>, %arg8: memref<1x32xf32, #tpu.memory_space<vmem>>, %arg9: memref<1x8x32xbf16, #tpu.memory_space<vmem>>) attributes {dimension_semantics = [#tpu.dimension_semantics<parallel>], iteration_bounds = array<i64: 2>, scalar_prefetch = 1 : i64, scratch_operands = 0 : i64, tpu.core_type = #tpu.core_type<tc>, window_params = [{transform_indices = @transform_0, window_bounds = array<i64: 1, 8, 32>}, {pipeline_mode = #tpu.pipeline_mode<synchronous>, transform_indices = @transform_1, window_bounds = array<i64: 32, 96>}, {pipeline_mode = #tpu.pipeline_mode<synchronous>, transform_indices = @transform_2, window_bounds = array<i64: 1, 96>}, {pipeline_mode = #tpu.pipeline_mode<synchronous>, transform_indices = @transform_3, window_bounds = array<i64: 32, 32>}, {pipeline_mode = #tpu.pipeline_mode<synchronous>, transform_indices = @transform_4, window_bounds = array<i64: 1, 32>}, {pipeline_mode = #tpu.pipeline_mode<synchronous>, transform_indices = @transform_5, window_bounds = array<i64: 1, 32>}, {pipeline_mode = #tpu.pipeline_mode<synchronous>, transform_indices = @transform_6, window_bounds = array<i64: 1, 32>}, {transform_indices = @transform_7, window_bounds = array<i64: 1, 8, 32>}]} {
    %c0 = arith.constant 0 : index
    %c0_0 = arith.constant 0 : index
    %c0_1 = arith.constant 0 : index
    %0 = vector.load %arg2[%c0, %c0_0, %c0_1] : memref<1x8x32xbf16, #tpu.memory_space<vmem>>, vector<1x8x32xbf16>
    %1 = vector.shape_cast %0 : vector<1x8x32xbf16> to vector<8x32xbf16>
    %2 = arith.extf %1 : vector<8x32xbf16> to vector<8x32xf32>
    %c0_2 = arith.constant 0 : index
    %c0_3 = arith.constant 0 : index
    %c0_4 = arith.constant 0 : index
    %3 = vector.load %arg2[%c0_2, %c0_3, %c0_4] : memref<1x8x32xbf16, #tpu.memory_space<vmem>>, vector<1x8x32xbf16>
    %4 = vector.shape_cast %3 : vector<1x8x32xbf16> to vector<8x32xbf16>
    %c0_5 = arith.constant 0 : index
    %c0_6 = arith.constant 0 : index
    %5 = vector.load %arg3[%c0_5, %c0_6] : memref<32x96xbf16, #tpu.memory_space<vmem>>, vector<32x96xbf16>
    %cst = arith.constant dense<0.000000e+00> : vector<8x96xf32>
    %6 = tpu.matmul %4, %5, %cst {dimension_numbers = #tpu.dot_dimension_numbers<[1], [0], [0], [1], [0, 0, 1, 1], [], []>} : vector<8x32xbf16>, vector<32x96xbf16>, vector<8x96xf32> -> vector<8x96xf32>
    %c0_7 = arith.constant 0 : index
    %c0_8 = arith.constant 0 : index
    %7 = vector.load %arg4[%c0_7, %c0_8] : memref<1x96xf32, #tpu.memory_space<vmem>>, vector<1x96xf32>
    %8 = vector.broadcast %7 : vector<1x96xf32> to vector<8x96xf32>
    %9 = arith.addf %6, %8 : vector<8x96xf32>
    %10 = vector.extract_strided_slice %9 {offsets = [0, 0], sizes = [8, 32], strides = [1, 1]} : vector<8x96xf32> to vector<8x32xf32>
    %11 = vector.extract_strided_slice %9 {offsets = [0, 32], sizes = [8, 32], strides = [1, 1]} : vector<8x96xf32> to vector<8x32xf32>
    %12 = vector.extract_strided_slice %9 {offsets = [0, 64], sizes = [8, 32], strides = [1, 1]} : vector<8x96xf32> to vector<8x32xf32>
    %cst_9 = arith.constant 0.000000e+00 : f32
    %13 = vector.broadcast %cst_9 : f32 to vector<8x8xf32>
    %14 = tpu.iota {dimensions = array<i32: 1>} : vector<8x8xi32>
    %15 = tpu.iota {dimensions = array<i32: 0>} : vector<8x8xi32>
    %16 = arith.cmpi sgt, %14, %15 : vector<8x8xi32>
    %cst_10 = arith.constant -1.000000e+09 : f32
    %17 = vector.broadcast %cst_10 : f32 to vector<8x8xf32>
    %18 = arith.select %16, %17, %13 : vector<8x8xi1>, vector<8x8xf32>
    %cst_11 = arith.constant 0.000000e+00 : f32
    %19 = vector.broadcast %cst_11 : f32 to vector<8x32xf32>
    %c0_12 = arith.constant 0 : index
    %c0_13 = arith.constant 0 : index
    %20 = vector.load %arg6[%c0_12, %c0_13] : memref<1x32xf32, #tpu.memory_space<vmem>>, vector<1x32xf32>
    %21 = vector.broadcast %20 : vector<1x32xf32> to vector<8x32xf32>
    %22 = arith.addf %19, %21 : vector<8x32xf32>
    %23 = vector.extract_strided_slice %10 {offsets = [0, 0], sizes = [8, 4], strides = [1, 1]} : vector<8x32xf32> to vector<8x4xf32>
    %cst_14 = arith.constant 5.000000e-01 : f32
    %24 = vector.broadcast %cst_14 : f32 to vector<8x4xf32>
    %25 = arith.mulf %23, %24 : vector<8x4xf32>
    %26 = arith.truncf %25 : vector<8x4xf32> to vector<8x4xbf16>
    %27 = vector.extract_strided_slice %11 {offsets = [0, 0], sizes = [8, 4], strides = [1, 1]} : vector<8x32xf32> to vector<8x4xf32>
    %28 = arith.truncf %27 : vector<8x4xf32> to vector<8x4xbf16>
    %29 = vector.extract_strided_slice %12 {offsets = [0, 0], sizes = [8, 4], strides = [1, 1]} : vector<8x32xf32> to vector<8x4xf32>
    %30 = arith.truncf %29 : vector<8x4xf32> to vector<8x4xbf16>
    %cst_15 = arith.constant dense<0.000000e+00> : vector<8x8xf32>
    %31 = tpu.matmul %26, %28, %cst_15 {dimension_numbers = #tpu.dot_dimension_numbers<[1], [1], [0], [0], [0, 0, 1, 0], [], []>} : vector<8x4xbf16>, vector<8x4xbf16>, vector<8x8xf32> -> vector<8x8xf32>
    %32 = arith.addf %31, %18 : vector<8x8xf32>
    %cst_16 = arith.constant dense<0xFF800000> : vector<8xf32>
    %33 = vector.multi_reduction <maximumf>, %32, %cst_16 [1] : vector<8x8xf32> to vector<8xf32>
    %34 = vector.shape_cast %33 : vector<8xf32> to vector<8x1xf32>
    %35 = vector.broadcast %34 : vector<8x1xf32> to vector<8x8xf32>
    %36 = arith.subf %32, %35 : vector<8x8xf32>
    %37 = math.exp %36 : vector<8x8xf32>
    %cst_17 = arith.constant dense<0.000000e+00> : vector<8xf32>
    %38 = vector.multi_reduction <add>, %37, %cst_17 [1] : vector<8x8xf32> to vector<8xf32>
    %39 = vector.shape_cast %38 : vector<8xf32> to vector<8x1xf32>
    %40 = arith.truncf %37 : vector<8x8xf32> to vector<8x8xbf16>
    %cst_18 = arith.constant dense<0.000000e+00> : vector<8x4xf32>
    %41 = tpu.matmul %40, %30, %cst_18 {dimension_numbers = #tpu.dot_dimension_numbers<[1], [0], [0], [1], [0, 0, 1, 1], [], []>} : vector<8x8xbf16>, vector<8x4xbf16>, vector<8x4xf32> -> vector<8x4xf32>
    %42 = tpu.reciprocal %39 {approx = true} : vector<8x1xf32> -> vector<8x1xf32>
    %43 = vector.broadcast %42 : vector<8x1xf32> to vector<8x4xf32>
    %44 = arith.mulf %41, %43 : vector<8x4xf32>
    %45 = arith.truncf %44 : vector<8x4xf32> to vector<8x4xbf16>
    %c0_19 = arith.constant 0 : index
    %c0_20 = arith.constant 0 : index
    %46 = vector.load %arg5[%c0_19, %c0_20] : memref<32x32xbf16, #tpu.memory_space<vmem>>, vector<4x32xbf16>
    %cst_21 = arith.constant dense<0.000000e+00> : vector<8x32xf32>
    %47 = tpu.matmul %45, %46, %cst_21 {dimension_numbers = #tpu.dot_dimension_numbers<[1], [0], [0], [1], [0, 0, 1, 1], [], []>} : vector<8x4xbf16>, vector<4x32xbf16>, vector<8x32xf32> -> vector<8x32xf32>
    %48 = arith.addf %22, %47 : vector<8x32xf32>
    %49 = vector.extract_strided_slice %10 {offsets = [0, 4], sizes = [8, 4], strides = [1, 1]} : vector<8x32xf32> to vector<8x4xf32>
    %cst_22 = arith.constant 5.000000e-01 : f32
    %50 = vector.broadcast %cst_22 : f32 to vector<8x4xf32>
    %51 = arith.mulf %49, %50 : vector<8x4xf32>
    %52 = arith.truncf %51 : vector<8x4xf32> to vector<8x4xbf16>
    %53 = vector.extract_strided_slice %11 {offsets = [0, 4], sizes = [8, 4], strides = [1, 1]} : vector<8x32xf32> to vector<8x4xf32>
    %54 = arith.truncf %53 : vector<8x4xf32> to vector<8x4xbf16>
    %55 = vector.extract_strided_slice %12 {offsets = [0, 4], sizes = [8, 4], strides = [1, 1]} : vector<8x32xf32> to vector<8x4xf32>
    %56 = arith.truncf %55 : vector<8x4xf32> to vector<8x4xbf16>
    %cst_23 = arith.constant dense<0.000000e+00> : vector<8x8xf32>
    %57 = tpu.matmul %52, %54, %cst_23 {dimension_numbers = #tpu.dot_dimension_numbers<[1], [1], [0], [0], [0, 0, 1, 0], [], []>} : vector<8x4xbf16>, vector<8x4xbf16>, vector<8x8xf32> -> vector<8x8xf32>
    %58 = arith.addf %57, %18 : vector<8x8xf32>
    %cst_24 = arith.constant dense<0xFF800000> : vector<8xf32>
    %59 = vector.multi_reduction <maximumf>, %58, %cst_24 [1] : vector<8x8xf32> to vector<8xf32>
    %60 = vector.shape_cast %59 : vector<8xf32> to vector<8x1xf32>
    %61 = vector.broadcast %60 : vector<8x1xf32> to vector<8x8xf32>
    %62 = arith.subf %58, %61 : vector<8x8xf32>
    %63 = math.exp %62 : vector<8x8xf32>
    %cst_25 = arith.constant dense<0.000000e+00> : vector<8xf32>
    %64 = vector.multi_reduction <add>, %63, %cst_25 [1] : vector<8x8xf32> to vector<8xf32>
    %65 = vector.shape_cast %64 : vector<8xf32> to vector<8x1xf32>
    %66 = arith.truncf %63 : vector<8x8xf32> to vector<8x8xbf16>
    %cst_26 = arith.constant dense<0.000000e+00> : vector<8x4xf32>
    %67 = tpu.matmul %66, %56, %cst_26 {dimension_numbers = #tpu.dot_dimension_numbers<[1], [0], [0], [1], [0, 0, 1, 1], [], []>} : vector<8x8xbf16>, vector<8x4xbf16>, vector<8x4xf32> -> vector<8x4xf32>
    %68 = tpu.reciprocal %65 {approx = true} : vector<8x1xf32> -> vector<8x1xf32>
    %69 = vector.broadcast %68 : vector<8x1xf32> to vector<8x4xf32>
    %70 = arith.mulf %67, %69 : vector<8x4xf32>
    %71 = arith.truncf %70 : vector<8x4xf32> to vector<8x4xbf16>
    %c4 = arith.constant 4 : index
    %c0_27 = arith.constant 0 : index
    %72 = vector.load %arg5[%c4, %c0_27] : memref<32x32xbf16, #tpu.memory_space<vmem>>, vector<4x32xbf16>
    %cst_28 = arith.constant dense<0.000000e+00> : vector<8x32xf32>
    %73 = tpu.matmul %71, %72, %cst_28 {dimension_numbers = #tpu.dot_dimension_numbers<[1], [0], [0], [1], [0, 0, 1, 1], [], []>} : vector<8x4xbf16>, vector<4x32xbf16>, vector<8x32xf32> -> vector<8x32xf32>
    %74 = arith.addf %48, %73 : vector<8x32xf32>
    %75 = vector.extract_strided_slice %10 {offsets = [0, 8], sizes = [8, 4], strides = [1, 1]} : vector<8x32xf32> to vector<8x4xf32>
    %cst_29 = arith.constant 5.000000e-01 : f32
    %76 = vector.broadcast %cst_29 : f32 to vector<8x4xf32>
    %77 = arith.mulf %75, %76 : vector<8x4xf32>
    %78 = arith.truncf %77 : vector<8x4xf32> to vector<8x4xbf16>
    %79 = vector.extract_strided_slice %11 {offsets = [0, 8], sizes = [8, 4], strides = [1, 1]} : vector<8x32xf32> to vector<8x4xf32>
    %80 = arith.truncf %79 : vector<8x4xf32> to vector<8x4xbf16>
    %81 = vector.extract_strided_slice %12 {offsets = [0, 8], sizes = [8, 4], strides = [1, 1]} : vector<8x32xf32> to vector<8x4xf32>
    %82 = arith.truncf %81 : vector<8x4xf32> to vector<8x4xbf16>
    %cst_30 = arith.constant dense<0.000000e+00> : vector<8x8xf32>
    %83 = tpu.matmul %78, %80, %cst_30 {dimension_numbers = #tpu.dot_dimension_numbers<[1], [1], [0], [0], [0, 0, 1, 0], [], []>} : vector<8x4xbf16>, vector<8x4xbf16>, vector<8x8xf32> -> vector<8x8xf32>
    %84 = arith.addf %83, %18 : vector<8x8xf32>
    %cst_31 = arith.constant dense<0xFF800000> : vector<8xf32>
    %85 = vector.multi_reduction <maximumf>, %84, %cst_31 [1] : vector<8x8xf32> to vector<8xf32>
    %86 = vector.shape_cast %85 : vector<8xf32> to vector<8x1xf32>
    %87 = vector.broadcast %86 : vector<8x1xf32> to vector<8x8xf32>
    %88 = arith.subf %84, %87 : vector<8x8xf32>
    %89 = math.exp %88 : vector<8x8xf32>
    %cst_32 = arith.constant dense<0.000000e+00> : vector<8xf32>
    %90 = vector.multi_reduction <add>, %89, %cst_32 [1] : vector<8x8xf32> to vector<8xf32>
    %91 = vector.shape_cast %90 : vector<8xf32> to vector<8x1xf32>
    %92 = arith.truncf %89 : vector<8x8xf32> to vector<8x8xbf16>
    %cst_33 = arith.constant dense<0.000000e+00> : vector<8x4xf32>
    %93 = tpu.matmul %92, %82, %cst_33 {dimension_numbers = #tpu.dot_dimension_numbers<[1], [0], [0], [1], [0, 0, 1, 1], [], []>} : vector<8x8xbf16>, vector<8x4xbf16>, vector<8x4xf32> -> vector<8x4xf32>
    %94 = tpu.reciprocal %91 {approx = true} : vector<8x1xf32> -> vector<8x1xf32>
    %95 = vector.broadcast %94 : vector<8x1xf32> to vector<8x4xf32>
    %96 = arith.mulf %93, %95 : vector<8x4xf32>
    %97 = arith.truncf %96 : vector<8x4xf32> to vector<8x4xbf16>
    %c8 = arith.constant 8 : index
    %c0_34 = arith.constant 0 : index
    %98 = vector.load %arg5[%c8, %c0_34] : memref<32x32xbf16, #tpu.memory_space<vmem>>, vector<4x32xbf16>
    %cst_35 = arith.constant dense<0.000000e+00> : vector<8x32xf32>
    %99 = tpu.matmul %97, %98, %cst_35 {dimension_numbers = #tpu.dot_dimension_numbers<[1], [0], [0], [1], [0, 0, 1, 1], [], []>} : vector<8x4xbf16>, vector<4x32xbf16>, vector<8x32xf32> -> vector<8x32xf32>
    %100 = arith.addf %74, %99 : vector<8x32xf32>
    %101 = vector.extract_strided_slice %10 {offsets = [0, 12], sizes = [8, 4], strides = [1, 1]} : vector<8x32xf32> to vector<8x4xf32>
    %cst_36 = arith.constant 5.000000e-01 : f32
    %102 = vector.broadcast %cst_36 : f32 to vector<8x4xf32>
    %103 = arith.mulf %101, %102 : vector<8x4xf32>
    %104 = arith.truncf %103 : vector<8x4xf32> to vector<8x4xbf16>
    %105 = vector.extract_strided_slice %11 {offsets = [0, 12], sizes = [8, 4], strides = [1, 1]} : vector<8x32xf32> to vector<8x4xf32>
    %106 = arith.truncf %105 : vector<8x4xf32> to vector<8x4xbf16>
    %107 = vector.extract_strided_slice %12 {offsets = [0, 12], sizes = [8, 4], strides = [1, 1]} : vector<8x32xf32> to vector<8x4xf32>
    %108 = arith.truncf %107 : vector<8x4xf32> to vector<8x4xbf16>
    %cst_37 = arith.constant dense<0.000000e+00> : vector<8x8xf32>
    %109 = tpu.matmul %104, %106, %cst_37 {dimension_numbers = #tpu.dot_dimension_numbers<[1], [1], [0], [0], [0, 0, 1, 0], [], []>} : vector<8x4xbf16>, vector<8x4xbf16>, vector<8x8xf32> -> vector<8x8xf32>
    %110 = arith.addf %109, %18 : vector<8x8xf32>
    %cst_38 = arith.constant dense<0xFF800000> : vector<8xf32>
    %111 = vector.multi_reduction <maximumf>, %110, %cst_38 [1] : vector<8x8xf32> to vector<8xf32>
    %112 = vector.shape_cast %111 : vector<8xf32> to vector<8x1xf32>
    %113 = vector.broadcast %112 : vector<8x1xf32> to vector<8x8xf32>
    %114 = arith.subf %110, %113 : vector<8x8xf32>
    %115 = math.exp %114 : vector<8x8xf32>
    %cst_39 = arith.constant dense<0.000000e+00> : vector<8xf32>
    %116 = vector.multi_reduction <add>, %115, %cst_39 [1] : vector<8x8xf32> to vector<8xf32>
    %117 = vector.shape_cast %116 : vector<8xf32> to vector<8x1xf32>
    %118 = arith.truncf %115 : vector<8x8xf32> to vector<8x8xbf16>
    %cst_40 = arith.constant dense<0.000000e+00> : vector<8x4xf32>
    %119 = tpu.matmul %118, %108, %cst_40 {dimension_numbers = #tpu.dot_dimension_numbers<[1], [0], [0], [1], [0, 0, 1, 1], [], []>} : vector<8x8xbf16>, vector<8x4xbf16>, vector<8x4xf32> -> vector<8x4xf32>
    %120 = tpu.reciprocal %117 {approx = true} : vector<8x1xf32> -> vector<8x1xf32>
    %121 = vector.broadcast %120 : vector<8x1xf32> to vector<8x4xf32>
    %122 = arith.mulf %119, %121 : vector<8x4xf32>
    %123 = arith.truncf %122 : vector<8x4xf32> to vector<8x4xbf16>
    %c12 = arith.constant 12 : index
    %c0_41 = arith.constant 0 : index
    %124 = vector.load %arg5[%c12, %c0_41] : memref<32x32xbf16, #tpu.memory_space<vmem>>, vector<4x32xbf16>
    %cst_42 = arith.constant dense<0.000000e+00> : vector<8x32xf32>
    %125 = tpu.matmul %123, %124, %cst_42 {dimension_numbers = #tpu.dot_dimension_numbers<[1], [0], [0], [1], [0, 0, 1, 1], [], []>} : vector<8x4xbf16>, vector<4x32xbf16>, vector<8x32xf32> -> vector<8x32xf32>
    %126 = arith.addf %100, %125 : vector<8x32xf32>
    %127 = vector.extract_strided_slice %10 {offsets = [0, 16], sizes = [8, 4], strides = [1, 1]} : vector<8x32xf32> to vector<8x4xf32>
    %cst_43 = arith.constant 5.000000e-01 : f32
    %128 = vector.broadcast %cst_43 : f32 to vector<8x4xf32>
    %129 = arith.mulf %127, %128 : vector<8x4xf32>
    %130 = arith.truncf %129 : vector<8x4xf32> to vector<8x4xbf16>
    %131 = vector.extract_strided_slice %11 {offsets = [0, 16], sizes = [8, 4], strides = [1, 1]} : vector<8x32xf32> to vector<8x4xf32>
    %132 = arith.truncf %131 : vector<8x4xf32> to vector<8x4xbf16>
    %133 = vector.extract_strided_slice %12 {offsets = [0, 16], sizes = [8, 4], strides = [1, 1]} : vector<8x32xf32> to vector<8x4xf32>
    %134 = arith.truncf %133 : vector<8x4xf32> to vector<8x4xbf16>
    %cst_44 = arith.constant dense<0.000000e+00> : vector<8x8xf32>
    %135 = tpu.matmul %130, %132, %cst_44 {dimension_numbers = #tpu.dot_dimension_numbers<[1], [1], [0], [0], [0, 0, 1, 0], [], []>} : vector<8x4xbf16>, vector<8x4xbf16>, vector<8x8xf32> -> vector<8x8xf32>
    %136 = arith.addf %135, %18 : vector<8x8xf32>
    %cst_45 = arith.constant dense<0xFF800000> : vector<8xf32>
    %137 = vector.multi_reduction <maximumf>, %136, %cst_45 [1] : vector<8x8xf32> to vector<8xf32>
    %138 = vector.shape_cast %137 : vector<8xf32> to vector<8x1xf32>
    %139 = vector.broadcast %138 : vector<8x1xf32> to vector<8x8xf32>
    %140 = arith.subf %136, %139 : vector<8x8xf32>
    %141 = math.exp %140 : vector<8x8xf32>
    %cst_46 = arith.constant dense<0.000000e+00> : vector<8xf32>
    %142 = vector.multi_reduction <add>, %141, %cst_46 [1] : vector<8x8xf32> to vector<8xf32>
    %143 = vector.shape_cast %142 : vector<8xf32> to vector<8x1xf32>
    %144 = arith.truncf %141 : vector<8x8xf32> to vector<8x8xbf16>
    %cst_47 = arith.constant dense<0.000000e+00> : vector<8x4xf32>
    %145 = tpu.matmul %144, %134, %cst_47 {dimension_numbers = #tpu.dot_dimension_numbers<[1], [0], [0], [1], [0, 0, 1, 1], [], []>} : vector<8x8xbf16>, vector<8x4xbf16>, vector<8x4xf32> -> vector<8x4xf32>
    %146 = tpu.reciprocal %143 {approx = true} : vector<8x1xf32> -> vector<8x1xf32>
    %147 = vector.broadcast %146 : vector<8x1xf32> to vector<8x4xf32>
    %148 = arith.mulf %145, %147 : vector<8x4xf32>
    %149 = arith.truncf %148 : vector<8x4xf32> to vector<8x4xbf16>
    %c16 = arith.constant 16 : index
    %c0_48 = arith.constant 0 : index
    %150 = vector.load %arg5[%c16, %c0_48] : memref<32x32xbf16, #tpu.memory_space<vmem>>, vector<4x32xbf16>
    %cst_49 = arith.constant dense<0.000000e+00> : vector<8x32xf32>
    %151 = tpu.matmul %149, %150, %cst_49 {dimension_numbers = #tpu.dot_dimension_numbers<[1], [0], [0], [1], [0, 0, 1, 1], [], []>} : vector<8x4xbf16>, vector<4x32xbf16>, vector<8x32xf32> -> vector<8x32xf32>
    %152 = arith.addf %126, %151 : vector<8x32xf32>
    %153 = vector.extract_strided_slice %10 {offsets = [0, 20], sizes = [8, 4], strides = [1, 1]} : vector<8x32xf32> to vector<8x4xf32>
    %cst_50 = arith.constant 5.000000e-01 : f32
    %154 = vector.broadcast %cst_50 : f32 to vector<8x4xf32>
    %155 = arith.mulf %153, %154 : vector<8x4xf32>
    %156 = arith.truncf %155 : vector<8x4xf32> to vector<8x4xbf16>
    %157 = vector.extract_strided_slice %11 {offsets = [0, 20], sizes = [8, 4], strides = [1, 1]} : vector<8x32xf32> to vector<8x4xf32>
    %158 = arith.truncf %157 : vector<8x4xf32> to vector<8x4xbf16>
    %159 = vector.extract_strided_slice %12 {offsets = [0, 20], sizes = [8, 4], strides = [1, 1]} : vector<8x32xf32> to vector<8x4xf32>
    %160 = arith.truncf %159 : vector<8x4xf32> to vector<8x4xbf16>
    %cst_51 = arith.constant dense<0.000000e+00> : vector<8x8xf32>
    %161 = tpu.matmul %156, %158, %cst_51 {dimension_numbers = #tpu.dot_dimension_numbers<[1], [1], [0], [0], [0, 0, 1, 0], [], []>} : vector<8x4xbf16>, vector<8x4xbf16>, vector<8x8xf32> -> vector<8x8xf32>
    %162 = arith.addf %161, %18 : vector<8x8xf32>
    %cst_52 = arith.constant dense<0xFF800000> : vector<8xf32>
    %163 = vector.multi_reduction <maximumf>, %162, %cst_52 [1] : vector<8x8xf32> to vector<8xf32>
    %164 = vector.shape_cast %163 : vector<8xf32> to vector<8x1xf32>
    %165 = vector.broadcast %164 : vector<8x1xf32> to vector<8x8xf32>
    %166 = arith.subf %162, %165 : vector<8x8xf32>
    %167 = math.exp %166 : vector<8x8xf32>
    %cst_53 = arith.constant dense<0.000000e+00> : vector<8xf32>
    %168 = vector.multi_reduction <add>, %167, %cst_53 [1] : vector<8x8xf32> to vector<8xf32>
    %169 = vector.shape_cast %168 : vector<8xf32> to vector<8x1xf32>
    %170 = arith.truncf %167 : vector<8x8xf32> to vector<8x8xbf16>
    %cst_54 = arith.constant dense<0.000000e+00> : vector<8x4xf32>
    %171 = tpu.matmul %170, %160, %cst_54 {dimension_numbers = #tpu.dot_dimension_numbers<[1], [0], [0], [1], [0, 0, 1, 1], [], []>} : vector<8x8xbf16>, vector<8x4xbf16>, vector<8x4xf32> -> vector<8x4xf32>
    %172 = tpu.reciprocal %169 {approx = true} : vector<8x1xf32> -> vector<8x1xf32>
    %173 = vector.broadcast %172 : vector<8x1xf32> to vector<8x4xf32>
    %174 = arith.mulf %171, %173 : vector<8x4xf32>
    %175 = arith.truncf %174 : vector<8x4xf32> to vector<8x4xbf16>
    %c20 = arith.constant 20 : index
    %c0_55 = arith.constant 0 : index
    %176 = vector.load %arg5[%c20, %c0_55] : memref<32x32xbf16, #tpu.memory_space<vmem>>, vector<4x32xbf16>
    %cst_56 = arith.constant dense<0.000000e+00> : vector<8x32xf32>
    %177 = tpu.matmul %175, %176, %cst_56 {dimension_numbers = #tpu.dot_dimension_numbers<[1], [0], [0], [1], [0, 0, 1, 1], [], []>} : vector<8x4xbf16>, vector<4x32xbf16>, vector<8x32xf32> -> vector<8x32xf32>
    %178 = arith.addf %152, %177 : vector<8x32xf32>
    %179 = vector.extract_strided_slice %10 {offsets = [0, 24], sizes = [8, 4], strides = [1, 1]} : vector<8x32xf32> to vector<8x4xf32>
    %cst_57 = arith.constant 5.000000e-01 : f32
    %180 = vector.broadcast %cst_57 : f32 to vector<8x4xf32>
    %181 = arith.mulf %179, %180 : vector<8x4xf32>
    %182 = arith.truncf %181 : vector<8x4xf32> to vector<8x4xbf16>
    %183 = vector.extract_strided_slice %11 {offsets = [0, 24], sizes = [8, 4], strides = [1, 1]} : vector<8x32xf32> to vector<8x4xf32>
    %184 = arith.truncf %183 : vector<8x4xf32> to vector<8x4xbf16>
    %185 = vector.extract_strided_slice %12 {offsets = [0, 24], sizes = [8, 4], strides = [1, 1]} : vector<8x32xf32> to vector<8x4xf32>
    %186 = arith.truncf %185 : vector<8x4xf32> to vector<8x4xbf16>
    %cst_58 = arith.constant dense<0.000000e+00> : vector<8x8xf32>
    %187 = tpu.matmul %182, %184, %cst_58 {dimension_numbers = #tpu.dot_dimension_numbers<[1], [1], [0], [0], [0, 0, 1, 0], [], []>} : vector<8x4xbf16>, vector<8x4xbf16>, vector<8x8xf32> -> vector<8x8xf32>
    %188 = arith.addf %187, %18 : vector<8x8xf32>
    %cst_59 = arith.constant dense<0xFF800000> : vector<8xf32>
    %189 = vector.multi_reduction <maximumf>, %188, %cst_59 [1] : vector<8x8xf32> to vector<8xf32>
    %190 = vector.shape_cast %189 : vector<8xf32> to vector<8x1xf32>
    %191 = vector.broadcast %190 : vector<8x1xf32> to vector<8x8xf32>
    %192 = arith.subf %188, %191 : vector<8x8xf32>
    %193 = math.exp %192 : vector<8x8xf32>
    %cst_60 = arith.constant dense<0.000000e+00> : vector<8xf32>
    %194 = vector.multi_reduction <add>, %193, %cst_60 [1] : vector<8x8xf32> to vector<8xf32>
    %195 = vector.shape_cast %194 : vector<8xf32> to vector<8x1xf32>
    %196 = arith.truncf %193 : vector<8x8xf32> to vector<8x8xbf16>
    %cst_61 = arith.constant dense<0.000000e+00> : vector<8x4xf32>
    %197 = tpu.matmul %196, %186, %cst_61 {dimension_numbers = #tpu.dot_dimension_numbers<[1], [0], [0], [1], [0, 0, 1, 1], [], []>} : vector<8x8xbf16>, vector<8x4xbf16>, vector<8x4xf32> -> vector<8x4xf32>
    %198 = tpu.reciprocal %195 {approx = true} : vector<8x1xf32> -> vector<8x1xf32>
    %199 = vector.broadcast %198 : vector<8x1xf32> to vector<8x4xf32>
    %200 = arith.mulf %197, %199 : vector<8x4xf32>
    %201 = arith.truncf %200 : vector<8x4xf32> to vector<8x4xbf16>
    %c24 = arith.constant 24 : index
    %c0_62 = arith.constant 0 : index
    %202 = vector.load %arg5[%c24, %c0_62] : memref<32x32xbf16, #tpu.memory_space<vmem>>, vector<4x32xbf16>
    %cst_63 = arith.constant dense<0.000000e+00> : vector<8x32xf32>
    %203 = tpu.matmul %201, %202, %cst_63 {dimension_numbers = #tpu.dot_dimension_numbers<[1], [0], [0], [1], [0, 0, 1, 1], [], []>} : vector<8x4xbf16>, vector<4x32xbf16>, vector<8x32xf32> -> vector<8x32xf32>
    %204 = arith.addf %178, %203 : vector<8x32xf32>
    %205 = vector.extract_strided_slice %10 {offsets = [0, 28], sizes = [8, 4], strides = [1, 1]} : vector<8x32xf32> to vector<8x4xf32>
    %cst_64 = arith.constant 5.000000e-01 : f32
    %206 = vector.broadcast %cst_64 : f32 to vector<8x4xf32>
    %207 = arith.mulf %205, %206 : vector<8x4xf32>
    %208 = arith.truncf %207 : vector<8x4xf32> to vector<8x4xbf16>
    %209 = vector.extract_strided_slice %11 {offsets = [0, 28], sizes = [8, 4], strides = [1, 1]} : vector<8x32xf32> to vector<8x4xf32>
    %210 = arith.truncf %209 : vector<8x4xf32> to vector<8x4xbf16>
    %211 = vector.extract_strided_slice %12 {offsets = [0, 28], sizes = [8, 4], strides = [1, 1]} : vector<8x32xf32> to vector<8x4xf32>
    %212 = arith.truncf %211 : vector<8x4xf32> to vector<8x4xbf16>
    %cst_65 = arith.constant dense<0.000000e+00> : vector<8x8xf32>
    %213 = tpu.matmul %208, %210, %cst_65 {dimension_numbers = #tpu.dot_dimension_numbers<[1], [1], [0], [0], [0, 0, 1, 0], [], []>} : vector<8x4xbf16>, vector<8x4xbf16>, vector<8x8xf32> -> vector<8x8xf32>
    %214 = arith.addf %213, %18 : vector<8x8xf32>
    %cst_66 = arith.constant dense<0xFF800000> : vector<8xf32>
    %215 = vector.multi_reduction <maximumf>, %214, %cst_66 [1] : vector<8x8xf32> to vector<8xf32>
    %216 = vector.shape_cast %215 : vector<8xf32> to vector<8x1xf32>
    %217 = vector.broadcast %216 : vector<8x1xf32> to vector<8x8xf32>
    %218 = arith.subf %214, %217 : vector<8x8xf32>
    %219 = math.exp %218 : vector<8x8xf32>
    %cst_67 = arith.constant dense<0.000000e+00> : vector<8xf32>
    %220 = vector.multi_reduction <add>, %219, %cst_67 [1] : vector<8x8xf32> to vector<8xf32>
    %221 = vector.shape_cast %220 : vector<8xf32> to vector<8x1xf32>
    %222 = arith.truncf %219 : vector<8x8xf32> to vector<8x8xbf16>
    %cst_68 = arith.constant dense<0.000000e+00> : vector<8x4xf32>
    %223 = tpu.matmul %222, %212, %cst_68 {dimension_numbers = #tpu.dot_dimension_numbers<[1], [0], [0], [1], [0, 0, 1, 1], [], []>} : vector<8x8xbf16>, vector<8x4xbf16>, vector<8x4xf32> -> vector<8x4xf32>
    %224 = tpu.reciprocal %221 {approx = true} : vector<8x1xf32> -> vector<8x1xf32>
    %225 = vector.broadcast %224 : vector<8x1xf32> to vector<8x4xf32>
    %226 = arith.mulf %223, %225 : vector<8x4xf32>
    %227 = arith.truncf %226 : vector<8x4xf32> to vector<8x4xbf16>
    %c28 = arith.constant 28 : index
    %c0_69 = arith.constant 0 : index
    %228 = vector.load %arg5[%c28, %c0_69] : memref<32x32xbf16, #tpu.memory_space<vmem>>, vector<4x32xbf16>
    %cst_70 = arith.constant dense<0.000000e+00> : vector<8x32xf32>
    %229 = tpu.matmul %227, %228, %cst_70 {dimension_numbers = #tpu.dot_dimension_numbers<[1], [0], [0], [1], [0, 0, 1, 1], [], []>} : vector<8x4xbf16>, vector<4x32xbf16>, vector<8x32xf32> -> vector<8x32xf32>
    %230 = arith.addf %204, %229 : vector<8x32xf32>
    %231 = arith.addf %230, %2 : vector<8x32xf32>
    %c0_71 = arith.constant 0 : index
    %c0_72 = arith.constant 0 : index
    %232 = vector.load %arg7[%c0_71, %c0_72] : memref<1x32xf32, #tpu.memory_space<vmem>>, vector<1x32xf32>
    %c0_73 = arith.constant 0 : index
    %c0_74 = arith.constant 0 : index
    %233 = vector.load %arg8[%c0_73, %c0_74] : memref<1x32xf32, #tpu.memory_space<vmem>>, vector<1x32xf32>
    %cst_75 = arith.constant dense<0.000000e+00> : vector<8xf32>
    %234 = vector.multi_reduction <add>, %231, %cst_75 [1] : vector<8x32xf32> to vector<8xf32>
    %235 = vector.shape_cast %234 : vector<8xf32> to vector<8x1xf32>
    %cst_76 = arith.constant 3.200000e+01 : f32
    %236 = vector.broadcast %cst_76 : f32 to vector<8x1xf32>
    %237 = arith.divf %235, %236 : vector<8x1xf32>
    %238 = vector.broadcast %237 : vector<8x1xf32> to vector<8x32xf32>
    %239 = arith.subf %231, %238 : vector<8x32xf32>
    %240 = arith.mulf %239, %239 : vector<8x32xf32>
    %cst_77 = arith.constant dense<0.000000e+00> : vector<8xf32>
    %241 = vector.multi_reduction <add>, %240, %cst_77 [1] : vector<8x32xf32> to vector<8xf32>
    %242 = vector.shape_cast %241 : vector<8xf32> to vector<8x1xf32>
    %cst_78 = arith.constant 3.200000e+01 : f32
    %243 = vector.broadcast %cst_78 : f32 to vector<8x1xf32>
    %244 = arith.divf %242, %243 : vector<8x1xf32>
    %245 = vector.broadcast %237 : vector<8x1xf32> to vector<8x32xf32>
    %246 = arith.subf %231, %245 : vector<8x32xf32>
    %cst_79 = arith.constant 9.99999974E-6 : f32
    %247 = vector.broadcast %cst_79 : f32 to vector<8x1xf32>
    %248 = arith.addf %244, %247 : vector<8x1xf32>
    %249 = math.rsqrt %248 : vector<8x1xf32>
    %250 = vector.broadcast %249 : vector<8x1xf32> to vector<8x32xf32>
    %251 = arith.mulf %246, %250 : vector<8x32xf32>
    %252 = vector.broadcast %232 : vector<1x32xf32> to vector<8x32xf32>
    %253 = arith.mulf %251, %252 : vector<8x32xf32>
    %254 = vector.broadcast %233 : vector<1x32xf32> to vector<8x32xf32>
    %255 = arith.addf %253, %254 : vector<8x32xf32>
    %256 = arith.truncf %255 : vector<8x32xf32> to vector<8x32xbf16>
    %c0_80 = arith.constant 0 : index
    %c0_81 = arith.constant 0 : index
    %c0_82 = arith.constant 0 : index
    %257 = vector.load %arg9[%c0_80, %c0_81, %c0_82] : memref<1x8x32xbf16, #tpu.memory_space<vmem>>, vector<1x8x32xbf16>
    %258 = vector.shape_cast %257 : vector<1x8x32xbf16> to vector<8x32xbf16>
    %259 = vector.shape_cast %256 : vector<8x32xbf16> to vector<1x8x32xbf16>
    tpu.vector_store %arg9[%c0_80, %c0_81, %c0_82], %259 {strides = array<i32>} : memref<1x8x32xbf16, #tpu.memory_space<vmem>>, vector<1x8x32xbf16>,
    return
  }
  func.func @transform_0(%arg0: i32, %arg1: memref<2xi32, #tpu.memory_space<smem>>) -> (i32, i32, i32) {
    %c0_i32 = arith.constant 0 : i32
    %c0_i32_0 = arith.constant 0 : i32
    %c0_i32_1 = arith.constant 0 : i32
    return %arg0, %c0_i32, %c0_i32_0 : i32, i32, i32
  }
  func.func @transform_1(%arg0: i32, %arg1: memref<2xi32, #tpu.memory_space<smem>>) -> (i32, i32) {
    %c0_i32 = arith.constant 0 : i32
    %c0_i32_0 = arith.constant 0 : i32
    %c0_i32_1 = arith.constant 0 : i32
    return %c0_i32, %c0_i32_0 : i32, i32
  }
  func.func @transform_2(%arg0: i32, %arg1: memref<2xi32, #tpu.memory_space<smem>>) -> (i32, i32) {
    %c0_i32 = arith.constant 0 : i32
    %c0_i32_0 = arith.constant 0 : i32
    %c0_i32_1 = arith.constant 0 : i32
    return %c0_i32, %c0_i32_0 : i32, i32
  }
  func.func @transform_3(%arg0: i32, %arg1: memref<2xi32, #tpu.memory_space<smem>>) -> (i32, i32) {
    %c0_i32 = arith.constant 0 : i32
    %c0_i32_0 = arith.constant 0 : i32
    %c0_i32_1 = arith.constant 0 : i32
    return %c0_i32, %c0_i32_0 : i32, i32
  }
  func.func @transform_4(%arg0: i32, %arg1: memref<2xi32, #tpu.memory_space<smem>>) -> (i32, i32) {
    %c0_i32 = arith.constant 0 : i32
    %c0_i32_0 = arith.constant 0 : i32
    %c0_i32_1 = arith.constant 0 : i32
    return %c0_i32, %c0_i32_0 : i32, i32
  }
  func.func @transform_5(%arg0: i32, %arg1: memref<2xi32, #tpu.memory_space<smem>>) -> (i32, i32) {
    %c0_i32 = arith.constant 0 : i32
    %c0_i32_0 = arith.constant 0 : i32
    %c0_i32_1 = arith.constant 0 : i32
    return %c0_i32, %c0_i32_0 : i32, i32
  }
  func.func @transform_6(%arg0: i32, %arg1: memref<2xi32, #tpu.memory_space<smem>>) -> (i32, i32) {
    %c0_i32 = arith.constant 0 : i32
    %c0_i32_0 = arith.constant 0 : i32
    %c0_i32_1 = arith.constant 0 : i32
    return %c0_i32, %c0_i32_0 : i32, i32
  }
  func.func @transform_7(%arg0: i32, %arg1: memref<2xi32, #tpu.memory_space<smem>>) -> (i32, i32, i32) {
    %c0_i32 = arith.constant 0 : i32
    %c0_i32_0 = arith.constant 0 : i32
    %c0_i32_1 = arith.constant 0 : i32
    return %arg0, %c0_i32, %c0_i32_0 : i32, i32, i32
  }
}

module attributes {stable_mosaic.version = 11 : i64} {
  func.func @_linear_kernel(%arg0: i32, %arg1: memref<16x32xbf16, #tpu.memory_space<vmem>>, %arg2: memref<32x4xbf16, #tpu.memory_space<vmem>>, %arg3: memref<1x4xf32, #tpu.memory_space<vmem>>, %arg4: memref<16x4xf32, #tpu.memory_space<vmem>>) attributes {dimension_semantics = [#tpu.dimension_semantics<parallel>], iteration_bounds = array<i64: 1>, scalar_prefetch = 0 : i64, scratch_operands = 0 : i64, tpu.core_type = #tpu.core_type<tc>, window_params = [{transform_indices = @transform_0, window_bounds = array<i64: 16, 32>}, {pipeline_mode = #tpu.pipeline_mode<synchronous>, transform_indices = @transform_1, window_bounds = array<i64: 32, 4>}, {pipeline_mode = #tpu.pipeline_mode<synchronous>, transform_indices = @transform_2, window_bounds = array<i64: 1, 4>}, {transform_indices = @transform_3, window_bounds = array<i64: 16, 4>}]} {
    %c0 = arith.constant 0 : index
    %c0_0 = arith.constant 0 : index
    %0 = vector.load %arg1[%c0, %c0_0] : memref<16x32xbf16, #tpu.memory_space<vmem>>, vector<16x32xbf16>
    %c0_1 = arith.constant 0 : index
    %c0_2 = arith.constant 0 : index
    %1 = vector.load %arg2[%c0_1, %c0_2] : memref<32x4xbf16, #tpu.memory_space<vmem>>, vector<32x4xbf16>
    %cst = arith.constant dense<0.000000e+00> : vector<16x4xf32>
    %2 = tpu.matmul %0, %1, %cst {dimension_numbers = #tpu.dot_dimension_numbers<[1], [0], [0], [1], [0, 0, 1, 1], [], []>} : vector<16x32xbf16>, vector<32x4xbf16>, vector<16x4xf32> -> vector<16x4xf32>
    %c0_3 = arith.constant 0 : index
    %c0_4 = arith.constant 0 : index
    %3 = vector.load %arg3[%c0_3, %c0_4] : memref<1x4xf32, #tpu.memory_space<vmem>>, vector<1x4xf32>
    %4 = vector.broadcast %3 : vector<1x4xf32> to vector<16x4xf32>
    %5 = arith.addf %2, %4 : vector<16x4xf32>
    %c0_5 = arith.constant 0 : index
    %c0_6 = arith.constant 0 : index
    %6 = vector.load %arg4[%c0_5, %c0_6] : memref<16x4xf32, #tpu.memory_space<vmem>>, vector<16x4xf32>
    tpu.vector_store %arg4[%c0_5, %c0_6], %5 {strides = array<i32>} : memref<16x4xf32, #tpu.memory_space<vmem>>, vector<16x4xf32>,
    return
  }
  func.func @transform_0(%arg0: i32) -> (i32, i32) {
    %c0_i32 = arith.constant 0 : i32
    %c0_i32_0 = arith.constant 0 : i32
    return %arg0, %c0_i32 : i32, i32
  }
  func.func @transform_1(%arg0: i32) -> (i32, i32) {
    %c0_i32 = arith.constant 0 : i32
    %c0_i32_0 = arith.constant 0 : i32
    %c0_i32_1 = arith.constant 0 : i32
    return %c0_i32, %c0_i32_0 : i32, i32
  }
  func.func @transform_2(%arg0: i32) -> (i32, i32) {
    %c0_i32 = arith.constant 0 : i32
    %c0_i32_0 = arith.constant 0 : i32
    %c0_i32_1 = arith.constant 0 : i32
    return %c0_i32, %c0_i32_0 : i32, i32
  }
  func.func @transform_3(%arg0: i32) -> (i32, i32) {
    %c0_i32 = arith.constant 0 : i32
    %c0_i32_0 = arith.constant 0 : i32
    return %arg0, %c0_i32 : i32, i32
  }
}

</mosaic_0001>

<bundles_post_ra>
// kernel: mfs_forward.20
= control target key start
LH: loop header
LB: loop body
LE: loop exit
PB: predicated region body
PF: predicated region fallthrough
CT: control target
= control target key end

     0   :  { %8 = vsyncpa [#allocation3], 0  ;;  %s347_s0 = inlined_call_operand.hbm [shape: f32[16,4], index: 0, kind: input, shape index: {}]   ;;  %s348_s1 = inlined_call_operand.hbm [shape: bf16[4,32], index: 1, kind: input, shape index: {}]   ;;  %s349_s2 = inlined_call_operand.hbm [shape: f32[1,32], index: 2, kind: input, shape index: {}]   ;;  %s350_s3 = inlined_call_operand.hbm [shape: bf16[16,32], index: 3, kind: output, shape index: {}]  }
   0x1   :  { %9 = vsyncpa [#allocation6], 0 }
   0x2   :  { %10 = vsyncpa [#allocation4], 0  ;;  %s262_s12 = smov [#allocation5]   ;;  %s263_s14 = smov [#allocation2]  }
   0x3   :  { %s29_s13 = sshll.u32 %s262_s12, 4  ;;  %s16_s15 = sshll.u32 %s263_s14, 4  ;;  %s30_s13 = int_to_ptr.vmem [resolvable:$true] %s29_s13  ;;  %s292_s15 = int_to_ptr.vmem [resolvable:$true] %s16_s15 }
   0x4   :  { %s168_s18 = scalar_lea.hbm %s348_s1, 32 }
   0x5   :  { %p169_p0 = scmp.ne.s32.totalorder %s348_s1, %s168_s18  ;;  %p172_p1 = scmp.lt.u32.totalorder %s168_s18, %s348_s1 }
   0x7   :  { %p174_p2 = pnand %p172_p1, %p169_p0 }
   0x9   :  { %177 = shalt.err (!%p174_p2)
}
   0xa   :  { %s178_s23 = scalar_lea.vmem %s30_s13, 32  ;;  %p183_p4 = scmp.lt.s32.totalorder %s30_s13, %s30_s13 }
   0xb   :  { %p179_p3 = scmp.ne.s32.totalorder %s30_s13, %s178_s23  ;;  %p184_p5 = scmp.lt.s32.totalorder %s178_s23, %s178_s23 }
   0xd   :  { %p185_p6 = por %p184_p5, %p183_p4 }
   0xf   :  { %p186_p7 = pnand %p185_p6, %p179_p3 }
  0x11   :  { %189 = shalt.err (!%p186_p7)
}
  0x12   :  { %32 = dma.hbm_to_vmem [thread:$0]  %s348_s1, 32, %s30_s13, [#allocation6]  }
  0x13   :  { %s190_s28 = scalar_lea.hbm %s347_s0, 256 }
  0x14   :  { %p191_p8 = scmp.ne.s32.totalorder %s347_s0, %s190_s28  ;;  %p194_p9 = scmp.lt.u32.totalorder %s190_s28, %s347_s0 }
  0x16   :  { %p196_p10 = pnand %p194_p9, %p191_p8 }
  0x18   :  { %199 = shalt.err (!%p196_p10)
}
  0x19   :  { %s200_s6 = scalar_lea.vmem %s292_s15, 256  ;;  %p205_p12 = scmp.lt.s32.totalorder %s292_s15, %s292_s15 }
  0x1a   :  { %p201_p11 = scmp.ne.s32.totalorder %s292_s15, %s200_s6  ;;  %p206_p13 = scmp.lt.s32.totalorder %s200_s6, %s200_s6 }
  0x1c   :  { %p207_p0 = por %p206_p13, %p205_p12 }
  0x1e   :  { %p208_p1 = pnand %p207_p0, %p201_p11 }
  0x20   :  { %211 = shalt.err (!%p208_p1)
}
  0x21   :  { %s264_s1 = smov 128   ;;  %s265_s7 = smov 8  }
  0x22   :  { %22 = dma.hbm_to_vmem [thread:$0]  %s347_s0, 256, %s292_s15, [#allocation3], %s264_s1, %s264_s1, %s265_s7  }
  0x23   :  { %s266_s10 = smov [#allocation7]   ;;  %s212_s14 = scalar_lea.hbm %s349_s2, 16 }
  0x24   :  { %s39_s11 = sshll.u32 %s266_s10, 4  ;;  %p213_p2 = scmp.ne.s32.totalorder %s349_s2, %s212_s14  ;;  %s40_s11 = int_to_ptr.vmem [resolvable:$true] %s39_s11 }
  0x25   :  { %p216_p3 = scmp.lt.u32.totalorder %s212_s14, %s349_s2 }
  0x27   :  { %p218_p4 = pnand %p216_p3, %p213_p2 }
  0x29   :  { %221 = shalt.err (!%p218_p4)
}
  0x2a   :  { %s222_s20 = scalar_lea.vmem %s40_s11, 16  ;;  %s226_s0 = scalar_lea.vmem %s40_s11, 32 }
  0x2b   :  { %p223_p5 = scmp.ne.s32.totalorder %s40_s11, %s222_s20  ;;  %p227_p6 = scmp.lt.s32.totalorder %s40_s11, %s40_s11 }
  0x2c   :  { %p228_p7 = scmp.lt.s32.totalorder %s226_s0, %s222_s20 }
  0x2e   :  { %p229_p8 = por %p228_p7, %p227_p6 }
  0x30   :  { %p230_p9 = pnand %p229_p8, %p223_p5 }
  0x32   :  { %233 = shalt.err (!%p230_p9)
}
  0x33   :  { %42 = dma.hbm_to_vmem [thread:$0]  %s349_s2, 16, %s40_s11, [#allocation6]  }
  0x34   :  { %256 = dma.done.wait [#allocation3], 256  }
  0x35   :  { %257 = vsyncadd [#allocation3], 4294967040 }
  0x36   :  { %258 = dma.done.wait [#allocation6], 48  }
  0x37   :  { %259 = vsyncadd [#allocation6], 4294967248  ;;  %v267_v0 = vmov 0.0   ;;  %vm268_vm0 = vmmov 0   ;;  %vm68_vm1 = vcmask 1041408   ;;  %v53_v2 = vld [vmem:[#allocation2] sm:$0xff] }
  0x38   :  { %152 = vmatprep.subr.bf16.mxu0 %v267_v0  ;;  %154 = vmatprep.mubr.msk.bf16.mxu0 %vm268_vm0, %v267_v0  ;;  %v56_v1 = vld [vmem:[#allocation5] sm:$0x3]  ;;  %v54_v3 = vld [vmem:[#allocation2 + $0x8] sm:$0xff]  ;;  %vm64_vm2 = vcmask 31744   ;;  %v144_v6 = vld [vmem:[#allocation7] ss:$0 sm:$0xff] }
  0x39   :  { %v70_v4 = vsel %vm68_vm1, %v56_v1, 0  ;;  %v55_v5 = vpack.c.bf16 %v54_v3, %v53_v2  ;;  %s269_s2 = smov [#allocation8]   ;;  %vm123_vm3 = vcmask 257024  }
  0x3a   :  { %153 = vmatpush3.bf16.msra.mxu0 %v70_v4  ;;  %s131_s22 = sshll.u32 %s269_s2, 4  ;;  %s132_s22 = int_to_ptr.vmem [resolvable:$true] %s131_s22 }
  0x3b   :  { %s234_s23 = scalar_lea.vmem %s132_s22, 128  ;;  %p239_p11 = scmp.lt.s32.totalorder %s132_s22, %s132_s22 }
  0x3c   :  { %p235_p10 = scmp.ne.s32.totalorder %s132_s22, %s234_s23  ;;  %p240_p12 = scmp.lt.s32.totalorder %s234_s23, %s234_s23 }
  0x3d   :  { %155 = vmatmul.mubr.msk.bf16.vlgmr.msra.gmra.mrb[0].mxu0 %vm64_vm2, %v55_v5 }
  0x3e   :  { %p241_p13 = por %p240_p12, %p239_p11 }
  0x40   :  { %p242_p0 = pnand %p241_p13, %p235_p10 }
 0x110   :  { %v106_v7 = vpop.f32.mrb[0].mxu0 }
 0x111   :  { %v107_v8 = vadd.f32 %v144_v6, %v106_v7  ;;  %v156_v9 = vpop.f32.mrb[1].mxu0 }
 0x112   :  { %v109_v10 = vpop.f32.mrb[2].mxu0 }
 0x113   :  { %v113_v11 = vmax.f32 %v107_v8, 0.0  ;;  %v110_v12 = vadd.f32 %v144_v6, %v109_v10  ;;  %v157_v13 = vpop.f32.mrb[3].mxu0 }
 0x115   :  { %v148_v14 = vpack.c.bf16 %v113_v11, %v113_v11  ;;  %v114_v15 = vmax.f32 %v110_v12, 0.0 }
 0x117   :  { %124 = vst.msk [vmem:[#allocation8] sm:$0xf] %vm123_vm3, %v148_v14  ;;  %v149_v16 = vpack.c.bf16 %v114_v15, %v114_v15 }
 0x119   :  { %125 = vst.msk [vmem:[#allocation8 + $0x4] sm:$0xf] %vm123_vm3, %v149_v16 }
 0x11a   :  { %245 = shalt.err (!%p242_p0)
}
 0x11b   :  { %s246_s26 = scalar_lea.hbm %s350_s3, 128 }
 0x11c   :  { %p247_p1 = scmp.ne.s32.totalorder %s350_s3, %s246_s26  ;;  %p250_p2 = scmp.lt.u32.totalorder %s246_s26, %s350_s3 }
 0x11e   :  { %p252_p3 = pnand %p250_p2, %p247_p1 }
 0x120   :  { %255 = shalt.err (!%p252_p3)
}
 0x121   :  { %s270_s4 = smov 64   ;;  %s271_s5 = smov 4  }
 0x122   :  { %137 = dma.vmem_to_hbm [thread:$0]  %s132_s22, 128, %s350_s3, [#allocation4], %s270_s4, %s270_s4, %s271_s5  }
 0x123   :  { %260 = dma.done.wait [#allocation4], 128  }
 0x124   :  { %261 = vsyncadd [#allocation4], 4294967168 }
 0x125   :  { %141 = vsyncpa [#allocation3], 1 }
 0x126   :  { %142 = vsyncpa [#allocation6], 1 }
 0x127   :  { %143 = vsyncpa [#allocation4], 1 }

// kernel: mfs_forward.26
= control target key start
LH: loop header
LB: loop body
LE: loop exit
PB: predicated region body
PF: predicated region fallthrough
CT: control target
= control target key end

     0   :  { %8 = vsyncpa [#allocation3], 0  ;;  %s364_s0 = inlined_call_operand.hbm [shape: f32[16,32], index: 0, kind: input, shape index: {}]   ;;  %s365_s1 = inlined_call_operand.hbm [shape: bf16[32,32], index: 1, kind: input, shape index: {}]   ;;  %s366_s2 = inlined_call_operand.hbm [shape: f32[1,32], index: 2, kind: input, shape index: {}]   ;;  %s367_s3 = inlined_call_operand.hbm [shape: bf16[16,32], index: 3, kind: output, shape index: {}]  }
   0x1   :  { %9 = vsyncpa [#allocation6], 0 }
   0x2   :  { %10 = vsyncpa [#allocation4], 0  ;;  %s280_s12 = smov [#allocation5]   ;;  %s186_s16 = scalar_lea.hbm %s365_s1, 256 }
   0x3   :  { %s28_s13 = sshll.u32 %s280_s12, 4  ;;  %p187_p0 = scmp.ne.s32.totalorder %s365_s1, %s186_s16  ;;  %s29_s13 = int_to_ptr.vmem [resolvable:$true] %s28_s13 }
   0x4   :  { %p190_p1 = scmp.lt.u32.totalorder %s186_s16, %s365_s1 }
   0x6   :  { %p192_p2 = pnand %p190_p1, %p187_p0 }
   0x8   :  { %195 = shalt.err (!%p192_p2)
}
   0x9   :  { %s196_s21 = scalar_lea.vmem %s29_s13, 256  ;;  %p201_p4 = scmp.lt.s32.totalorder %s29_s13, %s29_s13 }
   0xa   :  { %p197_p3 = scmp.ne.s32.totalorder %s29_s13, %s196_s21  ;;  %p202_p5 = scmp.lt.s32.totalorder %s196_s21, %s196_s21 }
   0xc   :  { %p203_p6 = por %p202_p5, %p201_p4 }
   0xe   :  { %p204_p7 = pnand %p203_p6, %p197_p3 }
  0x10   :  { %207 = shalt.err (!%p204_p7)
}
  0x11   :  { %s281_s22 = smov 64   ;;  %s282_s23 = smov 4  }
  0x12   :  { %34 = dma.hbm_to_vmem [thread:$0]  %s365_s1, 256, %s29_s13, [#allocation6], %s281_s22, %s281_s22, %s282_s23  }
  0x13   :  { %s283_s26 = smov [#allocation2]   ;;  %s208_s30 = scalar_lea.hbm %s364_s0, 256 }
  0x14   :  { %s16_s27 = sshll.u32 %s283_s26, 4  ;;  %p209_p8 = scmp.ne.s32.totalorder %s364_s0, %s208_s30  ;;  %s17_s27 = int_to_ptr.vmem [resolvable:$true] %s16_s27 }
  0x15   :  { %p212_p9 = scmp.lt.u32.totalorder %s208_s30, %s364_s0 }
  0x17   :  { %p214_p10 = pnand %p212_p9, %p209_p8 }
  0x19   :  { %217 = shalt.err (!%p214_p10)
}
  0x1a   :  { %s218_s8 = scalar_lea.vmem %s17_s27, 256  ;;  %p223_p12 = scmp.lt.s32.totalorder %s17_s27, %s17_s27 }
  0x1b   :  { %p219_p11 = scmp.ne.s32.totalorder %s17_s27, %s218_s8  ;;  %p224_p13 = scmp.lt.s32.totalorder %s218_s8, %s218_s8 }
  0x1d   :  { %p225_p0 = por %p224_p13, %p223_p12 }
  0x1f   :  { %p226_p1 = pnand %p225_p0, %p219_p11 }
  0x21   :  { %229 = shalt.err (!%p226_p1)
}
  0x22   :  { %s284_s1 = smov 128   ;;  %s285_s9 = smov 8  }
  0x23   :  { %22 = dma.hbm_to_vmem [thread:$0]  %s364_s0, 256, %s17_s27, [#allocation3], %s284_s1, %s284_s1, %s285_s9  }
  0x24   :  { %s286_s12 = smov [#allocation7]   ;;  %s230_s16 = scalar_lea.hbm %s366_s2, 16 }
  0x25   :  { %s41_s13 = sshll.u32 %s286_s12, 4  ;;  %p231_p2 = scmp.ne.s32.totalorder %s366_s2, %s230_s16  ;;  %s42_s13 = int_to_ptr.vmem [resolvable:$true] %s41_s13 }
  0x26   :  { %p234_p3 = scmp.lt.u32.totalorder %s230_s16, %s366_s2 }
  0x28   :  { %p236_p4 = pnand %p234_p3, %p231_p2 }
  0x2a   :  { %239 = shalt.err (!%p236_p4)
}
  0x2b   :  { %s240_s21 = scalar_lea.vmem %s42_s13, 16  ;;  %s244_s0 = scalar_lea.vmem %s42_s13, 32 }
  0x2c   :  { %p241_p5 = scmp.ne.s32.totalorder %s42_s13, %s240_s21  ;;  %p245_p6 = scmp.lt.s32.totalorder %s42_s13, %s42_s13 }
  0x2d   :  { %p246_p7 = scmp.lt.s32.totalorder %s244_s0, %s240_s21 }
  0x2f   :  { %p247_p8 = por %p246_p7, %p245_p6 }
  0x31   :  { %p248_p9 = pnand %p247_p8, %p241_p5 }
  0x33   :  { %251 = shalt.err (!%p248_p9)
}
  0x34   :  { %44 = dma.hbm_to_vmem [thread:$0]  %s366_s2, 16, %s42_s13, [#allocation6]  }
  0x35   :  { %274 = dma.done.wait [#allocation3], 256  }
  0x36   :  { %275 = vsyncadd [#allocation3], 4294967040 }
  0x37   :  { %276 = dma.done.wait [#allocation6], 272  }
  0x38   :  { %277 = vsyncadd [#allocation6], 4294967024  ;;  %v287_v0 = vmov 0.0   ;;  %vm288_vm0 = vmmov 0   ;;  %v184_v1 = vld [vmem:[#allocation5] sm:$0xff]   ;;  %v185_v2 = vld [vmem:[#allocation5 + $0x8] sm:$0xff]  }
  0x39   :  { %166 = vmatprep.subr.bf16.mxu0 %v287_v0  ;;  %170 = vmatprep.mubr.msk.bf16.mxu0 %vm288_vm0, %v287_v0  ;;  %v55_v3 = vld [vmem:[#allocation2] sm:$0xff]  ;;  %v56_v4 = vld [vmem:[#allocation2 + $0x8] sm:$0xff]  ;;  %vm81_vm1 = vcmask 261120   ;;  %vm134_vm2 = vcmask 257024   ;;  %s289_s2 = smov [#allocation8]  }
  0x3a   :  { %167 = vmatpush3.bf16.msra.mxu0 %v184_v1  ;;  %v57_v5 = vpack.c.bf16 %v56_v4, %v55_v3  ;;  %v155_v6 = vld [vmem:[#allocation7] ss:$0 sm:$0xff]  ;;  %s142_s26 = sshll.u32 %s289_s2, 4  ;;  %s143_s26 = int_to_ptr.vmem [resolvable:$true] %s142_s26 }
  0x3b   :  { %168 = vmatprep.subr.bf16.mxu0 %v287_v0  ;;  %s252_s27 = scalar_lea.vmem %s143_s26, 128  ;;  %p257_p11 = scmp.lt.s32.totalorder %s143_s26, %s143_s26 }
  0x3c   :  { %p253_p10 = scmp.ne.s32.totalorder %s143_s26, %s252_s27  ;;  %p258_p12 = scmp.lt.s32.totalorder %s252_s27, %s252_s27 }
  0x3e   :  { %169 = vmatpush3.bf16.msra.mxu0 %v185_v2  ;;  %p259_p13 = por %p258_p12, %p257_p11 }
  0x40   :  { %p260_p0 = pnand %p259_p13, %p253_p10 }
  0x41   :  { %171 = vmatmul.mubr.msk.bf16.vlgmr.msra.gmra.mrb[0].mxu0 %vm81_vm1, %v57_v5 }
 0x114   :  { %v119_v7 = vpop.f32.mrb[0].mxu0 }
 0x115   :  { %v120_v8 = vadd.f32 %v155_v6, %v119_v7  ;;  %v172_v9 = vpop.f32.mrb[1].mxu0 }
 0x116   :  { %v122_v10 = vpop.f32.mrb[2].mxu0 }
 0x117   :  { %v161_v11 = vpack.c.bf16 %v120_v8, %v120_v8  ;;  %v123_v12 = vadd.f32 %v155_v6, %v122_v10  ;;  %v173_v13 = vpop.f32.mrb[3].mxu0 }
 0x119   :  { %v162_v14 = vpack.c.bf16 %v123_v12, %v123_v12  ;;  %135 = vst.msk [vmem:[#allocation8] sm:$0xf] %vm134_vm2, %v161_v11 }
 0x11b   :  { %136 = vst.msk [vmem:[#allocation8 + $0x4] sm:$0xf] %vm134_vm2, %v162_v14 }
 0x11c   :  { %263 = shalt.err (!%p260_p0)
}
 0x11d   :  { %s264_s30 = scalar_lea.hbm %s367_s3, 128 }
 0x11e   :  { %p265_p1 = scmp.ne.s32.totalorder %s367_s3, %s264_s30  ;;  %p268_p2 = scmp.lt.u32.totalorder %s264_s30, %s367_s3 }
 0x120   :  { %p270_p3 = pnand %p268_p2, %p265_p1 }
 0x122   :  { %273 = shalt.err (!%p270_p3)
}
 0x123   :  { %148 = dma.vmem_to_hbm [thread:$0]  %s143_s26, 128, %s367_s3, [#allocation4], %s281_s22, %s281_s22, %s282_s23  }
 0x124   :  { %278 = dma.done.wait [#allocation4], 128  }
 0x125   :  { %279 = vsyncadd [#allocation4], 4294967168 }
 0x126   :  { %152 = vsyncpa [#allocation3], 1 }
 0x127   :  { %153 = vsyncpa [#allocation6], 1 }
 0x128   :  { %154 = vsyncpa [#allocation4], 1 }

// kernel: mfs_forward.32
= control target key start
LH: loop header
LB: loop body
LE: loop exit
PB: predicated region body
PF: predicated region fallthrough
CT: control target
= control target key end

     0   :  { %8 = vsyncpa [#allocation3], 0  ;;  %s345_s0 = inlined_call_operand.hbm [shape: f32[16,4], index: 0, kind: input, shape index: {}]   ;;  %s346_s1 = inlined_call_operand.hbm [shape: bf16[4,32], index: 1, kind: input, shape index: {}]   ;;  %s347_s2 = inlined_call_operand.hbm [shape: f32[1,32], index: 2, kind: input, shape index: {}]   ;;  %s348_s3 = inlined_call_operand.hbm [shape: bf16[16,32], index: 3, kind: output, shape index: {}]  }
   0x1   :  { %9 = vsyncpa [#allocation6], 0 }
   0x2   :  { %10 = vsyncpa [#allocation4], 0  ;;  %s260_s12 = smov [#allocation5]   ;;  %s261_s14 = smov [#allocation2]  }
   0x3   :  { %s29_s13 = sshll.u32 %s260_s12, 4  ;;  %s16_s15 = sshll.u32 %s261_s14, 4  ;;  %s30_s13 = int_to_ptr.vmem [resolvable:$true] %s29_s13  ;;  %s290_s15 = int_to_ptr.vmem [resolvable:$true] %s16_s15 }
   0x4   :  { %s166_s18 = scalar_lea.hbm %s346_s1, 32 }
   0x5   :  { %p167_p0 = scmp.ne.s32.totalorder %s346_s1, %s166_s18  ;;  %p170_p1 = scmp.lt.u32.totalorder %s166_s18, %s346_s1 }
   0x7   :  { %p172_p2 = pnand %p170_p1, %p167_p0 }
   0x9   :  { %175 = shalt.err (!%p172_p2)
}
   0xa   :  { %s176_s23 = scalar_lea.vmem %s30_s13, 32  ;;  %p181_p4 = scmp.lt.s32.totalorder %s30_s13, %s30_s13 }
   0xb   :  { %p177_p3 = scmp.ne.s32.totalorder %s30_s13, %s176_s23  ;;  %p182_p5 = scmp.lt.s32.totalorder %s176_s23, %s176_s23 }
   0xd   :  { %p183_p6 = por %p182_p5, %p181_p4 }
   0xf   :  { %p184_p7 = pnand %p183_p6, %p177_p3 }
  0x11   :  { %187 = shalt.err (!%p184_p7)
}
  0x12   :  { %32 = dma.hbm_to_vmem [thread:$0]  %s346_s1, 32, %s30_s13, [#allocation6]  }
  0x13   :  { %s188_s28 = scalar_lea.hbm %s345_s0, 256 }
  0x14   :  { %p189_p8 = scmp.ne.s32.totalorder %s345_s0, %s188_s28  ;;  %p192_p9 = scmp.lt.u32.totalorder %s188_s28, %s345_s0 }
  0x16   :  { %p194_p10 = pnand %p192_p9, %p189_p8 }
  0x18   :  { %197 = shalt.err (!%p194_p10)
}
  0x19   :  { %s198_s6 = scalar_lea.vmem %s290_s15, 256  ;;  %p203_p12 = scmp.lt.s32.totalorder %s290_s15, %s290_s15 }
  0x1a   :  { %p199_p11 = scmp.ne.s32.totalorder %s290_s15, %s198_s6  ;;  %p204_p13 = scmp.lt.s32.totalorder %s198_s6, %s198_s6 }
  0x1c   :  { %p205_p0 = por %p204_p13, %p203_p12 }
  0x1e   :  { %p206_p1 = pnand %p205_p0, %p199_p11 }
  0x20   :  { %209 = shalt.err (!%p206_p1)
}
  0x21   :  { %s262_s1 = smov 128   ;;  %s263_s7 = smov 8  }
  0x22   :  { %22 = dma.hbm_to_vmem [thread:$0]  %s345_s0, 256, %s290_s15, [#allocation3], %s262_s1, %s262_s1, %s263_s7  }
  0x23   :  { %s264_s10 = smov [#allocation7]   ;;  %s210_s14 = scalar_lea.hbm %s347_s2, 16 }
  0x24   :  { %s39_s11 = sshll.u32 %s264_s10, 4  ;;  %p211_p2 = scmp.ne.s32.totalorder %s347_s2, %s210_s14  ;;  %s40_s11 = int_to_ptr.vmem [resolvable:$true] %s39_s11 }
  0x25   :  { %p214_p3 = scmp.lt.u32.totalorder %s210_s14, %s347_s2 }
  0x27   :  { %p216_p4 = pnand %p214_p3, %p211_p2 }
  0x29   :  { %219 = shalt.err (!%p216_p4)
}
  0x2a   :  { %s220_s20 = scalar_lea.vmem %s40_s11, 16  ;;  %s224_s0 = scalar_lea.vmem %s40_s11, 32 }
  0x2b   :  { %p221_p5 = scmp.ne.s32.totalorder %s40_s11, %s220_s20  ;;  %p225_p6 = scmp.lt.s32.totalorder %s40_s11, %s40_s11 }
  0x2c   :  { %p226_p7 = scmp.lt.s32.totalorder %s224_s0, %s220_s20 }
  0x2e   :  { %p227_p8 = por %p226_p7, %p225_p6 }
  0x30   :  { %p228_p9 = pnand %p227_p8, %p221_p5 }
  0x32   :  { %231 = shalt.err (!%p228_p9)
}
  0x33   :  { %42 = dma.hbm_to_vmem [thread:$0]  %s347_s2, 16, %s40_s11, [#allocation6]  }
  0x34   :  { %254 = dma.done.wait [#allocation3], 256  }
  0x35   :  { %255 = vsyncadd [#allocation3], 4294967040 }
  0x36   :  { %256 = dma.done.wait [#allocation6], 48  }
  0x37   :  { %257 = vsyncadd [#allocation6], 4294967248  ;;  %v265_v0 = vmov 0.0   ;;  %vm266_vm0 = vmmov 0   ;;  %vm68_vm1 = vcmask 1041408   ;;  %v53_v2 = vld [vmem:[#allocation2] sm:$0xff] }
  0x38   :  { %150 = vmatprep.subr.bf16.mxu0 %v265_v0  ;;  %152 = vmatprep.mubr.msk.bf16.mxu0 %vm266_vm0, %v265_v0  ;;  %v56_v1 = vld [vmem:[#allocation5] sm:$0x3]  ;;  %v54_v3 = vld [vmem:[#allocation2 + $0x8] sm:$0xff]  ;;  %vm64_vm2 = vcmask 31744   ;;  %v142_v6 = vld [vmem:[#allocation7] ss:$0 sm:$0xff] }
  0x39   :  { %v70_v4 = vsel %vm68_vm1, %v56_v1, 0  ;;  %v55_v5 = vpack.c.bf16 %v54_v3, %v53_v2  ;;  %s267_s2 = smov [#allocation8]   ;;  %vm121_vm3 = vcmask 257024  }
  0x3a   :  { %151 = vmatpush3.bf16.msra.mxu0 %v70_v4  ;;  %s129_s22 = sshll.u32 %s267_s2, 4  ;;  %s130_s22 = int_to_ptr.vmem [resolvable:$true] %s129_s22 }
  0x3b   :  { %s232_s23 = scalar_lea.vmem %s130_s22, 128  ;;  %p237_p11 = scmp.lt.s32.totalorder %s130_s22, %s130_s22 }
  0x3c   :  { %p233_p10 = scmp.ne.s32.totalorder %s130_s22, %s232_s23  ;;  %p238_p12 = scmp.lt.s32.totalorder %s232_s23, %s232_s23 }
  0x3d   :  { %153 = vmatmul.mubr.msk.bf16.vlgmr.msra.gmra.mrb[0].mxu0 %vm64_vm2, %v55_v5 }
  0x3e   :  { %p239_p13 = por %p238_p12, %p237_p11 }
  0x40   :  { %p240_p0 = pnand %p239_p13, %p233_p10 }
 0x110   :  { %v106_v7 = vpop.f32.mrb[0].mxu0 }
 0x111   :  { %v107_v8 = vadd.f32 %v142_v6, %v106_v7  ;;  %v154_v9 = vpop.f32.mrb[1].mxu0 }
 0x112   :  { %v109_v10 = vpop.f32.mrb[2].mxu0 }
 0x113   :  { %v146_v11 = vpack.c.bf16 %v107_v8, %v107_v8  ;;  %v110_v12 = vadd.f32 %v142_v6, %v109_v10  ;;  %v155_v13 = vpop.f32.mrb[3].mxu0 }
 0x115   :  { %122 = vst.msk [vmem:[#allocation8] sm:$0xf] %vm121_vm3, %v146_v11  ;;  %v147_v14 = vpack.c.bf16 %v110_v12, %v110_v12 }
 0x117   :  { %123 = vst.msk [vmem:[#allocation8 + $0x4] sm:$0xf] %vm121_vm3, %v147_v14 }
 0x118   :  { %243 = shalt.err (!%p240_p0)
}
 0x119   :  { %s244_s26 = scalar_lea.hbm %s348_s3, 128 }
 0x11a   :  { %p245_p1 = scmp.ne.s32.totalorder %s348_s3, %s244_s26  ;;  %p248_p2 = scmp.lt.u32.totalorder %s244_s26, %s348_s3 }
 0x11c   :  { %p250_p3 = pnand %p248_p2, %p245_p1 }
 0x11e   :  { %253 = shalt.err (!%p250_p3)
}
 0x11f   :  { %s268_s4 = smov 64   ;;  %s269_s5 = smov 4  }
 0x120   :  { %135 = dma.vmem_to_hbm [thread:$0]  %s130_s22, 128, %s348_s3, [#allocation4], %s268_s4, %s268_s4, %s269_s5  }
 0x121   :  { %258 = dma.done.wait [#allocation4], 128  }
 0x122   :  { %259 = vsyncadd [#allocation4], 4294967168 }
 0x123   :  { %139 = vsyncpa [#allocation3], 1 }
 0x124   :  { %140 = vsyncpa [#allocation6], 1 }
 0x125   :  { %141 = vsyncpa [#allocation4], 1 }

// kernel: mfs_forward.28
= control target key start
LH: loop header
LB: loop body
LE: loop exit
PB: predicated region body
PF: predicated region fallthrough
CT: control target
= control target key end

     0   :  { %12 = vsyncpa [#allocation3], 0  ;;  %s791_s0 = inlined_call_operand.hbm [shape: bf16[16,32], index: 0, kind: input, shape index: {}]   ;;  %s792_s1 = inlined_call_operand.hbm [shape: bf16[32,64], index: 1, kind: input, shape index: {}]   ;;  %s793_s2 = inlined_call_operand.hbm [shape: f32[1,64], index: 2, kind: input, shape index: {}]   ;;  %s794_s3 = inlined_call_operand.hbm [shape: bf16[64,32], index: 3, kind: input, shape index: {}]   ;;  %s795_s4 = inlined_call_operand.hbm [shape: f32[1,32], index: 4, kind: input, shape index: {}]   ;;  %s796_s5 = inlined_call_operand.hbm [shape: f32[1,32], index: 5, kind: input, shape index: {}]   ;;  %s797_s6 = inlined_call_operand.hbm [shape: f32[1,32], index: 6, kind: input, shape index: {}]   ;;  %s798_s7 = inlined_call_operand.hbm [shape: bf16[16,32], index: 7, kind: output, shape index: {}]  }
   0x1   :  { %13 = vsyncpa [#allocation6], 0 }
   0x2   :  { %14 = vsyncpa [#allocation9], 0 }
   0x3   :  { %15 = vsyncpa [#allocation12], 0 }
   0x4   :  { %16 = vsyncpa [#allocation4], 0  ;;  %s612_s24 = smov [#allocation5]   ;;  %s613_s26 = smov [#allocation8]  }
   0x5   :  { %s34_s25 = sshll.u32 %s612_s24, 4  ;;  %s56_s27 = sshll.u32 %s613_s26, 4  ;;  %s35_s25 = int_to_ptr.vmem [resolvable:$true] %s34_s25  ;;  %s664_s27 = int_to_ptr.vmem [resolvable:$true] %s56_s27 }
   0x6   :  { %s426_s30 = scalar_lea.hbm %s792_s1, 256 }
   0x7   :  { %p427_p0 = scmp.ne.s32.totalorder %s792_s1, %s426_s30  ;;  %p430_p1 = scmp.lt.u32.totalorder %s426_s30, %s792_s1 }
   0x9   :  { %p432_p2 = pnand %p430_p1, %p427_p0 }
   0xb   :  { %435 = shalt.err (!%p432_p2)
}
   0xc   :  { %s436_s12 = scalar_lea.vmem %s35_s25, 256  ;;  %p441_p4 = scmp.lt.s32.totalorder %s35_s25, %s35_s25 }
   0xd   :  { %p437_p3 = scmp.ne.s32.totalorder %s35_s25, %s436_s12  ;;  %p442_p5 = scmp.lt.s32.totalorder %s436_s12, %s436_s12 }
   0xf   :  { %p443_p6 = por %p442_p5, %p441_p4 }
  0x11   :  { %p444_p7 = pnand %p443_p6, %p437_p3 }
  0x13   :  { %447 = shalt.err (!%p444_p7)
}
  0x14   :  { %s614_s13 = smov 64   ;;  %s615_s14 = smov 4  }
  0x15   :  { %40 = dma.hbm_to_vmem [thread:$0]  %s792_s1, 256, %s35_s25, [#allocation6], %s614_s13, %s614_s13, %s615_s14  }
  0x16   :  { %s448_s19 = scalar_lea.hbm %s794_s3, 512 }
  0x17   :  { %p449_p8 = scmp.ne.s32.totalorder %s794_s3, %s448_s19  ;;  %p452_p9 = scmp.lt.u32.totalorder %s448_s19, %s794_s3 }
  0x19   :  { %p454_p10 = pnand %p452_p9, %p449_p8 }
  0x1b   :  { %457 = shalt.err (!%p454_p10)
}
  0x1c   :  { %s458_s24 = scalar_lea.vmem %s664_s27, 512  ;;  %p463_p12 = scmp.lt.s32.totalorder %s664_s27, %s664_s27 }
  0x1d   :  { %p459_p11 = scmp.ne.s32.totalorder %s664_s27, %s458_s24  ;;  %p464_p13 = scmp.lt.s32.totalorder %s458_s24, %s458_s24 }
  0x1f   :  { %p465_p0 = por %p464_p13, %p463_p12 }
  0x21   :  { %p466_p1 = pnand %p465_p0, %p459_p11 }
  0x23   :  { %469 = shalt.err (!%p466_p1)
}
  0x24   :  { %62 = dma.hbm_to_vmem [thread:$0]  %s794_s3, 512, %s664_s27, [#allocation9], %s614_s13, %s614_s13, %s615_s14  }
  0x25   :  { %s616_s26 = smov [#allocation11]   ;;  %s617_s29 = smov [#allocation2]  }
  0x26   :  { %s79_s28 = sshll.u32 %s616_s26, 4  ;;  %s22_s30 = sshll.u32 %s617_s29, 4  ;;  %s80_s28 = int_to_ptr.vmem [resolvable:$true] %s79_s28  ;;  %s701_s30 = int_to_ptr.vmem [resolvable:$true] %s22_s30 }
  0x27   :  { %s470_s10 = scalar_lea.hbm %s796_s5, 16 }
  0x28   :  { %p471_p2 = scmp.ne.s32.totalorder %s796_s5, %s470_s10  ;;  %p474_p3 = scmp.lt.u32.totalorder %s470_s10, %s796_s5 }
  0x2a   :  { %p476_p4 = pnand %p474_p3, %p471_p2 }
  0x2c   :  { %479 = shalt.err (!%p476_p4)
}
  0x2d   :  { %s480_s3 = scalar_lea.vmem %s80_s28, 16  ;;  %s484_s27 = scalar_lea.vmem %s80_s28, 32 }
  0x2e   :  { %p481_p5 = scmp.ne.s32.totalorder %s80_s28, %s480_s3  ;;  %p485_p6 = scmp.lt.s32.totalorder %s80_s28, %s80_s28 }
  0x2f   :  { %p486_p7 = scmp.lt.s32.totalorder %s484_s27, %s480_s3 }
  0x31   :  { %p487_p8 = por %p486_p7, %p485_p6 }
  0x33   :  { %p488_p9 = pnand %p487_p8, %p481_p5 }
  0x35   :  { %491 = shalt.err (!%p488_p9)
}
  0x36   :  { %82 = dma.hbm_to_vmem [thread:$0]  %s796_s5, 16, %s80_s28, [#allocation12]  }
  0x37   :  { %s492_s21 = scalar_lea.hbm %s791_s0, 128 }
  0x38   :  { %p493_p10 = scmp.ne.s32.totalorder %s791_s0, %s492_s21  ;;  %p496_p11 = scmp.lt.u32.totalorder %s492_s21, %s791_s0 }
  0x3a   :  { %p498_p12 = pnand %p496_p11, %p493_p10 }
  0x3c   :  { %501 = shalt.err (!%p498_p12)
}
  0x3d   :  { %s502_s25 = scalar_lea.vmem %s701_s30, 128  ;;  %p507_p0 = scmp.lt.s32.totalorder %s701_s30, %s701_s30 }
  0x3e   :  { %p503_p13 = scmp.ne.s32.totalorder %s701_s30, %s502_s25  ;;  %p508_p1 = scmp.lt.s32.totalorder %s502_s25, %s502_s25 }
  0x40   :  { %p509_p2 = por %p508_p1, %p507_p0 }
  0x42   :  { %p510_p3 = pnand %p509_p2, %p503_p13 }
  0x44   :  { %513 = shalt.err (!%p510_p3)
}
  0x45   :  { %28 = dma.hbm_to_vmem [thread:$0]  %s791_s0, 128, %s701_s30, [#allocation3], %s614_s13, %s614_s13, %s615_s14  }
  0x46   :  { %s618_s28 = smov [#allocation7]   ;;  %s619_s8 = smov [#allocation10]  }
  0x47   :  { %s47_s29 = sshll.u32 %s618_s28, 4  ;;  %s69_s9 = sshll.u32 %s619_s8, 4  ;;  %s48_s29 = int_to_ptr.vmem [resolvable:$true] %s47_s29  ;;  %s70_s9 = int_to_ptr.vmem [resolvable:$true] %s69_s9 }
  0x48   :  { %s514_s12 = scalar_lea.hbm %s793_s2, 16 }
  0x49   :  { %p515_p4 = scmp.ne.s32.totalorder %s793_s2, %s514_s12  ;;  %p518_p5 = scmp.lt.u32.totalorder %s514_s12, %s793_s2 }
  0x4b   :  { %p520_p6 = pnand %p518_p5, %p515_p4 }
  0x4d   :  { %523 = shalt.err (!%p520_p6)
}
  0x4e   :  { %s524_s0 = scalar_lea.vmem %s48_s29, 16  ;;  %s528_s30 = scalar_lea.vmem %s48_s29, 32 }
  0x4f   :  { %p525_p7 = scmp.ne.s32.totalorder %s48_s29, %s524_s0  ;;  %p529_p8 = scmp.lt.s32.totalorder %s48_s29, %s48_s29 }
  0x50   :  { %p530_p9 = scmp.lt.s32.totalorder %s528_s30, %s524_s0 }
  0x52   :  { %p531_p10 = por %p530_p9, %p529_p8 }
  0x54   :  { %p532_p11 = pnand %p531_p10, %p525_p7 }
  0x56   :  { %535 = shalt.err (!%p532_p11)
}
  0x57   :  { %50 = dma.hbm_to_vmem [thread:$0]  %s793_s2, 16, %s48_s29, [#allocation6]  }
  0x58   :  { %s536_s21 = scalar_lea.hbm %s795_s4, 16 }
  0x59   :  { %p537_p12 = scmp.ne.s32.totalorder %s795_s4, %s536_s21  ;;  %p540_p13 = scmp.lt.u32.totalorder %s536_s21, %s795_s4 }
  0x5b   :  { %p542_p0 = pnand %p540_p13, %p537_p12 }
  0x5d   :  { %545 = shalt.err (!%p542_p0)
}
  0x5e   :  { %s546_s25 = scalar_lea.vmem %s70_s9, 16  ;;  %s550_s5 = scalar_lea.vmem %s70_s9, 32 }
  0x5f   :  { %p547_p1 = scmp.ne.s32.totalorder %s70_s9, %s546_s25  ;;  %p551_p2 = scmp.lt.s32.totalorder %s70_s9, %s70_s9 }
  0x60   :  { %p552_p3 = scmp.lt.s32.totalorder %s550_s5, %s546_s25 }
  0x62   :  { %p553_p4 = por %p552_p3, %p551_p2 }
  0x64   :  { %p554_p5 = pnand %p553_p4, %p547_p1 }
  0x66   :  { %557 = shalt.err (!%p554_p5)
}
  0x67   :  { %72 = dma.hbm_to_vmem [thread:$0]  %s795_s4, 16, %s70_s9, [#allocation9]  }
  0x68   :  { %s620_s28 = smov [#allocation13]   ;;  %s558_s11 = scalar_lea.hbm %s797_s6, 16 }
  0x69   :  { %s89_s29 = sshll.u32 %s620_s28, 4  ;;  %p559_p6 = scmp.ne.s32.totalorder %s797_s6, %s558_s11  ;;  %s90_s29 = int_to_ptr.vmem [resolvable:$true] %s89_s29 }
  0x6a   :  { %p562_p7 = scmp.lt.u32.totalorder %s558_s11, %s797_s6 }
  0x6c   :  { %p564_p8 = pnand %p562_p7, %p559_p6 }
  0x6e   :  { %567 = shalt.err (!%p564_p8)
}
  0x6f   :  { %s568_s27 = scalar_lea.vmem %s90_s29, 16  ;;  %s572_s4 = scalar_lea.vmem %s90_s29, 32 }
  0x70   :  { %p569_p9 = scmp.ne.s32.totalorder %s90_s29, %s568_s27  ;;  %p573_p10 = scmp.lt.s32.totalorder %s90_s29, %s90_s29 }
  0x71   :  { %p574_p11 = scmp.lt.s32.totalorder %s572_s4, %s568_s27 }
  0x73   :  { %p575_p12 = por %p574_p11, %p573_p10 }
  0x75   :  { %p576_p13 = pnand %p575_p12, %p569_p9 }
  0x77   :  { %579 = shalt.err (!%p576_p13)
}
  0x78   :  { %92 = dma.hbm_to_vmem [thread:$0]  %s797_s6, 16, %s90_s29, [#allocation12]  }
  0x79   :  { %602 = dma.done.wait [#allocation3], 128  }
  0x7a   :  { %603 = vsyncadd [#allocation3], 4294967168 }
  0x7b   :  { %604 = dma.done.wait [#allocation6], 272  }
  0x7c   :  { %605 = vsyncadd [#allocation6], 4294967024 }
  0x7d   :  { %606 = dma.done.wait [#allocation9], 528  }
  0x7e   :  { %607 = vsyncadd [#allocation9], 4294966768 }
  0x7f   :  { %608 = dma.done.wait [#allocation12], 32  }
  0x80   :  { %609 = vsyncadd [#allocation12], 4294967264  ;;  %v621_v0 = vmov 0.0   ;;  %vm622_vm0 = vmmov 0   ;;  %v414_v1 = vld [vmem:[#allocation5] sm:$0xff]   ;;  %v415_v2 = vld [vmem:[#allocation5 + $0x8] sm:$0xff]  }
  0x81   :  { %382 = vmatprep.subr.bf16.mxu0 %v621_v0  ;;  %386 = vmatprep.mubr.msk.bf16.mxu0 %vm622_vm0, %v621_v0  ;;  %v115_v3 = vld [vmem:[#allocation2] sm:$0xff]   ;;  %vm147_vm1 = vcmask 261120   ;;  %v419_v6 = vld [vmem:[#allocation8 + $0x10] sm:$0xff]   ;;  %v420_v7 = vld [vmem:[#allocation8 + $0x18] sm:$0xff]   ;;  %vm234_vm2 = vcmask 523264   ;;  %vm334_vm3 = vcmask 257024  }
  0x82   :  { %390 = vmatprep.subr.bf16.mxu1 %v621_v0  ;;  %398 = vmatprep.mubr.msk.bf16.mxu1 %vm622_vm0, %v621_v0  ;;  %v417_v4 = vld [vmem:[#allocation8] sm:$0xff]   ;;  %v418_v5 = vld [vmem:[#allocation8 + $0x8] sm:$0xff]   ;;  %v357_v8 = vld [vmem:[#allocation7] ss:$0 sm:$0xff]  ;;  %v117_v19 = vunpack.c.l.bf16 %v115_v3  ;;  %v118_v23 = vunpack.c.h.bf16 %v115_v3  ;;  %s623_s6 = smov [#allocation14]  }
  0x83   :  { %383 = vmatpush3.bf16.msra.mxu0 %v414_v1  ;;  %391 = vmatpush3.bf16.msra.mxu1 %v417_v4  ;;  %v362_v18 = vld [vmem:[#allocation10] ss:$0 sm:$0xff]  ;;  %v368_v48 = vld [vmem:[#allocation11] ss:$0 sm:$0xff]  ;;  %v369_v50 = vld [vmem:[#allocation13] ss:$0 sm:$0xff] }
  0x84   :  { %384 = vmatprep.subr.bf16.mxu0 %v621_v0  ;;  %392 = vmatprep.subr.bf16.mxu1 %v621_v0  ;;  %s342_s30 = sshll.u32 %s623_s6, 4  ;;  %s343_s30 = int_to_ptr.vmem [resolvable:$true] %s342_s30 }
  0x85   :  { %s580_s17 = scalar_lea.vmem %s343_s30, 128  ;;  %p585_p1 = scmp.lt.s32.totalorder %s343_s30, %s343_s30 }
  0x86   :  { %p581_p0 = scmp.ne.s32.totalorder %s343_s30, %s580_s17  ;;  %p586_p2 = scmp.lt.s32.totalorder %s580_s17, %s580_s17 }
  0x87   :  { %385 = vmatpush3.bf16.msra.mxu0 %v415_v2  ;;  %393 = vmatpush3.bf16.msra.mxu1 %v418_v5 }
  0x88   :  { %394 = vmatprep.subr.bf16.mxu1 %v621_v0  ;;  %p587_p3 = por %p586_p2, %p585_p1 }
  0x8a   :  { %387 = vmatmul.mubr.msk.bf16.vlgmr.msra.gmra.mrb[0].mxu0 %vm147_vm1, %v115_v3  ;;  %p588_p4 = pnand %p587_p3, %p581_p0 }
  0x8b   :  { %395 = vmatpush3.bf16.msra.mxu1 %v419_v6 }
  0x8c   :  { %396 = vmatprep.subr.bf16.mxu1 %v621_v0 }
  0x8f   :  { %397 = vmatpush3.bf16.msra.mxu1 %v420_v7 }
 0x15d   :  { %v185_v9 = vpop.f32.mrb[0].mxu0 }
 0x15e   :  { %v186_v10 = vadd.f32 %v357_v8, %v185_v9  ;;  %v388_v11 = vpop.f32.mrb[1].mxu0 }
 0x15f   :  { %v188_v12 = vpop.f32.mrb[2].mxu0 }
 0x160   :  { %v189_v13 = vadd.f32 %v357_v8, %v188_v12  ;;  %v389_v14 = vpop.f32.mrb[3].mxu0  ;;  %v192_v15 = vmax.f32 %v186_v10, 0.0 }
 0x162   :  { %v193_v16 = vmax.f32 %v189_v13, 0.0 }
 0x164   :  { %v194_v17 = vpack.c.bf16 %v193_v16, %v192_v15 }
 0x166   :  { %399 = vmatmul.mubr.msk.bf16.vlgmr.msra.gmra.mrb[0].mxu1 %vm234_vm2, %v194_v17 }
 0x239   :  { %v272_v20 = vpop.f32.mrb[0].mxu1 }
 0x23a   :  { %v273_v21 = vadd.f32 %v362_v18, %v272_v20  ;;  %v400_v22 = vpop.f32.mrb[1].mxu1 }
 0x23b   :  { %v275_v24 = vpop.f32.mrb[2].mxu1 }
 0x23c   :  { %v276_v25 = vadd.f32 %v362_v18, %v275_v24  ;;  %v401_v26 = vpop.f32.mrb[3].mxu1  ;;  %v279_v27 = vadd.f32 %v273_v21, %v117_v19 }
 0x23e   :  { %v283_v28 = vsel %vm147_vm1, %v279_v27, 0.0  ;;  %v280_v29 = vadd.f32 %v276_v25, %v118_v23 }
 0x23f   :  { %284 = vadd.xlane.f32.xlu0 %v283_v28 }
 0x240   :  { %v286_v30 = vsel %vm147_vm1, %v280_v29, 0.0 }
 0x243   :  { %287 = vadd.xlane.f32.xlu0 %v286_v30 }
 0x2cc   :  { %v285_v31 = vpop.xlane.xlu0 %284 }
 0x2cd   :  { %v290_v32 = vmul.f32 0.03125, %v285_v31 }
 0x2cf   :  { %v292_v33 = vsub.f32 %v279_v27, %v290_v32 }
 0x2d0   :  { %v288_v34 = vpop.xlane.xlu0 %287 }
 0x2d1   :  { %v291_v35 = vmul.f32 0.03125, %v288_v34  ;;  %v294_v36 = vmul.f32 %v292_v33, %v292_v33 }
 0x2d3   :  { %v293_v37 = vsub.f32 %v280_v29, %v291_v35  ;;  %v296_v38 = vsel %vm147_vm1, %v294_v36, 0.0 }
 0x2d4   :  { %297 = vadd.xlane.f32.xlu1 %v296_v38 }
 0x2d5   :  { %v295_v39 = vmul.f32 %v293_v37, %v293_v37 }
 0x2d7   :  { %v299_v40 = vsel %vm147_vm1, %v295_v39, 0.0 }
 0x2d8   :  { %300 = vadd.xlane.f32.xlu1 %v299_v40 }
 0x361   :  { %v298_v41 = vpop.xlane.xlu1 %297 }
 0x362   :  { %v302_v42 = vmul.f32 0.03125, %v298_v41 }
 0x364   :  { %v304_v43 = vadd.f32 1e-05, %v302_v42 }
 0x365   :  { %v301_v44 = vpop.xlane.xlu1 %300 }
 0x366   :  { %422 = vrsqrt.f32 %v304_v43  ;;  %v303_v45 = vmul.f32 0.03125, %v301_v44 }
 0x368   :  { %v305_v46 = vadd.f32 1e-05, %v303_v45 }
 0x36a   :  { %424 = vrsqrt.f32 %v305_v46 }
 0x370   :  { %v423_v47 = vpop.eup %422 }
 0x371   :  { %v308_v49 = vmul.f32 %v423_v47, %v292_v33 }
 0x373   :  { %v316_v51 = vmul.f32 %v368_v48, %v308_v49 }
 0x374   :  { %v425_v52 = vpop.eup %424 }
 0x375   :  { %v309_v53 = vmul.f32 %v425_v52, %v293_v37  ;;  %v324_v54 = vadd.f32 %v369_v50, %v316_v51 }
 0x377   :  { %v317_v55 = vmul.f32 %v368_v48, %v309_v53  ;;  %v372_v56 = vpack.c.bf16 %v324_v54, %v324_v54 }
 0x379   :  { %v325_v57 = vadd.f32 %v369_v50, %v317_v55  ;;  %335 = vst.msk [vmem:[#allocation14] sm:$0xf] %vm334_vm3, %v372_v56 }
 0x37b   :  { %v373_v58 = vpack.c.bf16 %v325_v57, %v325_v57 }
 0x37d   :  { %336 = vst.msk [vmem:[#allocation14 + $0x4] sm:$0xf] %vm334_vm3, %v373_v58 }
 0x37e   :  { %591 = shalt.err (!%p588_p4)
}
 0x37f   :  { %s592_s20 = scalar_lea.hbm %s798_s7, 128 }
 0x380   :  { %p593_p5 = scmp.ne.s32.totalorder %s798_s7, %s592_s20  ;;  %p596_p6 = scmp.lt.u32.totalorder %s592_s20, %s798_s7 }
 0x382   :  { %p598_p7 = pnand %p596_p6, %p593_p5 }
 0x384   :  { %601 = shalt.err (!%p598_p7)
}
 0x385   :  { %348 = dma.vmem_to_hbm [thread:$0]  %s343_s30, 128, %s798_s7, [#allocation4], %s614_s13, %s614_s13, %s615_s14  }
 0x386   :  { %610 = dma.done.wait [#allocation4], 128  }
 0x387   :  { %611 = vsyncadd [#allocation4], 4294967168 }
 0x388   :  { %352 = vsyncpa [#allocation3], 1 }
 0x389   :  { %353 = vsyncpa [#allocation6], 1 }
 0x38a   :  { %354 = vsyncpa [#allocation9], 1 }
 0x38b   :  { %355 = vsyncpa [#allocation12], 1 }
 0x38c   :  { %356 = vsyncpa [#allocation4], 1 }

// kernel: mfs_forward.27
= control target key start
LH: loop header
LB: loop body
LE: loop exit
PB: predicated region body
PF: predicated region fallthrough
CT: control target
= control target key end

     0   :  { %s3264_s0 = inlined_call_operand.hbm [shape: s32[2], index: 0, kind: input, shape index: {}]   ;;  %s3265_s1 = inlined_call_operand.hbm [shape: bf16[2,8,32], index: 1, kind: input, shape index: {}]   ;;  %s3266_s2 = inlined_call_operand.hbm [shape: bf16[32,96], index: 2, kind: input, shape index: {}]   ;;  %s3267_s3 = inlined_call_operand.hbm [shape: f32[1,96], index: 3, kind: input, shape index: {}]   ;;  %s3268_s4 = inlined_call_operand.hbm [shape: bf16[32,32], index: 4, kind: input, shape index: {}]   ;;  %s3269_s5 = inlined_call_operand.hbm [shape: f32[1,32], index: 5, kind: input, shape index: {}]   ;;  %s3270_s6 = inlined_call_operand.hbm [shape: f32[1,32], index: 6, kind: input, shape index: {}]   ;;  %s3271_s7 = inlined_call_operand.hbm [shape: f32[1,32], index: 7, kind: input, shape index: {}]   ;;  %s3272_s8 = inlined_call_operand.hbm [shape: bf16[2,8,32], index: 8, kind: output, shape index: {}]  }
   0x1   :  { %s2369_s29 = scalar_lea.hbm %s3264_s0, 16 }
   0x2   :  { %p2370_p0 = scmp.ne.s32.totalorder %s3264_s0, %s2369_s29  ;;  %p2373_p1 = scmp.lt.u32.totalorder %s2369_s29, %s3264_s0 }
   0x4   :  { %p2375_p2 = pnand %p2373_p1, %p2370_p0 }
   0x6   :  { %2378 = shalt.err (!%p2375_p2)  }
   0x7   :  { %s2659_s12 = smov [#allocation3]  }
   0x8   :  { %14 = dma.hbm_to_smem %s3264_s0, 16, %s2659_s12, [#allocation2] }
   0x9   :  { %2621 = dma.done.wait [#allocation2], 16 }
   0xa   :  { %2622 = vsyncadd [#allocation2], 4294967280 }
   0xb   :  { %16 = sfence }
   0xc   :  { %17 = vsyncpa [#allocation5], 0 }
   0xd   :  { %19 = vsyncpa [#allocation5 + $0x1], 0 }
   0xe   :  { %20 = vsyncpa [#allocation8], 0 }
   0xf   :  { %21 = vsyncpa [#allocation11], 0 }
  0x10   :  { %22 = vsyncpa [#allocation14], 0 }
  0x11   :  { %23 = vsyncpa [#allocation6], 0 }
  0x12   :  { %25 = vsyncpa [#allocation6 + $0x1], 0  ;;  %s2752_s15 = smov 0   ;;  %s2754_s16 = smov 0  }
  0x13   :  { %s2756_s17 = smov 0   ;;  %s2758_s18 = smov 0  }
  0x14 LB: > { %s2660_s0 = smov [#allocation7]   ;;  %s2773_s20 = sadd.s32 4294967295, %s2657_s18   ;;  %s2657_s18 = sphi %s2758_s18, %s3298_s18   ;;  %s2653_s17 = sphi %s2756_s17, %s3297_s17   ;;  %s2649_s16 = sphi %s2754_s16, %s3296_s16   ;;  %s2645_s15 = sphi %s2752_s15, %s3295_s15  }
  0x15   : > { %s226_s19 = sshll.u32 %s2660_s0, 4  ;;  %p1933_p3 = scmp.ge.s32.totalorder %s2657_s18, 1  ;;  %s2778_s19 = int_to_ptr.vmem [resolvable:$true] %s226_s19 }
  0x16   : > { %p3273_p4 = scmp.eq.s32.totalorder %s2773_s20, 0  ;;  %p214_p5 = scmp.lt.s32.totalorder %s2657_s18, 3 }
  0x17   : > { %s2661_s22 = smov [#allocation10]   ;;  %s2662_s25 = smov [#allocation13]  }
  0x18   : > { %p2780_p6 = pnand %p1933_p3, %p214_p5  ;;  %s250_s23 = sshll.u32 %s2661_s22, 4  ;;  %s2793_s23 = int_to_ptr.vmem [resolvable:$true] %s250_s23 }
  0x19   : > { %s275_s26 = sshll.u32 %s2662_s25, 4  ;;  %s2379_s29 = scalar_lea.hbm %s3266_s2, 256  ;;  %s2795_s26 = int_to_ptr.vmem [resolvable:$true] %s275_s26 }
  0x1a   : > { %s3276_s21 = scalar_select %p2780_p6, 1, 0 }
  0x1b   : > { %p2222_p8 = pneg %p2780_p6  ;;  %p2380_p10 = scmp.ne.s32.totalorder %s3266_s2, %s2379_s29 }
  0x1c   : > { %p2386_p0 = scmp.lt.u32.totalorder %s2379_s29, %s3266_s2 }
  0x1d   : > { %p2789_p9 = pnand %p2222_p8, %p3273_p4 }
  0x1f   : > { %p2805_p11 = pneg %p2789_p9 }
  0x21   : > { %p2382_p12 = pnand %p2805_p11, %p2380_p10 }
  0x23   : > { %p2383_p13 = pneg %p2382_p12 }
  0x25   : > { %p2388_p1 = pnand %p2386_p0, %p2383_p13 }
  0x27   : > { %2391 = shalt.err (!%p2388_p1)
}
  0x28   : > { %s2392_s13 = scalar_lea.vmem %s2778_s19, 256  ;;  %p2400_p8 = scmp.lt.s32.totalorder %s2778_s19, %s2778_s19 }
  0x29   : > { %p2393_p2 = scmp.ne.s32.totalorder %s2778_s19, %s2392_s13  ;;  %p2401_p7 = scmp.lt.s32.totalorder %s2392_s13, %s2392_s13 }
  0x2b   : > { %p2395_p3 = pnand %p2393_p2, %p2805_p11  ;;  %p2402_p10 = por %p2401_p7, %p2400_p8 }
  0x2d   : > { %p2396_p5 = pneg %p2395_p3 }
  0x2f   : > { %p2403_p12 = pnand %p2402_p10, %p2396_p5 }
  0x31   : > { %2406 = shalt.err (!%p2403_p12)
}
  0x32   : > { %s2663_s14 = smov 64   ;;  %s2664_s0 = smov 4  }
  0x33   : > { %2225 = dma.hbm_to_vmem [thread:$0]  (!%p2789_p9), %s3266_s2, 256, %s2778_s19, [#allocation8], %s2663_s14, %s2663_s14, %s2664_s0  }
  0x34   : > { %s2407_s29 = scalar_lea.hbm %s3268_s4, 256 }
  0x35   : > { %p2408_p7 = scmp.ne.s32.totalorder %s3268_s4, %s2407_s29  ;;  %p2414_p1 = scmp.lt.u32.totalorder %s2407_s29, %s3268_s4 }
  0x37   : > { %p2410_p13 = pnand %p2408_p7, %p2805_p11 }
  0x39   : > { %p2411_p0 = pneg %p2410_p13 }
  0x3b   : > { %p2416_p2 = pnand %p2414_p1, %p2411_p0 }
  0x3d   : > { %2419 = shalt.err (!%p2416_p2)
}
  0x3e   : > { %s2420_s19 = scalar_lea.vmem %s2793_s23, 256  ;;  %p2428_p10 = scmp.lt.s32.totalorder %s2793_s23, %s2793_s23 }
  0x3f   : > { %p2421_p3 = scmp.ne.s32.totalorder %s2793_s23, %s2420_s19  ;;  %p2429_p12 = scmp.lt.s32.totalorder %s2420_s19, %s2420_s19 }
  0x41   : > { %p2423_p5 = pnand %p2421_p3, %p2805_p11  ;;  %p2430_p7 = por %p2429_p12, %p2428_p10 }
  0x43   : > { %p2424_p8 = pneg %p2423_p5 }
  0x45   : > { %p2431_p13 = pnand %p2430_p7, %p2424_p8 }
  0x47   : > { %2434 = shalt.err (!%p2431_p13)
}
  0x48   : > { %2231 = dma.hbm_to_vmem [thread:$0]  (!%p2789_p9), %s3268_s4, 256, %s2793_s23, [#allocation11], %s2663_s14, %s2663_s14, %s2664_s0  }
  0x49   : > { %s2435_s28 = scalar_lea.hbm %s3270_s6, 16 }
  0x4a   : > { %p2436_p0 = scmp.ne.s32.totalorder %s3270_s6, %s2435_s28  ;;  %p2442_p3 = scmp.lt.u32.totalorder %s2435_s28, %s3270_s6 }
  0x4c   : > { %p2438_p1 = pnand %p2436_p0, %p2805_p11 }
  0x4e   : > { %p2439_p2 = pneg %p2438_p1 }
  0x50   : > { %p2444_p5 = pnand %p2442_p3, %p2439_p2 }
  0x52   : > { %2447 = shalt.err (!%p2444_p5)
}
  0x53   : > { %s2448_s23 = scalar_lea.vmem %s2795_s26, 16  ;;  %s2455_s14 = scalar_lea.vmem %s2795_s26, 32 }
  0x54   : > { %p2449_p8 = scmp.ne.s32.totalorder %s2795_s26, %s2448_s23  ;;  %p2456_p7 = scmp.lt.s32.totalorder %s2795_s26, %s2795_s26 }
  0x55   : > { %p2457_p13 = scmp.lt.s32.totalorder %s2455_s14, %s2448_s23 }
  0x56   : > { %p2451_p10 = pnand %p2449_p8, %p2805_p11 }
  0x57   : > { %p2458_p0 = por %p2457_p13, %p2456_p7 }
  0x58   : > { %p2452_p12 = pneg %p2451_p10 }
  0x5a   : > { %p2459_p1 = pnand %p2458_p0, %p2452_p12 }
  0x5c   : > { %2462 = shalt.err (!%p2459_p1)
}
  0x5d   : > { %2237 = dma.hbm_to_vmem [thread:$0]  (!%p2789_p9), %s3270_s6, 16, %s2795_s26, [#allocation14]  }
  0x5e   : > { %s2665_s19 = smov [#allocation9]   ;;  %s2666_s22 = smov [#allocation12]  }
  0x5f   : > { %s240_s13 = sshll.u32 %s2665_s19, 4  ;;  %s264_s25 = sshll.u32 %s2666_s22, 4  ;;  %s241_s13 = int_to_ptr.vmem [resolvable:$true] %s240_s13  ;;  %s265_s25 = int_to_ptr.vmem [resolvable:$true] %s264_s25 }
  0x60   : > { %s2463_s29 = scalar_lea.hbm %s3267_s3, 16 }
  0x61   : > { %p2464_p2 = scmp.ne.s32.totalorder %s3267_s3, %s2463_s29  ;;  %p2470_p8 = scmp.lt.u32.totalorder %s2463_s29, %s3267_s3 }
  0x63   : > { %p2466_p3 = pnand %p2464_p2, %p2805_p11 }
  0x65   : > { %p2467_p5 = pneg %p2466_p3 }
  0x67   : > { %p2472_p10 = pnand %p2470_p8, %p2467_p5 }
  0x69   : > { %2475 = shalt.err (!%p2472_p10)
}
  0x6a   : > { %s2476_s26 = scalar_lea.vmem %s241_s13, 16  ;;  %s2483_s14 = scalar_lea.vmem %s241_s13, 32 }
  0x6b   : > { %p2477_p12 = scmp.ne.s32.totalorder %s241_s13, %s2476_s26  ;;  %p2484_p0 = scmp.lt.s32.totalorder %s241_s13, %s241_s13 }
  0x6c   : > { %p2485_p1 = scmp.lt.s32.totalorder %s2483_s14, %s2476_s26 }
  0x6d   : > { %p2479_p7 = pnand %p2477_p12, %p2805_p11 }
  0x6e   : > { %p2486_p4 = por %p2485_p1, %p2484_p0 }
  0x6f   : > { %p2480_p13 = pneg %p2479_p7 }
  0x71   : > { %p2487_p6 = pnand %p2486_p4, %p2480_p13 }
  0x73   : > { %2490 = shalt.err (!%p2487_p6)
}
  0x74   : > { %2228 = dma.hbm_to_vmem [thread:$0]  (!%p2789_p9), %s3267_s3, 16, %s241_s13, [#allocation8]  }
  0x75   : > { %s2491_s27 = scalar_lea.hbm %s3269_s5, 16 }
  0x76   : > { %p2492_p2 = scmp.ne.s32.totalorder %s3269_s5, %s2491_s27  ;;  %p2498_p6 = scmp.lt.u32.totalorder %s2491_s27, %s3269_s5 }
  0x78   : > { %p2494_p3 = pnand %p2492_p2, %p2805_p11 }
  0x7a   : > { %p2495_p4 = pneg %p2494_p3 }
  0x7c   : > { %p2500_p5 = pnand %p2498_p6, %p2495_p4 }
  0x7e   : > { %2503 = shalt.err (!%p2500_p5)
}
  0x7f   : > { %s2504_s11 = scalar_lea.vmem %s265_s25, 16  ;;  %s2511_s13 = scalar_lea.vmem %s265_s25, 32 }
  0x80   : > { %p2505_p8 = scmp.ne.s32.totalorder %s265_s25, %s2504_s11  ;;  %p2512_p7 = scmp.lt.s32.totalorder %s265_s25, %s265_s25 }
  0x81   : > { %p2513_p13 = scmp.lt.s32.totalorder %s2511_s13, %s2504_s11 }
  0x82   : > { %p2507_p10 = pnand %p2505_p8, %p2805_p11 }
  0x83   : > { %p2514_p0 = por %p2513_p13, %p2512_p7 }
  0x84   : > { %p2508_p12 = pneg %p2507_p10 }
  0x86   : > { %p2515_p1 = pnand %p2514_p0, %p2508_p12 }
  0x88   : > { %2518 = shalt.err (!%p2515_p1)
}
  0x89   : > { %2234 = dma.hbm_to_vmem [thread:$0]  (!%p2789_p9), %s3269_s5, 16, %s265_s25, [#allocation11]  }
  0x8a   : > { %s2667_s14 = smov [#allocation15]   ;;  %s2519_s22 = scalar_lea.hbm %s3271_s7, 16 }
  0x8b   : > { %s286_s0 = sshll.u32 %s2667_s14, 4  ;;  %p2520_p2 = scmp.ne.s32.totalorder %s3271_s7, %s2519_s22  ;;  %s287_s0 = int_to_ptr.vmem [resolvable:$true] %s286_s0 }
  0x8c   : > { %p2526_p6 = scmp.lt.u32.totalorder %s2519_s22, %s3271_s7 }
  0x8d   : > { %p2522_p3 = pnand %p2520_p2, %p2805_p11 }
  0x8f   : > { %p2523_p4 = pneg %p2522_p3 }
  0x91   : > { %p2528_p5 = pnand %p2526_p6, %p2523_p4 }
  0x93   : > { %2531 = shalt.err (!%p2528_p5)
}
  0x94   : > { %s2532_s25 = scalar_lea.vmem %s287_s0, 16  ;;  %s2539_s9 = scalar_lea.vmem %s287_s0, 32 }
  0x95   : > { %p2533_p8 = scmp.ne.s32.totalorder %s287_s0, %s2532_s25  ;;  %p2540_p7 = scmp.lt.s32.totalorder %s287_s0, %s287_s0 }
  0x96   : > { %p2541_p13 = scmp.lt.s32.totalorder %s2539_s9, %s2532_s25 }
  0x97   : > { %p2535_p10 = pnand %p2533_p8, %p2805_p11 }
  0x98   : > { %p2542_p0 = por %p2541_p13, %p2540_p7 }
  0x99   : > { %p2536_p12 = pneg %p2535_p10 }
  0x9b   : > { %p2543_p1 = pnand %p2542_p0, %p2536_p12 }
  0x9d   : > { %2546 = shalt.err (!%p2543_p1)
}
  0x9e   : > { %2240 = dma.hbm_to_vmem [thread:$0]  (!%p2789_p9), %s3271_s7, 16, %s287_s0, [#allocation14]  }
  0x9f   : > { %s1932_s10 = sadd.s32 4294967294, %s2657_s18   ;;  %s2929_s24 = sadd.s32 1, %s2657_s18  }
  0xa0   : > { %s35_s23 = ssub.s32 %s2657_s18, %s2929_s24  ;;  %s38_s26 = sadd.s32 1, %s2653_s17 }
  0xa1   : > { %p36_p11 = scmp.eq.s32.totalorder %s35_s23, 0  ;;  %p45_p2 = scmp.ne.s32.totalorder %s2653_s17, %s2649_s16 }
  0xa2   : > { %p46_p3 = scmp.eq.s32.totalorder %s2657_s18, 0  ;;  %p51_p4 = scmp.ne.s32.totalorder %s2649_s16, %s2645_s15 }
  0xa3   : > { %s2940_s14 = scalar_select %p36_p11, %s2653_s17, %s38_s26  }
  0xa4   : > { %p2942_p6 = por %p46_p3, %p45_p2  ;;  %p3280_p5 = scmp.eq.s32.totalorder %s2773_s20, 0 }
  0xa5   : > { %p201_p8 = scmp.eq.s32.totalorder %s2773_s20, 1  ;;  %p207_p10 = scmp.eq.s32.totalorder %s1932_s10, 1 }
  0xa6   : > { %p2948_p9 = por %p3280_p5, %p51_p4  ;;  %p2255_p12 = scmp.lt.s32.totalorder %s2657_s18, 2 }
  0xa7   : > { %s297_s19 = sand.u32 1, %s2653_s17   ;;  %p2955_p7 = por %p201_p8, %p45_p2 }
  0xa8   : > { %p2959_p13 = por %p207_p10, %p51_p4  ;;  %s1941_s28 = sshll.u32 %s297_s19, 2 }
  0xa9   : > { %s3282_s22 = scalar_select %p2955_p7, 1, 0 }
  0xaa   : > { %s3283_s27 = scalar_select %p2959_p13, 1, 0 }
  0xab   : > { %s1942_s29 = sshll.u32 %s2657_s18, 6  ;;  %s301_s11 = scalar_lea.vmem [#allocation4], %s1941_s28 }
  0xac   : > { %s2967_s9 = scalar_lea.hbm %s3265_s1, %s1942_s29  ;;  %s308_s13 = sshll.u32 %s301_s11, 4  ;;  %s2969_s13 = int_to_ptr.vmem [resolvable:$true] %s308_s13 }
  0xad   : > { %p2973_p0 = pnand %p2255_p12, %p2942_p6  ;;  %s298_s23 = scalar_lea.sflag [#allocation5], %s297_s19 }
  0xae   : > { %s2547_s26 = scalar_lea.hbm %s2967_s9, 64  ;;  %s2552_s30 = scalar_lea.hbm %s3265_s1, 128 }
  0xaf   : > { %p2548_p1 = scmp.ne.s32.totalorder %s2967_s9, %s2547_s26  ;;  %p2549_p11 = pneg %p2973_p0 }
  0xb0   : > { %p2553_p4 = scmp.lt.u32.totalorder %s2967_s9, %s3265_s1  ;;  %p2554_p6 = scmp.lt.u32.totalorder %s2552_s30, %s2547_s26 }
  0xb1   : > { %p2550_p2 = pnand %p2549_p11, %p2548_p1  ;;  %p2556_p8 = scmp.lt.u32.totalorder %s2547_s26, %s2967_s9 }
  0xb2   : > { %p2555_p5 = por %p2554_p6, %p2553_p4 }
  0xb3   : > { %p2551_p3 = pneg %p2550_p2 }
  0xb4   : > { %p2557_p10 = por %p2556_p8, %p2555_p5 }
  0xb6   : > { %p2558_p12 = pnand %p2557_p10, %p2551_p3 }
  0xb8   : > { %2561 = shalt.err (!%p2558_p12)
}
  0xb9   : > { %s2562_s19 = scalar_lea.vmem %s2969_s13, 64  ;;  %s2668_s11 = smov [#allocation4]  }
  0xba   : > { %p2563_p1 = scmp.ne.s32.totalorder %s2969_s13, %s2562_s19  ;;  %s2567_s28 = sshll.u32 %s2668_s11, 4  ;;  %s2568_s28 = int_to_ptr.vmem [resolvable:$false] %s2567_s28 }
  0xbb   : > { %s2569_s29 = scalar_lea.vmem %s2568_s28, 128  ;;  %p2570_p7 = scmp.lt.s32.totalorder %s2969_s13, %s2568_s28 }
  0xbc   : > { %p2565_p2 = pnand %p2563_p1, %p2549_p11  ;;  %p2571_p4 = scmp.lt.s32.totalorder %s2569_s29, %s2562_s19 }
  0xbe   : > { %p2566_p13 = pneg %p2565_p2  ;;  %p2572_p6 = por %p2571_p4, %p2570_p7 }
  0xc0   : > { %p2573_p5 = pnand %p2572_p6, %p2566_p13 }
  0xc2   : > { %2576 = shalt.err (!%p2573_p5)
}
  0xc3   : > { %2244 = dma.hbm_to_vmem [thread:$0]  (!%p2973_p0), %s2967_s9, 64, %s2969_s13, %s298_s23  }
  0xc4   : > { %p3285_p3 = scmp.ne.s32.totalorder %s3276_s21, 0 }
  0xc5   : > { %s3005_s26 = sand.u32 (!%p3285_p3), 1, %s2649_s16  }
  0xc6   : > { %317 = sbr.rel (%p3285_p3) target bundleno = 4373 (0x1115), region = 48  ;;  %s1944_s30 = sshll.u32 (!%p3285_p3), %s3005_s26, 2 }
  0xc7   : > { %s320_s12 = scalar_lea.sflag (!%p3285_p3), [#allocation5], %s3005_s26  ;;  %s323_s25 = scalar_lea.vmem (!%p3285_p3), [#allocation4], %s1944_s30 }
  0xcd   : > { %2624 = dma.done.wait (%p2948_p9), %s320_s12, 64  }
  0xce   : > { %2626 = vsyncadd (%p2948_p9), %s320_s12, 4294967232  ;;  %p3286_p7 = scmp.eq.s32.totalorder %s2773_s20, 0 }
  0xd0   : > { %2628 = dma.done.wait (%p3286_p7), [#allocation8], 272   ;;  %p3287_p13 = pmov %p3286_p7 }
  0xd1   : > { %p3288_p0 = pmov %p3286_p7 }
  0xd2   : > { %2630 = vsyncadd (%p3287_p13), [#allocation8], 4294967024 }
  0xd3   : > { %2632 = dma.done.wait (%p3288_p0), [#allocation11], 272   ;;  %p3289_p11 = pmov %p3288_p0 }
  0xd4   : > { %p3290_p8 = pmov %p3288_p0 }
  0xd5   : > { %2634 = vsyncadd (%p3289_p11), [#allocation11], 4294967024 }
  0xd6   : > { %2636 = dma.done.wait (%p3290_p8), [#allocation14], 32   ;;  %p3291_p10 = pmov %p3288_p0 }
  0xd7   : > { %v2669_v0 = vmov 0.0   ;;  %vm2670_vm0 = vmmov 0   ;;  %v2329_v1 = vld [vmem:[#allocation7] sm:$0xff]   ;;  %v2330_v2 = vld [vmem:[#allocation7 + $0x8] sm:$0xff]   ;;  %v3034_v3 = vld [vmem:[%s323_s25] sm:$0xf]  ;;  %v448_v17 = vlaneseq }
  0xd8   : > { %2638 = vsyncadd (%p3291_p10), [#allocation14], 4294967264  ;;  %2042 = vmatprep.subr.bf16.mxu0 %v2669_v0  ;;  %2046 = vmatprep.mubr.msk.bf16.mxu0 %vm2670_vm0, %v2669_v0  ;;  %vm404_vm1 = vcmask 261120   ;;  %v1952_v4 = vld [vmem:[#allocation9] ss:$0 sm:$0xff]  ;;  %s2671_s21 = smov 64  }
  0xd9   : > { %2050 = vmatprep.subr.bf16.mxu1 %v2669_v0  ;;  %2052 = vmatprep.mubr.msk.bf16.mxu1 %vm2670_vm0, %v2669_v0  ;;  %s2672_s0 = smov 96   ;;  %s2673_s9 = smov 92   ;;  %vm531_vm2 = vcmask 1043456   ;;  %vm468_vm3 = vcmask 31744   ;;  %v449_v18 = vand.u32 127, %v448_v17  ;;  %vm515_vm5 = vcmask 64512  }
  0xda   : > { %2043 = vmatpush3.bf16.msra.mxu0 %v2329_v1  ;;  %s2674_s13 = smov 124   ;;  %s450_s10 = sld [smem:[#allocation3 + %s2773_s20]]  ;;  %v578_v36 = vld [vmem:[#allocation10] sm:$0x3]  ;;  %vm582_vm6 = vcmask 1041408   ;;  %vm1789_vm7 = vcmask 257024  }
  0xdb   : > { %2044 = vmatprep.subr.bf16.mxu0 %v2669_v0  ;;  %s2675_s23 = smov 88   ;;  %v584_v37 = vsel %vm582_vm6, %v578_v36, 0  ;;  %s2676_s19 = smov 60   ;;  %v1956_v36 = vld [vmem:[#allocation12] ss:$0 sm:$0xff] }
  0xdc   : > { %s2677_s11 = smov 120   ;;  %s2678_s28 = smov 56  }
  0xdd   : > { %s2679_s29 = smov 116   ;;  %s2680_s12 = smov 84  }
  0xde   : > { %2045 = vmatpush3.bf16.msra.mxu0 %v2330_v2  ;;  %s2681_s25 = smov 80   ;;  %p3292_p12 = scmp.ne.s32.totalorder %s3282_s22, 0 }
  0xdf   : > { %2056 = vmatprep.subr.bf16.mxu0 %v2669_v0 }
  0xe0   : > { %v451_v19 = vstv %s450_s10  ;;  %s2686_s10 = smov 76  }
  0xe1   : > { %2047 = vmatmul.mubr.msk.bf16.vlgmr.msra.gmra.mrb[0].mxu0 %vm404_vm1, %v3034_v3  ;;  %vm452_vm4 = vcmp.ge.s32.totalorder %v449_v18, %v451_v19 }
  0xe2   : > { %2058 = vmatprep.mubr.msk.bf16.mxu0 %vm2670_vm0, %v2669_v0  ;;  %v3059_v20 = vsel %vm452_vm4, -1e+09, %v2669_v0 }
 0x1b4   : > { %v442_v5 = vpop.f32.mrb[0].mxu0 }
 0x1b5   : > { %v443_v6 = vadd.f32 %v1952_v4, %v442_v5  ;;  %v2048_v7 = vpop.f32.mrb[1].mxu0  ;;  %v2331_v5 = vld [vmem:[#allocation10] ss:$0 sps:$4 sm:$0xcc]  }
 0x1b6   : > { %v445_v8 = vpop.f32.mrb[2].mxu0 }
 0x1b7   : > { %v3041_v9 = vpack.c.bf16 %v443_v6, %v443_v6  ;;  %v2049_v10 = vpop.f32.mrb[3].mxu0  ;;  %v462_v11 = vmul.f32 0.5, %v443_v6  ;;  %v743_v6 = vrot.slane %v2331_v5, 2 }
 0x1b9   : > { %526 = vrot.lane.b32.xlu1 %v3041_v9, %s2671_s21  ;;  %466 = vrot.lane.b32.xlu0 %v3041_v9, %s2672_s0  ;;  %v3046_v12 = vpack.c.bf16 %v462_v11, %v462_v11  ;;  %v748_v7 = vsel %vm582_vm6, %v743_v6, 0  ;;  %s2682_s21 = smov 112   ;;  %s2683_s0 = smov 52  }
 0x1bd   : > { %630 = vrot.lane.b32.xlu1 %v3041_v9, %s2673_s9  ;;  %s2684_s9 = smov 48  }
 0x1c1   : > { %628 = vrot.lane.b32.xlu1 %v3046_v12, %s2674_s13  ;;  %s2685_s13 = smov 108  }
 0x22b   : > { %v527_v13 = vpop.permute.xlu1 %526  ;;  %v467_v14 = vpop.permute.xlu0 %466 }
 0x22c   : > { %v533_v15 = vsel %vm531_vm2, %v527_v13, 0  ;;  %v473_v16 = vsel %vm468_vm3, %v467_v14, 0 }
 0x22d   : > { %2051 = vmatpush3.bf16.xpose.msra.mxu1 %v473_v16  ;;  %2057 = vmatpush3.bf16.msra.mxu0 %v533_v15 }
 0x22e   : > { %2068 = vmatprep.subr.bf16.mxu0 %v2669_v0  ;;  %2062 = vmatprep.subr.bf16.mxu1 %v2669_v0 }
 0x22f   : > { %v631_v31 = vpop.permute.xlu1 %630 }
 0x230   : > { %v636_v34 = vsel %vm468_vm3, %v631_v31, 0 }
 0x233   : > { %v629_v35 = vpop.permute.xlu1 %628 }
 0x234   : > { %2053 = vmatmul.mubr.msk.bf16.vlgmr.msra.gmra.mrb[0].mxu1 %vm468_vm3, %v3046_v12 }
 0x235   : > { %2064 = vmatprep.mubr.msk.bf16.mxu1 %vm2670_vm0, %v2669_v0  ;;  %2063 = vmatpush3.bf16.msra.mxu1 %v584_v37 }
 0x236   : > { %2074 = vmatprep.subr.bf16.mxu1 %v2669_v0 }
 0x307   : > { %v509_v21 = vpop.f32.mrb[0].mxu1 }
 0x308   : > { %v510_v22 = vadd.f32 %v509_v21, %v3059_v20  ;;  %v2054_v23 = vpop.f32.mrb[1].mxu1 }
 0x309   : > { %v512_v24 = vpop.f32.mrb[2].mxu1 }
 0x30a   : > { %v2055_v25 = vpop.f32.mrb[3].mxu1  ;;  %v516_v26 = vsel %vm515_vm5, %v510_v22, -inf }
 0x30b   : > { %517 = vmax.xlane.f32.xlu0 %v516_v26 }
 0x398   : > { %v518_v27 = vpop.xlane.xlu0 %517 }
 0x399   : > { %v519_v28 = vsub.f32 %v510_v22, %v518_v27 }
 0x39b   : > { %v520_v29 = vmul.f32 1.442695, %v519_v28 }
 0x39d   : > { %2335 = vpow2.f32 %v520_v29 }
 0x3a7   : > { %v2336_v30 = vpop.eup %2335 }
 0x3a8   : > { %v522_v32 = vsel %vm515_vm5, %v2336_v30, 0.0  ;;  %v525_v33 = vpack.c.bf16 %v2336_v30, %v2336_v30 }
 0x3a9   : > { %523 = vadd.xlane.f32.xlu1 %v522_v32 }
 0x3aa   : > { %2059 = vmatmul.mubr.msk.bf16.vlgmr.msra.gmra.mrb[4].mxu0 %vm515_vm5, %v525_v33 }
 0x3ab   : > { %2069 = vmatpush3.bf16.xpose.msra.mxu0 %v636_v34  ;;  %2070 = vmatprep.mubr.msk.bf16.mxu0 %vm2670_vm0, %v2669_v0 }
 0x3ac   : > { %2080 = vmatprep.subr.bf16.mxu0 %v2669_v0 }
 0x3b2   : > { %2071 = vmatmul.mubr.msk.bf16.vlgmr.msra.gmra.mrb[8].mxu0 %vm468_vm3, %v629_v35 }
 0x3b3   : > { %2082 = vmatprep.mubr.msk.bf16.mxu0 %vm2670_vm0, %v2669_v0  ;;  %2081 = vmatpush3.bf16.msra.mxu0 %v748_v7 }
 0x3b4   : > { %2092 = vmatprep.subr.bf16.mxu0 %v2669_v0 }
 0x3ba   : > { %793 = vrot.lane.b32.xlu1 %v3041_v9, %s2675_s23  ;;  %s2687_s23 = smov 72  }
 0x436   : > { %v524_v38 = vpop.xlane.xlu1 %523 }
 0x437   : > { %2337 = vrcp.f32 %v524_v38 }
 0x43a   : > { %v794_v58 = vpop.permute.xlu1 %793 }
 0x43b   : > { %v799_v61 = vsel %vm468_vm3, %v794_v58, 0 }
 0x441   : > { %v2338_v39 = vpop.eup %2337 }
 0x47d   : > { %v569_v40 = vpop.f32.mrb[4].mxu0 }
 0x47e   : > { %v576_v41 = vmul.f32 %v2338_v39, %v569_v40  ;;  %v2060_v42 = vpop.f32.mrb[5].mxu0 }
 0x47f   : > { %v572_v43 = vpop.f32.mrb[6].mxu0 }
 0x480   : > { %v577_v44 = vpack.c.bf16 %v576_v41, %v576_v41  ;;  %v2061_v45 = vpop.f32.mrb[7].mxu0  ;;  %v902_v43 = vld [vmem:[#allocation10 + $0x4] sm:$0x3] }
 0x482   : > { %2065 = vmatmul.mubr.msk.bf16.vlgmr.msra.gmra.mrb[4].mxu1 %vm468_vm3, %v577_v44  ;;  %v907_v44 = vsel %vm582_vm6, %v902_v43, 0 }
 0x483   : > { %2076 = vmatprep.mubr.msk.bf16.mxu1 %vm2670_vm0, %v2669_v0 }
 0x485   : > { %v672_v46 = vpop.f32.mrb[8].mxu0 }
 0x486   : > { %v673_v47 = vadd.f32 %v672_v46, %v3059_v20  ;;  %v2072_v48 = vpop.f32.mrb[9].mxu0 }
 0x487   : > { %v675_v49 = vpop.f32.mrb[10].mxu0 }
 0x488   : > { %v2073_v50 = vpop.f32.mrb[11].mxu0  ;;  %v678_v51 = vsel %vm515_vm5, %v673_v47, -inf }
 0x489   : > { %679 = vmax.xlane.f32.xlu0 %v678_v51 }
 0x49f   : > { %688 = vrot.lane.b32.xlu0 %v3041_v9, %s2676_s19  ;;  %s2688_s19 = smov 104  }
 0x4a3   : > { %791 = vrot.lane.b32.xlu0 %v3046_v12, %s2677_s11  ;;  %s2689_s11 = smov 44  }
 0x516   : > { %v680_v52 = vpop.xlane.xlu0 %679 }
 0x517   : > { %v681_v53 = vsub.f32 %v673_v47, %v680_v52 }
 0x519   : > { %v682_v54 = vmul.f32 1.442695, %v681_v53 }
 0x51a   : > { %v689_v55 = vpop.permute.xlu0 %688 }
 0x51b   : > { %2339 = vpow2.f32 %v682_v54  ;;  %v694_v56 = vsel %vm531_vm2, %v689_v55, 0 }
 0x51c   : > { %2075 = vmatpush3.bf16.msra.mxu1 %v694_v56 }
 0x51d   : > { %2086 = vmatprep.subr.bf16.mxu1 %v2669_v0 }
 0x51e   : > { %v792_v62 = vpop.permute.xlu0 %791 }
 0x525   : > { %v2340_v57 = vpop.eup %2339 }
 0x526   : > { %v684_v59 = vsel %vm515_vm5, %v2340_v57, 0.0  ;;  %v687_v60 = vpack.c.bf16 %v2340_v57, %v2340_v57 }
 0x527   : > { %685 = vadd.xlane.f32.xlu0 %v684_v59 }
 0x528   : > { %2077 = vmatmul.mubr.msk.bf16.vlgmr.msra.gmra.mrb[8].mxu1 %vm515_vm5, %v687_v60 }
 0x529   : > { %2087 = vmatpush3.bf16.xpose.msra.mxu1 %v799_v61  ;;  %2088 = vmatprep.mubr.msk.bf16.mxu1 %vm2670_vm0, %v2669_v0 }
 0x52a   : > { %2098 = vmatprep.subr.bf16.mxu1 %v2669_v0 }
 0x530   : > { %2089 = vmatmul.mubr.msk.bf16.vlgmr.msra.gmra.mrb[12].mxu1 %vm468_vm3, %v792_v62 }
 0x531   : > { %2100 = vmatprep.mubr.msk.bf16.mxu1 %vm2670_vm0, %v2669_v0  ;;  %2099 = vmatpush3.bf16.msra.mxu1 %v907_v44 }
 0x532   : > { %2110 = vmatprep.subr.bf16.mxu1 %v2669_v0 }
 0x53d   : > { %851 = vrot.lane.b32.xlu0 %v3041_v9, %s2678_s28  ;;  %s2690_s28 = smov 40  }
 0x541   : > { %950 = vrot.lane.b32.xlu0 %v3046_v12, %s2679_s29  ;;  %s2691_s29 = smov 100  }
 0x555   : > { %v620_v63 = vpop.f32.mrb[4].mxu1 }
 0x556   : > { %v2066_v1 = vpop.f32.mrb[5].mxu1  ;;  %v626_v37 = vadd.f32 %v1956_v36, %v620_v63 }
 0x557   : > { %v623_v2 = vpop.f32.mrb[6].mxu1 }
 0x558   : > { %v2067_v4 = vpop.f32.mrb[7].mxu1 }
 0x5b4   : > { %v686_v8 = vpop.xlane.xlu0 %685 }
 0x5b5   : > { %2341 = vrcp.f32 %v686_v8 }
 0x5b8   : > { %v852_v15 = vpop.permute.xlu0 %851 }
 0x5b9   : > { %v857_v19 = vsel %vm531_vm2, %v852_v15, 0  ;;  %v2332_v15 = vld [vmem:[#allocation10 + $0x4] ss:$0 sps:$4 sm:$0xcc]  }
 0x5bc   : > { %v951_v35 = vpop.permute.xlu0 %950 }
 0x5bf   : > { %v2342_v10 = vpop.eup %2341 }
 0x5fb   : > { %v730_v11 = vpop.f32.mrb[8].mxu1 }
 0x5fc   : > { %v737_v13 = vmul.f32 %v2342_v10, %v730_v11  ;;  %v2078_v14 = vpop.f32.mrb[9].mxu1 }
 0x5fd   : > { %v733_v16 = vpop.f32.mrb[10].mxu1 }
 0x5fe   : > { %v738_v17 = vpack.c.bf16 %v737_v13, %v737_v13  ;;  %v2079_v18 = vpop.f32.mrb[11].mxu1  ;;  %v1065_v16 = vrot.slane %v2332_v15, 2 }
 0x600   : > { %2083 = vmatmul.mubr.msk.bf16.vlgmr.msra.gmra.mrb[12].mxu0 %vm468_vm3, %v738_v17  ;;  %v1070_v17 = vsel %vm582_vm6, %v1065_v16, 0 }
 0x601   : > { %2093 = vmatpush3.bf16.msra.mxu0 %v857_v19  ;;  %2094 = vmatprep.mubr.msk.bf16.mxu0 %vm2670_vm0, %v2669_v0 }
 0x602   : > { %2104 = vmatprep.subr.bf16.mxu0 %v2669_v0 }
 0x603   : > { %v835_v21 = vpop.f32.mrb[12].mxu1 }
 0x604   : > { %v836_v22 = vadd.f32 %v835_v21, %v3059_v20  ;;  %v2090_v23 = vpop.f32.mrb[13].mxu1 }
 0x605   : > { %v838_v24 = vpop.f32.mrb[14].mxu1 }
 0x606   : > { %v2091_v25 = vpop.f32.mrb[15].mxu1  ;;  %v841_v26 = vsel %vm515_vm5, %v836_v22, -inf }
 0x607   : > { %842 = vmax.xlane.f32.xlu1 %v841_v26 }
 0x618   : > { %952 = vrot.lane.b32.xlu1 %v3041_v9, %s2680_s12  ;;  %s2692_s12 = smov 68  }
 0x694   : > { %v843_v27 = vpop.xlane.xlu1 %842 }
 0x695   : > { %v844_v28 = vsub.f32 %v836_v22, %v843_v27 }
 0x697   : > { %v845_v29 = vmul.f32 1.442695, %v844_v28 }
 0x698   : > { %v953_v31 = vpop.permute.xlu1 %952 }
 0x699   : > { %2343 = vpow2.f32 %v845_v29  ;;  %v958_v34 = vsel %vm468_vm3, %v953_v31, 0 }
 0x6a3   : > { %v2344_v30 = vpop.eup %2343 }
 0x6a4   : > { %v847_v32 = vsel %vm515_vm5, %v2344_v30, 0.0  ;;  %v850_v33 = vpack.c.bf16 %v2344_v30, %v2344_v30 }
 0x6a5   : > { %848 = vadd.xlane.f32.xlu1 %v847_v32 }
 0x6a6   : > { %2095 = vmatmul.mubr.msk.bf16.vlgmr.msra.gmra.mrb[16].mxu0 %vm515_vm5, %v850_v33 }
 0x6a7   : > { %2105 = vmatpush3.bf16.xpose.msra.mxu0 %v958_v34  ;;  %2106 = vmatprep.mubr.msk.bf16.mxu0 %vm2670_vm0, %v2669_v0 }
 0x6a8   : > { %2116 = vmatprep.subr.bf16.mxu0 %v2669_v0 }
 0x6ae   : > { %2107 = vmatmul.mubr.msk.bf16.vlgmr.msra.gmra.mrb[20].mxu0 %vm468_vm3, %v951_v35 }
 0x6af   : > { %2118 = vmatprep.mubr.msk.bf16.mxu0 %vm2670_vm0, %v2669_v0  ;;  %2117 = vmatpush3.bf16.msra.mxu0 %v1070_v17 }
 0x6b0   : > { %2128 = vmatprep.subr.bf16.mxu0 %v2669_v0 }
 0x6b6   : > { %1115 = vrot.lane.b32.xlu1 %v3041_v9, %s2681_s25  ;;  %s2693_s25 = smov 36  }
 0x6ba   : > { %1113 = vrot.lane.b32.xlu1 %v3046_v12, %s2682_s21  ;;  %s1988_s21 = sshll.u32 %s2773_s20, 6  ;;  %s2694_s20 = smov [#allocation16]  }
 0x6d3   : > { %v784_v38 = vpop.f32.mrb[12].mxu0 }
 0x6d4   : > { %v790_v39 = vadd.f32 %v784_v38, %v626_v37  ;;  %v2084_v40 = vpop.f32.mrb[13].mxu0 }
 0x6d5   : > { %v787_v41 = vpop.f32.mrb[14].mxu0 }
 0x6d6   : > { %v2085_v42 = vpop.f32.mrb[15].mxu0 }
 0x732   : > { %v849_v45 = vpop.xlane.xlu1 %848 }
 0x733   : > { %2345 = vrcp.f32 %v849_v45 }
 0x736   : > { %v1116_v2 = vpop.permute.xlu1 %1115 }
 0x737   : > { %v1121_v6 = vsel %vm468_vm3, %v1116_v2, 0 }
 0x73a   : > { %v1114_v7 = vpop.permute.xlu1 %1113 }
 0x73d   : > { %v2346_v46 = vpop.eup %2345 }
 0x779   : > { %v893_v47 = vpop.f32.mrb[16].mxu0 }
 0x77a   : > { %v900_v48 = vmul.f32 %v2346_v46, %v893_v47  ;;  %v2096_v49 = vpop.f32.mrb[17].mxu0 }
 0x77b   : > { %v896_v50 = vpop.f32.mrb[18].mxu0  ;;  %v1224_v49 = vld [vmem:[#allocation10 + $0x8] sm:$0x3] }
 0x77c   : > { %v901_v51 = vpack.c.bf16 %v900_v48, %v900_v48  ;;  %v2097_v52 = vpop.f32.mrb[19].mxu0  ;;  %v1229_v50 = vsel %vm582_vm6, %v1224_v49, 0 }
 0x77e   : > { %2101 = vmatmul.mubr.msk.bf16.vlgmr.msra.gmra.mrb[16].mxu1 %vm468_vm3, %v901_v51 }
 0x77f   : > { %2112 = vmatprep.mubr.msk.bf16.mxu1 %vm2670_vm0, %v2669_v0 }
 0x781   : > { %v994_v53 = vpop.f32.mrb[20].mxu0 }
 0x782   : > { %v995_v54 = vadd.f32 %v994_v53, %v3059_v20  ;;  %v2108_v55 = vpop.f32.mrb[21].mxu0 }
 0x783   : > { %v997_v56 = vpop.f32.mrb[22].mxu0 }
 0x784   : > { %v2109_v57 = vpop.f32.mrb[23].mxu0  ;;  %v1000_v58 = vsel %vm515_vm5, %v995_v54, -inf }
 0x785   : > { %1001 = vmax.xlane.f32.xlu0 %v1000_v58 }
 0x79b   : > { %1010 = vrot.lane.b32.xlu0 %v3041_v9, %s2683_s0  ;;  %s377_s0 = scalar_lea.vmem [#allocation16], %s1944_s30  ;;  %s2581_s30 = sshll.u32 %s2694_s20, 4  ;;  %s2582_s30 = int_to_ptr.vmem [resolvable:$false] %s2581_s30 }
 0x812   : > { %v1002_v59 = vpop.xlane.xlu0 %1001 }
 0x813   : > { %v1003_v60 = vsub.f32 %v995_v54, %v1002_v59 }
 0x815   : > { %v1004_v61 = vmul.f32 1.442695, %v1003_v60 }
 0x816   : > { %v1011_v62 = vpop.permute.xlu0 %1010 }
 0x817   : > { %2347 = vpow2.f32 %v1004_v61  ;;  %v1016_v63 = vsel %vm531_vm2, %v1011_v62, 0 }
 0x818   : > { %2111 = vmatpush3.bf16.msra.mxu1 %v1016_v63 }
 0x819   : > { %2122 = vmatprep.subr.bf16.mxu1 %v2669_v0 }
 0x821   : > { %v2348_v1 = vpop.eup %2347 }
 0x822   : > { %v1006_v4 = vsel %vm515_vm5, %v2348_v1, 0.0  ;;  %v1009_v5 = vpack.c.bf16 %v2348_v1, %v2348_v1 }
 0x823   : > { %1007 = vadd.xlane.f32.xlu0 %v1006_v4 }
 0x824   : > { %2113 = vmatmul.mubr.msk.bf16.vlgmr.msra.gmra.mrb[20].mxu1 %vm515_vm5, %v1009_v5 }
 0x825   : > { %2123 = vmatpush3.bf16.xpose.msra.mxu1 %v1121_v6  ;;  %2124 = vmatprep.mubr.msk.bf16.mxu1 %vm2670_vm0, %v2669_v0 }
 0x826   : > { %2134 = vmatprep.subr.bf16.mxu1 %v2669_v0 }
 0x82c   : > { %2125 = vmatmul.mubr.msk.bf16.vlgmr.msra.gmra.mrb[24].mxu1 %vm468_vm3, %v1114_v7 }
 0x82d   : > { %2136 = vmatprep.mubr.msk.bf16.mxu1 %vm2670_vm0, %v2669_v0  ;;  %2135 = vmatpush3.bf16.msra.mxu1 %v1229_v50 }
 0x82e   : > { %2146 = vmatprep.subr.bf16.mxu1 %v2669_v0 }
 0x839   : > { %1173 = vrot.lane.b32.xlu0 %v3041_v9, %s2684_s9  ;;  %s1805_s9 = sshll.u32 %s377_s0, 4  ;;  %s3222_s9 = int_to_ptr.vmem [resolvable:$true] %s1805_s9 }
 0x83a   : > { %p2584_p4 = scmp.lt.s32.totalorder %s3222_s9, %s2582_s30 }
 0x83d   : > { %1272 = vrot.lane.b32.xlu0 %v3046_v12, %s2685_s13 }
 0x851   : > { %v943_v8 = vpop.f32.mrb[16].mxu1 }
 0x852   : > { %v949_v10 = vadd.f32 %v943_v8, %v790_v39  ;;  %v2102_v11 = vpop.f32.mrb[17].mxu1 }
 0x853   : > { %v946_v13 = vpop.f32.mrb[18].mxu1 }
 0x854   : > { %v2103_v14 = vpop.f32.mrb[19].mxu1 }
 0x8b0   : > { %v1008_v18 = vpop.xlane.xlu0 %1007 }
 0x8b1   : > { %2349 = vrcp.f32 %v1008_v18 }
 0x8b4   : > { %v1174_v24 = vpop.permute.xlu0 %1173 }
 0x8b5   : > { %v1179_v28 = vsel %vm531_vm2, %v1174_v24, 0 }
 0x8b8   : > { %v1273_v43 = vpop.permute.xlu0 %1272 }
 0x8bb   : > { %v2350_v19 = vpop.eup %2349 }
 0x8f7   : > { %v1052_v21 = vpop.f32.mrb[20].mxu1 }
 0x8f8   : > { %v1059_v22 = vmul.f32 %v2350_v19, %v1052_v21  ;;  %v2114_v23 = vpop.f32.mrb[21].mxu1 }
 0x8f9   : > { %v1055_v25 = vpop.f32.mrb[22].mxu1 }
 0x8fa   : > { %v1060_v26 = vpack.c.bf16 %v1059_v22, %v1059_v22  ;;  %v2115_v27 = vpop.f32.mrb[23].mxu1  ;;  %v2333_v22 = vld [vmem:[#allocation10 + $0x8] ss:$0 sps:$4 sm:$0xcc]  }
 0x8fb   : > { %v1387_v23 = vrot.slane %v2333_v22, 2 }
 0x8fc   : > { %2119 = vmatmul.mubr.msk.bf16.vlgmr.msra.gmra.mrb[24].mxu0 %vm468_vm3, %v1060_v26 }
 0x8fd   : > { %2129 = vmatpush3.bf16.msra.mxu0 %v1179_v28  ;;  %2130 = vmatprep.mubr.msk.bf16.mxu0 %vm2670_vm0, %v2669_v0  ;;  %v1392_v24 = vsel %vm582_vm6, %v1387_v23, 0 }
 0x8fe   : > { %2140 = vmatprep.subr.bf16.mxu0 %v2669_v0 }
 0x8ff   : > { %v1157_v29 = vpop.f32.mrb[24].mxu1 }
 0x900   : > { %v1158_v30 = vadd.f32 %v1157_v29, %v3059_v20  ;;  %v2126_v31 = vpop.f32.mrb[25].mxu1 }
 0x901   : > { %v1160_v32 = vpop.f32.mrb[26].mxu1 }
 0x902   : > { %v2127_v33 = vpop.f32.mrb[27].mxu1  ;;  %v1163_v34 = vsel %vm515_vm5, %v1158_v30, -inf }
 0x903   : > { %1164 = vmax.xlane.f32.xlu1 %v1163_v34 }
 0x914   : > { %1274 = vrot.lane.b32.xlu1 %v3041_v9, %s2686_s10 }
 0x990   : > { %v1165_v35 = vpop.xlane.xlu1 %1164 }
 0x991   : > { %v1166_v36 = vsub.f32 %v1158_v30, %v1165_v35 }
 0x993   : > { %v1167_v37 = vmul.f32 1.442695, %v1166_v36 }
 0x994   : > { %v1275_v39 = vpop.permute.xlu1 %1274 }
 0x995   : > { %2351 = vpow2.f32 %v1167_v37  ;;  %v1280_v42 = vsel %vm468_vm3, %v1275_v39, 0 }
 0x99f   : > { %v2352_v38 = vpop.eup %2351 }
 0x9a0   : > { %v1169_v40 = vsel %vm515_vm5, %v2352_v38, 0.0  ;;  %v1172_v41 = vpack.c.bf16 %v2352_v38, %v2352_v38 }
 0x9a1   : > { %1170 = vadd.xlane.f32.xlu1 %v1169_v40 }
 0x9a2   : > { %2131 = vmatmul.mubr.msk.bf16.vlgmr.msra.gmra.mrb[28].mxu0 %vm515_vm5, %v1172_v41 }
 0x9a3   : > { %2141 = vmatpush3.bf16.xpose.msra.mxu0 %v1280_v42  ;;  %2142 = vmatprep.mubr.msk.bf16.mxu0 %vm2670_vm0, %v2669_v0 }
 0x9a4   : > { %2152 = vmatprep.subr.bf16.mxu0 %v2669_v0 }
 0x9aa   : > { %2143 = vmatmul.mubr.msk.bf16.vlgmr.msra.gmra.mrb[32].mxu0 %vm468_vm3, %v1273_v43 }
 0x9ab   : > { %2154 = vmatprep.mubr.msk.bf16.mxu0 %vm2670_vm0, %v2669_v0  ;;  %2153 = vmatpush3.bf16.msra.mxu0 %v1392_v24 }
 0x9ac   : > { %2164 = vmatprep.subr.bf16.mxu0 %v2669_v0 }
 0x9b2   : > { %1437 = vrot.lane.b32.xlu1 %v3041_v9, %s2687_s23  ;;  %s3220_s23 = scalar_lea.hbm %s3272_s8, %s1988_s21 }
 0x9b6   : > { %1435 = vrot.lane.b32.xlu1 %v3046_v12, %s2688_s19  ;;  %s1792_s19 = scalar_lea.sflag [#allocation6], %s3005_s26 }
 0x9cf   : > { %v1106_v44 = vpop.f32.mrb[24].mxu0 }
 0x9d0   : > { %v1112_v45 = vadd.f32 %v1106_v44, %v949_v10  ;;  %v2120_v46 = vpop.f32.mrb[25].mxu0 }
 0x9d1   : > { %v1109_v47 = vpop.f32.mrb[26].mxu0 }
 0x9d2   : > { %v2121_v48 = vpop.f32.mrb[27].mxu0 }
 0xa2e   : > { %v1171_v51 = vpop.xlane.xlu1 %1170 }
 0xa2f   : > { %2353 = vrcp.f32 %v1171_v51 }
 0xa32   : > { %v1438_v10 = vpop.permute.xlu1 %1437 }
 0xa33   : > { %v1443_v14 = vsel %vm468_vm3, %v1438_v10, 0 }
 0xa36   : > { %v1436_v15 = vpop.permute.xlu1 %1435 }
 0xa39   : > { %v2354_v52 = vpop.eup %2353 }
 0xa75   : > { %v1215_v53 = vpop.f32.mrb[28].mxu0 }
 0xa76   : > { %v1222_v54 = vmul.f32 %v2354_v52, %v1215_v53  ;;  %v2132_v55 = vpop.f32.mrb[29].mxu0 }
 0xa77   : > { %v1218_v56 = vpop.f32.mrb[30].mxu0 }
 0xa78   : > { %v1223_v57 = vpack.c.bf16 %v1222_v54, %v1222_v54  ;;  %v2133_v58 = vpop.f32.mrb[31].mxu0  ;;  %v1546_v54 = vld [vmem:[#allocation10 + $0xc] sm:$0x3] }
 0xa79   : > { %v1551_v55 = vsel %vm582_vm6, %v1546_v54, 0 }
 0xa7a   : > { %2137 = vmatmul.mubr.msk.bf16.vlgmr.msra.gmra.mrb[28].mxu1 %vm468_vm3, %v1223_v57 }
 0xa7b   : > { %2148 = vmatprep.mubr.msk.bf16.mxu1 %vm2670_vm0, %v2669_v0 }
 0xa7d   : > { %v1316_v59 = vpop.f32.mrb[32].mxu0 }
 0xa7e   : > { %v1317_v60 = vadd.f32 %v1316_v59, %v3059_v20  ;;  %v2144_v61 = vpop.f32.mrb[33].mxu0 }
 0xa7f   : > { %v1319_v62 = vpop.f32.mrb[34].mxu0 }
 0xa80   : > { %v2145_v63 = vpop.f32.mrb[35].mxu0  ;;  %v1322_v1 = vsel %vm515_vm5, %v1317_v60, -inf }
 0xa81   : > { %1323 = vmax.xlane.f32.xlu0 %v1322_v1 }
 0xa97   : > { %1332 = vrot.lane.b32.xlu0 %v3041_v9, %s2689_s11  ;;  %s2577_s11 = scalar_lea.vmem %s3222_s9, 64 }
 0xa98   : > { %p2578_p9 = scmp.ne.s32.totalorder %s3222_s9, %s2577_s11 }
 0xa9a   : > { %p2579_p1 = pnand %p2578_p9, %p3292_p12 }
 0xa9c   : > { %p2580_p2 = pneg %p2579_p1 }
 0xb0e   : > { %v1324_v2 = vpop.xlane.xlu0 %1323 }
 0xb0f   : > { %v1325_v4 = vsub.f32 %v1317_v60, %v1324_v2 }
 0xb11   : > { %v1326_v5 = vmul.f32 1.442695, %v1325_v4 }
 0xb12   : > { %v1333_v6 = vpop.permute.xlu0 %1332 }
 0xb13   : > { %2355 = vpow2.f32 %v1326_v5  ;;  %v1338_v7 = vsel %vm531_vm2, %v1333_v6, 0 }
 0xb14   : > { %2147 = vmatpush3.bf16.msra.mxu1 %v1338_v7 }
 0xb15   : > { %2158 = vmatprep.subr.bf16.mxu1 %v2669_v0 }
 0xb1d   : > { %v2356_v8 = vpop.eup %2355 }
 0xb1e   : > { %v1328_v11 = vsel %vm515_vm5, %v2356_v8, 0.0  ;;  %v1331_v13 = vpack.c.bf16 %v2356_v8, %v2356_v8 }
 0xb1f   : > { %1329 = vadd.xlane.f32.xlu0 %v1328_v11 }
 0xb20   : > { %2149 = vmatmul.mubr.msk.bf16.vlgmr.msra.gmra.mrb[32].mxu1 %vm515_vm5, %v1331_v13 }
 0xb21   : > { %2159 = vmatpush3.bf16.xpose.msra.mxu1 %v1443_v14  ;;  %2160 = vmatprep.mubr.msk.bf16.mxu1 %vm2670_vm0, %v2669_v0 }
 0xb22   : > { %2170 = vmatprep.subr.bf16.mxu1 %v2669_v0 }
 0xb28   : > { %2161 = vmatmul.mubr.msk.bf16.vlgmr.msra.gmra.mrb[36].mxu1 %vm468_vm3, %v1436_v15 }
 0xb29   : > { %2172 = vmatprep.mubr.msk.bf16.mxu1 %vm2670_vm0, %v2669_v0  ;;  %2171 = vmatpush3.bf16.msra.mxu1 %v1551_v55 }
 0xb2a   : > { %2182 = vmatprep.subr.bf16.mxu1 %v2669_v0 }
 0xb35   : > { %1495 = vrot.lane.b32.xlu0 %v3041_v9, %s2690_s28  ;;  %s2583_s28 = scalar_lea.vmem %s2582_s30, 128 }
 0xb36   : > { %p2585_p6 = scmp.lt.s32.totalorder %s2583_s28, %s2577_s11 }
 0xb38   : > { %p2586_p5 = por %p2585_p6, %p2584_p4 }
 0xb39   : > { %1594 = vrot.lane.b32.xlu0 %v3046_v12, %s2691_s29 }
 0xb3a   : > { %p2587_p3 = pnand %p2586_p5, %p2580_p2 }
 0xb4d   : > { %v1265_v16 = vpop.f32.mrb[28].mxu1 }
 0xb4e   : > { %v1271_v17 = vadd.f32 %v1265_v16, %v1112_v45  ;;  %v2138_v18 = vpop.f32.mrb[29].mxu1  ;;  %v2334_v16 = vld [vmem:[#allocation10 + $0xc] ss:$0 sps:$4 sm:$0xcc]  }
 0xb4f   : > { %v1268_v19 = vpop.f32.mrb[30].mxu1 }
 0xb50   : > { %v2139_v21 = vpop.f32.mrb[31].mxu1 }
 0xbac   : > { %v1330_v25 = vpop.xlane.xlu0 %1329 }
 0xbad   : > { %2357 = vrcp.f32 %v1330_v25 }
 0xbb0   : > { %v1496_v30 = vpop.permute.xlu0 %1495 }
 0xbb1   : > { %v1501_v33 = vsel %vm531_vm2, %v1496_v30, 0 }
 0xbb4   : > { %v1595_v48 = vpop.permute.xlu0 %1594 }
 0xbb7   : > { %v2358_v26 = vpop.eup %2357 }
 0xbf3   : > { %v1374_v27 = vpop.f32.mrb[32].mxu1 }
 0xbf4   : > { %v1381_v28 = vmul.f32 %v2358_v26, %v1374_v27  ;;  %v2150_v29 = vpop.f32.mrb[33].mxu1 }
 0xbf5   : > { %v1377_v12 = vpop.f32.mrb[34].mxu1 }
 0xbf6   : > { %v1382_v31 = vpack.c.bf16 %v1381_v28, %v1381_v28  ;;  %v2151_v32 = vpop.f32.mrb[35].mxu1 }
 0xbf8   : > { %2155 = vmatmul.mubr.msk.bf16.vlgmr.msra.gmra.mrb[36].mxu0 %vm468_vm3, %v1382_v31  ;;  %v380_v31 = vunpack.c.l.bf16 %v3034_v3 }
 0xbf9   : > { %2165 = vmatpush3.bf16.msra.mxu0 %v1501_v33  ;;  %2166 = vmatprep.mubr.msk.bf16.mxu0 %vm2670_vm0, %v2669_v0 }
 0xbfa   : > { %2176 = vmatprep.subr.bf16.mxu0 %v2669_v0 }
 0xbfb   : > { %v1479_v34 = vpop.f32.mrb[36].mxu1 }
 0xbfc   : > { %v1480_v35 = vadd.f32 %v1479_v34, %v3059_v20  ;;  %v2162_v36 = vpop.f32.mrb[37].mxu1 }
 0xbfd   : > { %v1482_v37 = vpop.f32.mrb[38].mxu1 }
 0xbfe   : > { %v2163_v38 = vpop.f32.mrb[39].mxu1  ;;  %v1485_v39 = vsel %vm515_vm5, %v1480_v35, -inf }
 0xbff   : > { %1486 = vmax.xlane.f32.xlu1 %v1485_v39 }
 0xc10   : > { %1596 = vrot.lane.b32.xlu1 %v3041_v9, %s2692_s12 }
 0xc8c   : > { %v1487_v40 = vpop.xlane.xlu1 %1486 }
 0xc8d   : > { %v1488_v41 = vsub.f32 %v1480_v35, %v1487_v40 }
 0xc8f   : > { %v1489_v42 = vmul.f32 1.442695, %v1488_v41 }
 0xc90   : > { %v1597_v44 = vpop.permute.xlu1 %1596 }
 0xc91   : > { %2359 = vpow2.f32 %v1489_v42  ;;  %v1602_v47 = vsel %vm468_vm3, %v1597_v44, 0 }
 0xc9b   : > { %v2360_v43 = vpop.eup %2359 }
 0xc9c   : > { %v1491_v45 = vsel %vm515_vm5, %v2360_v43, 0.0  ;;  %v1494_v46 = vpack.c.bf16 %v2360_v43, %v2360_v43 }
 0xc9d   : > { %1492 = vadd.xlane.f32.xlu1 %v1491_v45 }
 0xc9e   : > { %2167 = vmatmul.mubr.msk.bf16.vlgmr.msra.gmra.mrb[40].mxu0 %vm515_vm5, %v1494_v46 }
 0xc9f   : > { %2177 = vmatpush3.bf16.xpose.msra.mxu0 %v1602_v47  ;;  %2178 = vmatprep.mubr.msk.bf16.mxu0 %vm2670_vm0, %v2669_v0  ;;  %v1985_v47 = vld [vmem:[#allocation13] ss:$0 sm:$0xff] }
 0xca0   : > { %2188 = vmatprep.subr.bf16.mxu0 %v2669_v0 }
 0xca6   : > { %2179 = vmatmul.mubr.msk.bf16.vlgmr.msra.gmra.mrb[44].mxu0 %vm468_vm3, %v1595_v48 }
 0xca7   : > { %2190 = vmatprep.mubr.msk.bf16.mxu0 %vm2670_vm0, %v2669_v0 }
 0xccb   : > { %v1428_v49 = vpop.f32.mrb[36].mxu0 }
 0xccc   : > { %v1434_v50 = vadd.f32 %v1428_v49, %v1271_v17  ;;  %v2156_v51 = vpop.f32.mrb[37].mxu0  ;;  %v1709_v17 = vrot.slane %v2334_v16, 2  ;;  %v1986_v49 = vld [vmem:[#allocation15] ss:$0 sm:$0xff] }
 0xccd   : > { %v1431_v52 = vpop.f32.mrb[38].mxu0 }
 0xcce   : > { %v2157_v53 = vpop.f32.mrb[39].mxu0  ;;  %v1714_v18 = vsel %vm582_vm6, %v1709_v17, 0 }
 0xccf   : > { %2189 = vmatpush3.bf16.msra.mxu0 %v1714_v18 }
 0xd2a   : > { %v1493_v56 = vpop.xlane.xlu1 %1492 }
 0xd2b   : > { %2361 = vrcp.f32 %v1493_v56 }
 0xd35   : > { %v2362_v57 = vpop.eup %2361 }
 0xd71   : > { %v1537_v58 = vpop.f32.mrb[40].mxu0 }
 0xd72   : > { %v1544_v59 = vmul.f32 %v2362_v57, %v1537_v58  ;;  %v2168_v60 = vpop.f32.mrb[41].mxu0 }
 0xd73   : > { %v1540_v61 = vpop.f32.mrb[42].mxu0 }
 0xd74   : > { %v1545_v62 = vpack.c.bf16 %v1544_v59, %v1544_v59  ;;  %v2169_v63 = vpop.f32.mrb[43].mxu0 }
 0xd76   : > { %2173 = vmatmul.mubr.msk.bf16.vlgmr.msra.gmra.mrb[40].mxu1 %vm468_vm3, %v1545_v62 }
 0xd77   : > { %2184 = vmatprep.mubr.msk.bf16.mxu1 %vm2670_vm0, %v2669_v0 }
 0xd79   : > { %v1638_v1 = vpop.f32.mrb[44].mxu0 }
 0xd7a   : > { %v1639_v2 = vadd.f32 %v1638_v1, %v3059_v20  ;;  %v2180_v4 = vpop.f32.mrb[45].mxu0 }
 0xd7b   : > { %v1641_v5 = vpop.f32.mrb[46].mxu0 }
 0xd7c   : > { %v2181_v6 = vpop.f32.mrb[47].mxu0  ;;  %v1644_v7 = vsel %vm515_vm5, %v1639_v2, -inf }
 0xd7d   : > { %1645 = vmax.xlane.f32.xlu0 %v1644_v7 }
 0xd93   : > { %1654 = vrot.lane.b32.xlu0 %v3041_v9, %s2693_s25 }
 0xe0a   : > { %v1646_v8 = vpop.xlane.xlu0 %1645 }
 0xe0b   : > { %v1647_v10 = vsub.f32 %v1639_v2, %v1646_v8 }
 0xe0d   : > { %v1648_v11 = vmul.f32 1.442695, %v1647_v10 }
 0xe0e   : > { %v1655_v13 = vpop.permute.xlu0 %1654 }
 0xe0f   : > { %2363 = vpow2.f32 %v1648_v11  ;;  %v1660_v14 = vsel %vm531_vm2, %v1655_v13, 0 }
 0xe10   : > { %2183 = vmatpush3.bf16.msra.mxu1 %v1660_v14 }
 0xe19   : > { %v2364_v0 = vpop.eup %2363 }
 0xe1a   : > { %v1650_v20 = vsel %vm515_vm5, %v2364_v0, 0.0  ;;  %v1653_v15 = vpack.c.bf16 %v2364_v0, %v2364_v0 }
 0xe1b   : > { %1651 = vadd.xlane.f32.xlu1 %v1650_v20 }
 0xe1c   : > { %2185 = vmatmul.mubr.msk.bf16.vlgmr.msra.gmra.mrb[44].mxu1 %vm515_vm5, %v1653_v15 }
 0xe49   : > { %v1587_v9 = vpop.f32.mrb[40].mxu1 }
 0xe4a   : > { %v1593_v19 = vadd.f32 %v1587_v9, %v1434_v50  ;;  %v2174_v21 = vpop.f32.mrb[41].mxu1 }
 0xe4b   : > { %v1590_v22 = vpop.f32.mrb[42].mxu1 }
 0xe4c   : > { %v2175_v23 = vpop.f32.mrb[43].mxu1 }
 0xea8   : > { %v1652_v24 = vpop.xlane.xlu1 %1651 }
 0xea9   : > { %2365 = vrcp.f32 %v1652_v24 }
 0xeb3   : > { %v2366_v25 = vpop.eup %2365 }
 0xeef   : > { %v1696_v26 = vpop.f32.mrb[44].mxu1 }
 0xef0   : > { %v1703_v27 = vmul.f32 %v2366_v25, %v1696_v26  ;;  %v2186_v28 = vpop.f32.mrb[45].mxu1 }
 0xef1   : > { %v1699_v29 = vpop.f32.mrb[46].mxu1 }
 0xef2   : > { %v1704_v30 = vpack.c.bf16 %v1703_v27, %v1703_v27  ;;  %v2187_v12 = vpop.f32.mrb[47].mxu1 }
 0xef4   : > { %2191 = vmatmul.mubr.msk.bf16.vlgmr.msra.gmra.mrb[48].mxu0 %vm468_vm3, %v1704_v30 }
 0xfc7   : > { %v1750_v32 = vpop.f32.mrb[48].mxu0 }
 0xfc8   : > { %v1756_v33 = vadd.f32 %v1750_v32, %v1593_v19  ;;  %v2192_v34 = vpop.f32.mrb[49].mxu0 }
 0xfc9   : > { %v1753_v35 = vpop.f32.mrb[50].mxu0 }
 0xfca   : > { %v2193_v36 = vpop.f32.mrb[51].mxu0  ;;  %v1757_v37 = vadd.f32 %v1756_v33, %v380_v31 }
 0xfcc   : > { %v1760_v38 = vsel %vm404_vm1, %v1757_v37, 0.0 }
 0xfcd   : > { %1761 = vadd.xlane.f32.xlu1 %v1760_v38 }
0x105a   : > { %v1762_v39 = vpop.xlane.xlu1 %1761 }
0x105b   : > { %v1764_v40 = vmul.f32 0.03125, %v1762_v39 }
0x105d   : > { %v1765_v41 = vsub.f32 %v1757_v37, %v1764_v40 }
0x105f   : > { %v1766_v42 = vmul.f32 %v1765_v41, %v1765_v41 }
0x1061   : > { %v1767_v43 = vsel %vm404_vm1, %v1766_v42, 0.0 }
0x1062   : > { %1768 = vadd.xlane.f32.xlu1 %v1767_v43 }
0x10ef   : > { %v1769_v44 = vpop.xlane.xlu1 %1768 }
0x10f0   : > { %v1770_v3 = vmul.f32 0.03125, %v1769_v44 }
0x10f2   : > { %v1771_v45 = vadd.f32 1e-05, %v1770_v3 }
0x10f4   : > { %2367 = vrsqrt.f32 %v1771_v45 }
0x10fe   : > { %v2368_v46 = vpop.eup %2367 }
0x10ff   : > { %v1773_v48 = vmul.f32 %v2368_v46, %v1765_v41 }
0x1101   : > { %v1780_v50 = vmul.f32 %v1985_v47, %v1773_v48 }
0x1103   : > { %v1787_v51 = vadd.f32 %v1986_v49, %v1780_v50 }
0x1105   : > { %v1788_v52 = vpack.c.bf16 %v1787_v51, %v1787_v51 }
0x1107   : > { %1790 = vst.msk [vmem:[%s377_s0] sm:$0xf] %vm1789_vm7, %v1788_v52 }
0x1108   : > { %2590 = shalt.err (!%p2587_p3)
}
0x1109   : > { %s2591_s26 = scalar_lea.hbm %s3220_s23, 64  ;;  %s2595_s25 = scalar_lea.hbm %s3272_s8, 128 }
0x110a   : > { %p2592_p7 = scmp.ne.s32.totalorder %s3220_s23, %s2591_s26  ;;  %p2596_p11 = scmp.lt.u32.totalorder %s3220_s23, %s3272_s8 }
0x110b   : > { %p2597_p8 = scmp.lt.u32.totalorder %s2595_s25, %s2591_s26  ;;  %p2599_p9 = scmp.lt.u32.totalorder %s2591_s26, %s3220_s23 }
0x110c   : > { %p2593_p13 = pnand %p2592_p7, %p3292_p12 }
0x110d   : > { %p2598_p10 = por %p2597_p8, %p2596_p11 }
0x110e   : > { %p2594_p0 = pneg %p2593_p13 }
0x110f   : > { %p2600_p1 = por %p2599_p9, %p2598_p10 }
0x1111   : > { %p2601_p2 = pnand %p2600_p1, %p2594_p0 }
0x1113   : > { %2604 = shalt.err (!%p2601_p2)
}
0x1114   : > { %2220 = dma.vmem_to_hbm [thread:$0]  (%p3292_p12), %s3222_s9, 64, %s3220_s23, %s1792_s19  }
0x1115 PF: > { %s1817_s13 = sand.u32 1, %s2645_s15   ;;  %p3293_p4 = scmp.ne.s32.totalorder %s3283_s27, 0 }
0x1116   : > { %p3294_p6 = scmp.ge.s32.totalorder %s2657_s18, 2  ;;  %s1818_s10 = scalar_lea.sflag [#allocation6], %s1817_s13 }
0x1118   : > { %p2246_p5 = pnand %p3294_p6, %p3293_p4 }
0x111a   : > { %2640 = dma.done.wait (!%p2246_p5), %s1818_s10, 64  }
0x111b   : > { %2642 = vsyncadd (!%p2246_p5), %s1818_s10, 4294967232  ;;  %p28_p3 = scmp.ge.s32.totalorder %s2929_s24, 4   ;;  %s3295_s15 = smov %s2649_s16 }
0x111c   : > { %s3296_s16 = smov %s2653_s17  ;;  %s3297_s17 = smov %s2940_s14 }
0x111d   : > { %s3298_s18 = smov %s2929_s24  ;;  %30 = sbr.rel (!%p28_p3) target bundleno = 20 (0x14), region = 117 }
0x1124   :  { %1823 = vsyncpa [#allocation5], 1 }
0x1125   :  { %1825 = vsyncpa [#allocation5 + $0x1], 1 }
0x1126   :  { %1826 = vsyncpa [#allocation8], 1 }
0x1127   :  { %1827 = vsyncpa [#allocation11], 1 }
0x1128   :  { %1828 = vsyncpa [#allocation14], 1 }
0x1129   :  { %1829 = vsyncpa [#allocation6], 1 }
0x112a   :  { %1831 = vsyncpa [#allocation6 + $0x1], 1 }

// kernel: mfs_forward.31
= control target key start
LH: loop header
LB: loop body
LE: loop exit
PB: predicated region body
PF: predicated region fallthrough
CT: control target
= control target key end

     0   :  { %s3753_s0 = inlined_call_operand.hbm [shape: s32[2], index: 0, kind: input, shape index: {}]   ;;  %s3754_s1 = inlined_call_operand.hbm [shape: bf16[2,8,32], index: 1, kind: input, shape index: {}]   ;;  %s3755_s2 = inlined_call_operand.hbm [shape: bf16[2,8,32], index: 2, kind: input, shape index: {}]   ;;  %s3756_s3 = inlined_call_operand.hbm [shape: bf16[32,32], index: 3, kind: input, shape index: {}]   ;;  %s3757_s4 = inlined_call_operand.hbm [shape: f32[1,32], index: 4, kind: input, shape index: {}]   ;;  %s3758_s5 = inlined_call_operand.hbm [shape: bf16[32,64], index: 5, kind: input, shape index: {}]   ;;  %s3759_s6 = inlined_call_operand.hbm [shape: f32[1,64], index: 6, kind: input, shape index: {}]   ;;  %s3760_s7 = inlined_call_operand.hbm [shape: bf16[32,32], index: 7, kind: input, shape index: {}]   ;;  %s3761_s8 = inlined_call_operand.hbm [shape: f32[1,32], index: 8, kind: input, shape index: {}]   ;;  %s3762_s9 = inlined_call_operand.hbm [shape: f32[1,32], index: 9, kind: input, shape index: {}]   ;;  %s3763_s10 = inlined_call_operand.hbm [shape: f32[1,32], index: 10, kind: input, shape index: {}]   ;;  %s3764_s11 = inlined_call_operand.hbm [shape: bf16[2,8,32], index: 11, kind: output, shape index: {}]  }
   0x1   :  { %3773 = sst [smem:[#allocation32_spill]] %s3756_s3  ;;  %s2656_s19 = scalar_lea.hbm %s3753_s0, 16 }
   0x2   :  { %3774 = sst [smem:[#allocation33_spill]] %s3757_s4  ;;  %p2657_p0 = scmp.ne.s32.totalorder %s3753_s0, %s2656_s19 }
   0x3   :  { %3775 = sst [smem:[#allocation34_spill]] %s3758_s5  ;;  %p2660_p1 = scmp.lt.u32.totalorder %s2656_s19, %s3753_s0 }
   0x4   :  { %3776 = sst [smem:[#allocation35_spill]] %s3759_s6 }
   0x5   :  { %3777 = sst [smem:[#allocation36_spill]] %s3760_s7  ;;  %p2662_p2 = pnand %p2660_p1, %p2657_p0 }
   0x6   :  { %3778 = sst [smem:[#allocation37_spill]] %s3764_s11 }
   0x7   :  { %2665 = shalt.err (!%p2662_p2)  }
   0x8   :  { %s3044_s24 = smov [#allocation3]  }
   0x9   :  { %17 = dma.hbm_to_smem %s3753_s0, 16, %s3044_s24, [#allocation2] }
   0xa   :  { %2994 = dma.done.wait [#allocation2], 16 }
   0xb   :  { %2995 = vsyncadd [#allocation2], 4294967280 }
   0xc   :  { %19 = sfence }
   0xd   :  { %20 = vsyncpa [#allocation5], 0 }
   0xe   :  { %22 = vsyncpa [#allocation5 + $0x1], 0 }
   0xf   :  { %23 = vsyncpa [#allocation8], 0 }
  0x10   :  { %25 = vsyncpa [#allocation8 + $0x1], 0 }
  0x11   :  { %26 = vsyncpa [#allocation11], 0 }
  0x12   :  { %27 = vsyncpa [#allocation14], 0 }
  0x13   :  { %28 = vsyncpa [#allocation17], 0 }
  0x14   :  { %29 = vsyncpa [#allocation20], 0 }
  0x15   :  { %30 = vsyncpa [#allocation6], 0 }
  0x16   :  { %32 = vsyncpa [#allocation6 + $0x1], 0  ;;  %s3147_s27 = smov 0   ;;  %s3149_s28 = smov 0  }
  0x17   :  { %s3151_s29 = smov 0   ;;  %s3153_s0 = smov 0  }
  0x18 LB: > { %s3045_s30 = smov [#allocation9]   ;;  %s3168_s13 = sadd.s32 4294967295, %s3042_s0   ;;  %s3042_s0 = sphi %s3153_s0, %s3815_s0   ;;  %s3038_s29 = sphi %s3151_s29, %s3814_s29   ;;  %s3034_s28 = sphi %s3149_s28, %s3813_s28   ;;  %s3030_s27 = sphi %s3147_s27, %s3812_s27  }
  0x19   : > { %s301_s12 = sshll.u32 %s3045_s30, 4  ;;  %p2179_p3 = scmp.ge.s32.totalorder %s3042_s0, 1  ;;  %s3173_s12 = int_to_ptr.vmem [resolvable:$true] %s301_s12 }
  0x1a   : > { %p3769_p4 = scmp.eq.s32.totalorder %s3168_s13, 0  ;;  %p289_p5 = scmp.lt.s32.totalorder %s3042_s0, 3 }
  0x1b   : > { %s3046_s15 = smov [#allocation10]   ;;  %s3047_s18 = smov [#allocation13]  }
  0x1c   : > { %p3175_p6 = pnand %p2179_p3, %p289_p5  ;;  %s315_s16 = sshll.u32 %s3046_s15, 4  ;;  %s3188_s16 = int_to_ptr.vmem [resolvable:$true] %s315_s16 }
  0x1d   : > { %s339_s19 = sshll.u32 %s3047_s18, 4  ;;  %s3782_s3 = sld [smem:[#allocation32_spill]]  ;;  %s3190_s19 = int_to_ptr.vmem [resolvable:$true] %s339_s19 }
  0x1e   : > { %s3779_s14 = scalar_select %p3175_p6, 1, 0 }
  0x1f   : > { %p2500_p8 = pneg %p3175_p6 }
  0x20   : > { %3780 = sst [smem:[#allocation31_spill]] %s3779_s14 }
  0x21   : > { %p3184_p9 = pnand %p2500_p8, %p3769_p4 }
  0x23   : > { %s2666_s22 = scalar_lea.hbm %s3782_s3, 256  ;;  %p3200_p11 = pneg %p3184_p9 }
  0x24   : > { %p2667_p10 = scmp.ne.s32.totalorder %s3782_s3, %s2666_s22  ;;  %p2673_p0 = scmp.lt.u32.totalorder %s2666_s22, %s3782_s3 }
  0x26   : > { %p2669_p12 = pnand %p3200_p11, %p2667_p10 }
  0x28   : > { %p2670_p13 = pneg %p2669_p12 }
  0x2a   : > { %p2675_p1 = pnand %p2673_p0, %p2670_p13 }
  0x2c   : > { %2678 = shalt.err (!%p2675_p1)
}
  0x2d   : > { %s2679_s15 = scalar_lea.vmem %s3173_s12, 256  ;;  %p2687_p8 = scmp.lt.s32.totalorder %s3173_s12, %s3173_s12 }
  0x2e   : > { %p2680_p2 = scmp.ne.s32.totalorder %s3173_s12, %s2679_s15  ;;  %p2688_p7 = scmp.lt.s32.totalorder %s2679_s15, %s2679_s15 }
  0x30   : > { %p2682_p3 = pnand %p2680_p2, %p3200_p11  ;;  %p2689_p10 = por %p2688_p7, %p2687_p8 }
  0x32   : > { %p2683_p5 = pneg %p2682_p3 }
  0x34   : > { %p2690_p12 = pnand %p2689_p10, %p2683_p5 }
  0x36   : > { %2693 = shalt.err (!%p2690_p12)
}
  0x37   : > { %s3767_s18 = smov 64   ;;  %s3049_s20 = smov 4  }
  0x38   : > { %2503 = dma.hbm_to_vmem [thread:$0]  (!%p3184_p9), %s3782_s3, 256, %s3173_s12, [#allocation8], %s3767_s18, %s3767_s18, %s3049_s20  }
  0x39   : > { %s3784_s4 = sld [smem:[#allocation33_spill]] }
  0x3f   : > { %s2694_s26 = scalar_lea.hbm %s3784_s4, 16 }
  0x40   : > { %p2695_p7 = scmp.ne.s32.totalorder %s3784_s4, %s2694_s26  ;;  %p2701_p1 = scmp.lt.u32.totalorder %s2694_s26, %s3784_s4 }
  0x42   : > { %p2697_p13 = pnand %p2695_p7, %p3200_p11 }
  0x44   : > { %p2698_p0 = pneg %p2697_p13 }
  0x46   : > { %p2703_p2 = pnand %p2701_p1, %p2698_p0 }
  0x48   : > { %2706 = shalt.err (!%p2703_p2)
}
  0x49   : > { %s2707_s12 = scalar_lea.vmem %s3188_s16, 16  ;;  %s2714_s21 = scalar_lea.vmem %s3188_s16, 32 }
  0x4a   : > { %p2708_p3 = scmp.ne.s32.totalorder %s3188_s16, %s2707_s12  ;;  %p2715_p10 = scmp.lt.s32.totalorder %s3188_s16, %s3188_s16 }
  0x4b   : > { %p2716_p12 = scmp.lt.s32.totalorder %s2714_s21, %s2707_s12 }
  0x4c   : > { %p2710_p5 = pnand %p2708_p3, %p3200_p11 }
  0x4d   : > { %p2717_p7 = por %p2716_p12, %p2715_p10 }
  0x4e   : > { %p2711_p8 = pneg %p2710_p5 }
  0x50   : > { %p2718_p13 = pnand %p2717_p7, %p2711_p8 }
  0x52   : > { %2721 = shalt.err (!%p2718_p13)
}
  0x53   : > { %2506 = dma.hbm_to_vmem [thread:$0]  (!%p3184_p9), %s3784_s4, 16, %s3188_s16, [#allocation11]  }
  0x54   : > { %s3785_s6 = sld [smem:[#allocation35_spill]] }
  0x5a   : > { %s2722_s24 = scalar_lea.hbm %s3785_s6, 16 }
  0x5b   : > { %p2723_p0 = scmp.ne.s32.totalorder %s3785_s6, %s2722_s24  ;;  %p2729_p3 = scmp.lt.u32.totalorder %s2722_s24, %s3785_s6 }
  0x5d   : > { %p2725_p1 = pnand %p2723_p0, %p3200_p11 }
  0x5f   : > { %p2726_p2 = pneg %p2725_p1 }
  0x61   : > { %p2731_p5 = pnand %p2729_p3, %p2726_p2 }
  0x63   : > { %2734 = shalt.err (!%p2731_p5)
}
  0x64   : > { %s2735_s16 = scalar_lea.vmem %s3190_s19, 16  ;;  %s2742_s21 = scalar_lea.vmem %s3190_s19, 32 }
  0x65   : > { %p2736_p8 = scmp.ne.s32.totalorder %s3190_s19, %s2735_s16  ;;  %p2743_p7 = scmp.lt.s32.totalorder %s3190_s19, %s3190_s19 }
  0x66   : > { %p2744_p13 = scmp.lt.s32.totalorder %s2742_s21, %s2735_s16 }
  0x67   : > { %p2738_p10 = pnand %p2736_p8, %p3200_p11 }
  0x68   : > { %p2745_p0 = por %p2744_p13, %p2743_p7 }
  0x69   : > { %p2739_p12 = pneg %p2738_p10 }
  0x6b   : > { %p2746_p1 = pnand %p2745_p0, %p2739_p12 }
  0x6d   : > { %2749 = shalt.err (!%p2746_p1)
}
  0x6e   : > { %2512 = dma.hbm_to_vmem [thread:$0]  (!%p3184_p9), %s3785_s6, 16, %s3190_s19, [#allocation14]  }
  0x6f   : > { %s3050_s22 = smov [#allocation16]   ;;  %s3051_s24 = smov [#allocation12]  }
  0x70   : > { %s363_s23 = sshll.u32 %s3050_s22, 4  ;;  %s325_s26 = sshll.u32 %s3051_s24, 4  ;;  %s364_s23 = int_to_ptr.vmem [resolvable:$true] %s363_s23  ;;  %s326_s26 = int_to_ptr.vmem [resolvable:$true] %s325_s26 }
  0x71   : > { %s2750_s12 = scalar_lea.hbm %s3761_s8, 16 }
  0x72   : > { %p2751_p2 = scmp.ne.s32.totalorder %s3761_s8, %s2750_s12  ;;  %p2757_p8 = scmp.lt.u32.totalorder %s2750_s12, %s3761_s8 }
  0x74   : > { %p2753_p3 = pnand %p2751_p2, %p3200_p11 }
  0x76   : > { %p2754_p5 = pneg %p2753_p3 }
  0x78   : > { %p2759_p10 = pnand %p2757_p8, %p2754_p5 }
  0x7a   : > { %2762 = shalt.err (!%p2759_p10)
}
  0x7b   : > { %s2763_s19 = scalar_lea.vmem %s364_s23, 16  ;;  %s2770_s14 = scalar_lea.vmem %s364_s23, 32 }
  0x7c   : > { %p2764_p12 = scmp.ne.s32.totalorder %s364_s23, %s2763_s19  ;;  %p2771_p0 = scmp.lt.s32.totalorder %s364_s23, %s364_s23 }
  0x7d   : > { %p2772_p1 = scmp.lt.s32.totalorder %s2770_s14, %s2763_s19 }
  0x7e   : > { %p2766_p7 = pnand %p2764_p12, %p3200_p11 }
  0x7f   : > { %p2773_p4 = por %p2772_p1, %p2771_p0 }
  0x80   : > { %p2767_p13 = pneg %p2766_p7 }
  0x82   : > { %p2774_p6 = pnand %p2773_p4, %p2767_p13 }
  0x84   : > { %2777 = shalt.err (!%p2774_p6)
}
  0x85   : > { %2518 = dma.hbm_to_vmem [thread:$0]  (!%p3184_p9), %s3761_s8, 16, %s364_s23, [#allocation17]  }
  0x86   : > { %s3786_s5 = sld [smem:[#allocation34_spill]] }
  0x8c   : > { %s2778_s15 = scalar_lea.hbm %s3786_s5, 256 }
  0x8d   : > { %p2779_p2 = scmp.ne.s32.totalorder %s3786_s5, %s2778_s15  ;;  %p2785_p6 = scmp.lt.u32.totalorder %s2778_s15, %s3786_s5 }
  0x8f   : > { %p2781_p3 = pnand %p2779_p2, %p3200_p11 }
  0x91   : > { %p2782_p4 = pneg %p2781_p3 }
  0x93   : > { %p2787_p5 = pnand %p2785_p6, %p2782_p4 }
  0x95   : > { %2790 = shalt.err (!%p2787_p5)
}
  0x96   : > { %s2791_s19 = scalar_lea.vmem %s326_s26, 256  ;;  %p2799_p7 = scmp.lt.s32.totalorder %s326_s26, %s326_s26 }
  0x97   : > { %p2792_p8 = scmp.ne.s32.totalorder %s326_s26, %s2791_s19  ;;  %p2800_p13 = scmp.lt.s32.totalorder %s2791_s19, %s2791_s19 }
  0x99   : > { %p2794_p10 = pnand %p2792_p8, %p3200_p11  ;;  %p2801_p0 = por %p2800_p13, %p2799_p7 }
  0x9b   : > { %p2795_p12 = pneg %p2794_p10 }
  0x9d   : > { %p2802_p1 = pnand %p2801_p0, %p2795_p12 }
  0x9f   : > { %2805 = shalt.err (!%p2802_p1)
}
  0xa0   : > { %s3787_s23 = smov 64   ;;  %s3052_s24 = smov [#allocation15]  }
  0xa1   : > { %2509 = dma.hbm_to_vmem [thread:$0]  (!%p3184_p9), %s3786_s5, 256, %s326_s26, [#allocation11], %s3787_s23, %s3787_s23, %s3049_s20  }
  0xa2   : > { %s349_s18 = sshll.u32 %s3052_s24, 4  ;;  %s3053_s30 = smov [#allocation18]   ;;  %s350_s18 = int_to_ptr.vmem [resolvable:$true] %s349_s18 }
  0xa3   : > { %s374_s15 = sshll.u32 %s3053_s30, 4  ;;  %s3788_s7 = sld [smem:[#allocation36_spill]]  ;;  %s375_s15 = int_to_ptr.vmem [resolvable:$true] %s374_s15 }
  0xa9   : > { %s2806_s21 = scalar_lea.hbm %s3788_s7, 256 }
  0xaa   : > { %p2807_p2 = scmp.ne.s32.totalorder %s3788_s7, %s2806_s21  ;;  %p2813_p6 = scmp.lt.u32.totalorder %s2806_s21, %s3788_s7 }
  0xac   : > { %p2809_p3 = pnand %p2807_p2, %p3200_p11 }
  0xae   : > { %p2810_p4 = pneg %p2809_p3 }
  0xb0   : > { %p2815_p5 = pnand %p2813_p6, %p2810_p4 }
  0xb2   : > { %2818 = shalt.err (!%p2815_p5)
}
  0xb3   : > { %s2819_s26 = scalar_lea.vmem %s350_s18, 256  ;;  %p2827_p7 = scmp.lt.s32.totalorder %s350_s18, %s350_s18 }
  0xb4   : > { %p2820_p8 = scmp.ne.s32.totalorder %s350_s18, %s2819_s26  ;;  %p2828_p13 = scmp.lt.s32.totalorder %s2819_s26, %s2819_s26 }
  0xb6   : > { %p2822_p10 = pnand %p2820_p8, %p3200_p11  ;;  %p2829_p0 = por %p2828_p13, %p2827_p7 }
  0xb8   : > { %p2823_p12 = pneg %p2822_p10 }
  0xba   : > { %p2830_p1 = pnand %p2829_p0, %p2823_p12 }
  0xbc   : > { %2833 = shalt.err (!%p2830_p1)
}
  0xbd   : > { %2515 = dma.hbm_to_vmem [thread:$0]  (!%p3184_p9), %s3788_s7, 256, %s350_s18, [#allocation14], %s3787_s23, %s3787_s23, %s3049_s20  }
  0xbe   : > { %s2834_s12 = scalar_lea.hbm %s3762_s9, 16 }
  0xbf   : > { %p2835_p2 = scmp.ne.s32.totalorder %s3762_s9, %s2834_s12  ;;  %p2841_p6 = scmp.lt.u32.totalorder %s2834_s12, %s3762_s9 }
  0xc1   : > { %p2837_p3 = pnand %p2835_p2, %p3200_p11 }
  0xc3   : > { %p2838_p4 = pneg %p2837_p3 }
  0xc5   : > { %p2843_p5 = pnand %p2841_p6, %p2838_p4 }
  0xc7   : > { %2846 = shalt.err (!%p2843_p5)
}
  0xc8   : > { %s2847_s14 = scalar_lea.vmem %s375_s15, 16  ;;  %s2854_s20 = scalar_lea.vmem %s375_s15, 32 }
  0xc9   : > { %p2848_p8 = scmp.ne.s32.totalorder %s375_s15, %s2847_s14  ;;  %p2855_p7 = scmp.lt.s32.totalorder %s375_s15, %s375_s15 }
  0xca   : > { %p2856_p13 = scmp.lt.s32.totalorder %s2854_s20, %s2847_s14 }
  0xcb   : > { %p2850_p10 = pnand %p2848_p8, %p3200_p11 }
  0xcc   : > { %p2857_p0 = por %p2856_p13, %p2855_p7 }
  0xcd   : > { %p2851_p12 = pneg %p2850_p10 }
  0xcf   : > { %p2858_p1 = pnand %p2857_p0, %p2851_p12 }
  0xd1   : > { %2861 = shalt.err (!%p2858_p1)
}
  0xd2   : > { %2521 = dma.hbm_to_vmem [thread:$0]  (!%p3184_p9), %s3762_s9, 16, %s375_s15, [#allocation17]  }
  0xd3   : > { %s3054_s26 = smov [#allocation19]   ;;  %s2862_s30 = scalar_lea.hbm %s3763_s10, 16 }
  0xd4   : > { %s385_s3 = sshll.u32 %s3054_s26, 4  ;;  %p2863_p2 = scmp.ne.s32.totalorder %s3763_s10, %s2862_s30  ;;  %s386_s3 = int_to_ptr.vmem [resolvable:$true] %s385_s3 }
  0xd5   : > { %p2869_p6 = scmp.lt.u32.totalorder %s2862_s30, %s3763_s10 }
  0xd6   : > { %p2865_p3 = pnand %p2863_p2, %p3200_p11 }
  0xd8   : > { %p2866_p4 = pneg %p2865_p3 }
  0xda   : > { %p2871_p5 = pnand %p2869_p6, %p2866_p4 }
  0xdc   : > { %2874 = shalt.err (!%p2871_p5)
}
  0xdd   : > { %s2875_s15 = scalar_lea.vmem %s386_s3, 16  ;;  %s2882_s19 = scalar_lea.vmem %s386_s3, 32 }
  0xde   : > { %p2876_p8 = scmp.ne.s32.totalorder %s386_s3, %s2875_s15  ;;  %p2883_p7 = scmp.lt.s32.totalorder %s386_s3, %s386_s3 }
  0xdf   : > { %p2884_p13 = scmp.lt.s32.totalorder %s2882_s19, %s2875_s15 }
  0xe0   : > { %p2878_p10 = pnand %p2876_p8, %p3200_p11 }
  0xe1   : > { %p2885_p0 = por %p2884_p13, %p2883_p7 }
  0xe2   : > { %p2879_p12 = pneg %p2878_p10 }
  0xe4   : > { %p2886_p1 = pnand %p2885_p0, %p2879_p12 }
  0xe6   : > { %2889 = shalt.err (!%p2886_p1)
}
  0xe7   : > { %2524 = dma.hbm_to_vmem [thread:$0]  (!%p3184_p9), %s3763_s10, 16, %s386_s3, [#allocation20]  }
  0xe8   : > { %s2178_s25 = sadd.s32 4294967294, %s3042_s0   ;;  %s3370_s17 = sadd.s32 1, %s3042_s0  }
  0xe9   : > { %s42_s23 = ssub.s32 %s3042_s0, %s3370_s17  ;;  %s45_s18 = sadd.s32 1, %s3038_s29 }
  0xea   : > { %p43_p11 = scmp.eq.s32.totalorder %s42_s23, 0  ;;  %p52_p2 = scmp.ne.s32.totalorder %s3038_s29, %s3034_s28 }
  0xeb   : > { %p53_p3 = scmp.eq.s32.totalorder %s3042_s0, 0  ;;  %p58_p4 = scmp.ne.s32.totalorder %s3034_s28, %s3030_s27 }
  0xec   : > { %s3381_s26 = scalar_select %p43_p11, %s3038_s29, %s45_s18  }
  0xed   : > { %p3383_p6 = por %p53_p3, %p52_p2  ;;  %p3790_p5 = scmp.eq.s32.totalorder %s3168_s13, 0 }
  0xee   : > { %p276_p8 = scmp.eq.s32.totalorder %s3168_s13, 1  ;;  %p282_p10 = scmp.eq.s32.totalorder %s2178_s25, 1 }
  0xef   : > { %p3389_p9 = por %p3790_p5, %p58_p4  ;;  %p2544_p12 = scmp.lt.s32.totalorder %s3042_s0, 2 }
  0xf0   : > { %s396_s24 = sand.u32 1, %s3038_s29   ;;  %p3396_p7 = por %p276_p8, %p52_p2 }
  0xf1   : > { %s3791_s3 = scalar_select %p3389_p9, 1, 0 }
  0xf2   : > { %s3792_s30 = scalar_select %p3396_p7, 1, 0 }
  0xf3   : > { %p3400_p13 = por %p282_p10, %p58_p4  ;;  %s3404_s16 = sshll.u32 %s396_s24, 2 }
  0xf4   : > { %s2190_s21 = sshll.u32 %s3042_s0, 6  ;;  %s400_s14 = scalar_lea.vmem [#allocation4], %s3404_s16 }
  0xf5   : > { %s3793_s12 = scalar_select %p3400_p13, 1, 0 }
  0xf6   : > { %s3410_s19 = scalar_lea.hbm %s3754_s1, %s2190_s21  ;;  %s407_s20 = sshll.u32 %s400_s14, 4  ;;  %s3413_s20 = int_to_ptr.vmem [resolvable:$true] %s407_s20 }
  0xf7   : > { %p3417_p0 = pnand %p2544_p12, %p3383_p6  ;;  %s3424_s11 = scalar_lea.hbm %s3755_s2, %s2190_s21 }
  0xf8   : > { %s414_s15 = sand.u32 1, %s3042_s0   ;;  %s397_s4 = scalar_lea.sflag [#allocation5], %s396_s24 }
  0xf9   : > { %s2890_s5 = scalar_lea.hbm %s3410_s19, 64  ;;  %p2892_p11 = pneg %p3417_p0 }
  0xfa   : > { %p2891_p1 = scmp.ne.s32.totalorder %s3410_s19, %s2890_s5  ;;  %s2895_s6 = scalar_lea.hbm %s3754_s1, 128 }
  0xfb   : > { %p2896_p4 = scmp.lt.u32.totalorder %s3410_s19, %s3754_s1  ;;  %p2897_p6 = scmp.lt.u32.totalorder %s2895_s6, %s2890_s5 }
  0xfc   : > { %p2893_p2 = pnand %p2892_p11, %p2891_p1  ;;  %p2899_p8 = scmp.lt.u32.totalorder %s2890_s5, %s3410_s19 }
  0xfd   : > { %p2898_p5 = por %p2897_p6, %p2896_p4 }
  0xfe   : > { %p2894_p3 = pneg %p2893_p2 }
  0xff   : > { %p2900_p10 = por %p2899_p8, %p2898_p5 }
 0x101   : > { %p2901_p12 = pnand %p2900_p10, %p2894_p3 }
 0x103   : > { %2904 = shalt.err (!%p2901_p12)
}
 0x104   : > { %s2905_s24 = scalar_lea.vmem %s3413_s20, 64  ;;  %s3055_s21 = smov [#allocation4]  }
 0x105   : > { %p2906_p1 = scmp.ne.s32.totalorder %s3413_s20, %s2905_s24  ;;  %s2910_s18 = sshll.u32 %s3055_s21, 4  ;;  %s2911_s18 = int_to_ptr.vmem [resolvable:$false] %s2910_s18 }
 0x106   : > { %s2912_s7 = scalar_lea.vmem %s2911_s18, 128  ;;  %p2913_p7 = scmp.lt.s32.totalorder %s3413_s20, %s2911_s18 }
 0x107   : > { %p2908_p2 = pnand %p2906_p1, %p2892_p11  ;;  %p2914_p4 = scmp.lt.s32.totalorder %s2912_s7, %s2905_s24 }
 0x109   : > { %p2909_p13 = pneg %p2908_p2  ;;  %p2915_p6 = por %p2914_p4, %p2913_p7 }
 0x10b   : > { %p2916_p5 = pnand %p2915_p6, %p2909_p13 }
 0x10d   : > { %2919 = shalt.err (!%p2916_p5)
}
 0x10e   : > { %2528 = dma.hbm_to_vmem [thread:$0]  (!%p3417_p0), %s3410_s19, 64, %s3413_s20, %s397_s4  }
 0x10f   : > { %s418_s5 = scalar_lea.vmem [#allocation7], %s3404_s16  ;;  %s415_s22 = scalar_lea.sflag [#allocation8], %s414_s15 }
 0x110   : > { %s425_s6 = sshll.u32 %s418_s5, 4  ;;  %s2920_s14 = scalar_lea.hbm %s3424_s11, 64  ;;  %s426_s6 = int_to_ptr.vmem [resolvable:$true] %s425_s6 }
 0x111   : > { %p2921_p7 = scmp.ne.s32.totalorder %s3424_s11, %s2920_s14  ;;  %s2925_s21 = scalar_lea.hbm %s3755_s2, 128 }
 0x112   : > { %p2926_p8 = scmp.lt.u32.totalorder %s3424_s11, %s3755_s2  ;;  %p2927_p10 = scmp.lt.u32.totalorder %s2925_s21, %s2920_s14 }
 0x113   : > { %p2923_p13 = pnand %p2921_p7, %p2892_p11  ;;  %p2929_p1 = scmp.lt.u32.totalorder %s2920_s14, %s3424_s11 }
 0x114   : > { %p2928_p12 = por %p2927_p10, %p2926_p8 }
 0x115   : > { %p2924_p3 = pneg %p2923_p13 }
 0x116   : > { %p2930_p2 = por %p2929_p1, %p2928_p12 }
 0x118   : > { %p2931_p4 = pnand %p2930_p2, %p2924_p3 }
 0x11a   : > { %2934 = shalt.err (!%p2931_p4)
}
 0x11b   : > { %s2935_s4 = scalar_lea.vmem %s426_s6, 64  ;;  %s3056_s16 = smov [#allocation7]  }
 0x11c   : > { %p2936_p6 = scmp.ne.s32.totalorder %s426_s6, %s2935_s4  ;;  %s2940_s19 = sshll.u32 %s3056_s16, 4  ;;  %s2941_s19 = int_to_ptr.vmem [resolvable:$false] %s2940_s19 }
 0x11d   : > { %s2942_s20 = scalar_lea.vmem %s2941_s19, 128  ;;  %p2943_p13 = scmp.lt.s32.totalorder %s426_s6, %s2941_s19 }
 0x11e   : > { %p2938_p5 = pnand %p2936_p6, %p2892_p11  ;;  %p2944_p9 = scmp.lt.s32.totalorder %s2942_s20, %s2935_s4 }
 0x120   : > { %p2939_p7 = pneg %p2938_p5  ;;  %p2945_p8 = por %p2944_p9, %p2943_p13 }
 0x122   : > { %p2946_p10 = pnand %p2945_p8, %p2939_p7 }
 0x124   : > { %2949 = shalt.err (!%p2946_p10)
}
 0x125   : > { %2531 = dma.hbm_to_vmem [thread:$0]  (!%p3417_p0), %s3424_s11, 64, %s426_s6, %s415_s22  }
 0x126   : > { %s3795_s15 = sld [smem:[#allocation31_spill]] }
 0x12c   : > { %p3796_p3 = scmp.ne.s32.totalorder %s3795_s15, 0 }
 0x12d   : > { %s3477_s5 = sand.u32 (!%p3796_p3), 1, %s3034_s28   ;;  %p3797_p9 = scmp.ne.s32.totalorder (!%p3796_p3), %s3791_s3, 0 }
 0x12e   : > { %434 = sbr.rel (%p3796_p3) target bundleno = 4355 (0x1103), region = 60  ;;  %s3480_s14 = sshll.u32 (!%p3796_p3), %s3477_s5, 2 }
 0x12f   : > { %s437_s23 = scalar_lea.sflag (!%p3796_p3), [#allocation5], %s3477_s5  ;;  %s440_s24 = scalar_lea.vmem (!%p3796_p3), [#allocation4], %s3480_s14 }
 0x135   : > { %2997 = dma.done.wait (%p3797_p9), %s437_s23, 64  }
 0x136   : > { %2999 = vsyncadd (%p3797_p9), %s437_s23, 4294967232  ;;  %s445_s25 = sand.u32 1, %s3168_s13   ;;  %s449_s6 = scalar_lea.vmem [#allocation7], %s3480_s14 }
 0x137   : > { %s446_s11 = scalar_lea.sflag [#allocation8], %s445_s25 }
 0x138   : > { %3001 = dma.done.wait (%p3797_p9), %s446_s11, 64  }
 0x139   : > { %3003 = vsyncadd (%p3797_p9), %s446_s11, 4294967232  ;;  %p3798_p0 = scmp.eq.s32.totalorder %s3168_s13, 0 }
 0x13b   : > { %3005 = dma.done.wait (%p3798_p0), [#allocation8], 256   ;;  %p3799_p11 = pmov %p3798_p0 }
 0x13c   : > { %p3800_p12 = pmov %p3798_p0 }
 0x13d   : > { %3007 = vsyncadd (%p3799_p11), [#allocation8], 4294967040 }
 0x13e   : > { %3009 = dma.done.wait (%p3800_p12), [#allocation11], 272   ;;  %p3801_p1 = pmov %p3798_p0 }
 0x13f   : > { %p3802_p2 = pmov %p3798_p0 }
 0x140   : > { %3011 = vsyncadd (%p3801_p1), [#allocation11], 4294967024 }
 0x141   : > { %3013 = dma.done.wait (%p3802_p2), [#allocation14], 272   ;;  %p3803_p4 = pmov %p3798_p0 }
 0x142   : > { %p3804_p6 = pmov %p3798_p0 }
 0x143   : > { %3015 = vsyncadd (%p3803_p4), [#allocation14], 4294967024 }
 0x144   : > { %3017 = dma.done.wait (%p3804_p6), [#allocation17], 32   ;;  %p3805_p5 = pmov %p3798_p0 }
 0x145   : > { %p3806_p7 = pmov %p3798_p0 }
 0x146   : > { %3019 = vsyncadd (%p3805_p5), [#allocation17], 4294967264 }
 0x147   : > { %3021 = dma.done.wait (%p3806_p7), [#allocation20], 16   ;;  %p3807_p13 = pmov %p3798_p0 }
 0x148   : > { %v3057_v0 = vmov 0.0   ;;  %vm3058_vm0 = vmmov 0   ;;  %v2614_v1 = vld [vmem:[#allocation12] sm:$0xff]   ;;  %v2615_v2 = vld [vmem:[#allocation9] sm:$0xff]   ;;  %v2617_v4 = vld [vmem:[#allocation9 + $0x8] sm:$0xff]   ;;  %vm549_vm1 = vcmask 261120  }
 0x149   : > { %3023 = vsyncadd (%p3807_p13), [#allocation20], 4294967280  ;;  %2310 = vmatprep.subr.bf16.mxu1 %v3057_v0  ;;  %2302 = vmatprep.subr.bf16.mxu0 %v3057_v0  ;;  %v2616_v3 = vld [vmem:[#allocation12 + $0x8] sm:$0xff]   ;;  %v3524_v6 = vld [vmem:[%s440_s24] sm:$0xf]  ;;  %vm671_vm2 = vcmask 31744  }
 0x14a   : > { %2314 = vmatprep.mubr.msk.bf16.mxu1 %vm3058_vm0, %v3057_v0  ;;  %2306 = vmatprep.mubr.msk.bf16.mxu0 %vm3058_vm0, %v3057_v0  ;;  %v593_v5 = vld [vmem:[%s449_s6] sm:$0xf]  ;;  %v2209_v7 = vld [vmem:[#allocation13] ss:$0 sm:$0xff]  ;;  %v2205_v8 = vld [vmem:[#allocation10] ss:$0 sm:$0xff] }
 0x14b   : > { %2311 = vmatpush3.bf16.msra.mxu1 %v2614_v1  ;;  %2303 = vmatpush3.bf16.msra.mxu0 %v2615_v2  ;;  %s3059_s3 = smov 124   ;;  %vm718_vm3 = vcmask 64512   ;;  %s3060_s22 = smov 96   ;;  %vm735_vm4 = vcmask 1043456   ;;  %v782_v39 = vld [vmem:[#allocation15] sm:$0x3] }
 0x14c   : > { %2312 = vmatprep.subr.bf16.mxu1 %v3057_v0  ;;  %2304 = vmatprep.subr.bf16.mxu0 %v3057_v0  ;;  %s3061_s21 = smov 92   ;;  %s3062_s18 = smov 120   ;;  %vm786_vm5 = vcmask 1041408   ;;  %vm1993_vm6 = vcmask 257024  }
 0x14d   : > { %v788_v40 = vsel %vm786_vm5, %v782_v39, 0  ;;  %s3063_s7 = smov 88   ;;  %s3064_s4 = smov 116  }
 0x14e   : > { %s3065_s16 = smov 84   ;;  %s3066_s19 = smov 112  }
 0x14f   : > { %2313 = vmatpush3.bf16.msra.mxu1 %v2616_v3  ;;  %2305 = vmatpush3.bf16.msra.mxu0 %v2617_v4  ;;  %s3067_s20 = smov 80   ;;  %s3068_s15 = smov 108  }
 0x150   : > { %2324 = vmatprep.subr.bf16.mxu1 %v3057_v0  ;;  %2318 = vmatprep.subr.bf16.mxu0 %v3057_v0  ;;  %s3069_s23 = smov 104   ;;  %s3070_s24 = smov 76  }
 0x151   : > { %s3071_s25 = smov 72   ;;  %s3072_s11 = smov 100  }
 0x152   : > { %2315 = vmatmul.mubr.msk.bf16.vlgmr.msra.gmra.mrb[0].mxu1 %vm549_vm1, %v593_v5  ;;  %2307 = vmatmul.mubr.msk.bf16.vlgmr.msra.gmra.mrb[0].mxu0 %vm549_vm1, %v3524_v6  ;;  %s3073_s6 = smov 68   ;;  %p3809_p10 = scmp.ne.s32.totalorder %s3792_s30, 0 }
 0x153   : > { %2326 = vmatprep.mubr.msk.bf16.mxu1 %vm3058_vm0, %v3057_v0  ;;  %2320 = vmatprep.mubr.msk.bf16.mxu0 %vm3058_vm0, %v3057_v0 }
 0x225   : > { %v654_v9 = vpop.f32.mrb[0].mxu1  ;;  %v587_v12 = vpop.f32.mrb[0].mxu0 }
 0x226   : > { %v655_v10 = vadd.f32 %v2209_v7, %v654_v9  ;;  %v2316_v11 = vpop.f32.mrb[1].mxu1  ;;  %v588_v14 = vadd.f32 %v2205_v8, %v587_v12  ;;  %v2308_v15 = vpop.f32.mrb[1].mxu0  ;;  %v2618_v7 = vld [vmem:[#allocation15] ss:$0 sps:$4 sm:$0xcc]  }
 0x227   : > { %v657_v13 = vpop.f32.mrb[2].mxu1  ;;  %v590_v18 = vpop.f32.mrb[2].mxu0  ;;  %v947_v8 = vrot.slane %v2618_v7, 2 }
 0x228   : > { %v3535_v16 = vpack.c.bf16 %v655_v10, %v655_v10  ;;  %v2317_v17 = vpop.f32.mrb[3].mxu1  ;;  %v668_v19 = vmul.f32 0.5, %v588_v14  ;;  %v2309_v20 = vpop.f32.mrb[3].mxu0 }
 0x229   : > { %v952_v9 = vsel %vm786_vm5, %v947_v8, 0 }
 0x22a   : > { %834 = vrot.lane.b32.xlu1 %v3535_v16, %s3059_s3  ;;  %v676_v21 = vsel %vm671_vm2, %v3535_v16, 0  ;;  %v3540_v22 = vpack.c.bf16 %v668_v19, %v668_v19 }
 0x22b   : > { %2319 = vmatpush3.bf16.xpose.msra.mxu0 %v676_v21 }
 0x22c   : > { %2330 = vmatprep.subr.bf16.mxu0 %v3057_v0 }
 0x22e   : > { %832 = vrot.lane.b32.xlu1 %v3540_v22, %s3059_s3  ;;  %s2245_s3 = sshll.u32 %s3168_s13, 6  ;;  %s3074_s13 = smov [#allocation21]  }
 0x232   : > { %2321 = vmatmul.mubr.msk.bf16.vlgmr.msra.gmra.mrb[4].mxu0 %vm671_vm2, %v3540_v22 }
 0x233   : > { %2332 = vmatprep.mubr.msk.bf16.mxu0 %vm3058_vm0, %v3057_v0  ;;  %2331 = vmatpush3.bf16.msra.mxu0 %v788_v40 }
 0x234   : > { %2342 = vmatprep.subr.bf16.mxu0 %v3057_v0 }
 0x29c   : > { %v835_v34 = vpop.permute.xlu1 %834 }
 0x29d   : > { %v840_v37 = vsel %vm671_vm2, %v835_v34, 0 }
 0x2a0   : > { %v833_v38 = vpop.permute.xlu1 %832 }
 0x305   : > { %v712_v23 = vpop.f32.mrb[4].mxu0 }
 0x306   : > { %v2322_v24 = vpop.f32.mrb[5].mxu0  ;;  %v719_v25 = vsel %vm718_vm3, %v712_v23, -inf }
 0x307   : > { %720 = vmax.xlane.f32.xlu0 %v719_v25  ;;  %v715_v26 = vpop.f32.mrb[6].mxu0 }
 0x308   : > { %v2323_v27 = vpop.f32.mrb[7].mxu0 }
 0x31d   : > { %730 = vrot.lane.b32.xlu0 %v3535_v16, %s3060_s22  ;;  %s522_s22 = scalar_lea.vmem [#allocation21], %s3480_s14  ;;  %s2954_s14 = sshll.u32 %s3074_s13, 4  ;;  %s2955_s14 = int_to_ptr.vmem [resolvable:$false] %s2954_s14 }
 0x394   : > { %v721_v28 = vpop.xlane.xlu0 %720 }
 0x395   : > { %v722_v29 = vsub.f32 %v712_v23, %v721_v28 }
 0x397   : > { %v723_v30 = vmul.f32 1.442695, %v722_v29 }
 0x398   : > { %v731_v31 = vpop.permute.xlu0 %730 }
 0x399   : > { %2622 = vpow2.f32 %v723_v30  ;;  %v737_v32 = vsel %vm735_vm4, %v731_v31, 0 }
 0x39a   : > { %2325 = vmatpush3.bf16.msra.mxu1 %v737_v32 }
 0x39b   : > { %2336 = vmatprep.subr.bf16.mxu1 %v3057_v0 }
 0x3a3   : > { %v2623_v33 = vpop.eup %2622 }
 0x3a4   : > { %v725_v35 = vsel %vm718_vm3, %v2623_v33, 0.0  ;;  %v728_v36 = vpack.c.bf16 %v2623_v33, %v2623_v33 }
 0x3a5   : > { %726 = vadd.xlane.f32.xlu1 %v725_v35 }
 0x3a6   : > { %2327 = vmatmul.mubr.msk.bf16.vlgmr.msra.gmra.mrb[4].mxu1 %vm718_vm3, %v728_v36  ;;  %v2213_v36 = vld [vmem:[#allocation16] ss:$0 sm:$0xff] }
 0x3a7   : > { %2337 = vmatpush3.bf16.xpose.msra.mxu1 %v840_v37  ;;  %2338 = vmatprep.mubr.msk.bf16.mxu1 %vm3058_vm0, %v3057_v0 }
 0x3a8   : > { %2348 = vmatprep.subr.bf16.mxu1 %v3057_v0 }
 0x3ae   : > { %2339 = vmatmul.mubr.msk.bf16.vlgmr.msra.gmra.mrb[8].mxu1 %vm671_vm2, %v833_v38 }
 0x3af   : > { %2350 = vmatprep.mubr.msk.bf16.mxu1 %vm3058_vm0, %v3057_v0  ;;  %2349 = vmatpush3.bf16.msra.mxu1 %v952_v9 }
 0x3b0   : > { %2360 = vmatprep.subr.bf16.mxu1 %v3057_v0 }
 0x3b6   : > { %892 = vrot.lane.b32.xlu1 %v3535_v16, %s3061_s21  ;;  %s2009_s21 = sshll.u32 %s522_s22, 4  ;;  %s3711_s21 = int_to_ptr.vmem [resolvable:$true] %s2009_s21 }
 0x3b7   : > { %p2957_p0 = scmp.lt.s32.totalorder %s3711_s21, %s2955_s14 }
 0x3ba   : > { %995 = vrot.lane.b32.xlu1 %v3540_v22, %s3062_s18 }
 0x432   : > { %v727_v41 = vpop.xlane.xlu1 %726 }
 0x433   : > { %2624 = vrcp.f32 %v727_v41 }
 0x436   : > { %v893_v46 = vpop.permute.xlu1 %892 }
 0x437   : > { %v898_v50 = vsel %vm735_vm4, %v893_v46, 0 }
 0x43a   : > { %v996_v1 = vpop.permute.xlu1 %995 }
 0x43d   : > { %v2625_v42 = vpop.eup %2624 }
 0x479   : > { %v773_v43 = vpop.f32.mrb[4].mxu1 }
 0x47a   : > { %v780_v44 = vmul.f32 %v2625_v42, %v773_v43  ;;  %v2328_v45 = vpop.f32.mrb[5].mxu1  ;;  %v1106_v43 = vld [vmem:[#allocation15 + $0x4] sm:$0x3] }
 0x47b   : > { %v776_v47 = vpop.f32.mrb[6].mxu1 }
 0x47c   : > { %v781_v48 = vpack.c.bf16 %v780_v44, %v780_v44  ;;  %v2329_v49 = vpop.f32.mrb[7].mxu1  ;;  %v1111_v44 = vsel %vm786_vm5, %v1106_v43, 0 }
 0x47e   : > { %2333 = vmatmul.mubr.msk.bf16.vlgmr.msra.gmra.mrb[8].mxu0 %vm671_vm2, %v781_v48 }
 0x47f   : > { %2343 = vmatpush3.bf16.msra.mxu0 %v898_v50  ;;  %2344 = vmatprep.mubr.msk.bf16.mxu0 %vm3058_vm0, %v3057_v0 }
 0x480   : > { %2354 = vmatprep.subr.bf16.mxu0 %v3057_v0 }
 0x481   : > { %v876_v51 = vpop.f32.mrb[8].mxu1 }
 0x482   : > { %v2340_v52 = vpop.f32.mrb[9].mxu1  ;;  %v882_v53 = vsel %vm718_vm3, %v876_v51, -inf }
 0x483   : > { %883 = vmax.xlane.f32.xlu0 %v882_v53  ;;  %v879_v54 = vpop.f32.mrb[10].mxu1 }
 0x484   : > { %v2341_v55 = vpop.f32.mrb[11].mxu1 }
 0x499   : > { %997 = vrot.lane.b32.xlu0 %v3535_v16, %s3062_s18 }
 0x510   : > { %v884_v56 = vpop.xlane.xlu0 %883 }
 0x511   : > { %v885_v57 = vsub.f32 %v876_v51, %v884_v56 }
 0x513   : > { %v886_v58 = vmul.f32 1.442695, %v885_v57 }
 0x514   : > { %v998_v60 = vpop.permute.xlu0 %997 }
 0x515   : > { %2626 = vpow2.f32 %v886_v58  ;;  %v1003_v63 = vsel %vm671_vm2, %v998_v60, 0 }
 0x51f   : > { %v2627_v59 = vpop.eup %2626 }
 0x520   : > { %v888_v61 = vsel %vm718_vm3, %v2627_v59, 0.0  ;;  %v891_v62 = vpack.c.bf16 %v2627_v59, %v2627_v59 }
 0x521   : > { %889 = vadd.xlane.f32.xlu1 %v888_v61 }
 0x522   : > { %2345 = vmatmul.mubr.msk.bf16.vlgmr.msra.gmra.mrb[12].mxu0 %vm718_vm3, %v891_v62 }
 0x523   : > { %2355 = vmatpush3.bf16.xpose.msra.mxu0 %v1003_v63  ;;  %2356 = vmatprep.mubr.msk.bf16.mxu0 %vm3058_vm0, %v3057_v0 }
 0x524   : > { %2366 = vmatprep.subr.bf16.mxu0 %v3057_v0 }
 0x52a   : > { %2357 = vmatmul.mubr.msk.bf16.vlgmr.msra.gmra.mrb[16].mxu0 %vm671_vm2, %v996_v1 }
 0x52b   : > { %2368 = vmatprep.mubr.msk.bf16.mxu0 %vm3058_vm0, %v3057_v0  ;;  %2367 = vmatpush3.bf16.msra.mxu0 %v1111_v44 }
 0x52c   : > { %2378 = vmatprep.subr.bf16.mxu0 %v3057_v0 }
 0x532   : > { %1055 = vrot.lane.b32.xlu1 %v3535_v16, %s3063_s7 }
 0x536   : > { %1154 = vrot.lane.b32.xlu1 %v3540_v22, %s3064_s4 }
 0x551   : > { %v824_v2 = vpop.f32.mrb[8].mxu0 }
 0x552   : > { %v2334_v3 = vpop.f32.mrb[9].mxu0  ;;  %v830_v37 = vadd.f32 %v2213_v36, %v824_v2 }
 0x553   : > { %v827_v4 = vpop.f32.mrb[10].mxu0 }
 0x554   : > { %v2335_v5 = vpop.f32.mrb[11].mxu0 }
 0x5ae   : > { %v890_v10 = vpop.xlane.xlu1 %889 }
 0x5af   : > { %2628 = vrcp.f32 %v890_v10 }
 0x5b2   : > { %v1056_v15 = vpop.permute.xlu1 %1055 }
 0x5b3   : > { %v1061_v20 = vsel %vm735_vm4, %v1056_v15, 0 }
 0x5b6   : > { %v1155_v35 = vpop.permute.xlu1 %1154 }
 0x5b9   : > { %v2629_v11 = vpop.eup %2628 }
 0x5f5   : > { %v934_v12 = vpop.f32.mrb[12].mxu0 }
 0x5f6   : > { %v941_v13 = vmul.f32 %v2629_v11, %v934_v12  ;;  %v2346_v14 = vpop.f32.mrb[13].mxu0  ;;  %v2619_v12 = vld [vmem:[#allocation15 + $0x4] ss:$0 sps:$4 sm:$0xcc]  }
 0x5f7   : > { %v937_v17 = vpop.f32.mrb[14].mxu0 }
 0x5f8   : > { %v942_v18 = vpack.c.bf16 %v941_v13, %v941_v13  ;;  %v2347_v19 = vpop.f32.mrb[15].mxu0  ;;  %v1269_v13 = vrot.slane %v2619_v12, 2 }
 0x5fa   : > { %2351 = vmatmul.mubr.msk.bf16.vlgmr.msra.gmra.mrb[12].mxu1 %vm671_vm2, %v942_v18  ;;  %v1274_v14 = vsel %vm786_vm5, %v1269_v13, 0 }
 0x5fb   : > { %2361 = vmatpush3.bf16.msra.mxu1 %v1061_v20  ;;  %2362 = vmatprep.mubr.msk.bf16.mxu1 %vm3058_vm0, %v3057_v0 }
 0x5fc   : > { %2372 = vmatprep.subr.bf16.mxu1 %v3057_v0 }
 0x5fd   : > { %v1039_v21 = vpop.f32.mrb[16].mxu0 }
 0x5fe   : > { %v2358_v23 = vpop.f32.mrb[17].mxu0  ;;  %v1045_v24 = vsel %vm718_vm3, %v1039_v21, -inf }
 0x5ff   : > { %1046 = vmax.xlane.f32.xlu0 %v1045_v24  ;;  %v1042_v25 = vpop.f32.mrb[18].mxu0 }
 0x600   : > { %v2359_v26 = vpop.f32.mrb[19].mxu0 }
 0x615   : > { %1156 = vrot.lane.b32.xlu0 %v3535_v16, %s3064_s4  ;;  %s3808_s4 = sld [smem:[#allocation37_spill]] }
 0x68c   : > { %v1047_v27 = vpop.xlane.xlu0 %1046 }
 0x68d   : > { %v1048_v28 = vsub.f32 %v1039_v21, %v1047_v27 }
 0x68f   : > { %v1049_v29 = vmul.f32 1.442695, %v1048_v28 }
 0x690   : > { %v1157_v31 = vpop.permute.xlu0 %1156 }
 0x691   : > { %2630 = vpow2.f32 %v1049_v29  ;;  %v1162_v34 = vsel %vm671_vm2, %v1157_v31, 0 }
 0x69b   : > { %v2631_v30 = vpop.eup %2630 }
 0x69c   : > { %v1051_v32 = vsel %vm718_vm3, %v2631_v30, 0.0  ;;  %v1054_v33 = vpack.c.bf16 %v2631_v30, %v2631_v30 }
 0x69d   : > { %1052 = vadd.xlane.f32.xlu1 %v1051_v32 }
 0x69e   : > { %2363 = vmatmul.mubr.msk.bf16.vlgmr.msra.gmra.mrb[16].mxu1 %vm718_vm3, %v1054_v33 }
 0x69f   : > { %2373 = vmatpush3.bf16.xpose.msra.mxu1 %v1162_v34  ;;  %2374 = vmatprep.mubr.msk.bf16.mxu1 %vm3058_vm0, %v3057_v0 }
 0x6a0   : > { %2384 = vmatprep.subr.bf16.mxu1 %v3057_v0 }
 0x6a6   : > { %2375 = vmatmul.mubr.msk.bf16.vlgmr.msra.gmra.mrb[20].mxu1 %vm671_vm2, %v1155_v35 }
 0x6a7   : > { %2386 = vmatprep.mubr.msk.bf16.mxu1 %vm3058_vm0, %v3057_v0  ;;  %2385 = vmatpush3.bf16.msra.mxu1 %v1274_v14 }
 0x6a8   : > { %2396 = vmatprep.subr.bf16.mxu1 %v3057_v0 }
 0x6ae   : > { %1214 = vrot.lane.b32.xlu1 %v3535_v16, %s3065_s16  ;;  %s3709_s16 = scalar_lea.hbm %s3808_s4, %s2245_s3 }
 0x6b2   : > { %1317 = vrot.lane.b32.xlu1 %v3540_v22, %s3066_s19 }
 0x6cd   : > { %v988_v38 = vpop.f32.mrb[12].mxu1 }
 0x6ce   : > { %v994_v39 = vadd.f32 %v988_v38, %v830_v37  ;;  %v2352_v40 = vpop.f32.mrb[13].mxu1 }
 0x6cf   : > { %v991_v41 = vpop.f32.mrb[14].mxu1 }
 0x6d0   : > { %v2353_v42 = vpop.f32.mrb[15].mxu1 }
 0x72a   : > { %v1053_v45 = vpop.xlane.xlu1 %1052 }
 0x72b   : > { %2632 = vrcp.f32 %v1053_v45 }
 0x72e   : > { %v1215_v50 = vpop.permute.xlu1 %1214 }
 0x72f   : > { %v1220_v54 = vsel %vm735_vm4, %v1215_v50, 0 }
 0x732   : > { %v1318_v5 = vpop.permute.xlu1 %1317 }
 0x735   : > { %v2633_v46 = vpop.eup %2632 }
 0x771   : > { %v1097_v47 = vpop.f32.mrb[16].mxu1 }
 0x772   : > { %v1104_v48 = vmul.f32 %v2633_v46, %v1097_v47  ;;  %v2364_v49 = vpop.f32.mrb[17].mxu1  ;;  %v1428_v46 = vld [vmem:[#allocation15 + $0x8] sm:$0x3] }
 0x773   : > { %v1100_v51 = vpop.f32.mrb[18].mxu1  ;;  %v1433_v47 = vsel %vm786_vm5, %v1428_v46, 0 }
 0x774   : > { %v1105_v52 = vpack.c.bf16 %v1104_v48, %v1104_v48  ;;  %v2365_v53 = vpop.f32.mrb[19].mxu1 }
 0x776   : > { %2369 = vmatmul.mubr.msk.bf16.vlgmr.msra.gmra.mrb[20].mxu0 %vm671_vm2, %v1105_v52 }
 0x777   : > { %2379 = vmatpush3.bf16.msra.mxu0 %v1220_v54  ;;  %2380 = vmatprep.mubr.msk.bf16.mxu0 %vm3058_vm0, %v3057_v0 }
 0x778   : > { %2390 = vmatprep.subr.bf16.mxu0 %v3057_v0 }
 0x779   : > { %v1198_v55 = vpop.f32.mrb[20].mxu1 }
 0x77a   : > { %v2376_v56 = vpop.f32.mrb[21].mxu1  ;;  %v1204_v57 = vsel %vm718_vm3, %v1198_v55, -inf }
 0x77b   : > { %1205 = vmax.xlane.f32.xlu0 %v1204_v57  ;;  %v1201_v58 = vpop.f32.mrb[22].mxu1 }
 0x77c   : > { %v2377_v59 = vpop.f32.mrb[23].mxu1 }
 0x791   : > { %1319 = vrot.lane.b32.xlu0 %v3535_v16, %s3066_s19  ;;  %s1996_s19 = scalar_lea.sflag [#allocation6], %s3477_s5 }
 0x808   : > { %v1206_v60 = vpop.xlane.xlu0 %1205 }
 0x809   : > { %v1207_v61 = vsub.f32 %v1198_v55, %v1206_v60 }
 0x80b   : > { %v1208_v62 = vmul.f32 1.442695, %v1207_v61 }
 0x80c   : > { %v1320_v1 = vpop.permute.xlu0 %1319 }
 0x80d   : > { %2634 = vpow2.f32 %v1208_v62  ;;  %v1325_v4 = vsel %vm671_vm2, %v1320_v1, 0 }
 0x817   : > { %v2635_v63 = vpop.eup %2634 }
 0x818   : > { %v1210_v2 = vsel %vm718_vm3, %v2635_v63, 0.0  ;;  %v1213_v3 = vpack.c.bf16 %v2635_v63, %v2635_v63 }
 0x819   : > { %1211 = vadd.xlane.f32.xlu1 %v1210_v2 }
 0x81a   : > { %2381 = vmatmul.mubr.msk.bf16.vlgmr.msra.gmra.mrb[24].mxu0 %vm718_vm3, %v1213_v3 }
 0x81b   : > { %2391 = vmatpush3.bf16.xpose.msra.mxu0 %v1325_v4  ;;  %2392 = vmatprep.mubr.msk.bf16.mxu0 %vm3058_vm0, %v3057_v0 }
 0x81c   : > { %2402 = vmatprep.subr.bf16.mxu0 %v3057_v0 }
 0x822   : > { %2393 = vmatmul.mubr.msk.bf16.vlgmr.msra.gmra.mrb[28].mxu0 %vm671_vm2, %v1318_v5 }
 0x823   : > { %2404 = vmatprep.mubr.msk.bf16.mxu0 %vm3058_vm0, %v3057_v0  ;;  %2403 = vmatpush3.bf16.msra.mxu0 %v1433_v47 }
 0x824   : > { %2414 = vmatprep.subr.bf16.mxu0 %v3057_v0 }
 0x82a   : > { %1377 = vrot.lane.b32.xlu1 %v3535_v16, %s3067_s20  ;;  %s2950_s20 = scalar_lea.vmem %s3711_s21, 64 }
 0x82b   : > { %p2951_p8 = scmp.ne.s32.totalorder %s3711_s21, %s2950_s20 }
 0x82d   : > { %p2952_p3 = pnand %p2951_p8, %p3809_p10 }
 0x82e   : > { %1476 = vrot.lane.b32.xlu1 %v3540_v22, %s3068_s15 }
 0x82f   : > { %p2953_p9 = pneg %p2952_p3 }
 0x849   : > { %v1147_v7 = vpop.f32.mrb[20].mxu0 }
 0x84a   : > { %v1153_v8 = vadd.f32 %v1147_v7, %v994_v39  ;;  %v2370_v9 = vpop.f32.mrb[21].mxu0 }
 0x84b   : > { %v1150_v10 = vpop.f32.mrb[22].mxu0 }
 0x84c   : > { %v2371_v11 = vpop.f32.mrb[23].mxu0 }
 0x8a6   : > { %v1212_v15 = vpop.xlane.xlu1 %1211 }
 0x8a7   : > { %2636 = vrcp.f32 %v1212_v15  ;;  %v2620_v15 = vld [vmem:[#allocation15 + $0x8] ss:$0 sps:$4 sm:$0xcc]  }
 0x8aa   : > { %v1378_v21 = vpop.permute.xlu1 %1377 }
 0x8ab   : > { %v1383_v26 = vsel %vm735_vm4, %v1378_v21, 0 }
 0x8ae   : > { %v1477_v40 = vpop.permute.xlu1 %1476 }
 0x8b1   : > { %v2637_v17 = vpop.eup %2636 }
 0x8ed   : > { %v1256_v18 = vpop.f32.mrb[24].mxu0 }
 0x8ee   : > { %v1263_v19 = vmul.f32 %v2637_v17, %v1256_v18  ;;  %v2382_v20 = vpop.f32.mrb[25].mxu0  ;;  %v1591_v17 = vrot.slane %v2620_v15, 2 }
 0x8ef   : > { %v1259_v23 = vpop.f32.mrb[26].mxu0 }
 0x8f0   : > { %v1264_v24 = vpack.c.bf16 %v1263_v19, %v1263_v19  ;;  %v2383_v25 = vpop.f32.mrb[27].mxu0  ;;  %v1596_v18 = vsel %vm786_vm5, %v1591_v17, 0 }
 0x8f2   : > { %2387 = vmatmul.mubr.msk.bf16.vlgmr.msra.gmra.mrb[24].mxu1 %vm671_vm2, %v1264_v24 }
 0x8f3   : > { %2397 = vmatpush3.bf16.msra.mxu1 %v1383_v26  ;;  %2398 = vmatprep.mubr.msk.bf16.mxu1 %vm3058_vm0, %v3057_v0 }
 0x8f4   : > { %2408 = vmatprep.subr.bf16.mxu1 %v3057_v0 }
 0x8f5   : > { %v1361_v27 = vpop.f32.mrb[28].mxu0 }
 0x8f6   : > { %v2394_v28 = vpop.f32.mrb[29].mxu0  ;;  %v1367_v29 = vsel %vm718_vm3, %v1361_v27, -inf }
 0x8f7   : > { %1368 = vmax.xlane.f32.xlu0 %v1367_v29  ;;  %v1364_v30 = vpop.f32.mrb[30].mxu0 }
 0x8f8   : > { %v2395_v31 = vpop.f32.mrb[31].mxu0 }
 0x90d   : > { %1478 = vrot.lane.b32.xlu0 %v3535_v16, %s3068_s15  ;;  %s2956_s15 = scalar_lea.vmem %s2955_s14, 128 }
 0x90e   : > { %p2958_p11 = scmp.lt.s32.totalorder %s2956_s15, %s2950_s20 }
 0x910   : > { %p2959_p12 = por %p2958_p11, %p2957_p0 }
 0x912   : > { %p2960_p1 = pnand %p2959_p12, %p2953_p9 }
 0x984   : > { %v1369_v32 = vpop.xlane.xlu0 %1368 }
 0x985   : > { %v1370_v33 = vsub.f32 %v1361_v27, %v1369_v32 }
 0x987   : > { %v1371_v34 = vmul.f32 1.442695, %v1370_v33 }
 0x988   : > { %v1479_v36 = vpop.permute.xlu0 %1478 }
 0x989   : > { %2638 = vpow2.f32 %v1371_v34  ;;  %v1484_v39 = vsel %vm671_vm2, %v1479_v36, 0 }
 0x993   : > { %v2639_v35 = vpop.eup %2638 }
 0x994   : > { %v1373_v37 = vsel %vm718_vm3, %v2639_v35, 0.0  ;;  %v1376_v38 = vpack.c.bf16 %v2639_v35, %v2639_v35 }
 0x995   : > { %1374 = vadd.xlane.f32.xlu1 %v1373_v37 }
 0x996   : > { %2399 = vmatmul.mubr.msk.bf16.vlgmr.msra.gmra.mrb[28].mxu1 %vm718_vm3, %v1376_v38 }
 0x997   : > { %2409 = vmatpush3.bf16.xpose.msra.mxu1 %v1484_v39  ;;  %2410 = vmatprep.mubr.msk.bf16.mxu1 %vm3058_vm0, %v3057_v0 }
 0x998   : > { %2420 = vmatprep.subr.bf16.mxu1 %v3057_v0 }
 0x99e   : > { %2411 = vmatmul.mubr.msk.bf16.vlgmr.msra.gmra.mrb[32].mxu1 %vm671_vm2, %v1477_v40 }
 0x99f   : > { %2422 = vmatprep.mubr.msk.bf16.mxu1 %vm3058_vm0, %v3057_v0  ;;  %2421 = vmatpush3.bf16.msra.mxu1 %v1596_v18 }
 0x9a0   : > { %2432 = vmatprep.subr.bf16.mxu1 %v3057_v0 }
 0x9a6   : > { %1641 = vrot.lane.b32.xlu1 %v3535_v16, %s3069_s23 }
 0x9aa   : > { %1639 = vrot.lane.b32.xlu1 %v3540_v22, %s3069_s23 }
 0x9c5   : > { %v1310_v41 = vpop.f32.mrb[24].mxu1 }
 0x9c6   : > { %v1316_v42 = vadd.f32 %v1310_v41, %v1153_v8  ;;  %v2388_v43 = vpop.f32.mrb[25].mxu1 }
 0x9c7   : > { %v1313_v44 = vpop.f32.mrb[26].mxu1 }
 0x9c8   : > { %v2389_v45 = vpop.f32.mrb[27].mxu1 }
 0xa22   : > { %v1375_v48 = vpop.xlane.xlu1 %1374 }
 0xa23   : > { %2640 = vrcp.f32 %v1375_v48  ;;  %v1750_v48 = vld [vmem:[#allocation15 + $0xc] sm:$0x3] }
 0xa26   : > { %v1642_v4 = vpop.permute.xlu1 %1641 }
 0xa27   : > { %v1647_v8 = vsel %vm671_vm2, %v1642_v4, 0 }
 0xa2a   : > { %v1640_v9 = vpop.permute.xlu1 %1639 }
 0xa2d   : > { %v2641_v49 = vpop.eup %2640 }
 0xa69   : > { %v1419_v50 = vpop.f32.mrb[28].mxu1 }
 0xa6a   : > { %v1426_v51 = vmul.f32 %v2641_v49, %v1419_v50  ;;  %v2400_v52 = vpop.f32.mrb[29].mxu1  ;;  %v1755_v49 = vsel %vm786_vm5, %v1750_v48, 0 }
 0xa6b   : > { %v1422_v53 = vpop.f32.mrb[30].mxu1 }
 0xa6c   : > { %v1427_v54 = vpack.c.bf16 %v1426_v51, %v1426_v51  ;;  %v2401_v55 = vpop.f32.mrb[31].mxu1 }
 0xa6e   : > { %2405 = vmatmul.mubr.msk.bf16.vlgmr.msra.gmra.mrb[32].mxu0 %vm671_vm2, %v1427_v54 }
 0xa6f   : > { %2416 = vmatprep.mubr.msk.bf16.mxu0 %vm3058_vm0, %v3057_v0 }
 0xa71   : > { %v1520_v56 = vpop.f32.mrb[32].mxu1 }
 0xa72   : > { %v2412_v57 = vpop.f32.mrb[33].mxu1  ;;  %v1526_v58 = vsel %vm718_vm3, %v1520_v56, -inf }
 0xa73   : > { %1527 = vmax.xlane.f32.xlu0 %v1526_v58  ;;  %v1523_v59 = vpop.f32.mrb[34].mxu1 }
 0xa74   : > { %v2413_v60 = vpop.f32.mrb[35].mxu1 }
 0xa89   : > { %1536 = vrot.lane.b32.xlu0 %v3535_v16, %s3070_s24 }
 0xb00   : > { %v1528_v61 = vpop.xlane.xlu0 %1527 }
 0xb01   : > { %v1529_v62 = vsub.f32 %v1520_v56, %v1528_v61 }
 0xb03   : > { %v1530_v63 = vmul.f32 1.442695, %v1529_v62 }
 0xb04   : > { %v1537_v1 = vpop.permute.xlu0 %1536 }
 0xb05   : > { %2642 = vpow2.f32 %v1530_v63  ;;  %v1542_v2 = vsel %vm735_vm4, %v1537_v1, 0 }
 0xb06   : > { %2415 = vmatpush3.bf16.msra.mxu0 %v1542_v2 }
 0xb07   : > { %2426 = vmatprep.subr.bf16.mxu0 %v3057_v0 }
 0xb0f   : > { %v2643_v3 = vpop.eup %2642 }
 0xb10   : > { %v1532_v5 = vsel %vm718_vm3, %v2643_v3, 0.0  ;;  %v1535_v7 = vpack.c.bf16 %v2643_v3, %v2643_v3 }
 0xb11   : > { %1533 = vadd.xlane.f32.xlu0 %v1532_v5 }
 0xb12   : > { %2417 = vmatmul.mubr.msk.bf16.vlgmr.msra.gmra.mrb[36].mxu0 %vm718_vm3, %v1535_v7 }
 0xb13   : > { %2427 = vmatpush3.bf16.xpose.msra.mxu0 %v1647_v8  ;;  %2428 = vmatprep.mubr.msk.bf16.mxu0 %vm3058_vm0, %v3057_v0  ;;  %v2621_v8 = vld [vmem:[#allocation15 + $0xc] ss:$0 sps:$4 sm:$0xcc]  }
 0xb14   : > { %2438 = vmatprep.subr.bf16.mxu0 %v3057_v0 }
 0xb1a   : > { %2429 = vmatmul.mubr.msk.bf16.vlgmr.msra.gmra.mrb[40].mxu0 %vm671_vm2, %v1640_v9  ;;  %v1913_v9 = vrot.slane %v2621_v8, 2 }
 0xb1b   : > { %2440 = vmatprep.mubr.msk.bf16.mxu0 %vm3058_vm0, %v3057_v0  ;;  %2439 = vmatpush3.bf16.msra.mxu0 %v1755_v49 }
 0xb1c   : > { %2450 = vmatprep.subr.bf16.mxu0 %v3057_v0 }
 0xb27   : > { %1699 = vrot.lane.b32.xlu0 %v3535_v16, %s3071_s25 }
 0xb2b   : > { %1798 = vrot.lane.b32.xlu0 %v3540_v22, %s3072_s11 }
 0xb41   : > { %v1469_v10 = vpop.f32.mrb[32].mxu0 }
 0xb42   : > { %v1475_v11 = vadd.f32 %v1469_v10, %v1316_v42  ;;  %v2406_v12 = vpop.f32.mrb[33].mxu0  ;;  %v1918_v10 = vsel %vm786_vm5, %v1913_v9, 0 }
 0xb43   : > { %v1472_v13 = vpop.f32.mrb[34].mxu0 }
 0xb44   : > { %v2407_v14 = vpop.f32.mrb[35].mxu0 }
 0xb9e   : > { %v1534_v19 = vpop.xlane.xlu0 %1533 }
 0xb9f   : > { %2644 = vrcp.f32 %v1534_v19 }
 0xba2   : > { %v1700_v25 = vpop.permute.xlu0 %1699 }
 0xba3   : > { %v1705_v28 = vsel %vm735_vm4, %v1700_v25, 0  ;;  %v525_v25 = vunpack.c.l.bf16 %v3524_v6 }
 0xba6   : > { %v1799_v42 = vpop.permute.xlu0 %1798 }
 0xba9   : > { %v2645_v20 = vpop.eup %2644 }
 0xbe5   : > { %v1578_v21 = vpop.f32.mrb[36].mxu0 }
 0xbe6   : > { %v1585_v23 = vmul.f32 %v2645_v20, %v1578_v21  ;;  %v2418_v24 = vpop.f32.mrb[37].mxu0 }
 0xbe7   : > { %v1581_v22 = vpop.f32.mrb[38].mxu0 }
 0xbe8   : > { %v1586_v26 = vpack.c.bf16 %v1585_v23, %v1585_v23  ;;  %v2419_v27 = vpop.f32.mrb[39].mxu0 }
 0xbea   : > { %2423 = vmatmul.mubr.msk.bf16.vlgmr.msra.gmra.mrb[36].mxu1 %vm671_vm2, %v1586_v26 }
 0xbeb   : > { %2433 = vmatpush3.bf16.msra.mxu1 %v1705_v28  ;;  %2434 = vmatprep.mubr.msk.bf16.mxu1 %vm3058_vm0, %v3057_v0 }
 0xbec   : > { %2444 = vmatprep.subr.bf16.mxu1 %v3057_v0 }
 0xbed   : > { %v1683_v29 = vpop.f32.mrb[40].mxu0 }
 0xbee   : > { %v2430_v30 = vpop.f32.mrb[41].mxu0  ;;  %v1689_v31 = vsel %vm718_vm3, %v1683_v29, -inf }
 0xbef   : > { %1690 = vmax.xlane.f32.xlu1 %v1689_v31  ;;  %v1686_v32 = vpop.f32.mrb[42].mxu0 }
 0xbf0   : > { %v2431_v33 = vpop.f32.mrb[43].mxu0 }
 0xc00   : > { %1800 = vrot.lane.b32.xlu1 %v3535_v16, %s3072_s11 }
 0xc7c   : > { %v1691_v34 = vpop.xlane.xlu1 %1690 }
 0xc7d   : > { %v1692_v35 = vsub.f32 %v1683_v29, %v1691_v34 }
 0xc7f   : > { %v1693_v36 = vmul.f32 1.442695, %v1692_v35 }
 0xc80   : > { %v1801_v38 = vpop.permute.xlu1 %1800 }
 0xc81   : > { %2646 = vpow2.f32 %v1693_v36  ;;  %v1806_v41 = vsel %vm671_vm2, %v1801_v38, 0 }
 0xc8b   : > { %v2647_v37 = vpop.eup %2646 }
 0xc8c   : > { %v1695_v39 = vsel %vm718_vm3, %v2647_v37, 0.0  ;;  %v1698_v40 = vpack.c.bf16 %v2647_v37, %v2647_v37 }
 0xc8d   : > { %1696 = vadd.xlane.f32.xlu1 %v1695_v39 }
 0xc8e   : > { %2435 = vmatmul.mubr.msk.bf16.vlgmr.msra.gmra.mrb[40].mxu1 %vm718_vm3, %v1698_v40  ;;  %v2242_v40 = vld [vmem:[#allocation18] ss:$0 sm:$0xff] }
 0xc8f   : > { %2445 = vmatpush3.bf16.xpose.msra.mxu1 %v1806_v41  ;;  %2446 = vmatprep.mubr.msk.bf16.mxu1 %vm3058_vm0, %v3057_v0 }
 0xc90   : > { %2456 = vmatprep.subr.bf16.mxu1 %v3057_v0 }
 0xc96   : > { %2447 = vmatmul.mubr.msk.bf16.vlgmr.msra.gmra.mrb[44].mxu1 %vm671_vm2, %v1799_v42  ;;  %v2243_v42 = vld [vmem:[#allocation19] ss:$0 sm:$0xff] }
 0xc97   : > { %2458 = vmatprep.mubr.msk.bf16.mxu1 %vm3058_vm0, %v3057_v0  ;;  %2457 = vmatpush3.bf16.msra.mxu1 %v1918_v10 }
 0xcbd   : > { %v1632_v43 = vpop.f32.mrb[36].mxu1 }
 0xcbe   : > { %v1638_v44 = vadd.f32 %v1632_v43, %v1475_v11  ;;  %v2424_v45 = vpop.f32.mrb[37].mxu1 }
 0xcbf   : > { %v1635_v46 = vpop.f32.mrb[38].mxu1 }
 0xcc0   : > { %v2425_v47 = vpop.f32.mrb[39].mxu1 }
 0xd1a   : > { %v1697_v50 = vpop.xlane.xlu1 %1696 }
 0xd1b   : > { %2648 = vrcp.f32 %v1697_v50 }
 0xd25   : > { %v2649_v51 = vpop.eup %2648 }
 0xd61   : > { %v1741_v52 = vpop.f32.mrb[40].mxu1 }
 0xd62   : > { %v1748_v53 = vmul.f32 %v2649_v51, %v1741_v52  ;;  %v2436_v54 = vpop.f32.mrb[41].mxu1 }
 0xd63   : > { %v1744_v55 = vpop.f32.mrb[42].mxu1 }
 0xd64   : > { %v1749_v56 = vpack.c.bf16 %v1748_v53, %v1748_v53  ;;  %v2437_v57 = vpop.f32.mrb[43].mxu1 }
 0xd66   : > { %2441 = vmatmul.mubr.msk.bf16.vlgmr.msra.gmra.mrb[44].mxu0 %vm671_vm2, %v1749_v56 }
 0xd67   : > { %2452 = vmatprep.mubr.msk.bf16.mxu0 %vm3058_vm0, %v3057_v0 }
 0xd69   : > { %v1842_v58 = vpop.f32.mrb[44].mxu1 }
 0xd6a   : > { %v2448_v59 = vpop.f32.mrb[45].mxu1  ;;  %v1848_v60 = vsel %vm718_vm3, %v1842_v58, -inf }
 0xd6b   : > { %1849 = vmax.xlane.f32.xlu0 %v1848_v60  ;;  %v1845_v61 = vpop.f32.mrb[46].mxu1 }
 0xd6c   : > { %v2449_v62 = vpop.f32.mrb[47].mxu1 }
 0xd81   : > { %1858 = vrot.lane.b32.xlu0 %v3535_v16, %s3073_s6 }
 0xdf8   : > { %v1850_v63 = vpop.xlane.xlu0 %1849 }
 0xdf9   : > { %v1851_v1 = vsub.f32 %v1842_v58, %v1850_v63 }
 0xdfb   : > { %v1852_v2 = vmul.f32 1.442695, %v1851_v1 }
 0xdfc   : > { %v1859_v3 = vpop.permute.xlu0 %1858 }
 0xdfd   : > { %2650 = vpow2.f32 %v1852_v2  ;;  %v1864_v4 = vsel %vm735_vm4, %v1859_v3, 0 }
 0xdfe   : > { %2451 = vmatpush3.bf16.msra.mxu0 %v1864_v4 }
 0xe07   : > { %v2651_v5 = vpop.eup %2650 }
 0xe08   : > { %v1854_v0 = vsel %vm718_vm3, %v2651_v5, 0.0  ;;  %v1857_v7 = vpack.c.bf16 %v2651_v5, %v2651_v5 }
 0xe09   : > { %1855 = vadd.xlane.f32.xlu1 %v1854_v0 }
 0xe0a   : > { %2453 = vmatmul.mubr.msk.bf16.vlgmr.msra.gmra.mrb[48].mxu0 %vm718_vm3, %v1857_v7 }
 0xe39   : > { %v1791_v16 = vpop.f32.mrb[44].mxu0 }
 0xe3a   : > { %v1797_v11 = vadd.f32 %v1791_v16, %v1638_v44  ;;  %v2442_v12 = vpop.f32.mrb[45].mxu0 }
 0xe3b   : > { %v1794_v13 = vpop.f32.mrb[46].mxu0 }
 0xe3c   : > { %v2443_v14 = vpop.f32.mrb[47].mxu0 }
 0xe96   : > { %v1856_v15 = vpop.xlane.xlu1 %1855 }
 0xe97   : > { %2652 = vrcp.f32 %v1856_v15 }
 0xea1   : > { %v2653_v17 = vpop.eup %2652 }
 0xedd   : > { %v1900_v18 = vpop.f32.mrb[48].mxu0 }
 0xede   : > { %v1907_v19 = vmul.f32 %v2653_v17, %v1900_v18  ;;  %v2454_v20 = vpop.f32.mrb[49].mxu0 }
 0xedf   : > { %v1903_v21 = vpop.f32.mrb[50].mxu0 }
 0xee0   : > { %v1908_v23 = vpack.c.bf16 %v1907_v19, %v1907_v19  ;;  %v2455_v24 = vpop.f32.mrb[51].mxu0 }
 0xee2   : > { %2459 = vmatmul.mubr.msk.bf16.vlgmr.msra.gmra.mrb[48].mxu1 %vm671_vm2, %v1908_v23 }
 0xfb5   : > { %v1954_v22 = vpop.f32.mrb[48].mxu1 }
 0xfb6   : > { %v1960_v26 = vadd.f32 %v1954_v22, %v1797_v11  ;;  %v2460_v27 = vpop.f32.mrb[49].mxu1 }
 0xfb7   : > { %v1957_v28 = vpop.f32.mrb[50].mxu1 }
 0xfb8   : > { %v2461_v29 = vpop.f32.mrb[51].mxu1  ;;  %v1961_v30 = vadd.f32 %v1960_v26, %v525_v25 }
 0xfba   : > { %v1964_v31 = vsel %vm549_vm1, %v1961_v30, 0.0 }
 0xfbb   : > { %1965 = vadd.xlane.f32.xlu1 %v1964_v31 }
0x1048   : > { %v1966_v32 = vpop.xlane.xlu1 %1965 }
0x1049   : > { %v1968_v33 = vmul.f32 0.03125, %v1966_v32 }
0x104b   : > { %v1969_v34 = vsub.f32 %v1961_v30, %v1968_v33 }
0x104d   : > { %v1970_v35 = vmul.f32 %v1969_v34, %v1969_v34 }
0x104f   : > { %v1971_v36 = vsel %vm549_vm1, %v1970_v35, 0.0 }
0x1050   : > { %1972 = vadd.xlane.f32.xlu1 %v1971_v36 }
0x10dd   : > { %v1973_v37 = vpop.xlane.xlu1 %1972 }
0x10de   : > { %v1974_v6 = vmul.f32 0.03125, %v1973_v37 }
0x10e0   : > { %v1975_v38 = vadd.f32 1e-05, %v1974_v6 }
0x10e2   : > { %2654 = vrsqrt.f32 %v1975_v38 }
0x10ec   : > { %v2655_v39 = vpop.eup %2654 }
0x10ed   : > { %v1977_v41 = vmul.f32 %v2655_v39, %v1969_v34 }
0x10ef   : > { %v1984_v43 = vmul.f32 %v2242_v40, %v1977_v41 }
0x10f1   : > { %v1991_v44 = vadd.f32 %v2243_v42, %v1984_v43 }
0x10f3   : > { %v1992_v45 = vpack.c.bf16 %v1991_v44, %v1991_v44 }
0x10f5   : > { %1994 = vst.msk [vmem:[%s522_s22] sm:$0xf] %vm1993_vm6, %v1992_v45 }
0x10f6   : > { %2963 = shalt.err (!%p2960_p1)
}
0x10f7   : > { %s2964_s5 = scalar_lea.hbm %s3709_s16, 64  ;;  %s2968_s25 = scalar_lea.hbm %s3808_s4, 128 }
0x10f8   : > { %p2965_p2 = scmp.ne.s32.totalorder %s3709_s16, %s2964_s5  ;;  %p2969_p5 = scmp.lt.u32.totalorder %s3709_s16, %s3808_s4 }
0x10f9   : > { %p2970_p7 = scmp.lt.u32.totalorder %s2968_s25, %s2964_s5  ;;  %p2972_p8 = scmp.lt.u32.totalorder %s2964_s5, %s3709_s16 }
0x10fa   : > { %p2966_p4 = pnand %p2965_p2, %p3809_p10 }
0x10fb   : > { %p2971_p13 = por %p2970_p7, %p2969_p5 }
0x10fc   : > { %p2967_p6 = pneg %p2966_p4 }
0x10fd   : > { %p2973_p3 = por %p2972_p8, %p2971_p13 }
0x10ff   : > { %p2974_p9 = pnand %p2973_p3, %p2967_p6 }
0x1101   : > { %2977 = shalt.err (!%p2974_p9)
}
0x1102   : > { %2498 = dma.vmem_to_hbm [thread:$0]  (%p3809_p10), %s3711_s21, 64, %s3709_s16, %s1996_s19  }
0x1103 PF: > { %s2021_s3 = sand.u32 1, %s3030_s27   ;;  %p3810_p0 = scmp.ne.s32.totalorder %s3793_s12, 0 }
0x1104   : > { %p3811_p11 = scmp.ge.s32.totalorder %s3042_s0, 2  ;;  %s2022_s22 = scalar_lea.sflag [#allocation6], %s2021_s3 }
0x1106   : > { %p2533_p12 = pnand %p3811_p11, %p3810_p0 }
0x1108   : > { %3025 = dma.done.wait (!%p2533_p12), %s2022_s22, 64  }
0x1109   : > { %3027 = vsyncadd (!%p2533_p12), %s2022_s22, 4294967232  ;;  %p35_p1 = scmp.ge.s32.totalorder %s3370_s17, 4   ;;  %s3812_s27 = smov %s3034_s28 }
0x110a   : > { %s3813_s28 = smov %s3038_s29  ;;  %s3814_s29 = smov %s3381_s26 }
0x110b   : > { %s3815_s0 = smov %s3370_s17  ;;  %37 = sbr.rel (!%p35_p1) target bundleno = 24 (0x18), region = 150 }
0x1112   :  { %2027 = vsyncpa [#allocation5], 1 }
0x1113   :  { %2029 = vsyncpa [#allocation5 + $0x1], 1 }
0x1114   :  { %2030 = vsyncpa [#allocation8], 1 }
0x1115   :  { %2032 = vsyncpa [#allocation8 + $0x1], 1 }
0x1116   :  { %2033 = vsyncpa [#allocation11], 1 }
0x1117   :  { %2034 = vsyncpa [#allocation14], 1 }
0x1118   :  { %2035 = vsyncpa [#allocation17], 1 }
0x1119   :  { %2036 = vsyncpa [#allocation20], 1 }
0x111a   :  { %2037 = vsyncpa [#allocation6], 1 }
0x111b   :  { %2039 = vsyncpa [#allocation6 + $0x1], 1 }

// kernel: mfs_forward.39
= control target key start
LH: loop header
LB: loop body
LE: loop exit
PB: predicated region body
PF: predicated region fallthrough
CT: control target
= control target key end

     0   :  { %8 = vsyncpa [#allocation3], 0  ;;  %s359_s0 = inlined_call_operand.hbm [shape: bf16[16,32], index: 0, kind: input, shape index: {}]   ;;  %s360_s1 = inlined_call_operand.hbm [shape: bf16[32,4], index: 1, kind: input, shape index: {}]   ;;  %s361_s2 = inlined_call_operand.hbm [shape: f32[1,4], index: 2, kind: input, shape index: {}]   ;;  %s362_s3 = inlined_call_operand.hbm [shape: f32[16,4], index: 3, kind: output, shape index: {}]  }
   0x1   :  { %9 = vsyncpa [#allocation6], 0 }
   0x2   :  { %10 = vsyncpa [#allocation4], 0  ;;  %s274_s12 = smov [#allocation5]   ;;  %s275_s14 = smov [#allocation2]  }
   0x3   :  { %s28_s13 = sshll.u32 %s274_s12, 4  ;;  %s16_s15 = sshll.u32 %s275_s14, 4  ;;  %s29_s13 = int_to_ptr.vmem [resolvable:$true] %s28_s13  ;;  %s304_s15 = int_to_ptr.vmem [resolvable:$true] %s16_s15 }
   0x4   :  { %s180_s18 = scalar_lea.hbm %s360_s1, 256 }
   0x5   :  { %p181_p0 = scmp.ne.s32.totalorder %s360_s1, %s180_s18  ;;  %p184_p1 = scmp.lt.u32.totalorder %s180_s18, %s360_s1 }
   0x7   :  { %p186_p2 = pnand %p184_p1, %p181_p0 }
   0x9   :  { %189 = shalt.err (!%p186_p2)
}
   0xa   :  { %s190_s23 = scalar_lea.vmem %s29_s13, 256  ;;  %p195_p4 = scmp.lt.s32.totalorder %s29_s13, %s29_s13 }
   0xb   :  { %p191_p3 = scmp.ne.s32.totalorder %s29_s13, %s190_s23  ;;  %p196_p5 = scmp.lt.s32.totalorder %s190_s23, %s190_s23 }
   0xd   :  { %p197_p6 = por %p196_p5, %p195_p4 }
   0xf   :  { %p198_p7 = pnand %p197_p6, %p191_p3 }
  0x11   :  { %201 = shalt.err (!%p198_p7)
}
  0x12   :  { %s276_s24 = smov 64   ;;  %s277_s25 = smov 4  }
  0x13   :  { %34 = dma.hbm_to_vmem [thread:$0]  %s360_s1, 256, %s29_s13, [#allocation6], %s276_s24, %s276_s24, %s277_s25  }
  0x14   :  { %s202_s30 = scalar_lea.hbm %s359_s0, 128 }
  0x15   :  { %p203_p8 = scmp.ne.s32.totalorder %s359_s0, %s202_s30  ;;  %p206_p9 = scmp.lt.u32.totalorder %s202_s30, %s359_s0 }
  0x17   :  { %p208_p10 = pnand %p206_p9, %p203_p8 }
  0x19   :  { %211 = shalt.err (!%p208_p10)
}
  0x1a   :  { %s212_s8 = scalar_lea.vmem %s304_s15, 128  ;;  %p217_p12 = scmp.lt.s32.totalorder %s304_s15, %s304_s15 }
  0x1b   :  { %p213_p11 = scmp.ne.s32.totalorder %s304_s15, %s212_s8  ;;  %p218_p13 = scmp.lt.s32.totalorder %s212_s8, %s212_s8 }
  0x1d   :  { %p219_p0 = por %p218_p13, %p217_p12 }
  0x1f   :  { %p220_p1 = pnand %p219_p0, %p213_p11 }
  0x21   :  { %223 = shalt.err (!%p220_p1)
}
  0x22   :  { %22 = dma.hbm_to_vmem [thread:$0]  %s359_s0, 128, %s304_s15, [#allocation3], %s276_s24, %s276_s24, %s277_s25  }
  0x23   :  { %s278_s10 = smov [#allocation7]   ;;  %s224_s14 = scalar_lea.hbm %s361_s2, 16 }
  0x24   :  { %s41_s11 = sshll.u32 %s278_s10, 4  ;;  %p225_p2 = scmp.ne.s32.totalorder %s361_s2, %s224_s14  ;;  %s42_s11 = int_to_ptr.vmem [resolvable:$true] %s41_s11 }
  0x25   :  { %p228_p3 = scmp.lt.u32.totalorder %s224_s14, %s361_s2 }
  0x27   :  { %p230_p4 = pnand %p228_p3, %p225_p2 }
  0x29   :  { %233 = shalt.err (!%p230_p4)
}
  0x2a   :  { %s234_s20 = scalar_lea.vmem %s42_s11, 16  ;;  %s238_s0 = scalar_lea.vmem %s42_s11, 32 }
  0x2b   :  { %p235_p5 = scmp.ne.s32.totalorder %s42_s11, %s234_s20  ;;  %p239_p6 = scmp.lt.s32.totalorder %s42_s11, %s42_s11 }
  0x2c   :  { %p240_p7 = scmp.lt.s32.totalorder %s238_s0, %s234_s20 }
  0x2e   :  { %p241_p8 = por %p240_p7, %p239_p6 }
  0x30   :  { %p242_p9 = pnand %p241_p8, %p235_p5 }
  0x32   :  { %245 = shalt.err (!%p242_p9)
}
  0x33   :  { %44 = dma.hbm_to_vmem [thread:$0]  %s361_s2, 16, %s42_s11, [#allocation6]  }
  0x34   :  { %268 = dma.done.wait [#allocation3], 128  }
  0x35   :  { %269 = vsyncadd [#allocation3], 4294967168 }
  0x36   :  { %270 = dma.done.wait [#allocation6], 272  }
  0x37   :  { %271 = vsyncadd [#allocation6], 4294967024  ;;  %v279_v0 = vmov 0.0   ;;  %vm280_vm0 = vmmov 0   ;;  %v177_v1 = vld [vmem:[#allocation5] sm:$0xff]   ;;  %v178_v2 = vld [vmem:[#allocation5 + $0x8] sm:$0xff]  }
  0x38   :  { %159 = vmatprep.subr.bf16.mxu0 %v279_v0  ;;  %163 = vmatprep.mubr.msk.bf16.mxu0 %vm280_vm0, %v279_v0  ;;  %v179_v3 = vld [vmem:[#allocation2] sm:$0xff]   ;;  %vm85_vm1 = vcmask 261120   ;;  %v151_v4 = vld [vmem:[#allocation7] ss:$0 sm:$0xff]  ;;  %s281_s22 = smov [#allocation8]   ;;  %vm130_vm2 = vcmask 31744  }
  0x39   :  { %160 = vmatpush3.bf16.msra.mxu0 %v177_v1  ;;  %s138_s23 = sshll.u32 %s281_s22, 4  ;;  %s139_s23 = int_to_ptr.vmem [resolvable:$true] %s138_s23 }
  0x3a   :  { %161 = vmatprep.subr.bf16.mxu0 %v279_v0  ;;  %s246_s2 = scalar_lea.vmem %s139_s23, 256  ;;  %p251_p11 = scmp.lt.s32.totalorder %s139_s23, %s139_s23 }
  0x3b   :  { %p247_p10 = scmp.ne.s32.totalorder %s139_s23, %s246_s2  ;;  %p252_p12 = scmp.lt.s32.totalorder %s246_s2, %s246_s2 }
  0x3d   :  { %162 = vmatpush3.bf16.msra.mxu0 %v178_v2  ;;  %p253_p13 = por %p252_p12, %p251_p11 }
  0x3f   :  { %p254_p0 = pnand %p253_p13, %p247_p10 }
  0x40   :  { %164 = vmatmul.mubr.msk.bf16.vlgmr.msra.gmra.mrb[0].mxu0 %vm85_vm1, %v179_v3 }
 0x113   :  { %v123_v5 = vpop.f32.mrb[0].mxu0 }
 0x114   :  { %v124_v6 = vadd.f32 %v151_v4, %v123_v5  ;;  %v165_v7 = vpop.f32.mrb[1].mxu0 }
 0x115   :  { %v126_v8 = vpop.f32.mrb[2].mxu0 }
 0x116   :  { %131 = vst.msk [vmem:[#allocation8] sm:$0xff] %vm130_vm2, %v124_v6  ;;  %v127_v9 = vadd.f32 %v151_v4, %v126_v8  ;;  %v166_v10 = vpop.f32.mrb[3].mxu0 }
 0x118   :  { %132 = vst.msk [vmem:[#allocation8 + $0x8] sm:$0xff] %vm130_vm2, %v127_v9 }
 0x119   :  { %257 = shalt.err (!%p254_p0)
}
 0x11a   :  { %s258_s26 = scalar_lea.hbm %s362_s3, 256 }
 0x11b   :  { %p259_p1 = scmp.ne.s32.totalorder %s362_s3, %s258_s26  ;;  %p262_p2 = scmp.lt.u32.totalorder %s258_s26, %s362_s3 }
 0x11d   :  { %p264_p3 = pnand %p262_p2, %p259_p1 }
 0x11f   :  { %267 = shalt.err (!%p264_p3)
}
 0x120   :  { %s282_s4 = smov 128   ;;  %s283_s5 = smov 8  }
 0x121   :  { %144 = dma.vmem_to_hbm [thread:$0]  %s139_s23, 256, %s362_s3, [#allocation4], %s282_s4, %s282_s4, %s283_s5  }
 0x122   :  { %272 = dma.done.wait [#allocation4], 256  }
 0x123   :  { %273 = vsyncadd [#allocation4], 4294967040 }
 0x124   :  { %148 = vsyncpa [#allocation3], 1 }
 0x125   :  { %149 = vsyncpa [#allocation6], 1 }
 0x126   :  { %150 = vsyncpa [#allocation4], 1 }

// kernel: mfs_forward.33
= control target key start
LH: loop header
LB: loop body
LE: loop exit
PB: predicated region body
PF: predicated region fallthrough
CT: control target
= control target key end

     0   :  { %s3263_s0 = inlined_call_operand.hbm [shape: s32[2], index: 0, kind: input, shape index: {}]   ;;  %s3264_s1 = inlined_call_operand.hbm [shape: bf16[2,8,32], index: 1, kind: input, shape index: {}]   ;;  %s3265_s2 = inlined_call_operand.hbm [shape: bf16[32,96], index: 2, kind: input, shape index: {}]   ;;  %s3266_s3 = inlined_call_operand.hbm [shape: f32[1,96], index: 3, kind: input, shape index: {}]   ;;  %s3267_s4 = inlined_call_operand.hbm [shape: bf16[32,32], index: 4, kind: input, shape index: {}]   ;;  %s3268_s5 = inlined_call_operand.hbm [shape: f32[1,32], index: 5, kind: input, shape index: {}]   ;;  %s3269_s6 = inlined_call_operand.hbm [shape: f32[1,32], index: 6, kind: input, shape index: {}]   ;;  %s3270_s7 = inlined_call_operand.hbm [shape: f32[1,32], index: 7, kind: input, shape index: {}]   ;;  %s3271_s8 = inlined_call_operand.hbm [shape: bf16[2,8,32], index: 8, kind: output, shape index: {}]  }
   0x1   :  { %s2369_s29 = scalar_lea.hbm %s3263_s0, 16 }
   0x2   :  { %p2370_p0 = scmp.ne.s32.totalorder %s3263_s0, %s2369_s29  ;;  %p2373_p1 = scmp.lt.u32.totalorder %s2369_s29, %s3263_s0 }
   0x4   :  { %p2375_p2 = pnand %p2373_p1, %p2370_p0 }
   0x6   :  { %2378 = shalt.err (!%p2375_p2)  }
   0x7   :  { %s2659_s12 = smov [#allocation3]  }
   0x8   :  { %14 = dma.hbm_to_smem %s3263_s0, 16, %s2659_s12, [#allocation2] }
   0x9   :  { %2621 = dma.done.wait [#allocation2], 16 }
   0xa   :  { %2622 = vsyncadd [#allocation2], 4294967280 }
   0xb   :  { %16 = sfence }
   0xc   :  { %17 = vsyncpa [#allocation5], 0 }
   0xd   :  { %19 = vsyncpa [#allocation5 + $0x1], 0 }
   0xe   :  { %20 = vsyncpa [#allocation8], 0 }
   0xf   :  { %21 = vsyncpa [#allocation11], 0 }
  0x10   :  { %22 = vsyncpa [#allocation14], 0 }
  0x11   :  { %23 = vsyncpa [#allocation6], 0 }
  0x12   :  { %25 = vsyncpa [#allocation6 + $0x1], 0  ;;  %s2752_s15 = smov 0   ;;  %s2754_s16 = smov 0  }
  0x13   :  { %s2756_s17 = smov 0   ;;  %s2758_s18 = smov 0  }
  0x14 LB: > { %s2660_s0 = smov [#allocation7]   ;;  %s2773_s20 = sadd.s32 4294967295, %s2657_s18   ;;  %s2657_s18 = sphi %s2758_s18, %s3297_s18   ;;  %s2653_s17 = sphi %s2756_s17, %s3296_s17   ;;  %s2649_s16 = sphi %s2754_s16, %s3295_s16   ;;  %s2645_s15 = sphi %s2752_s15, %s3294_s15  }
  0x15   : > { %s226_s19 = sshll.u32 %s2660_s0, 4  ;;  %p1933_p3 = scmp.ge.s32.totalorder %s2657_s18, 1  ;;  %s2778_s19 = int_to_ptr.vmem [resolvable:$true] %s226_s19 }
  0x16   : > { %p3272_p4 = scmp.eq.s32.totalorder %s2773_s20, 0  ;;  %p214_p5 = scmp.lt.s32.totalorder %s2657_s18, 3 }
  0x17   : > { %s2661_s22 = smov [#allocation10]   ;;  %s2662_s25 = smov [#allocation13]  }
  0x18   : > { %p2780_p6 = pnand %p1933_p3, %p214_p5  ;;  %s250_s23 = sshll.u32 %s2661_s22, 4  ;;  %s2793_s23 = int_to_ptr.vmem [resolvable:$true] %s250_s23 }
  0x19   : > { %s275_s26 = sshll.u32 %s2662_s25, 4  ;;  %s2379_s29 = scalar_lea.hbm %s3265_s2, 256  ;;  %s2795_s26 = int_to_ptr.vmem [resolvable:$true] %s275_s26 }
  0x1a   : > { %s3275_s21 = scalar_select %p2780_p6, 1, 0 }
  0x1b   : > { %p2222_p8 = pneg %p2780_p6  ;;  %p2380_p10 = scmp.ne.s32.totalorder %s3265_s2, %s2379_s29 }
  0x1c   : > { %p2386_p0 = scmp.lt.u32.totalorder %s2379_s29, %s3265_s2 }
  0x1d   : > { %p2789_p9 = pnand %p2222_p8, %p3272_p4 }
  0x1f   : > { %p2805_p11 = pneg %p2789_p9 }
  0x21   : > { %p2382_p12 = pnand %p2805_p11, %p2380_p10 }
  0x23   : > { %p2383_p13 = pneg %p2382_p12 }
  0x25   : > { %p2388_p1 = pnand %p2386_p0, %p2383_p13 }
  0x27   : > { %2391 = shalt.err (!%p2388_p1)
}
  0x28   : > { %s2392_s13 = scalar_lea.vmem %s2778_s19, 256  ;;  %p2400_p8 = scmp.lt.s32.totalorder %s2778_s19, %s2778_s19 }
  0x29   : > { %p2393_p2 = scmp.ne.s32.totalorder %s2778_s19, %s2392_s13  ;;  %p2401_p7 = scmp.lt.s32.totalorder %s2392_s13, %s2392_s13 }
  0x2b   : > { %p2395_p3 = pnand %p2393_p2, %p2805_p11  ;;  %p2402_p10 = por %p2401_p7, %p2400_p8 }
  0x2d   : > { %p2396_p5 = pneg %p2395_p3 }
  0x2f   : > { %p2403_p12 = pnand %p2402_p10, %p2396_p5 }
  0x31   : > { %2406 = shalt.err (!%p2403_p12)
}
  0x32   : > { %s2663_s14 = smov 64   ;;  %s2664_s0 = smov 4  }
  0x33   : > { %2225 = dma.hbm_to_vmem [thread:$0]  (!%p2789_p9), %s3265_s2, 256, %s2778_s19, [#allocation8], %s2663_s14, %s2663_s14, %s2664_s0  }
  0x34   : > { %s2407_s29 = scalar_lea.hbm %s3267_s4, 256 }
  0x35   : > { %p2408_p7 = scmp.ne.s32.totalorder %s3267_s4, %s2407_s29  ;;  %p2414_p1 = scmp.lt.u32.totalorder %s2407_s29, %s3267_s4 }
  0x37   : > { %p2410_p13 = pnand %p2408_p7, %p2805_p11 }
  0x39   : > { %p2411_p0 = pneg %p2410_p13 }
  0x3b   : > { %p2416_p2 = pnand %p2414_p1, %p2411_p0 }
  0x3d   : > { %2419 = shalt.err (!%p2416_p2)
}
  0x3e   : > { %s2420_s19 = scalar_lea.vmem %s2793_s23, 256  ;;  %p2428_p10 = scmp.lt.s32.totalorder %s2793_s23, %s2793_s23 }
  0x3f   : > { %p2421_p3 = scmp.ne.s32.totalorder %s2793_s23, %s2420_s19  ;;  %p2429_p12 = scmp.lt.s32.totalorder %s2420_s19, %s2420_s19 }
  0x41   : > { %p2423_p5 = pnand %p2421_p3, %p2805_p11  ;;  %p2430_p7 = por %p2429_p12, %p2428_p10 }
  0x43   : > { %p2424_p8 = pneg %p2423_p5 }
  0x45   : > { %p2431_p13 = pnand %p2430_p7, %p2424_p8 }
  0x47   : > { %2434 = shalt.err (!%p2431_p13)
}
  0x48   : > { %2231 = dma.hbm_to_vmem [thread:$0]  (!%p2789_p9), %s3267_s4, 256, %s2793_s23, [#allocation11], %s2663_s14, %s2663_s14, %s2664_s0  }
  0x49   : > { %s2435_s28 = scalar_lea.hbm %s3269_s6, 16 }
  0x4a   : > { %p2436_p0 = scmp.ne.s32.totalorder %s3269_s6, %s2435_s28  ;;  %p2442_p3 = scmp.lt.u32.totalorder %s2435_s28, %s3269_s6 }
  0x4c   : > { %p2438_p1 = pnand %p2436_p0, %p2805_p11 }
  0x4e   : > { %p2439_p2 = pneg %p2438_p1 }
  0x50   : > { %p2444_p5 = pnand %p2442_p3, %p2439_p2 }
  0x52   : > { %2447 = shalt.err (!%p2444_p5)
}
  0x53   : > { %s2448_s23 = scalar_lea.vmem %s2795_s26, 16  ;;  %s2455_s14 = scalar_lea.vmem %s2795_s26, 32 }
  0x54   : > { %p2449_p8 = scmp.ne.s32.totalorder %s2795_s26, %s2448_s23  ;;  %p2456_p7 = scmp.lt.s32.totalorder %s2795_s26, %s2795_s26 }
  0x55   : > { %p2457_p13 = scmp.lt.s32.totalorder %s2455_s14, %s2448_s23 }
  0x56   : > { %p2451_p10 = pnand %p2449_p8, %p2805_p11 }
  0x57   : > { %p2458_p0 = por %p2457_p13, %p2456_p7 }
  0x58   : > { %p2452_p12 = pneg %p2451_p10 }
  0x5a   : > { %p2459_p1 = pnand %p2458_p0, %p2452_p12 }
  0x5c   : > { %2462 = shalt.err (!%p2459_p1)
}
  0x5d   : > { %2237 = dma.hbm_to_vmem [thread:$0]  (!%p2789_p9), %s3269_s6, 16, %s2795_s26, [#allocation14]  }
  0x5e   : > { %s2665_s19 = smov [#allocation9]   ;;  %s2666_s22 = smov [#allocation12]  }
  0x5f   : > { %s240_s13 = sshll.u32 %s2665_s19, 4  ;;  %s264_s25 = sshll.u32 %s2666_s22, 4  ;;  %s241_s13 = int_to_ptr.vmem [resolvable:$true] %s240_s13  ;;  %s265_s25 = int_to_ptr.vmem [resolvable:$true] %s264_s25 }
  0x60   : > { %s2463_s29 = scalar_lea.hbm %s3266_s3, 16 }
  0x61   : > { %p2464_p2 = scmp.ne.s32.totalorder %s3266_s3, %s2463_s29  ;;  %p2470_p8 = scmp.lt.u32.totalorder %s2463_s29, %s3266_s3 }
  0x63   : > { %p2466_p3 = pnand %p2464_p2, %p2805_p11 }
  0x65   : > { %p2467_p5 = pneg %p2466_p3 }
  0x67   : > { %p2472_p10 = pnand %p2470_p8, %p2467_p5 }
  0x69   : > { %2475 = shalt.err (!%p2472_p10)
}
  0x6a   : > { %s2476_s26 = scalar_lea.vmem %s241_s13, 16  ;;  %s2483_s14 = scalar_lea.vmem %s241_s13, 32 }
  0x6b   : > { %p2477_p12 = scmp.ne.s32.totalorder %s241_s13, %s2476_s26  ;;  %p2484_p0 = scmp.lt.s32.totalorder %s241_s13, %s241_s13 }
  0x6c   : > { %p2485_p1 = scmp.lt.s32.totalorder %s2483_s14, %s2476_s26 }
  0x6d   : > { %p2479_p7 = pnand %p2477_p12, %p2805_p11 }
  0x6e   : > { %p2486_p4 = por %p2485_p1, %p2484_p0 }
  0x6f   : > { %p2480_p13 = pneg %p2479_p7 }
  0x71   : > { %p2487_p6 = pnand %p2486_p4, %p2480_p13 }
  0x73   : > { %2490 = shalt.err (!%p2487_p6)
}
  0x74   : > { %2228 = dma.hbm_to_vmem [thread:$0]  (!%p2789_p9), %s3266_s3, 16, %s241_s13, [#allocation8]  }
  0x75   : > { %s2491_s27 = scalar_lea.hbm %s3268_s5, 16 }
  0x76   : > { %p2492_p2 = scmp.ne.s32.totalorder %s3268_s5, %s2491_s27  ;;  %p2498_p6 = scmp.lt.u32.totalorder %s2491_s27, %s3268_s5 }
  0x78   : > { %p2494_p3 = pnand %p2492_p2, %p2805_p11 }
  0x7a   : > { %p2495_p4 = pneg %p2494_p3 }
  0x7c   : > { %p2500_p5 = pnand %p2498_p6, %p2495_p4 }
  0x7e   : > { %2503 = shalt.err (!%p2500_p5)
}
  0x7f   : > { %s2504_s11 = scalar_lea.vmem %s265_s25, 16  ;;  %s2511_s13 = scalar_lea.vmem %s265_s25, 32 }
  0x80   : > { %p2505_p8 = scmp.ne.s32.totalorder %s265_s25, %s2504_s11  ;;  %p2512_p7 = scmp.lt.s32.totalorder %s265_s25, %s265_s25 }
  0x81   : > { %p2513_p13 = scmp.lt.s32.totalorder %s2511_s13, %s2504_s11 }
  0x82   : > { %p2507_p10 = pnand %p2505_p8, %p2805_p11 }
  0x83   : > { %p2514_p0 = por %p2513_p13, %p2512_p7 }
  0x84   : > { %p2508_p12 = pneg %p2507_p10 }
  0x86   : > { %p2515_p1 = pnand %p2514_p0, %p2508_p12 }
  0x88   : > { %2518 = shalt.err (!%p2515_p1)
}
  0x89   : > { %2234 = dma.hbm_to_vmem [thread:$0]  (!%p2789_p9), %s3268_s5, 16, %s265_s25, [#allocation11]  }
  0x8a   : > { %s2667_s14 = smov [#allocation15]   ;;  %s2519_s22 = scalar_lea.hbm %s3270_s7, 16 }
  0x8b   : > { %s286_s0 = sshll.u32 %s2667_s14, 4  ;;  %p2520_p2 = scmp.ne.s32.totalorder %s3270_s7, %s2519_s22  ;;  %s287_s0 = int_to_ptr.vmem [resolvable:$true] %s286_s0 }
  0x8c   : > { %p2526_p6 = scmp.lt.u32.totalorder %s2519_s22, %s3270_s7 }
  0x8d   : > { %p2522_p3 = pnand %p2520_p2, %p2805_p11 }
  0x8f   : > { %p2523_p4 = pneg %p2522_p3 }
  0x91   : > { %p2528_p5 = pnand %p2526_p6, %p2523_p4 }
  0x93   : > { %2531 = shalt.err (!%p2528_p5)
}
  0x94   : > { %s2532_s25 = scalar_lea.vmem %s287_s0, 16  ;;  %s2539_s9 = scalar_lea.vmem %s287_s0, 32 }
  0x95   : > { %p2533_p8 = scmp.ne.s32.totalorder %s287_s0, %s2532_s25  ;;  %p2540_p7 = scmp.lt.s32.totalorder %s287_s0, %s287_s0 }
  0x96   : > { %p2541_p13 = scmp.lt.s32.totalorder %s2539_s9, %s2532_s25 }
  0x97   : > { %p2535_p10 = pnand %p2533_p8, %p2805_p11 }
  0x98   : > { %p2542_p0 = por %p2541_p13, %p2540_p7 }
  0x99   : > { %p2536_p12 = pneg %p2535_p10 }
  0x9b   : > { %p2543_p1 = pnand %p2542_p0, %p2536_p12 }
  0x9d   : > { %2546 = shalt.err (!%p2543_p1)
}
  0x9e   : > { %2240 = dma.hbm_to_vmem [thread:$0]  (!%p2789_p9), %s3270_s7, 16, %s287_s0, [#allocation14]  }
  0x9f   : > { %s1932_s10 = sadd.s32 4294967294, %s2657_s18   ;;  %s2929_s24 = sadd.s32 1, %s2657_s18  }
  0xa0   : > { %s35_s23 = ssub.s32 %s2657_s18, %s2929_s24  ;;  %s38_s26 = sadd.s32 1, %s2653_s17 }
  0xa1   : > { %p36_p11 = scmp.eq.s32.totalorder %s35_s23, 0  ;;  %p45_p2 = scmp.ne.s32.totalorder %s2653_s17, %s2649_s16 }
  0xa2   : > { %p46_p3 = scmp.eq.s32.totalorder %s2657_s18, 0  ;;  %p51_p4 = scmp.ne.s32.totalorder %s2649_s16, %s2645_s15 }
  0xa3   : > { %s2940_s14 = scalar_select %p36_p11, %s2653_s17, %s38_s26  }
  0xa4   : > { %p2942_p6 = por %p46_p3, %p45_p2  ;;  %p3279_p5 = scmp.eq.s32.totalorder %s2773_s20, 0 }
  0xa5   : > { %p201_p8 = scmp.eq.s32.totalorder %s2773_s20, 1  ;;  %p207_p10 = scmp.eq.s32.totalorder %s1932_s10, 1 }
  0xa6   : > { %p2948_p9 = por %p3279_p5, %p51_p4  ;;  %p2255_p12 = scmp.lt.s32.totalorder %s2657_s18, 2 }
  0xa7   : > { %s297_s19 = sand.u32 1, %s2653_s17   ;;  %p2955_p7 = por %p201_p8, %p45_p2 }
  0xa8   : > { %p2959_p13 = por %p207_p10, %p51_p4  ;;  %s1941_s28 = sshll.u32 %s297_s19, 2 }
  0xa9   : > { %s3281_s22 = scalar_select %p2955_p7, 1, 0 }
  0xaa   : > { %s3282_s27 = scalar_select %p2959_p13, 1, 0 }
  0xab   : > { %s1942_s29 = sshll.u32 %s2657_s18, 6  ;;  %s301_s11 = scalar_lea.vmem [#allocation4], %s1941_s28 }
  0xac   : > { %s2967_s9 = scalar_lea.hbm %s3264_s1, %s1942_s29  ;;  %s308_s13 = sshll.u32 %s301_s11, 4  ;;  %s2969_s13 = int_to_ptr.vmem [resolvable:$true] %s308_s13 }
  0xad   : > { %p2973_p0 = pnand %p2255_p12, %p2942_p6  ;;  %s298_s23 = scalar_lea.sflag [#allocation5], %s297_s19 }
  0xae   : > { %s2547_s26 = scalar_lea.hbm %s2967_s9, 64  ;;  %s2552_s30 = scalar_lea.hbm %s3264_s1, 128 }
  0xaf   : > { %p2548_p1 = scmp.ne.s32.totalorder %s2967_s9, %s2547_s26  ;;  %p2549_p11 = pneg %p2973_p0 }
  0xb0   : > { %p2553_p4 = scmp.lt.u32.totalorder %s2967_s9, %s3264_s1  ;;  %p2554_p6 = scmp.lt.u32.totalorder %s2552_s30, %s2547_s26 }
  0xb1   : > { %p2550_p2 = pnand %p2549_p11, %p2548_p1  ;;  %p2556_p8 = scmp.lt.u32.totalorder %s2547_s26, %s2967_s9 }
  0xb2   : > { %p2555_p5 = por %p2554_p6, %p2553_p4 }
  0xb3   : > { %p2551_p3 = pneg %p2550_p2 }
  0xb4   : > { %p2557_p10 = por %p2556_p8, %p2555_p5 }
  0xb6   : > { %p2558_p12 = pnand %p2557_p10, %p2551_p3 }
  0xb8   : > { %2561 = shalt.err (!%p2558_p12)
}
  0xb9   : > { %s2562_s19 = scalar_lea.vmem %s2969_s13, 64  ;;  %s2668_s11 = smov [#allocation4]  }
  0xba   : > { %p2563_p1 = scmp.ne.s32.totalorder %s2969_s13, %s2562_s19  ;;  %s2567_s28 = sshll.u32 %s2668_s11, 4  ;;  %s2568_s28 = int_to_ptr.vmem [resolvable:$false] %s2567_s28 }
  0xbb   : > { %s2569_s29 = scalar_lea.vmem %s2568_s28, 128  ;;  %p2570_p7 = scmp.lt.s32.totalorder %s2969_s13, %s2568_s28 }
  0xbc   : > { %p2565_p2 = pnand %p2563_p1, %p2549_p11  ;;  %p2571_p4 = scmp.lt.s32.totalorder %s2569_s29, %s2562_s19 }
  0xbe   : > { %p2566_p13 = pneg %p2565_p2  ;;  %p2572_p6 = por %p2571_p4, %p2570_p7 }
  0xc0   : > { %p2573_p5 = pnand %p2572_p6, %p2566_p13 }
  0xc2   : > { %2576 = shalt.err (!%p2573_p5)
}
  0xc3   : > { %2244 = dma.hbm_to_vmem [thread:$0]  (!%p2973_p0), %s2967_s9, 64, %s2969_s13, %s298_s23  }
  0xc4   : > { %p3284_p3 = scmp.ne.s32.totalorder %s3275_s21, 0 }
  0xc5   : > { %s3005_s26 = sand.u32 (!%p3284_p3), 1, %s2649_s16  }
  0xc6   : > { %317 = sbr.rel (%p3284_p3) target bundleno = 4373 (0x1115), region = 48  ;;  %s1944_s30 = sshll.u32 (!%p3284_p3), %s3005_s26, 2 }
  0xc7   : > { %s320_s12 = scalar_lea.sflag (!%p3284_p3), [#allocation5], %s3005_s26  ;;  %s323_s25 = scalar_lea.vmem (!%p3284_p3), [#allocation4], %s1944_s30 }
  0xcd   : > { %2624 = dma.done.wait (%p2948_p9), %s320_s12, 64  }
  0xce   : > { %2626 = vsyncadd (%p2948_p9), %s320_s12, 4294967232  ;;  %p3285_p7 = scmp.eq.s32.totalorder %s2773_s20, 0 }
  0xd0   : > { %2628 = dma.done.wait (%p3285_p7), [#allocation8], 272   ;;  %p3286_p13 = pmov %p3285_p7 }
  0xd1   : > { %p3287_p0 = pmov %p3285_p7 }
  0xd2   : > { %2630 = vsyncadd (%p3286_p13), [#allocation8], 4294967024 }
  0xd3   : > { %2632 = dma.done.wait (%p3287_p0), [#allocation11], 272   ;;  %p3288_p11 = pmov %p3287_p0 }
  0xd4   : > { %p3289_p8 = pmov %p3287_p0 }
  0xd5   : > { %2634 = vsyncadd (%p3288_p11), [#allocation11], 4294967024 }
  0xd6   : > { %2636 = dma.done.wait (%p3289_p8), [#allocation14], 32   ;;  %p3290_p10 = pmov %p3287_p0 }
  0xd7   : > { %v2669_v0 = vmov 0.0   ;;  %vm2670_vm0 = vmmov 0   ;;  %v2329_v1 = vld [vmem:[#allocation7] sm:$0xff]   ;;  %v2330_v2 = vld [vmem:[#allocation7 + $0x8] sm:$0xff]   ;;  %v3034_v3 = vld [vmem:[%s323_s25] sm:$0xf]  ;;  %v448_v17 = vlaneseq }
  0xd8   : > { %2638 = vsyncadd (%p3290_p10), [#allocation14], 4294967264  ;;  %2042 = vmatprep.subr.bf16.mxu0 %v2669_v0  ;;  %2046 = vmatprep.mubr.msk.bf16.mxu0 %vm2670_vm0, %v2669_v0  ;;  %vm404_vm1 = vcmask 261120   ;;  %v1952_v4 = vld [vmem:[#allocation9] ss:$0 sm:$0xff]  ;;  %s2671_s21 = smov 64  }
  0xd9   : > { %2050 = vmatprep.subr.bf16.mxu1 %v2669_v0  ;;  %2052 = vmatprep.mubr.msk.bf16.mxu1 %vm2670_vm0, %v2669_v0  ;;  %s2672_s0 = smov 96   ;;  %s2673_s9 = smov 92   ;;  %vm531_vm2 = vcmask 1043456   ;;  %vm468_vm3 = vcmask 31744   ;;  %v449_v18 = vand.u32 127, %v448_v17  ;;  %v451_v19 = vshrl.u32 %v448_v17, 7 }
  0xda   : > { %2043 = vmatpush3.bf16.msra.mxu0 %v2329_v1  ;;  %s2674_s13 = smov 124   ;;  %vm515_vm5 = vcmask 64512   ;;  %s2675_s10 = smov 88   ;;  %v578_v36 = vld [vmem:[#allocation10] sm:$0x3]  ;;  %vm582_vm6 = vcmask 1041408  }
  0xdb   : > { %2044 = vmatprep.subr.bf16.mxu0 %v2669_v0  ;;  %vm452_vm4 = vcmp.gt.s32.totalorder %v449_v18, %v451_v19  ;;  %v584_v37 = vsel %vm582_vm6, %v578_v36, 0  ;;  %s2676_s23 = smov 60   ;;  %s2677_s19 = smov 120   ;;  %v1956_v36 = vld [vmem:[#allocation12] ss:$0 sm:$0xff]  ;;  %vm1789_vm7 = vcmask 257024  }
  0xdc   : > { %v3058_v20 = vsel %vm452_vm4, -1e+09, %v2669_v0  ;;  %s2678_s11 = smov 56   ;;  %s2679_s28 = smov 116  }
  0xdd   : > { %s2680_s29 = smov 84   ;;  %s2681_s12 = smov 80  }
  0xde   : > { %2045 = vmatpush3.bf16.msra.mxu0 %v2330_v2  ;;  %s2682_s25 = smov 112   ;;  %p3291_p12 = scmp.ne.s32.totalorder %s3281_s22, 0 }
  0xdf   : > { %2056 = vmatprep.subr.bf16.mxu0 %v2669_v0 }
  0xe1   : > { %2047 = vmatmul.mubr.msk.bf16.vlgmr.msra.gmra.mrb[0].mxu0 %vm404_vm1, %v3034_v3 }
  0xe2   : > { %2058 = vmatprep.mubr.msk.bf16.mxu0 %vm2670_vm0, %v2669_v0 }
 0x1b4   : > { %v442_v5 = vpop.f32.mrb[0].mxu0 }
 0x1b5   : > { %v443_v6 = vadd.f32 %v1952_v4, %v442_v5  ;;  %v2048_v7 = vpop.f32.mrb[1].mxu0  ;;  %v2331_v5 = vld [vmem:[#allocation10] ss:$0 sps:$4 sm:$0xcc]  }
 0x1b6   : > { %v445_v8 = vpop.f32.mrb[2].mxu0 }
 0x1b7   : > { %v3041_v9 = vpack.c.bf16 %v443_v6, %v443_v6  ;;  %v2049_v10 = vpop.f32.mrb[3].mxu0  ;;  %v462_v11 = vmul.f32 0.5, %v443_v6  ;;  %v743_v6 = vrot.slane %v2331_v5, 2 }
 0x1b9   : > { %526 = vrot.lane.b32.xlu1 %v3041_v9, %s2671_s21  ;;  %466 = vrot.lane.b32.xlu0 %v3041_v9, %s2672_s0  ;;  %v3046_v12 = vpack.c.bf16 %v462_v11, %v462_v11  ;;  %v748_v7 = vsel %vm582_vm6, %v743_v6, 0  ;;  %s2683_s21 = smov 52   ;;  %s2684_s0 = smov 48  }
 0x1bd   : > { %630 = vrot.lane.b32.xlu1 %v3041_v9, %s2673_s9  ;;  %s2685_s9 = smov 108  }
 0x1c1   : > { %628 = vrot.lane.b32.xlu1 %v3046_v12, %s2674_s13  ;;  %s2686_s13 = smov 76  }
 0x22b   : > { %v527_v13 = vpop.permute.xlu1 %526  ;;  %v467_v14 = vpop.permute.xlu0 %466 }
 0x22c   : > { %v533_v15 = vsel %vm531_vm2, %v527_v13, 0  ;;  %v473_v16 = vsel %vm468_vm3, %v467_v14, 0 }
 0x22d   : > { %2051 = vmatpush3.bf16.xpose.msra.mxu1 %v473_v16  ;;  %2057 = vmatpush3.bf16.msra.mxu0 %v533_v15 }
 0x22e   : > { %2068 = vmatprep.subr.bf16.mxu0 %v2669_v0  ;;  %2062 = vmatprep.subr.bf16.mxu1 %v2669_v0 }
 0x22f   : > { %v631_v31 = vpop.permute.xlu1 %630 }
 0x230   : > { %v636_v34 = vsel %vm468_vm3, %v631_v31, 0 }
 0x233   : > { %v629_v35 = vpop.permute.xlu1 %628 }
 0x234   : > { %2053 = vmatmul.mubr.msk.bf16.vlgmr.msra.gmra.mrb[0].mxu1 %vm468_vm3, %v3046_v12 }
 0x235   : > { %2064 = vmatprep.mubr.msk.bf16.mxu1 %vm2670_vm0, %v2669_v0  ;;  %2063 = vmatpush3.bf16.msra.mxu1 %v584_v37 }
 0x236   : > { %2074 = vmatprep.subr.bf16.mxu1 %v2669_v0 }
 0x307   : > { %v509_v21 = vpop.f32.mrb[0].mxu1 }
 0x308   : > { %v510_v22 = vadd.f32 %v509_v21, %v3058_v20  ;;  %v2054_v23 = vpop.f32.mrb[1].mxu1 }
 0x309   : > { %v512_v24 = vpop.f32.mrb[2].mxu1 }
 0x30a   : > { %v2055_v25 = vpop.f32.mrb[3].mxu1  ;;  %v516_v26 = vsel %vm515_vm5, %v510_v22, -inf }
 0x30b   : > { %517 = vmax.xlane.f32.xlu0 %v516_v26 }
 0x398   : > { %v518_v27 = vpop.xlane.xlu0 %517 }
 0x399   : > { %v519_v28 = vsub.f32 %v510_v22, %v518_v27 }
 0x39b   : > { %v520_v29 = vmul.f32 1.442695, %v519_v28 }
 0x39d   : > { %2335 = vpow2.f32 %v520_v29 }
 0x3a7   : > { %v2336_v30 = vpop.eup %2335 }
 0x3a8   : > { %v522_v32 = vsel %vm515_vm5, %v2336_v30, 0.0  ;;  %v525_v33 = vpack.c.bf16 %v2336_v30, %v2336_v30 }
 0x3a9   : > { %523 = vadd.xlane.f32.xlu1 %v522_v32 }
 0x3aa   : > { %2059 = vmatmul.mubr.msk.bf16.vlgmr.msra.gmra.mrb[4].mxu0 %vm515_vm5, %v525_v33 }
 0x3ab   : > { %2069 = vmatpush3.bf16.xpose.msra.mxu0 %v636_v34  ;;  %2070 = vmatprep.mubr.msk.bf16.mxu0 %vm2670_vm0, %v2669_v0 }
 0x3ac   : > { %2080 = vmatprep.subr.bf16.mxu0 %v2669_v0 }
 0x3b2   : > { %2071 = vmatmul.mubr.msk.bf16.vlgmr.msra.gmra.mrb[8].mxu0 %vm468_vm3, %v629_v35 }
 0x3b3   : > { %2082 = vmatprep.mubr.msk.bf16.mxu0 %vm2670_vm0, %v2669_v0  ;;  %2081 = vmatpush3.bf16.msra.mxu0 %v748_v7 }
 0x3b4   : > { %2092 = vmatprep.subr.bf16.mxu0 %v2669_v0 }
 0x3ba   : > { %793 = vrot.lane.b32.xlu1 %v3041_v9, %s2675_s10  ;;  %s2687_s10 = smov 72  }
 0x436   : > { %v524_v38 = vpop.xlane.xlu1 %523 }
 0x437   : > { %2337 = vrcp.f32 %v524_v38 }
 0x43a   : > { %v794_v58 = vpop.permute.xlu1 %793 }
 0x43b   : > { %v799_v61 = vsel %vm468_vm3, %v794_v58, 0 }
 0x441   : > { %v2338_v39 = vpop.eup %2337 }
 0x47d   : > { %v569_v40 = vpop.f32.mrb[4].mxu0 }
 0x47e   : > { %v576_v41 = vmul.f32 %v2338_v39, %v569_v40  ;;  %v2060_v42 = vpop.f32.mrb[5].mxu0 }
 0x47f   : > { %v572_v43 = vpop.f32.mrb[6].mxu0 }
 0x480   : > { %v577_v44 = vpack.c.bf16 %v576_v41, %v576_v41  ;;  %v2061_v45 = vpop.f32.mrb[7].mxu0  ;;  %v902_v43 = vld [vmem:[#allocation10 + $0x4] sm:$0x3] }
 0x482   : > { %2065 = vmatmul.mubr.msk.bf16.vlgmr.msra.gmra.mrb[4].mxu1 %vm468_vm3, %v577_v44  ;;  %v907_v44 = vsel %vm582_vm6, %v902_v43, 0 }
 0x483   : > { %2076 = vmatprep.mubr.msk.bf16.mxu1 %vm2670_vm0, %v2669_v0 }
 0x485   : > { %v672_v46 = vpop.f32.mrb[8].mxu0 }
 0x486   : > { %v673_v47 = vadd.f32 %v672_v46, %v3058_v20  ;;  %v2072_v48 = vpop.f32.mrb[9].mxu0 }
 0x487   : > { %v675_v49 = vpop.f32.mrb[10].mxu0 }
 0x488   : > { %v2073_v50 = vpop.f32.mrb[11].mxu0  ;;  %v678_v51 = vsel %vm515_vm5, %v673_v47, -inf }
 0x489   : > { %679 = vmax.xlane.f32.xlu0 %v678_v51 }
 0x49f   : > { %688 = vrot.lane.b32.xlu0 %v3041_v9, %s2676_s23  ;;  %s2688_s23 = smov 104  }
 0x4a3   : > { %791 = vrot.lane.b32.xlu0 %v3046_v12, %s2677_s19  ;;  %s2689_s19 = smov 44  }
 0x516   : > { %v680_v52 = vpop.xlane.xlu0 %679 }
 0x517   : > { %v681_v53 = vsub.f32 %v673_v47, %v680_v52 }
 0x519   : > { %v682_v54 = vmul.f32 1.442695, %v681_v53 }
 0x51a   : > { %v689_v55 = vpop.permute.xlu0 %688 }
 0x51b   : > { %2339 = vpow2.f32 %v682_v54  ;;  %v694_v56 = vsel %vm531_vm2, %v689_v55, 0 }
 0x51c   : > { %2075 = vmatpush3.bf16.msra.mxu1 %v694_v56 }
 0x51d   : > { %2086 = vmatprep.subr.bf16.mxu1 %v2669_v0 }
 0x51e   : > { %v792_v62 = vpop.permute.xlu0 %791 }
 0x525   : > { %v2340_v57 = vpop.eup %2339 }
 0x526   : > { %v684_v59 = vsel %vm515_vm5, %v2340_v57, 0.0  ;;  %v687_v60 = vpack.c.bf16 %v2340_v57, %v2340_v57 }
 0x527   : > { %685 = vadd.xlane.f32.xlu0 %v684_v59 }
 0x528   : > { %2077 = vmatmul.mubr.msk.bf16.vlgmr.msra.gmra.mrb[8].mxu1 %vm515_vm5, %v687_v60 }
 0x529   : > { %2087 = vmatpush3.bf16.xpose.msra.mxu1 %v799_v61  ;;  %2088 = vmatprep.mubr.msk.bf16.mxu1 %vm2670_vm0, %v2669_v0 }
 0x52a   : > { %2098 = vmatprep.subr.bf16.mxu1 %v2669_v0 }
 0x530   : > { %2089 = vmatmul.mubr.msk.bf16.vlgmr.msra.gmra.mrb[12].mxu1 %vm468_vm3, %v792_v62 }
 0x531   : > { %2100 = vmatprep.mubr.msk.bf16.mxu1 %vm2670_vm0, %v2669_v0  ;;  %2099 = vmatpush3.bf16.msra.mxu1 %v907_v44 }
 0x532   : > { %2110 = vmatprep.subr.bf16.mxu1 %v2669_v0 }
 0x53d   : > { %851 = vrot.lane.b32.xlu0 %v3041_v9, %s2678_s11  ;;  %s2690_s11 = smov 40  }
 0x541   : > { %950 = vrot.lane.b32.xlu0 %v3046_v12, %s2679_s28  ;;  %s2691_s28 = smov 100  }
 0x555   : > { %v620_v63 = vpop.f32.mrb[4].mxu1 }
 0x556   : > { %v2066_v1 = vpop.f32.mrb[5].mxu1  ;;  %v626_v37 = vadd.f32 %v1956_v36, %v620_v63 }
 0x557   : > { %v623_v2 = vpop.f32.mrb[6].mxu1 }
 0x558   : > { %v2067_v4 = vpop.f32.mrb[7].mxu1 }
 0x5b4   : > { %v686_v8 = vpop.xlane.xlu0 %685 }
 0x5b5   : > { %2341 = vrcp.f32 %v686_v8 }
 0x5b8   : > { %v852_v15 = vpop.permute.xlu0 %851 }
 0x5b9   : > { %v857_v19 = vsel %vm531_vm2, %v852_v15, 0  ;;  %v2332_v15 = vld [vmem:[#allocation10 + $0x4] ss:$0 sps:$4 sm:$0xcc]  }
 0x5bc   : > { %v951_v35 = vpop.permute.xlu0 %950 }
 0x5bf   : > { %v2342_v10 = vpop.eup %2341 }
 0x5fb   : > { %v730_v11 = vpop.f32.mrb[8].mxu1 }
 0x5fc   : > { %v737_v13 = vmul.f32 %v2342_v10, %v730_v11  ;;  %v2078_v14 = vpop.f32.mrb[9].mxu1 }
 0x5fd   : > { %v733_v16 = vpop.f32.mrb[10].mxu1 }
 0x5fe   : > { %v738_v17 = vpack.c.bf16 %v737_v13, %v737_v13  ;;  %v2079_v18 = vpop.f32.mrb[11].mxu1  ;;  %v1065_v16 = vrot.slane %v2332_v15, 2 }
 0x600   : > { %2083 = vmatmul.mubr.msk.bf16.vlgmr.msra.gmra.mrb[12].mxu0 %vm468_vm3, %v738_v17  ;;  %v1070_v17 = vsel %vm582_vm6, %v1065_v16, 0 }
 0x601   : > { %2093 = vmatpush3.bf16.msra.mxu0 %v857_v19  ;;  %2094 = vmatprep.mubr.msk.bf16.mxu0 %vm2670_vm0, %v2669_v0 }
 0x602   : > { %2104 = vmatprep.subr.bf16.mxu0 %v2669_v0 }
 0x603   : > { %v835_v21 = vpop.f32.mrb[12].mxu1 }
 0x604   : > { %v836_v22 = vadd.f32 %v835_v21, %v3058_v20  ;;  %v2090_v23 = vpop.f32.mrb[13].mxu1 }
 0x605   : > { %v838_v24 = vpop.f32.mrb[14].mxu1 }
 0x606   : > { %v2091_v25 = vpop.f32.mrb[15].mxu1  ;;  %v841_v26 = vsel %vm515_vm5, %v836_v22, -inf }
 0x607   : > { %842 = vmax.xlane.f32.xlu1 %v841_v26 }
 0x618   : > { %952 = vrot.lane.b32.xlu1 %v3041_v9, %s2680_s29  ;;  %s2692_s29 = smov 68  }
 0x694   : > { %v843_v27 = vpop.xlane.xlu1 %842 }
 0x695   : > { %v844_v28 = vsub.f32 %v836_v22, %v843_v27 }
 0x697   : > { %v845_v29 = vmul.f32 1.442695, %v844_v28 }
 0x698   : > { %v953_v31 = vpop.permute.xlu1 %952 }
 0x699   : > { %2343 = vpow2.f32 %v845_v29  ;;  %v958_v34 = vsel %vm468_vm3, %v953_v31, 0 }
 0x6a3   : > { %v2344_v30 = vpop.eup %2343 }
 0x6a4   : > { %v847_v32 = vsel %vm515_vm5, %v2344_v30, 0.0  ;;  %v850_v33 = vpack.c.bf16 %v2344_v30, %v2344_v30 }
 0x6a5   : > { %848 = vadd.xlane.f32.xlu1 %v847_v32 }
 0x6a6   : > { %2095 = vmatmul.mubr.msk.bf16.vlgmr.msra.gmra.mrb[16].mxu0 %vm515_vm5, %v850_v33 }
 0x6a7   : > { %2105 = vmatpush3.bf16.xpose.msra.mxu0 %v958_v34  ;;  %2106 = vmatprep.mubr.msk.bf16.mxu0 %vm2670_vm0, %v2669_v0 }
 0x6a8   : > { %2116 = vmatprep.subr.bf16.mxu0 %v2669_v0 }
 0x6ae   : > { %2107 = vmatmul.mubr.msk.bf16.vlgmr.msra.gmra.mrb[20].mxu0 %vm468_vm3, %v951_v35 }
 0x6af   : > { %2118 = vmatprep.mubr.msk.bf16.mxu0 %vm2670_vm0, %v2669_v0  ;;  %2117 = vmatpush3.bf16.msra.mxu0 %v1070_v17 }
 0x6b0   : > { %2128 = vmatprep.subr.bf16.mxu0 %v2669_v0 }
 0x6b6   : > { %1115 = vrot.lane.b32.xlu1 %v3041_v9, %s2681_s12  ;;  %s2693_s12 = smov 36  }
 0x6ba   : > { %1113 = vrot.lane.b32.xlu1 %v3046_v12, %s2682_s25  ;;  %s1988_s25 = sshll.u32 %s2773_s20, 6  ;;  %s2694_s20 = smov [#allocation16]  }
 0x6d3   : > { %v784_v38 = vpop.f32.mrb[12].mxu0 }
 0x6d4   : > { %v790_v39 = vadd.f32 %v784_v38, %v626_v37  ;;  %v2084_v40 = vpop.f32.mrb[13].mxu0 }
 0x6d5   : > { %v787_v41 = vpop.f32.mrb[14].mxu0 }
 0x6d6   : > { %v2085_v42 = vpop.f32.mrb[15].mxu0 }
 0x732   : > { %v849_v45 = vpop.xlane.xlu1 %848 }
 0x733   : > { %2345 = vrcp.f32 %v849_v45 }
 0x736   : > { %v1116_v2 = vpop.permute.xlu1 %1115 }
 0x737   : > { %v1121_v6 = vsel %vm468_vm3, %v1116_v2, 0 }
 0x73a   : > { %v1114_v7 = vpop.permute.xlu1 %1113 }
 0x73d   : > { %v2346_v46 = vpop.eup %2345 }
 0x779   : > { %v893_v47 = vpop.f32.mrb[16].mxu0 }
 0x77a   : > { %v900_v48 = vmul.f32 %v2346_v46, %v893_v47  ;;  %v2096_v49 = vpop.f32.mrb[17].mxu0 }
 0x77b   : > { %v896_v50 = vpop.f32.mrb[18].mxu0  ;;  %v1224_v49 = vld [vmem:[#allocation10 + $0x8] sm:$0x3] }
 0x77c   : > { %v901_v51 = vpack.c.bf16 %v900_v48, %v900_v48  ;;  %v2097_v52 = vpop.f32.mrb[19].mxu0  ;;  %v1229_v50 = vsel %vm582_vm6, %v1224_v49, 0 }
 0x77e   : > { %2101 = vmatmul.mubr.msk.bf16.vlgmr.msra.gmra.mrb[16].mxu1 %vm468_vm3, %v901_v51 }
 0x77f   : > { %2112 = vmatprep.mubr.msk.bf16.mxu1 %vm2670_vm0, %v2669_v0 }
 0x781   : > { %v994_v53 = vpop.f32.mrb[20].mxu0 }
 0x782   : > { %v995_v54 = vadd.f32 %v994_v53, %v3058_v20  ;;  %v2108_v55 = vpop.f32.mrb[21].mxu0 }
 0x783   : > { %v997_v56 = vpop.f32.mrb[22].mxu0 }
 0x784   : > { %v2109_v57 = vpop.f32.mrb[23].mxu0  ;;  %v1000_v58 = vsel %vm515_vm5, %v995_v54, -inf }
 0x785   : > { %1001 = vmax.xlane.f32.xlu0 %v1000_v58 }
 0x79b   : > { %1010 = vrot.lane.b32.xlu0 %v3041_v9, %s2683_s21  ;;  %s377_s21 = scalar_lea.vmem [#allocation16], %s1944_s30  ;;  %s2581_s30 = sshll.u32 %s2694_s20, 4  ;;  %s2582_s30 = int_to_ptr.vmem [resolvable:$false] %s2581_s30 }
 0x812   : > { %v1002_v59 = vpop.xlane.xlu0 %1001 }
 0x813   : > { %v1003_v60 = vsub.f32 %v995_v54, %v1002_v59 }
 0x815   : > { %v1004_v61 = vmul.f32 1.442695, %v1003_v60 }
 0x816   : > { %v1011_v62 = vpop.permute.xlu0 %1010 }
 0x817   : > { %2347 = vpow2.f32 %v1004_v61  ;;  %v1016_v63 = vsel %vm531_vm2, %v1011_v62, 0 }
 0x818   : > { %2111 = vmatpush3.bf16.msra.mxu1 %v1016_v63 }
 0x819   : > { %2122 = vmatprep.subr.bf16.mxu1 %v2669_v0 }
 0x821   : > { %v2348_v1 = vpop.eup %2347 }
 0x822   : > { %v1006_v4 = vsel %vm515_vm5, %v2348_v1, 0.0  ;;  %v1009_v5 = vpack.c.bf16 %v2348_v1, %v2348_v1 }
 0x823   : > { %1007 = vadd.xlane.f32.xlu0 %v1006_v4 }
 0x824   : > { %2113 = vmatmul.mubr.msk.bf16.vlgmr.msra.gmra.mrb[20].mxu1 %vm515_vm5, %v1009_v5 }
 0x825   : > { %2123 = vmatpush3.bf16.xpose.msra.mxu1 %v1121_v6  ;;  %2124 = vmatprep.mubr.msk.bf16.mxu1 %vm2670_vm0, %v2669_v0 }
 0x826   : > { %2134 = vmatprep.subr.bf16.mxu1 %v2669_v0 }
 0x82c   : > { %2125 = vmatmul.mubr.msk.bf16.vlgmr.msra.gmra.mrb[24].mxu1 %vm468_vm3, %v1114_v7 }
 0x82d   : > { %2136 = vmatprep.mubr.msk.bf16.mxu1 %vm2670_vm0, %v2669_v0  ;;  %2135 = vmatpush3.bf16.msra.mxu1 %v1229_v50 }
 0x82e   : > { %2146 = vmatprep.subr.bf16.mxu1 %v2669_v0 }
 0x839   : > { %1173 = vrot.lane.b32.xlu0 %v3041_v9, %s2684_s0  ;;  %s1805_s0 = sshll.u32 %s377_s21, 4  ;;  %s3221_s0 = int_to_ptr.vmem [resolvable:$true] %s1805_s0 }
 0x83a   : > { %p2584_p4 = scmp.lt.s32.totalorder %s3221_s0, %s2582_s30 }
 0x83d   : > { %1272 = vrot.lane.b32.xlu0 %v3046_v12, %s2685_s9 }
 0x851   : > { %v943_v8 = vpop.f32.mrb[16].mxu1 }
 0x852   : > { %v949_v10 = vadd.f32 %v943_v8, %v790_v39  ;;  %v2102_v11 = vpop.f32.mrb[17].mxu1 }
 0x853   : > { %v946_v13 = vpop.f32.mrb[18].mxu1 }
 0x854   : > { %v2103_v14 = vpop.f32.mrb[19].mxu1 }
 0x8b0   : > { %v1008_v18 = vpop.xlane.xlu0 %1007 }
 0x8b1   : > { %2349 = vrcp.f32 %v1008_v18 }
 0x8b4   : > { %v1174_v24 = vpop.permute.xlu0 %1173 }
 0x8b5   : > { %v1179_v28 = vsel %vm531_vm2, %v1174_v24, 0 }
 0x8b8   : > { %v1273_v43 = vpop.permute.xlu0 %1272 }
 0x8bb   : > { %v2350_v19 = vpop.eup %2349 }
 0x8f7   : > { %v1052_v21 = vpop.f32.mrb[20].mxu1 }
 0x8f8   : > { %v1059_v22 = vmul.f32 %v2350_v19, %v1052_v21  ;;  %v2114_v23 = vpop.f32.mrb[21].mxu1 }
 0x8f9   : > { %v1055_v25 = vpop.f32.mrb[22].mxu1 }
 0x8fa   : > { %v1060_v26 = vpack.c.bf16 %v1059_v22, %v1059_v22  ;;  %v2115_v27 = vpop.f32.mrb[23].mxu1  ;;  %v2333_v22 = vld [vmem:[#allocation10 + $0x8] ss:$0 sps:$4 sm:$0xcc]  }
 0x8fb   : > { %v1387_v23 = vrot.slane %v2333_v22, 2 }
 0x8fc   : > { %2119 = vmatmul.mubr.msk.bf16.vlgmr.msra.gmra.mrb[24].mxu0 %vm468_vm3, %v1060_v26 }
 0x8fd   : > { %2129 = vmatpush3.bf16.msra.mxu0 %v1179_v28  ;;  %2130 = vmatprep.mubr.msk.bf16.mxu0 %vm2670_vm0, %v2669_v0  ;;  %v1392_v24 = vsel %vm582_vm6, %v1387_v23, 0 }
 0x8fe   : > { %2140 = vmatprep.subr.bf16.mxu0 %v2669_v0 }
 0x8ff   : > { %v1157_v29 = vpop.f32.mrb[24].mxu1 }
 0x900   : > { %v1158_v30 = vadd.f32 %v1157_v29, %v3058_v20  ;;  %v2126_v31 = vpop.f32.mrb[25].mxu1 }
 0x901   : > { %v1160_v32 = vpop.f32.mrb[26].mxu1 }
 0x902   : > { %v2127_v33 = vpop.f32.mrb[27].mxu1  ;;  %v1163_v34 = vsel %vm515_vm5, %v1158_v30, -inf }
 0x903   : > { %1164 = vmax.xlane.f32.xlu1 %v1163_v34 }
 0x914   : > { %1274 = vrot.lane.b32.xlu1 %v3041_v9, %s2686_s13 }
 0x990   : > { %v1165_v35 = vpop.xlane.xlu1 %1164 }
 0x991   : > { %v1166_v36 = vsub.f32 %v1158_v30, %v1165_v35 }
 0x993   : > { %v1167_v37 = vmul.f32 1.442695, %v1166_v36 }
 0x994   : > { %v1275_v39 = vpop.permute.xlu1 %1274 }
 0x995   : > { %2351 = vpow2.f32 %v1167_v37  ;;  %v1280_v42 = vsel %vm468_vm3, %v1275_v39, 0 }
 0x99f   : > { %v2352_v38 = vpop.eup %2351 }
 0x9a0   : > { %v1169_v40 = vsel %vm515_vm5, %v2352_v38, 0.0  ;;  %v1172_v41 = vpack.c.bf16 %v2352_v38, %v2352_v38 }
 0x9a1   : > { %1170 = vadd.xlane.f32.xlu1 %v1169_v40 }
 0x9a2   : > { %2131 = vmatmul.mubr.msk.bf16.vlgmr.msra.gmra.mrb[28].mxu0 %vm515_vm5, %v1172_v41 }
 0x9a3   : > { %2141 = vmatpush3.bf16.xpose.msra.mxu0 %v1280_v42  ;;  %2142 = vmatprep.mubr.msk.bf16.mxu0 %vm2670_vm0, %v2669_v0 }
 0x9a4   : > { %2152 = vmatprep.subr.bf16.mxu0 %v2669_v0 }
 0x9aa   : > { %2143 = vmatmul.mubr.msk.bf16.vlgmr.msra.gmra.mrb[32].mxu0 %vm468_vm3, %v1273_v43 }
 0x9ab   : > { %2154 = vmatprep.mubr.msk.bf16.mxu0 %vm2670_vm0, %v2669_v0  ;;  %2153 = vmatpush3.bf16.msra.mxu0 %v1392_v24 }
 0x9ac   : > { %2164 = vmatprep.subr.bf16.mxu0 %v2669_v0 }
 0x9b2   : > { %1437 = vrot.lane.b32.xlu1 %v3041_v9, %s2687_s10  ;;  %s3219_s10 = scalar_lea.hbm %s3271_s8, %s1988_s25 }
 0x9b6   : > { %1435 = vrot.lane.b32.xlu1 %v3046_v12, %s2688_s23  ;;  %s1792_s23 = scalar_lea.sflag [#allocation6], %s3005_s26 }
 0x9cf   : > { %v1106_v44 = vpop.f32.mrb[24].mxu0 }
 0x9d0   : > { %v1112_v45 = vadd.f32 %v1106_v44, %v949_v10  ;;  %v2120_v46 = vpop.f32.mrb[25].mxu0 }
 0x9d1   : > { %v1109_v47 = vpop.f32.mrb[26].mxu0 }
 0x9d2   : > { %v2121_v48 = vpop.f32.mrb[27].mxu0 }
 0xa2e   : > { %v1171_v51 = vpop.xlane.xlu1 %1170 }
 0xa2f   : > { %2353 = vrcp.f32 %v1171_v51 }
 0xa32   : > { %v1438_v10 = vpop.permute.xlu1 %1437 }
 0xa33   : > { %v1443_v14 = vsel %vm468_vm3, %v1438_v10, 0 }
 0xa36   : > { %v1436_v15 = vpop.permute.xlu1 %1435 }
 0xa39   : > { %v2354_v52 = vpop.eup %2353 }
 0xa75   : > { %v1215_v53 = vpop.f32.mrb[28].mxu0 }
 0xa76   : > { %v1222_v54 = vmul.f32 %v2354_v52, %v1215_v53  ;;  %v2132_v55 = vpop.f32.mrb[29].mxu0 }
 0xa77   : > { %v1218_v56 = vpop.f32.mrb[30].mxu0 }
 0xa78   : > { %v1223_v57 = vpack.c.bf16 %v1222_v54, %v1222_v54  ;;  %v2133_v58 = vpop.f32.mrb[31].mxu0  ;;  %v1546_v54 = vld [vmem:[#allocation10 + $0xc] sm:$0x3] }
 0xa79   : > { %v1551_v55 = vsel %vm582_vm6, %v1546_v54, 0 }
 0xa7a   : > { %2137 = vmatmul.mubr.msk.bf16.vlgmr.msra.gmra.mrb[28].mxu1 %vm468_vm3, %v1223_v57 }
 0xa7b   : > { %2148 = vmatprep.mubr.msk.bf16.mxu1 %vm2670_vm0, %v2669_v0 }
 0xa7d   : > { %v1316_v59 = vpop.f32.mrb[32].mxu0 }
 0xa7e   : > { %v1317_v60 = vadd.f32 %v1316_v59, %v3058_v20  ;;  %v2144_v61 = vpop.f32.mrb[33].mxu0 }
 0xa7f   : > { %v1319_v62 = vpop.f32.mrb[34].mxu0 }
 0xa80   : > { %v2145_v63 = vpop.f32.mrb[35].mxu0  ;;  %v1322_v1 = vsel %vm515_vm5, %v1317_v60, -inf }
 0xa81   : > { %1323 = vmax.xlane.f32.xlu0 %v1322_v1 }
 0xa97   : > { %1332 = vrot.lane.b32.xlu0 %v3041_v9, %s2689_s19  ;;  %s2577_s19 = scalar_lea.vmem %s3221_s0, 64 }
 0xa98   : > { %p2578_p9 = scmp.ne.s32.totalorder %s3221_s0, %s2577_s19 }
 0xa9a   : > { %p2579_p1 = pnand %p2578_p9, %p3291_p12 }
 0xa9c   : > { %p2580_p2 = pneg %p2579_p1 }
 0xb0e   : > { %v1324_v2 = vpop.xlane.xlu0 %1323 }
 0xb0f   : > { %v1325_v4 = vsub.f32 %v1317_v60, %v1324_v2 }
 0xb11   : > { %v1326_v5 = vmul.f32 1.442695, %v1325_v4 }
 0xb12   : > { %v1333_v6 = vpop.permute.xlu0 %1332 }
 0xb13   : > { %2355 = vpow2.f32 %v1326_v5  ;;  %v1338_v7 = vsel %vm531_vm2, %v1333_v6, 0 }
 0xb14   : > { %2147 = vmatpush3.bf16.msra.mxu1 %v1338_v7 }
 0xb15   : > { %2158 = vmatprep.subr.bf16.mxu1 %v2669_v0 }
 0xb1d   : > { %v2356_v8 = vpop.eup %2355 }
 0xb1e   : > { %v1328_v11 = vsel %vm515_vm5, %v2356_v8, 0.0  ;;  %v1331_v13 = vpack.c.bf16 %v2356_v8, %v2356_v8 }
 0xb1f   : > { %1329 = vadd.xlane.f32.xlu0 %v1328_v11 }
 0xb20   : > { %2149 = vmatmul.mubr.msk.bf16.vlgmr.msra.gmra.mrb[32].mxu1 %vm515_vm5, %v1331_v13 }
 0xb21   : > { %2159 = vmatpush3.bf16.xpose.msra.mxu1 %v1443_v14  ;;  %2160 = vmatprep.mubr.msk.bf16.mxu1 %vm2670_vm0, %v2669_v0 }
 0xb22   : > { %2170 = vmatprep.subr.bf16.mxu1 %v2669_v0 }
 0xb28   : > { %2161 = vmatmul.mubr.msk.bf16.vlgmr.msra.gmra.mrb[36].mxu1 %vm468_vm3, %v1436_v15 }
 0xb29   : > { %2172 = vmatprep.mubr.msk.bf16.mxu1 %vm2670_vm0, %v2669_v0  ;;  %2171 = vmatpush3.bf16.msra.mxu1 %v1551_v55 }
 0xb2a   : > { %2182 = vmatprep.subr.bf16.mxu1 %v2669_v0 }
 0xb35   : > { %1495 = vrot.lane.b32.xlu0 %v3041_v9, %s2690_s11  ;;  %s2583_s11 = scalar_lea.vmem %s2582_s30, 128 }
 0xb36   : > { %p2585_p6 = scmp.lt.s32.totalorder %s2583_s11, %s2577_s19 }
 0xb38   : > { %p2586_p5 = por %p2585_p6, %p2584_p4 }
 0xb39   : > { %1594 = vrot.lane.b32.xlu0 %v3046_v12, %s2691_s28 }
 0xb3a   : > { %p2587_p3 = pnand %p2586_p5, %p2580_p2 }
 0xb4d   : > { %v1265_v16 = vpop.f32.mrb[28].mxu1 }
 0xb4e   : > { %v1271_v17 = vadd.f32 %v1265_v16, %v1112_v45  ;;  %v2138_v18 = vpop.f32.mrb[29].mxu1  ;;  %v2334_v16 = vld [vmem:[#allocation10 + $0xc] ss:$0 sps:$4 sm:$0xcc]  }
 0xb4f   : > { %v1268_v19 = vpop.f32.mrb[30].mxu1 }
 0xb50   : > { %v2139_v21 = vpop.f32.mrb[31].mxu1 }
 0xbac   : > { %v1330_v25 = vpop.xlane.xlu0 %1329 }
 0xbad   : > { %2357 = vrcp.f32 %v1330_v25 }
 0xbb0   : > { %v1496_v30 = vpop.permute.xlu0 %1495 }
 0xbb1   : > { %v1501_v33 = vsel %vm531_vm2, %v1496_v30, 0 }
 0xbb4   : > { %v1595_v48 = vpop.permute.xlu0 %1594 }
 0xbb7   : > { %v2358_v26 = vpop.eup %2357 }
 0xbf3   : > { %v1374_v27 = vpop.f32.mrb[32].mxu1 }
 0xbf4   : > { %v1381_v28 = vmul.f32 %v2358_v26, %v1374_v27  ;;  %v2150_v29 = vpop.f32.mrb[33].mxu1 }
 0xbf5   : > { %v1377_v12 = vpop.f32.mrb[34].mxu1 }
 0xbf6   : > { %v1382_v31 = vpack.c.bf16 %v1381_v28, %v1381_v28  ;;  %v2151_v32 = vpop.f32.mrb[35].mxu1 }
 0xbf8   : > { %2155 = vmatmul.mubr.msk.bf16.vlgmr.msra.gmra.mrb[36].mxu0 %vm468_vm3, %v1382_v31  ;;  %v380_v31 = vunpack.c.l.bf16 %v3034_v3 }
 0xbf9   : > { %2165 = vmatpush3.bf16.msra.mxu0 %v1501_v33  ;;  %2166 = vmatprep.mubr.msk.bf16.mxu0 %vm2670_vm0, %v2669_v0 }
 0xbfa   : > { %2176 = vmatprep.subr.bf16.mxu0 %v2669_v0 }
 0xbfb   : > { %v1479_v34 = vpop.f32.mrb[36].mxu1 }
 0xbfc   : > { %v1480_v35 = vadd.f32 %v1479_v34, %v3058_v20  ;;  %v2162_v36 = vpop.f32.mrb[37].mxu1 }
 0xbfd   : > { %v1482_v37 = vpop.f32.mrb[38].mxu1 }
 0xbfe   : > { %v2163_v38 = vpop.f32.mrb[39].mxu1  ;;  %v1485_v39 = vsel %vm515_vm5, %v1480_v35, -inf }
 0xbff   : > { %1486 = vmax.xlane.f32.xlu1 %v1485_v39 }
 0xc10   : > { %1596 = vrot.lane.b32.xlu1 %v3041_v9, %s2692_s29 }
 0xc8c   : > { %v1487_v40 = vpop.xlane.xlu1 %1486 }
 0xc8d   : > { %v1488_v41 = vsub.f32 %v1480_v35, %v1487_v40 }
 0xc8f   : > { %v1489_v42 = vmul.f32 1.442695, %v1488_v41 }
 0xc90   : > { %v1597_v44 = vpop.permute.xlu1 %1596 }
 0xc91   : > { %2359 = vpow2.f32 %v1489_v42  ;;  %v1602_v47 = vsel %vm468_vm3, %v1597_v44, 0 }
 0xc9b   : > { %v2360_v43 = vpop.eup %2359 }
 0xc9c   : > { %v1491_v45 = vsel %vm515_vm5, %v2360_v43, 0.0  ;;  %v1494_v46 = vpack.c.bf16 %v2360_v43, %v2360_v43 }
 0xc9d   : > { %1492 = vadd.xlane.f32.xlu1 %v1491_v45 }
 0xc9e   : > { %2167 = vmatmul.mubr.msk.bf16.vlgmr.msra.gmra.mrb[40].mxu0 %vm515_vm5, %v1494_v46 }
 0xc9f   : > { %2177 = vmatpush3.bf16.xpose.msra.mxu0 %v1602_v47  ;;  %2178 = vmatprep.mubr.msk.bf16.mxu0 %vm2670_vm0, %v2669_v0  ;;  %v1985_v47 = vld [vmem:[#allocation13] ss:$0 sm:$0xff] }
 0xca0   : > { %2188 = vmatprep.subr.bf16.mxu0 %v2669_v0 }
 0xca6   : > { %2179 = vmatmul.mubr.msk.bf16.vlgmr.msra.gmra.mrb[44].mxu0 %vm468_vm3, %v1595_v48 }
 0xca7   : > { %2190 = vmatprep.mubr.msk.bf16.mxu0 %vm2670_vm0, %v2669_v0 }
 0xccb   : > { %v1428_v49 = vpop.f32.mrb[36].mxu0 }
 0xccc   : > { %v1434_v50 = vadd.f32 %v1428_v49, %v1271_v17  ;;  %v2156_v51 = vpop.f32.mrb[37].mxu0  ;;  %v1709_v17 = vrot.slane %v2334_v16, 2  ;;  %v1986_v49 = vld [vmem:[#allocation15] ss:$0 sm:$0xff] }
 0xccd   : > { %v1431_v52 = vpop.f32.mrb[38].mxu0 }
 0xcce   : > { %v2157_v53 = vpop.f32.mrb[39].mxu0  ;;  %v1714_v18 = vsel %vm582_vm6, %v1709_v17, 0 }
 0xccf   : > { %2189 = vmatpush3.bf16.msra.mxu0 %v1714_v18 }
 0xd2a   : > { %v1493_v56 = vpop.xlane.xlu1 %1492 }
 0xd2b   : > { %2361 = vrcp.f32 %v1493_v56 }
 0xd35   : > { %v2362_v57 = vpop.eup %2361 }
 0xd71   : > { %v1537_v58 = vpop.f32.mrb[40].mxu0 }
 0xd72   : > { %v1544_v59 = vmul.f32 %v2362_v57, %v1537_v58  ;;  %v2168_v60 = vpop.f32.mrb[41].mxu0 }
 0xd73   : > { %v1540_v61 = vpop.f32.mrb[42].mxu0 }
 0xd74   : > { %v1545_v62 = vpack.c.bf16 %v1544_v59, %v1544_v59  ;;  %v2169_v63 = vpop.f32.mrb[43].mxu0 }
 0xd76   : > { %2173 = vmatmul.mubr.msk.bf16.vlgmr.msra.gmra.mrb[40].mxu1 %vm468_vm3, %v1545_v62 }
 0xd77   : > { %2184 = vmatprep.mubr.msk.bf16.mxu1 %vm2670_vm0, %v2669_v0 }
 0xd79   : > { %v1638_v1 = vpop.f32.mrb[44].mxu0 }
 0xd7a   : > { %v1639_v2 = vadd.f32 %v1638_v1, %v3058_v20  ;;  %v2180_v4 = vpop.f32.mrb[45].mxu0 }
 0xd7b   : > { %v1641_v5 = vpop.f32.mrb[46].mxu0 }
 0xd7c   : > { %v2181_v6 = vpop.f32.mrb[47].mxu0  ;;  %v1644_v7 = vsel %vm515_vm5, %v1639_v2, -inf }
 0xd7d   : > { %1645 = vmax.xlane.f32.xlu0 %v1644_v7 }
 0xd93   : > { %1654 = vrot.lane.b32.xlu0 %v3041_v9, %s2693_s12 }
 0xe0a   : > { %v1646_v8 = vpop.xlane.xlu0 %1645 }
 0xe0b   : > { %v1647_v10 = vsub.f32 %v1639_v2, %v1646_v8 }
 0xe0d   : > { %v1648_v11 = vmul.f32 1.442695, %v1647_v10 }
 0xe0e   : > { %v1655_v13 = vpop.permute.xlu0 %1654 }
 0xe0f   : > { %2363 = vpow2.f32 %v1648_v11  ;;  %v1660_v14 = vsel %vm531_vm2, %v1655_v13, 0 }
 0xe10   : > { %2183 = vmatpush3.bf16.msra.mxu1 %v1660_v14 }
 0xe19   : > { %v2364_v0 = vpop.eup %2363 }
 0xe1a   : > { %v1650_v20 = vsel %vm515_vm5, %v2364_v0, 0.0  ;;  %v1653_v15 = vpack.c.bf16 %v2364_v0, %v2364_v0 }
 0xe1b   : > { %1651 = vadd.xlane.f32.xlu1 %v1650_v20 }
 0xe1c   : > { %2185 = vmatmul.mubr.msk.bf16.vlgmr.msra.gmra.mrb[44].mxu1 %vm515_vm5, %v1653_v15 }
 0xe49   : > { %v1587_v9 = vpop.f32.mrb[40].mxu1 }
 0xe4a   : > { %v1593_v19 = vadd.f32 %v1587_v9, %v1434_v50  ;;  %v2174_v21 = vpop.f32.mrb[41].mxu1 }
 0xe4b   : > { %v1590_v22 = vpop.f32.mrb[42].mxu1 }
 0xe4c   : > { %v2175_v23 = vpop.f32.mrb[43].mxu1 }
 0xea8   : > { %v1652_v24 = vpop.xlane.xlu1 %1651 }
 0xea9   : > { %2365 = vrcp.f32 %v1652_v24 }
 0xeb3   : > { %v2366_v25 = vpop.eup %2365 }
 0xeef   : > { %v1696_v26 = vpop.f32.mrb[44].mxu1 }
 0xef0   : > { %v1703_v27 = vmul.f32 %v2366_v25, %v1696_v26  ;;  %v2186_v28 = vpop.f32.mrb[45].mxu1 }
 0xef1   : > { %v1699_v29 = vpop.f32.mrb[46].mxu1 }
 0xef2   : > { %v1704_v30 = vpack.c.bf16 %v1703_v27, %v1703_v27  ;;  %v2187_v12 = vpop.f32.mrb[47].mxu1 }
 0xef4   : > { %2191 = vmatmul.mubr.msk.bf16.vlgmr.msra.gmra.mrb[48].mxu0 %vm468_vm3, %v1704_v30 }
 0xfc7   : > { %v1750_v32 = vpop.f32.mrb[48].mxu0 }
 0xfc8   : > { %v1756_v33 = vadd.f32 %v1750_v32, %v1593_v19  ;;  %v2192_v34 = vpop.f32.mrb[49].mxu0 }
 0xfc9   : > { %v1753_v35 = vpop.f32.mrb[50].mxu0 }
 0xfca   : > { %v2193_v36 = vpop.f32.mrb[51].mxu0  ;;  %v1757_v37 = vadd.f32 %v1756_v33, %v380_v31 }
 0xfcc   : > { %v1760_v38 = vsel %vm404_vm1, %v1757_v37, 0.0 }
 0xfcd   : > { %1761 = vadd.xlane.f32.xlu1 %v1760_v38 }
0x105a   : > { %v1762_v39 = vpop.xlane.xlu1 %1761 }
0x105b   : > { %v1764_v40 = vmul.f32 0.03125, %v1762_v39 }
0x105d   : > { %v1765_v41 = vsub.f32 %v1757_v37, %v1764_v40 }
0x105f   : > { %v1766_v42 = vmul.f32 %v1765_v41, %v1765_v41 }
0x1061   : > { %v1767_v43 = vsel %vm404_vm1, %v1766_v42, 0.0 }
0x1062   : > { %1768 = vadd.xlane.f32.xlu1 %v1767_v43 }
0x10ef   : > { %v1769_v44 = vpop.xlane.xlu1 %1768 }
0x10f0   : > { %v1770_v3 = vmul.f32 0.03125, %v1769_v44 }
0x10f2   : > { %v1771_v45 = vadd.f32 1e-05, %v1770_v3 }
0x10f4   : > { %2367 = vrsqrt.f32 %v1771_v45 }
0x10fe   : > { %v2368_v46 = vpop.eup %2367 }
0x10ff   : > { %v1773_v48 = vmul.f32 %v2368_v46, %v1765_v41 }
0x1101   : > { %v1780_v50 = vmul.f32 %v1985_v47, %v1773_v48 }
0x1103   : > { %v1787_v51 = vadd.f32 %v1986_v49, %v1780_v50 }
0x1105   : > { %v1788_v52 = vpack.c.bf16 %v1787_v51, %v1787_v51 }
0x1107   : > { %1790 = vst.msk [vmem:[%s377_s21] sm:$0xf] %vm1789_vm7, %v1788_v52 }
0x1108   : > { %2590 = shalt.err (!%p2587_p3)
}
0x1109   : > { %s2591_s26 = scalar_lea.hbm %s3219_s10, 64  ;;  %s2595_s12 = scalar_lea.hbm %s3271_s8, 128 }
0x110a   : > { %p2592_p7 = scmp.ne.s32.totalorder %s3219_s10, %s2591_s26  ;;  %p2596_p11 = scmp.lt.u32.totalorder %s3219_s10, %s3271_s8 }
0x110b   : > { %p2597_p8 = scmp.lt.u32.totalorder %s2595_s12, %s2591_s26  ;;  %p2599_p9 = scmp.lt.u32.totalorder %s2591_s26, %s3219_s10 }
0x110c   : > { %p2593_p13 = pnand %p2592_p7, %p3291_p12 }
0x110d   : > { %p2598_p10 = por %p2597_p8, %p2596_p11 }
0x110e   : > { %p2594_p0 = pneg %p2593_p13 }
0x110f   : > { %p2600_p1 = por %p2599_p9, %p2598_p10 }
0x1111   : > { %p2601_p2 = pnand %p2600_p1, %p2594_p0 }
0x1113   : > { %2604 = shalt.err (!%p2601_p2)
}
0x1114   : > { %2220 = dma.vmem_to_hbm [thread:$0]  (%p3291_p12), %s3221_s0, 64, %s3219_s10, %s1792_s23  }
0x1115 PF: > { %s1817_s9 = sand.u32 1, %s2645_s15   ;;  %p3292_p4 = scmp.ne.s32.totalorder %s3282_s27, 0 }
0x1116   : > { %p3293_p6 = scmp.ge.s32.totalorder %s2657_s18, 2  ;;  %s1818_s13 = scalar_lea.sflag [#allocation6], %s1817_s9 }
0x1118   : > { %p2246_p5 = pnand %p3293_p6, %p3292_p4 }
0x111a   : > { %2640 = dma.done.wait (!%p2246_p5), %s1818_s13, 64  }
0x111b   : > { %2642 = vsyncadd (!%p2246_p5), %s1818_s13, 4294967232  ;;  %p28_p3 = scmp.ge.s32.totalorder %s2929_s24, 4   ;;  %s3294_s15 = smov %s2649_s16 }
0x111c   : > { %s3295_s16 = smov %s2653_s17  ;;  %s3296_s17 = smov %s2940_s14 }
0x111d   : > { %s3297_s18 = smov %s2929_s24  ;;  %30 = sbr.rel (!%p28_p3) target bundleno = 20 (0x14), region = 117 }
0x1124   :  { %1823 = vsyncpa [#allocation5], 1 }
0x1125   :  { %1825 = vsyncpa [#allocation5 + $0x1], 1 }
0x1126   :  { %1826 = vsyncpa [#allocation8], 1 }
0x1127   :  { %1827 = vsyncpa [#allocation11], 1 }
0x1128   :  { %1828 = vsyncpa [#allocation14], 1 }
0x1129   :  { %1829 = vsyncpa [#allocation6], 1 }
0x112a   :  { %1831 = vsyncpa [#allocation6 + $0x1], 1 }

</bundles_post_ra>
